<compile_context>
chip_gen: v7x
topology: tpu7x:2x2x1
jax: 0.10.0
libtpu: 0.0.40
codegen_flags: <defaults>
</compile_context>

<pallas_src>
import functools

import numpy as np
import jax
import jax.numpy as jnp
from jax import lax
from jax.experimental import pallas as pl
from jax.experimental.pallas import tpu as pltpu


# ------------- Conv3x3 (stride 1, pad 1) + folded BN (eval) + ReLU + MaxPool 2x2 -------------

def _pooled_rows_per_step(Wo, Cout, rows_per_grid):
    """Pooled rows per inner iteration; keeps the f32 [2P*Wo, 2*Cout] accumulator ~16 vregs
    (lane-padded accounting: a <128-lane f32 value still costs a full vreg per 8 rows)."""
    lane_groups = max(1, (2 * Cout + 127) // 128)
    m_max = 128 // lane_groups
    P = max(1, min(rows_per_grid, m_max // (2 * Wo)))
    while rows_per_grid % P:
        P -= 1
    return P


def _make_conv_pool_kernel(P, n_sub, fold_dy):
    def kernel(x_ref, w_ref, b_ref, o_ref):
        # x_ref: [1, H+2, Wo+1, 2*Cin] bf16  whole padded image, column pairs packed on lanes
        # w_ref: [3, 4*Cin, 2*Cout] bf16  (or [12*Cin, 2*Cout] when dy is folded), BN folded
        # b_ref: [1, Cout] f32             folded BN bias
        # o_ref: [1, PG, Wo, Cout] bf16    PG = n_sub*P pooled rows for this grid step
        _, PG, Wo, Cout = o_ref.shape
        R = 2 * P                           # conv rows per inner step
        M = R * Wo
        row0 = pl.program_id(1) * 2 * PG    # first padded input row of this grid step
        bias = b_ref[...]                   # hoisted out of the group loop

        def sub(s, carry):
            r0 = row0 + s * R
            if fold_dy:                      # layer 1: one dot, K = 12*Cin, N = 2*Cout
                pieces = []
                for dy in range(3):
                    rows = x_ref[0, pl.ds(r0 + dy, R), :, :]          # [R, Wo+1, 2Cin]
                    pieces += [rows[:, :Wo, :], rows[:, 1:, :]]
                patch = jnp.concatenate(pieces, axis=-1)              # [R, Wo, 12*Cin]
                acc = jnp.dot(patch.reshape(M, patch.shape[-1]), w_ref[...],
                              preferred_element_type=jnp.float32)     # [M, 2*Cout] f32
            else:                            # layers 2/3: 3 dots, K = 4*Cin, N = 2*Cout
                acc = jnp.zeros((M, 2 * Cout), jnp.float32)
                for dy in range(3):
                    rows = x_ref[0, pl.ds(r0 + dy, R), :, :]          # [R, Wo+1, 2Cin]
                    quad = jnp.concatenate([rows[:, :Wo, :], rows[:, 1:, :]], axis=-1)
                    acc = acc + jnp.dot(quad.reshape(M, quad.shape[-1]), w_ref[dy],
                                        preferred_element_type=jnp.float32)
            # 2x2 max-pool before bias+ReLU (both maps are monotone, so order is equivalent)
            colmax = jnp.maximum(acc[:, :Cout], acc[:, Cout:])        # even/odd column-pair max
            for p in range(P):                                        # row-pair max + epilogue
                rp = jnp.maximum(colmax[(2 * p) * Wo:(2 * p + 1) * Wo, :],
                                 colmax[(2 * p + 1) * Wo:(2 * p + 2) * Wo, :])
                o_ref[0, s * P + p, :, :] = jnp.maximum(rp + bias, 0.0).astype(o_ref.dtype)
            return carry

        lax.fori_loop(0, n_sub, sub, 0)

    return kernel


def conv_bn_relu_pool(x, w_pair, bias):
    """x: [B, H, W, Cin] bf16 NHWC (Cin multiple of 8);
    w_pair: [3, 4*Cin, 2*Cout] (or [12*Cin, 2*Cout]) bf16; bias: [1, Cout] f32."""
    B, H, W, Cin = x.shape
    Cout = w_pair.shape[-1] // 2
    Ho, Wo = H // 2, W // 2
    fold_dy = (w_pair.ndim == 2)
    G = next(g for g in (4, 2, 1) if Ho % g == 0)       # outer row groups per batch
    PG = Ho // G
    P = _pooled_rows_per_step(Wo, Cout, PG)
    n_sub = PG // P
    xp = jnp.pad(x, ((0, 0), (1, 1), (1, 1), (0, 0)))   # SAME padding
    xq = xp.reshape(B, H + 2, Wo + 1, 2 * Cin)          # free row-major column-pair repack
    return pl.pallas_call(
        _make_conv_pool_kernel(P, n_sub, fold_dy),
        out_shape=jax.ShapeDtypeStruct((B, Ho, Wo, Cout), jnp.bfloat16),
        grid_spec=pltpu.PrefetchScalarGridSpec(
            num_scalar_prefetch=0,
            grid=(B, G),
            in_specs=[
                pl.BlockSpec((1, H + 2, Wo + 1, 2 * Cin), lambda b, g: (b, 0, 0, 0)),
                pl.BlockSpec(w_pair.shape, lambda b, g: (0,) * w_pair.ndim),
                pl.BlockSpec((1, Cout), lambda b, g: (0, 0)),
            ],
            out_specs=pl.BlockSpec((1, PG, Wo, Cout), lambda b, g: (b, g, 0, 0)),
        ),
        compiler_params=pltpu.CompilerParams(
            dimension_semantics=("parallel", "parallel")),
    )(xq, w_pair, bias)


# -------------------- fc1 (bf16 weight stream, hidden split in two) + ReLU + fc2 --------------------

def _mlp_kernel(x_ref, w1_ref, b1_ref, w2_ref, o_ref, acc_ref):
    k = pl.program_id(1)

    @pl.when(k == 0)
    def _():
        acc_ref[...] = jnp.zeros_like(acc_ref)

    acc_ref[...] += jnp.dot(x_ref[...], w1_ref[...], preferred_element_type=jnp.float32)

    @pl.when(k == pl.num_programs(1) - 1)
    def _():
        h = jnp.maximum(acc_ref[...] + b1_ref[...], 0.0)       # this core's half of fc1 + ReLU
        o_ref[0, :, :] = jnp.dot(h, w2_ref[...],
                                 preferred_element_type=jnp.float32).astype(o_ref.dtype)


def mlp_head(x, w1, b1, w2, *, block_k=8192):
    """fc1(+ReLU)+fc2: w1 is streamed over K in large blocks; the N1=512 hidden dim is split
    along the leading 'parallel' grid axis (two partial-logit slots summed outside)."""
    M, K = x.shape
    N1 = w1.shape[1]
    N2 = w2.shape[1]
    assert K % block_k == 0 and N1 % 2 == 0
    Nh = N1 // 2
    parts = pl.pallas_call(
        _mlp_kernel,
        out_shape=jax.ShapeDtypeStruct((2, M, N2), jnp.float32),
        grid_spec=pltpu.PrefetchScalarGridSpec(
            num_scalar_prefetch=0,
            grid=(2, K // block_k),
            in_specs=[
                pl.BlockSpec((M, block_k), lambda c, k: (0, k)),
                pl.BlockSpec((block_k, Nh), lambda c, k: (k, c)),
                pl.BlockSpec((1, Nh), lambda c, k: (0, c)),
                pl.BlockSpec((Nh, N2), lambda c, k: (c, 0)),
            ],
            out_specs=pl.BlockSpec((1, M, N2), lambda c, k: (c, 0, 0)),
            scratch_shapes=[pltpu.VMEM((M, Nh), jnp.float32)],
        ),
        compiler_params=pltpu.CompilerParams(
            dimension_semantics=("parallel", "arbitrary"),
            vmem_limit_bytes=32 * 1024 * 1024),
    )(x, w1, b1, w2)
    return parts[0] + parts[1]


# ----------------------------------- Model parameters -----------------------------------

def init_params(key, num_classes=10):
    ks = iter(jax.random.split(key, 24))

    def conv_block(cin, cout):
        w = jax.random.normal(next(ks), (3, 3, cin, cout), jnp.float32) / np.sqrt(9.0 * cin)
        b = 0.1 * jax.random.normal(next(ks), (cout,), jnp.float32)
        gamma = 1.0 + 0.1 * jax.random.normal(next(ks), (cout,), jnp.float32)
        beta = 0.1 * jax.random.normal(next(ks), (cout,), jnp.float32)
        mean = 0.05 * jax.random.normal(next(ks), (cout,), jnp.float32)
        var = 1.0 + 0.1 * jax.random.uniform(next(ks), (cout,), jnp.float32)
        return dict(w=w, b=b, gamma=gamma, beta=beta, mean=mean, var=var)

    convs = [conv_block(3, 32), conv_block(32, 64), conv_block(64, 128)]
    w_fc1 = jax.random.normal(next(ks), (128 * 16 * 16, 512), jnp.float32) / np.sqrt(128 * 16 * 16)
    b_fc1 = 0.1 * jax.random.normal(next(ks), (512,), jnp.float32)
    w_fc2 = jax.random.normal(next(ks), (512, num_classes), jnp.float32) / np.sqrt(512.0)
    b_fc2 = 0.1 * jax.random.normal(next(ks), (num_classes,), jnp.float32)
    return dict(convs=convs, w_fc1=w_fc1, b_fc1=b_fc1, w_fc2=w_fc2, b_fc2=b_fc2)


def prepare_params(params, eps=1e-5):
    """One-time packing: fold eval-mode BN into conv weights/bias, pad Cin to 8, pack the
    even/odd-column tap sets along N ([3, 4*Cin, 2*Cout], dy folded into K when 12*Cin<=128),
    cast to bf16; permute fc1 rows to NHWC flatten order (bf16), pad fc2's N to 128."""
    convs = []
    for blk in params["convs"]:
        scale = blk["gamma"] / jnp.sqrt(blk["var"] + eps)
        bias = blk["beta"] + (blk["b"] - blk["mean"]) * scale
        w = blk["w"] * scale                                   # fold BN scale into the taps
        cin, cout = w.shape[2], w.shape[3]
        cin_p = ((cin + 7) // 8) * 8
        if cin_p != cin:
            w = jnp.pad(w, ((0, 0), (0, 0), (0, cin_p - cin), (0, 0)))
        z = jnp.zeros((3, 1, cin_p, cout), w.dtype)
        w_pair = jnp.concatenate(
            [jnp.concatenate([w, z], axis=1),                  # even cols: dx slots 0..2
             jnp.concatenate([z, w], axis=1)],                 # odd  cols: dx slots 1..3
            axis=-1).reshape(3, 4 * cin_p, 2 * cout)
        if 12 * cin_p <= 128:                                  # fold dy into K (layer 1)
            w_pair = w_pair.reshape(12 * cin_p, 2 * cout)
        convs.append(dict(w=w_pair.astype(jnp.bfloat16), bias=bias.reshape(1, cout)))
    C, Hs, Ws = 128, 16, 16                                    # conv3 output is [B, 16, 16, 128]
    w1 = jnp.transpose(params["w_fc1"].reshape(C, Hs, Ws, -1), (1, 2, 0, 3))
    w1 = w1.reshape(C * Hs * Ws, -1).astype(jnp.bfloat16)      # NHWC flatten order, bf16 stream
    n2 = params["w_fc2"].shape[1]
    pad_n = 128 - n2
    w2 = jnp.pad(params["w_fc2"], ((0, 0), (0, pad_n)))
    b2 = jnp.pad(params["b_fc2"], ((0, pad_n),))
    return dict(convs=convs, w1=w1, b1=params["b_fc1"].reshape(1, -1),
                w2=w2, b2=b2.reshape(1, -1))


# ------------------------------------- Forward passes -------------------------------------

@functools.partial(jax.jit, static_argnames=("num_classes",))
def cnn_forward(prep, x_nchw, num_classes=10):
    # TODO(synk): BatchNorm runs in eval mode (running statistics folded into conv
    # weights/bias); train-mode batch statistics are not computed.
    x = jnp.transpose(x_nchw, (0, 2, 3, 1))                    # NCHW -> NHWC
    cpad = (-x.shape[-1]) % 8
    if cpad:
        x = jnp.pad(x, ((0, 0), (0, 0), (0, 0), (0, cpad)))    # zero-pad channels (no-op math)
    x = x.astype(jnp.bfloat16)
    for layer in prep["convs"]:
        x = conv_bn_relu_pool(x, layer["w"], layer["bias"])
    B = x.shape[0]
    x = x.reshape(B, -1)                                       # NHWC flatten (w1 pre-permuted)
    logits = mlp_head(x, prep["w1"], prep["b1"], prep["w2"]) + prep["b2"]
    return logits[:, :num_classes]


def reference_forward(params, x_nchw, eps=1e-5):
    x = x_nchw
    for blk in params["convs"]:
        scale = blk["gamma"] / jnp.sqrt(blk["var"] + eps)
        bias = blk["beta"] + (blk["b"] - blk["mean"]) * scale
        x = lax.conv_general_dilated(x, blk["w"], window_strides=(1, 1), padding="SAME",
                                     dimension_numbers=("NCHW", "HWIO", "NCHW"))
        x = x * scale[None, :, None, None] + bias[None, :, None, None]
        x = jnp.maximum(x, 0.0)
        x = lax.reduce_window(x, -jnp.inf, lax.max, (1, 1, 2, 2), (1, 1, 2, 2), "VALID")
    B = x.shape[0]
    x = x.reshape(B, -1)
    x = jnp.maximum(x @ params["w_fc1"] + params["b_fc1"], 0.0)
    return x @ params["w_fc2"] + params["b_fc2"]


if __name__ == "__main__":
    key = jax.random.PRNGKey(0)
    pkey, xkey = jax.random.split(key)
    params = init_params(pkey, num_classes=10)
    prep = prepare_params(params)
    # 128x128 spatial input is implied by the Linear(128*16*16, 512) layer (3 pools of /2).
    x = jax.random.normal(xkey, (2, 3, 128, 128), jnp.float32)

    out = jax.block_until_ready(cnn_forward(prep, x, num_classes=10))
    assert out.shape == (2, 10)

    ref = reference_forward(params, x)
    np.testing.assert_allclose(np.asarray(out), np.asarray(ref), rtol=5e-2, atol=5e-2)
    print("KERNEL_OK")
</pallas_src>

<mosaic_0001>
module attributes {stable_mosaic.version = 11 : i64} {
  func.func @kernel(%arg0: i32, %arg1: i32, %arg2: memref<1x130x65x16xbf16, #tpu.memory_space<vmem>>, %arg3: memref<96x64xbf16, #tpu.memory_space<vmem>>, %arg4: memref<1x32xf32, #tpu.memory_space<vmem>>, %arg5: memref<1x16x64x32xbf16, #tpu.memory_space<vmem>>) attributes {dimension_semantics = [#tpu.dimension_semantics<parallel>, #tpu.dimension_semantics<parallel>], iteration_bounds = array<i64: 2, 4>, scalar_prefetch = 0 : i64, scratch_operands = 0 : i64, tpu.core_type = #tpu.core_type<tc>, window_params = [{transform_indices = @transform_0, window_bounds = array<i64: 1, 130, 65, 16>}, {pipeline_mode = #tpu.pipeline_mode<synchronous>, transform_indices = @transform_1, window_bounds = array<i64: 96, 64>}, {pipeline_mode = #tpu.pipeline_mode<synchronous>, transform_indices = @transform_2, window_bounds = array<i64: 1, 32>}, {transform_indices = @transform_3, window_bounds = array<i64: 1, 16, 64, 32>}]} {
    %c2_i32 = arith.constant 2 : i32
    %0 = arith.muli %arg1, %c2_i32 : i32
    %c16_i32 = arith.constant 16 : i32
    %1 = arith.muli %0, %c16_i32 : i32
    %c0 = arith.constant 0 : index
    %c0_0 = arith.constant 0 : index
    %2 = vector.load %arg4[%c0, %c0_0] : memref<1x32xf32, #tpu.memory_space<vmem>>, vector<1x32xf32>
    %c0_i32 = arith.constant 0 : i32
    %c16_i32_1 = arith.constant 16 : i32
    %3 = arith.addi %c0_i32, %c16_i32_1 : i32
    %c1_i32 = arith.constant 1 : i32
    scf.for %arg6 = %c0_i32 to %3 step %c1_i32  : i32 {
      %c2_i32_3 = arith.constant 2 : i32
      %4 = arith.muli %arg6, %c2_i32_3 : i32
      %5 = arith.addi %1, %4 : i32
      %c0_i32_4 = arith.constant 0 : i32
      %6 = arith.addi %5, %c0_i32_4 : i32
      %c0_5 = arith.constant 0 : index
      %7 = arith.index_cast %6 : i32 to index
      %c0_6 = arith.constant 0 : index
      %c0_7 = arith.constant 0 : index
      %8 = vector.load %arg2[%c0_5, %7, %c0_6, %c0_7] : memref<1x130x65x16xbf16, #tpu.memory_space<vmem>>, vector<1x2x65x16xbf16>
      %9 = vector.shape_cast %8 : vector<1x2x65x16xbf16> to vector<2x65x16xbf16>
      %10 = vector.extract_strided_slice %9 {offsets = [0, 0, 0], sizes = [2, 64, 16], strides = [1, 1, 1]} : vector<2x65x16xbf16> to vector<2x64x16xbf16>
      %11 = vector.extract_strided_slice %9 {offsets = [0, 1, 0], sizes = [2, 64, 16], strides = [1, 1, 1]} : vector<2x65x16xbf16> to vector<2x64x16xbf16>
      %c1_i32_8 = arith.constant 1 : i32
      %12 = arith.addi %5, %c1_i32_8 : i32
      %c0_9 = arith.constant 0 : index
      %13 = arith.index_cast %12 : i32 to index
      %c0_10 = arith.constant 0 : index
      %c0_11 = arith.constant 0 : index
      %14 = vector.load %arg2[%c0_9, %13, %c0_10, %c0_11] : memref<1x130x65x16xbf16, #tpu.memory_space<vmem>>, vector<1x2x65x16xbf16>
      %15 = vector.shape_cast %14 : vector<1x2x65x16xbf16> to vector<2x65x16xbf16>
      %16 = vector.extract_strided_slice %15 {offsets = [0, 0, 0], sizes = [2, 64, 16], strides = [1, 1, 1]} : vector<2x65x16xbf16> to vector<2x64x16xbf16>
      %17 = vector.extract_strided_slice %15 {offsets = [0, 1, 0], sizes = [2, 64, 16], strides = [1, 1, 1]} : vector<2x65x16xbf16> to vector<2x64x16xbf16>
      %c2_i32_12 = arith.constant 2 : i32
      %18 = arith.addi %5, %c2_i32_12 : i32
      %c0_13 = arith.constant 0 : index
      %19 = arith.index_cast %18 : i32 to index
      %c0_14 = arith.constant 0 : index
      %c0_15 = arith.constant 0 : index
      %20 = vector.load %arg2[%c0_13, %19, %c0_14, %c0_15] : memref<1x130x65x16xbf16, #tpu.memory_space<vmem>>, vector<1x2x65x16xbf16>
      %21 = vector.shape_cast %20 : vector<1x2x65x16xbf16> to vector<2x65x16xbf16>
      %22 = vector.extract_strided_slice %21 {offsets = [0, 0, 0], sizes = [2, 64, 16], strides = [1, 1, 1]} : vector<2x65x16xbf16> to vector<2x64x16xbf16>
      %23 = vector.extract_strided_slice %21 {offsets = [0, 1, 0], sizes = [2, 64, 16], strides = [1, 1, 1]} : vector<2x65x16xbf16> to vector<2x64x16xbf16>
      %24 = tpu.concatenate %10, %11, %16, %17, %22, %23 in 2 : vector<2x64x16xbf16>, vector<2x64x16xbf16>, vector<2x64x16xbf16>, vector<2x64x16xbf16>, vector<2x64x16xbf16>, vector<2x64x16xbf16> -> vector<2x64x96xbf16>
      %25 = vector.shape_cast %24 : vector<2x64x96xbf16> to vector<128x96xbf16>
      %c0_16 = arith.constant 0 : index
      %c0_17 = arith.constant 0 : index
      %26 = vector.load %arg3[%c0_16, %c0_17] : memref<96x64xbf16, #tpu.memory_space<vmem>>, vector<96x64xbf16>
      %cst = arith.constant dense<0.000000e+00> : vector<128x64xf32>
      %27 = tpu.matmul %25, %26, %cst {dimension_numbers = #tpu.dot_dimension_numbers<[1], [0], [0], [1], [0, 0, 1, 1], [], []>} : vector<128x96xbf16>, vector<96x64xbf16>, vector<128x64xf32> -> vector<128x64xf32>
      %28 = vector.extract_strided_slice %27 {offsets = [0, 0], sizes = [128, 32], strides = [1, 1]} : vector<128x64xf32> to vector<128x32xf32>
      %29 = vector.extract_strided_slice %27 {offsets = [0, 32], sizes = [128, 32], strides = [1, 1]} : vector<128x64xf32> to vector<128x32xf32>
      %30 = arith.maximumf %28, %29 : vector<128x32xf32>
      %31 = vector.extract_strided_slice %30 {offsets = [0, 0], sizes = [64, 32], strides = [1, 1]} : vector<128x32xf32> to vector<64x32xf32>
      %32 = vector.extract_strided_slice %30 {offsets = [64, 0], sizes = [64, 32], strides = [1, 1]} : vector<128x32xf32> to vector<64x32xf32>
      %33 = arith.maximumf %31, %32 : vector<64x32xf32>
      %34 = vector.broadcast %2 : vector<1x32xf32> to vector<64x32xf32>
      %35 = arith.addf %33, %34 : vector<64x32xf32>
      %cst_18 = arith.constant 0.000000e+00 : f32
      %36 = vector.broadcast %cst_18 : f32 to vector<64x32xf32>
      %37 = arith.maximumf %35, %36 : vector<64x32xf32>
      %38 = arith.truncf %37 : vector<64x32xf32> to vector<64x32xbf16>
      %c1_i32_19 = arith.constant 1 : i32
      %39 = arith.muli %arg6, %c1_i32_19 : i32
      %c0_i32_20 = arith.constant 0 : i32
      %40 = arith.addi %39, %c0_i32_20 : i32
      %c0_21 = arith.constant 0 : index
      %41 = arith.index_cast %40 : i32 to index
      %c0_22 = arith.constant 0 : index
      %c0_23 = arith.constant 0 : index
      %42 = vector.load %arg5[%c0_21, %41, %c0_22, %c0_23] : memref<1x16x64x32xbf16, #tpu.memory_space<vmem>>, vector<1x1x64x32xbf16>
      %43 = vector.shape_cast %42 : vector<1x1x64x32xbf16> to vector<64x32xbf16>
      %44 = vector.shape_cast %38 : vector<64x32xbf16> to vector<1x1x64x32xbf16>
      tpu.vector_store %arg5[%c0_21, %41, %c0_22, %c0_23], %44 {strides = array<i32>} : memref<1x16x64x32xbf16, #tpu.memory_space<vmem>>, vector<1x1x64x32xbf16>,
    }
    %c16_i32_2 = arith.constant 16 : i32
    return
  }
  func.func @transform_0(%arg0: i32, %arg1: i32) -> (i32, i32, i32, i32) {
    %c0_i32 = arith.constant 0 : i32
    %c0_i32_0 = arith.constant 0 : i32
    %c0_i32_1 = arith.constant 0 : i32
    %c0_i32_2 = arith.constant 0 : i32
    return %arg0, %c0_i32, %c0_i32_0, %c0_i32_1 : i32, i32, i32, i32
  }
  func.func @transform_1(%arg0: i32, %arg1: i32) -> (i32, i32) {
    %c0_i32 = arith.constant 0 : i32
    %c0_i32_0 = arith.constant 0 : i32
    %c0_i32_1 = arith.constant 0 : i32
    return %c0_i32, %c0_i32_0 : i32, i32
  }
  func.func @transform_2(%arg0: i32, %arg1: i32) -> (i32, i32) {
    %c0_i32 = arith.constant 0 : i32
    %c0_i32_0 = arith.constant 0 : i32
    %c0_i32_1 = arith.constant 0 : i32
    return %c0_i32, %c0_i32_0 : i32, i32
  }
  func.func @transform_3(%arg0: i32, %arg1: i32) -> (i32, i32, i32, i32) {
    %c0_i32 = arith.constant 0 : i32
    %c0_i32_0 = arith.constant 0 : i32
    %c0_i32_1 = arith.constant 0 : i32
    return %arg0, %arg1, %c0_i32, %c0_i32_0 : i32, i32, i32, i32
  }
}

module attributes {stable_mosaic.version = 11 : i64} {
  func.func @kernel(%arg0: i32, %arg1: i32, %arg2: memref<1x66x33x64xbf16, #tpu.memory_space<vmem>>, %arg3: memref<3x128x128xbf16, #tpu.memory_space<vmem>>, %arg4: memref<1x64xf32, #tpu.memory_space<vmem>>, %arg5: memref<1x8x32x64xbf16, #tpu.memory_space<vmem>>) attributes {dimension_semantics = [#tpu.dimension_semantics<parallel>, #tpu.dimension_semantics<parallel>], iteration_bounds = array<i64: 2, 4>, scalar_prefetch = 0 : i64, scratch_operands = 0 : i64, tpu.core_type = #tpu.core_type<tc>, window_params = [{transform_indices = @transform_0, window_bounds = array<i64: 1, 66, 33, 64>}, {pipeline_mode = #tpu.pipeline_mode<synchronous>, transform_indices = @transform_1, window_bounds = array<i64: 3, 128, 128>}, {pipeline_mode = #tpu.pipeline_mode<synchronous>, transform_indices = @transform_2, window_bounds = array<i64: 1, 64>}, {transform_indices = @transform_3, window_bounds = array<i64: 1, 8, 32, 64>}]} {
    %c2_i32 = arith.constant 2 : i32
    %0 = arith.muli %arg1, %c2_i32 : i32
    %c8_i32 = arith.constant 8 : i32
    %1 = arith.muli %0, %c8_i32 : i32
    %c0 = arith.constant 0 : index
    %c0_0 = arith.constant 0 : index
    %2 = vector.load %arg4[%c0, %c0_0] : memref<1x64xf32, #tpu.memory_space<vmem>>, vector<1x64xf32>
    %c0_i32 = arith.constant 0 : i32
    %c4_i32 = arith.constant 4 : i32
    %3 = arith.addi %c0_i32, %c4_i32 : i32
    %c1_i32 = arith.constant 1 : i32
    scf.for %arg6 = %c0_i32 to %3 step %c1_i32  : i32 {
      %c4_i32_2 = arith.constant 4 : i32
      %4 = arith.muli %arg6, %c4_i32_2 : i32
      %5 = arith.addi %1, %4 : i32
      %cst = arith.constant 0.000000e+00 : f32
      %6 = vector.broadcast %cst : f32 to vector<128x128xf32>
      %c0_i32_3 = arith.constant 0 : i32
      %7 = arith.addi %5, %c0_i32_3 : i32
      %c0_4 = arith.constant 0 : index
      %8 = arith.index_cast %7 : i32 to index
      %c0_5 = arith.constant 0 : index
      %c0_6 = arith.constant 0 : index
      %9 = vector.load %arg2[%c0_4, %8, %c0_5, %c0_6] : memref<1x66x33x64xbf16, #tpu.memory_space<vmem>>, vector<1x4x33x64xbf16>
      %10 = vector.shape_cast %9 : vector<1x4x33x64xbf16> to vector<4x33x64xbf16>
      %11 = vector.extract_strided_slice %10 {offsets = [0, 0, 0], sizes = [4, 32, 64], strides = [1, 1, 1]} : vector<4x33x64xbf16> to vector<4x32x64xbf16>
      %12 = vector.extract_strided_slice %10 {offsets = [0, 1, 0], sizes = [4, 32, 64], strides = [1, 1, 1]} : vector<4x33x64xbf16> to vector<4x32x64xbf16>
      %13 = tpu.concatenate %11, %12 in 2 : vector<4x32x64xbf16>, vector<4x32x64xbf16> -> vector<4x32x128xbf16>
      %14 = vector.shape_cast %13 : vector<4x32x128xbf16> to vector<128x128xbf16>
      %c0_7 = arith.constant 0 : index
      %c0_8 = arith.constant 0 : index
      %c0_9 = arith.constant 0 : index
      %15 = vector.load %arg3[%c0_7, %c0_8, %c0_9] : memref<3x128x128xbf16, #tpu.memory_space<vmem>>, vector<1x128x128xbf16>
      %16 = vector.shape_cast %15 : vector<1x128x128xbf16> to vector<128x128xbf16>
      %cst_10 = arith.constant dense<0.000000e+00> : vector<128x128xf32>
      %17 = tpu.matmul %14, %16, %cst_10 {dimension_numbers = #tpu.dot_dimension_numbers<[1], [0], [0], [1], [0, 0, 1, 1], [], []>} : vector<128x128xbf16>, vector<128x128xbf16>, vector<128x128xf32> -> vector<128x128xf32>
      %18 = arith.addf %6, %17 : vector<128x128xf32>
      %c1_i32_11 = arith.constant 1 : i32
      %19 = arith.addi %5, %c1_i32_11 : i32
      %c0_12 = arith.constant 0 : index
      %20 = arith.index_cast %19 : i32 to index
      %c0_13 = arith.constant 0 : index
      %c0_14 = arith.constant 0 : index
      %21 = vector.load %arg2[%c0_12, %20, %c0_13, %c0_14] : memref<1x66x33x64xbf16, #tpu.memory_space<vmem>>, vector<1x4x33x64xbf16>
      %22 = vector.shape_cast %21 : vector<1x4x33x64xbf16> to vector<4x33x64xbf16>
      %23 = vector.extract_strided_slice %22 {offsets = [0, 0, 0], sizes = [4, 32, 64], strides = [1, 1, 1]} : vector<4x33x64xbf16> to vector<4x32x64xbf16>
      %24 = vector.extract_strided_slice %22 {offsets = [0, 1, 0], sizes = [4, 32, 64], strides = [1, 1, 1]} : vector<4x33x64xbf16> to vector<4x32x64xbf16>
      %25 = tpu.concatenate %23, %24 in 2 : vector<4x32x64xbf16>, vector<4x32x64xbf16> -> vector<4x32x128xbf16>
      %26 = vector.shape_cast %25 : vector<4x32x128xbf16> to vector<128x128xbf16>
      %c1 = arith.constant 1 : index
      %c0_15 = arith.constant 0 : index
      %c0_16 = arith.constant 0 : index
      %27 = vector.load %arg3[%c1, %c0_15, %c0_16] : memref<3x128x128xbf16, #tpu.memory_space<vmem>>, vector<1x128x128xbf16>
      %28 = vector.shape_cast %27 : vector<1x128x128xbf16> to vector<128x128xbf16>
      %cst_17 = arith.constant dense<0.000000e+00> : vector<128x128xf32>
      %29 = tpu.matmul %26, %28, %cst_17 {dimension_numbers = #tpu.dot_dimension_numbers<[1], [0], [0], [1], [0, 0, 1, 1], [], []>} : vector<128x128xbf16>, vector<128x128xbf16>, vector<128x128xf32> -> vector<128x128xf32>
      %30 = arith.addf %18, %29 : vector<128x128xf32>
      %c2_i32_18 = arith.constant 2 : i32
      %31 = arith.addi %5, %c2_i32_18 : i32
      %c0_19 = arith.constant 0 : index
      %32 = arith.index_cast %31 : i32 to index
      %c0_20 = arith.constant 0 : index
      %c0_21 = arith.constant 0 : index
      %33 = vector.load %arg2[%c0_19, %32, %c0_20, %c0_21] : memref<1x66x33x64xbf16, #tpu.memory_space<vmem>>, vector<1x4x33x64xbf16>
      %34 = vector.shape_cast %33 : vector<1x4x33x64xbf16> to vector<4x33x64xbf16>
      %35 = vector.extract_strided_slice %34 {offsets = [0, 0, 0], sizes = [4, 32, 64], strides = [1, 1, 1]} : vector<4x33x64xbf16> to vector<4x32x64xbf16>
      %36 = vector.extract_strided_slice %34 {offsets = [0, 1, 0], sizes = [4, 32, 64], strides = [1, 1, 1]} : vector<4x33x64xbf16> to vector<4x32x64xbf16>
      %37 = tpu.concatenate %35, %36 in 2 : vector<4x32x64xbf16>, vector<4x32x64xbf16> -> vector<4x32x128xbf16>
      %38 = vector.shape_cast %37 : vector<4x32x128xbf16> to vector<128x128xbf16>
      %c2 = arith.constant 2 : index
      %c0_22 = arith.constant 0 : index
      %c0_23 = arith.constant 0 : index
      %39 = vector.load %arg3[%c2, %c0_22, %c0_23] : memref<3x128x128xbf16, #tpu.memory_space<vmem>>, vector<1x128x128xbf16>
      %40 = vector.shape_cast %39 : vector<1x128x128xbf16> to vector<128x128xbf16>
      %cst_24 = arith.constant dense<0.000000e+00> : vector<128x128xf32>
      %41 = tpu.matmul %38, %40, %cst_24 {dimension_numbers = #tpu.dot_dimension_numbers<[1], [0], [0], [1], [0, 0, 1, 1], [], []>} : vector<128x128xbf16>, vector<128x128xbf16>, vector<128x128xf32> -> vector<128x128xf32>
      %42 = arith.addf %30, %41 : vector<128x128xf32>
      %43 = vector.extract_strided_slice %42 {offsets = [0, 0], sizes = [128, 64], strides = [1, 1]} : vector<128x128xf32> to vector<128x64xf32>
      %44 = vector.extract_strided_slice %42 {offsets = [0, 64], sizes = [128, 64], strides = [1, 1]} : vector<128x128xf32> to vector<128x64xf32>
      %45 = arith.maximumf %43, %44 : vector<128x64xf32>
      %46 = vector.extract_strided_slice %45 {offsets = [0, 0], sizes = [32, 64], strides = [1, 1]} : vector<128x64xf32> to vector<32x64xf32>
      %47 = vector.extract_strided_slice %45 {offsets = [32, 0], sizes = [32, 64], strides = [1, 1]} : vector<128x64xf32> to vector<32x64xf32>
      %48 = arith.maximumf %46, %47 : vector<32x64xf32>
      %49 = vector.broadcast %2 : vector<1x64xf32> to vector<32x64xf32>
      %50 = arith.addf %48, %49 : vector<32x64xf32>
      %cst_25 = arith.constant 0.000000e+00 : f32
      %51 = vector.broadcast %cst_25 : f32 to vector<32x64xf32>
      %52 = arith.maximumf %50, %51 : vector<32x64xf32>
      %53 = arith.truncf %52 : vector<32x64xf32> to vector<32x64xbf16>
      %c2_i32_26 = arith.constant 2 : i32
      %54 = arith.muli %arg6, %c2_i32_26 : i32
      %c0_i32_27 = arith.constant 0 : i32
      %55 = arith.addi %54, %c0_i32_27 : i32
      %c0_28 = arith.constant 0 : index
      %56 = arith.index_cast %55 : i32 to index
      %c0_29 = arith.constant 0 : index
      %c0_30 = arith.constant 0 : index
      %57 = vector.load %arg5[%c0_28, %56, %c0_29, %c0_30] : memref<1x8x32x64xbf16, #tpu.memory_space<vmem>>, vector<1x1x32x64xbf16>
      %58 = vector.shape_cast %57 : vector<1x1x32x64xbf16> to vector<32x64xbf16>
      %59 = vector.shape_cast %53 : vector<32x64xbf16> to vector<1x1x32x64xbf16>
      tpu.vector_store %arg5[%c0_28, %56, %c0_29, %c0_30], %59 {strides = array<i32>} : memref<1x8x32x64xbf16, #tpu.memory_space<vmem>>, vector<1x1x32x64xbf16>,
      %60 = vector.extract_strided_slice %45 {offsets = [64, 0], sizes = [32, 64], strides = [1, 1]} : vector<128x64xf32> to vector<32x64xf32>
      %61 = vector.extract_strided_slice %45 {offsets = [96, 0], sizes = [32, 64], strides = [1, 1]} : vector<128x64xf32> to vector<32x64xf32>
      %62 = arith.maximumf %60, %61 : vector<32x64xf32>
      %63 = vector.broadcast %2 : vector<1x64xf32> to vector<32x64xf32>
      %64 = arith.addf %62, %63 : vector<32x64xf32>
      %cst_31 = arith.constant 0.000000e+00 : f32
      %65 = vector.broadcast %cst_31 : f32 to vector<32x64xf32>
      %66 = arith.maximumf %64, %65 : vector<32x64xf32>
      %67 = arith.truncf %66 : vector<32x64xf32> to vector<32x64xbf16>
      %c2_i32_32 = arith.constant 2 : i32
      %68 = arith.muli %arg6, %c2_i32_32 : i32
      %c1_i32_33 = arith.constant 1 : i32
      %69 = arith.addi %68, %c1_i32_33 : i32
      %c0_34 = arith.constant 0 : index
      %70 = arith.index_cast %69 : i32 to index
      %c0_35 = arith.constant 0 : index
      %c0_36 = arith.constant 0 : index
      %71 = vector.load %arg5[%c0_34, %70, %c0_35, %c0_36] : memref<1x8x32x64xbf16, #tpu.memory_space<vmem>>, vector<1x1x32x64xbf16>
      %72 = vector.shape_cast %71 : vector<1x1x32x64xbf16> to vector<32x64xbf16>
      %73 = vector.shape_cast %67 : vector<32x64xbf16> to vector<1x1x32x64xbf16>
      tpu.vector_store %arg5[%c0_34, %70, %c0_35, %c0_36], %73 {strides = array<i32>} : memref<1x8x32x64xbf16, #tpu.memory_space<vmem>>, vector<1x1x32x64xbf16>,
    }
    %c4_i32_1 = arith.constant 4 : i32
    return
  }
  func.func @transform_0(%arg0: i32, %arg1: i32) -> (i32, i32, i32, i32) {
    %c0_i32 = arith.constant 0 : i32
    %c0_i32_0 = arith.constant 0 : i32
    %c0_i32_1 = arith.constant 0 : i32
    %c0_i32_2 = arith.constant 0 : i32
    return %arg0, %c0_i32, %c0_i32_0, %c0_i32_1 : i32, i32, i32, i32
  }
  func.func @transform_1(%arg0: i32, %arg1: i32) -> (i32, i32, i32) {
    %c0_i32 = arith.constant 0 : i32
    %c0_i32_0 = arith.constant 0 : i32
    %c0_i32_1 = arith.constant 0 : i32
    %c0_i32_2 = arith.constant 0 : i32
    return %c0_i32, %c0_i32_0, %c0_i32_1 : i32, i32, i32
  }
  func.func @transform_2(%arg0: i32, %arg1: i32) -> (i32, i32) {
    %c0_i32 = arith.constant 0 : i32
    %c0_i32_0 = arith.constant 0 : i32
    %c0_i32_1 = arith.constant 0 : i32
    return %c0_i32, %c0_i32_0 : i32, i32
  }
  func.func @transform_3(%arg0: i32, %arg1: i32) -> (i32, i32, i32, i32) {
    %c0_i32 = arith.constant 0 : i32
    %c0_i32_0 = arith.constant 0 : i32
    %c0_i32_1 = arith.constant 0 : i32
    return %arg0, %arg1, %c0_i32, %c0_i32_0 : i32, i32, i32, i32
  }
}

module attributes {stable_mosaic.version = 11 : i64} {
  func.func @kernel(%arg0: i32, %arg1: i32, %arg2: memref<1x34x17x128xbf16, #tpu.memory_space<vmem>>, %arg3: memref<3x256x256xbf16, #tpu.memory_space<vmem>>, %arg4: memref<1x128xf32, #tpu.memory_space<vmem>>, %arg5: memref<1x4x16x128xbf16, #tpu.memory_space<vmem>>) attributes {dimension_semantics = [#tpu.dimension_semantics<parallel>, #tpu.dimension_semantics<parallel>], iteration_bounds = array<i64: 2, 4>, scalar_prefetch = 0 : i64, scratch_operands = 0 : i64, tpu.core_type = #tpu.core_type<tc>, window_params = [{transform_indices = @transform_0, window_bounds = array<i64: 1, 34, 17, 128>}, {pipeline_mode = #tpu.pipeline_mode<synchronous>, transform_indices = @transform_1, window_bounds = array<i64: 3, 256, 256>}, {pipeline_mode = #tpu.pipeline_mode<synchronous>, transform_indices = @transform_2, window_bounds = array<i64: 1, 128>}, {transform_indices = @transform_3, window_bounds = array<i64: 1, 4, 16, 128>}]} {
    %c2_i32 = arith.constant 2 : i32
    %0 = arith.muli %arg1, %c2_i32 : i32
    %c4_i32 = arith.constant 4 : i32
    %1 = arith.muli %0, %c4_i32 : i32
    %c0 = arith.constant 0 : index
    %c0_0 = arith.constant 0 : index
    %2 = vector.load %arg4[%c0, %c0_0] : memref<1x128xf32, #tpu.memory_space<vmem>>, vector<1x128xf32>
    %c0_i32 = arith.constant 0 : i32
    %c2_i32_1 = arith.constant 2 : i32
    %3 = arith.addi %c0_i32, %c2_i32_1 : i32
    %c1_i32 = arith.constant 1 : i32
    scf.for %arg6 = %c0_i32 to %3 step %c1_i32  : i32 {
      %c4_i32_3 = arith.constant 4 : i32
      %4 = arith.muli %arg6, %c4_i32_3 : i32
      %5 = arith.addi %1, %4 : i32
      %cst = arith.constant 0.000000e+00 : f32
      %6 = vector.broadcast %cst : f32 to vector<64x256xf32>
      %c0_i32_4 = arith.constant 0 : i32
      %7 = arith.addi %5, %c0_i32_4 : i32
      %c0_5 = arith.constant 0 : index
      %8 = arith.index_cast %7 : i32 to index
      %c0_6 = arith.constant 0 : index
      %c0_7 = arith.constant 0 : index
      %9 = vector.load %arg2[%c0_5, %8, %c0_6, %c0_7] : memref<1x34x17x128xbf16, #tpu.memory_space<vmem>>, vector<1x4x17x128xbf16>
      %10 = vector.shape_cast %9 : vector<1x4x17x128xbf16> to vector<4x17x128xbf16>
      %11 = vector.extract_strided_slice %10 {offsets = [0, 0, 0], sizes = [4, 16, 128], strides = [1, 1, 1]} : vector<4x17x128xbf16> to vector<4x16x128xbf16>
      %12 = vector.extract_strided_slice %10 {offsets = [0, 1, 0], sizes = [4, 16, 128], strides = [1, 1, 1]} : vector<4x17x128xbf16> to vector<4x16x128xbf16>
      %13 = tpu.concatenate %11, %12 in 2 : vector<4x16x128xbf16>, vector<4x16x128xbf16> -> vector<4x16x256xbf16>
      %14 = vector.shape_cast %13 : vector<4x16x256xbf16> to vector<64x256xbf16>
      %c0_8 = arith.constant 0 : index
      %c0_9 = arith.constant 0 : index
      %c0_10 = arith.constant 0 : index
      %15 = vector.load %arg3[%c0_8, %c0_9, %c0_10] : memref<3x256x256xbf16, #tpu.memory_space<vmem>>, vector<1x256x256xbf16>
      %16 = vector.shape_cast %15 : vector<1x256x256xbf16> to vector<256x256xbf16>
      %cst_11 = arith.constant dense<0.000000e+00> : vector<64x256xf32>
      %17 = tpu.matmul %14, %16, %cst_11 {dimension_numbers = #tpu.dot_dimension_numbers<[1], [0], [0], [1], [0, 0, 1, 1], [], []>} : vector<64x256xbf16>, vector<256x256xbf16>, vector<64x256xf32> -> vector<64x256xf32>
      %18 = arith.addf %6, %17 : vector<64x256xf32>
      %c1_i32_12 = arith.constant 1 : i32
      %19 = arith.addi %5, %c1_i32_12 : i32
      %c0_13 = arith.constant 0 : index
      %20 = arith.index_cast %19 : i32 to index
      %c0_14 = arith.constant 0 : index
      %c0_15 = arith.constant 0 : index
      %21 = vector.load %arg2[%c0_13, %20, %c0_14, %c0_15] : memref<1x34x17x128xbf16, #tpu.memory_space<vmem>>, vector<1x4x17x128xbf16>
      %22 = vector.shape_cast %21 : vector<1x4x17x128xbf16> to vector<4x17x128xbf16>
      %23 = vector.extract_strided_slice %22 {offsets = [0, 0, 0], sizes = [4, 16, 128], strides = [1, 1, 1]} : vector<4x17x128xbf16> to vector<4x16x128xbf16>
      %24 = vector.extract_strided_slice %22 {offsets = [0, 1, 0], sizes = [4, 16, 128], strides = [1, 1, 1]} : vector<4x17x128xbf16> to vector<4x16x128xbf16>
      %25 = tpu.concatenate %23, %24 in 2 : vector<4x16x128xbf16>, vector<4x16x128xbf16> -> vector<4x16x256xbf16>
      %26 = vector.shape_cast %25 : vector<4x16x256xbf16> to vector<64x256xbf16>
      %c1 = arith.constant 1 : index
      %c0_16 = arith.constant 0 : index
      %c0_17 = arith.constant 0 : index
      %27 = vector.load %arg3[%c1, %c0_16, %c0_17] : memref<3x256x256xbf16, #tpu.memory_space<vmem>>, vector<1x256x256xbf16>
      %28 = vector.shape_cast %27 : vector<1x256x256xbf16> to vector<256x256xbf16>
      %cst_18 = arith.constant dense<0.000000e+00> : vector<64x256xf32>
      %29 = tpu.matmul %26, %28, %cst_18 {dimension_numbers = #tpu.dot_dimension_numbers<[1], [0], [0], [1], [0, 0, 1, 1], [], []>} : vector<64x256xbf16>, vector<256x256xbf16>, vector<64x256xf32> -> vector<64x256xf32>
      %30 = arith.addf %18, %29 : vector<64x256xf32>
      %c2_i32_19 = arith.constant 2 : i32
      %31 = arith.addi %5, %c2_i32_19 : i32
      %c0_20 = arith.constant 0 : index
      %32 = arith.index_cast %31 : i32 to index
      %c0_21 = arith.constant 0 : index
      %c0_22 = arith.constant 0 : index
      %33 = vector.load %arg2[%c0_20, %32, %c0_21, %c0_22] : memref<1x34x17x128xbf16, #tpu.memory_space<vmem>>, vector<1x4x17x128xbf16>
      %34 = vector.shape_cast %33 : vector<1x4x17x128xbf16> to vector<4x17x128xbf16>
      %35 = vector.extract_strided_slice %34 {offsets = [0, 0, 0], sizes = [4, 16, 128], strides = [1, 1, 1]} : vector<4x17x128xbf16> to vector<4x16x128xbf16>
      %36 = vector.extract_strided_slice %34 {offsets = [0, 1, 0], sizes = [4, 16, 128], strides = [1, 1, 1]} : vector<4x17x128xbf16> to vector<4x16x128xbf16>
      %37 = tpu.concatenate %35, %36 in 2 : vector<4x16x128xbf16>, vector<4x16x128xbf16> -> vector<4x16x256xbf16>
      %38 = vector.shape_cast %37 : vector<4x16x256xbf16> to vector<64x256xbf16>
      %c2 = arith.constant 2 : index
      %c0_23 = arith.constant 0 : index
      %c0_24 = arith.constant 0 : index
      %39 = vector.load %arg3[%c2, %c0_23, %c0_24] : memref<3x256x256xbf16, #tpu.memory_space<vmem>>, vector<1x256x256xbf16>
      %40 = vector.shape_cast %39 : vector<1x256x256xbf16> to vector<256x256xbf16>
      %cst_25 = arith.constant dense<0.000000e+00> : vector<64x256xf32>
      %41 = tpu.matmul %38, %40, %cst_25 {dimension_numbers = #tpu.dot_dimension_numbers<[1], [0], [0], [1], [0, 0, 1, 1], [], []>} : vector<64x256xbf16>, vector<256x256xbf16>, vector<64x256xf32> -> vector<64x256xf32>
      %42 = arith.addf %30, %41 : vector<64x256xf32>
      %43 = vector.extract_strided_slice %42 {offsets = [0, 0], sizes = [64, 128], strides = [1, 1]} : vector<64x256xf32> to vector<64x128xf32>
      %44 = vector.extract_strided_slice %42 {offsets = [0, 128], sizes = [64, 128], strides = [1, 1]} : vector<64x256xf32> to vector<64x128xf32>
      %45 = arith.maximumf %43, %44 : vector<64x128xf32>
      %46 = vector.extract_strided_slice %45 {offsets = [0, 0], sizes = [16, 128], strides = [1, 1]} : vector<64x128xf32> to vector<16x128xf32>
      %47 = vector.extract_strided_slice %45 {offsets = [16, 0], sizes = [16, 128], strides = [1, 1]} : vector<64x128xf32> to vector<16x128xf32>
      %48 = arith.maximumf %46, %47 : vector<16x128xf32>
      %49 = vector.broadcast %2 : vector<1x128xf32> to vector<16x128xf32>
      %50 = arith.addf %48, %49 : vector<16x128xf32>
      %cst_26 = arith.constant 0.000000e+00 : f32
      %51 = vector.broadcast %cst_26 : f32 to vector<16x128xf32>
      %52 = arith.maximumf %50, %51 : vector<16x128xf32>
      %53 = arith.truncf %52 : vector<16x128xf32> to vector<16x128xbf16>
      %c2_i32_27 = arith.constant 2 : i32
      %54 = arith.muli %arg6, %c2_i32_27 : i32
      %c0_i32_28 = arith.constant 0 : i32
      %55 = arith.addi %54, %c0_i32_28 : i32
      %c0_29 = arith.constant 0 : index
      %56 = arith.index_cast %55 : i32 to index
      %c0_30 = arith.constant 0 : index
      %c0_31 = arith.constant 0 : index
      %57 = vector.load %arg5[%c0_29, %56, %c0_30, %c0_31] : memref<1x4x16x128xbf16, #tpu.memory_space<vmem>>, vector<1x1x16x128xbf16>
      %58 = vector.shape_cast %57 : vector<1x1x16x128xbf16> to vector<16x128xbf16>
      %59 = vector.shape_cast %53 : vector<16x128xbf16> to vector<1x1x16x128xbf16>
      tpu.vector_store %arg5[%c0_29, %56, %c0_30, %c0_31], %59 {strides = array<i32>} : memref<1x4x16x128xbf16, #tpu.memory_space<vmem>>, vector<1x1x16x128xbf16>,
      %60 = vector.extract_strided_slice %45 {offsets = [32, 0], sizes = [16, 128], strides = [1, 1]} : vector<64x128xf32> to vector<16x128xf32>
      %61 = vector.extract_strided_slice %45 {offsets = [48, 0], sizes = [16, 128], strides = [1, 1]} : vector<64x128xf32> to vector<16x128xf32>
      %62 = arith.maximumf %60, %61 : vector<16x128xf32>
      %63 = vector.broadcast %2 : vector<1x128xf32> to vector<16x128xf32>
      %64 = arith.addf %62, %63 : vector<16x128xf32>
      %cst_32 = arith.constant 0.000000e+00 : f32
      %65 = vector.broadcast %cst_32 : f32 to vector<16x128xf32>
      %66 = arith.maximumf %64, %65 : vector<16x128xf32>
      %67 = arith.truncf %66 : vector<16x128xf32> to vector<16x128xbf16>
      %c2_i32_33 = arith.constant 2 : i32
      %68 = arith.muli %arg6, %c2_i32_33 : i32
      %c1_i32_34 = arith.constant 1 : i32
      %69 = arith.addi %68, %c1_i32_34 : i32
      %c0_35 = arith.constant 0 : index
      %70 = arith.index_cast %69 : i32 to index
      %c0_36 = arith.constant 0 : index
      %c0_37 = arith.constant 0 : index
      %71 = vector.load %arg5[%c0_35, %70, %c0_36, %c0_37] : memref<1x4x16x128xbf16, #tpu.memory_space<vmem>>, vector<1x1x16x128xbf16>
      %72 = vector.shape_cast %71 : vector<1x1x16x128xbf16> to vector<16x128xbf16>
      %73 = vector.shape_cast %67 : vector<16x128xbf16> to vector<1x1x16x128xbf16>
      tpu.vector_store %arg5[%c0_35, %70, %c0_36, %c0_37], %73 {strides = array<i32>} : memref<1x4x16x128xbf16, #tpu.memory_space<vmem>>, vector<1x1x16x128xbf16>,
    }
    %c2_i32_2 = arith.constant 2 : i32
    return
  }
  func.func @transform_0(%arg0: i32, %arg1: i32) -> (i32, i32, i32, i32) {
    %c0_i32 = arith.constant 0 : i32
    %c0_i32_0 = arith.constant 0 : i32
    %c0_i32_1 = arith.constant 0 : i32
    %c0_i32_2 = arith.constant 0 : i32
    return %arg0, %c0_i32, %c0_i32_0, %c0_i32_1 : i32, i32, i32, i32
  }
  func.func @transform_1(%arg0: i32, %arg1: i32) -> (i32, i32, i32) {
    %c0_i32 = arith.constant 0 : i32
    %c0_i32_0 = arith.constant 0 : i32
    %c0_i32_1 = arith.constant 0 : i32
    %c0_i32_2 = arith.constant 0 : i32
    return %c0_i32, %c0_i32_0, %c0_i32_1 : i32, i32, i32
  }
  func.func @transform_2(%arg0: i32, %arg1: i32) -> (i32, i32) {
    %c0_i32 = arith.constant 0 : i32
    %c0_i32_0 = arith.constant 0 : i32
    %c0_i32_1 = arith.constant 0 : i32
    return %c0_i32, %c0_i32_0 : i32, i32
  }
  func.func @transform_3(%arg0: i32, %arg1: i32) -> (i32, i32, i32, i32) {
    %c0_i32 = arith.constant 0 : i32
    %c0_i32_0 = arith.constant 0 : i32
    %c0_i32_1 = arith.constant 0 : i32
    return %arg0, %arg1, %c0_i32, %c0_i32_0 : i32, i32, i32, i32
  }
}

module attributes {stable_mosaic.version = 11 : i64} {
  func.func @_mlp_kernel(%arg0: i32, %arg1: i32, %arg2: memref<2x8192xbf16, #tpu.memory_space<vmem>>, %arg3: memref<8192x256xbf16, #tpu.memory_space<vmem>>, %arg4: memref<1x256xf32, #tpu.memory_space<vmem>>, %arg5: memref<256x128xf32, #tpu.memory_space<vmem>>, %arg6: memref<1x2x128xf32, #tpu.memory_space<vmem>>, %arg7: memref<2x256xf32, #tpu.memory_space<vmem>>) attributes {dimension_semantics = [#tpu.dimension_semantics<parallel>, #tpu.dimension_semantics<arbitrary>], iteration_bounds = array<i64: 2, 4>, scalar_prefetch = 0 : i64, scratch_operands = 1 : i64, tpu.core_type = #tpu.core_type<tc>, window_params = [{transform_indices = @transform_0, window_bounds = array<i64: 2, 8192>}, {transform_indices = @transform_1, window_bounds = array<i64: 8192, 256>}, {transform_indices = @transform_2, window_bounds = array<i64: 1, 256>}, {transform_indices = @transform_3, window_bounds = array<i64: 256, 128>}, {transform_indices = @transform_4, window_bounds = array<i64: 1, 2, 128>}]} {
    %c0_i32 = arith.constant 0 : i32
    %0 = arith.cmpi eq, %arg1, %c0_i32 : i32
    %1 = arith.extui %0 : i1 to i32
    %c0_i32_0 = arith.constant 0 : i32
    %2 = arith.cmpi ne, %1, %c0_i32_0 : i32
    scf.if %2 {
      %cst_9 = arith.constant 0.000000e+00 : f32
      %12 = vector.broadcast %cst_9 : f32 to vector<2x256xf32>
      %c0_10 = arith.constant 0 : index
      %c0_11 = arith.constant 0 : index
      %13 = vector.load %arg7[%c0_10, %c0_11] : memref<2x256xf32, #tpu.memory_space<vmem>>, vector<2x256xf32>
      tpu.vector_store %arg7[%c0_10, %c0_11], %12 {strides = array<i32>} : memref<2x256xf32, #tpu.memory_space<vmem>>, vector<2x256xf32>,
    } else {
    }
    %c0 = arith.constant 0 : index
    %c0_1 = arith.constant 0 : index
    %3 = vector.load %arg7[%c0, %c0_1] : memref<2x256xf32, #tpu.memory_space<vmem>>, vector<2x256xf32>
    %c0_2 = arith.constant 0 : index
    %c0_3 = arith.constant 0 : index
    %4 = vector.load %arg2[%c0_2, %c0_3] : memref<2x8192xbf16, #tpu.memory_space<vmem>>, vector<2x8192xbf16>
    %c0_4 = arith.constant 0 : index
    %c0_5 = arith.constant 0 : index
    %5 = vector.load %arg3[%c0_4, %c0_5] : memref<8192x256xbf16, #tpu.memory_space<vmem>>, vector<8192x256xbf16>
    %cst = arith.constant dense<0.000000e+00> : vector<2x256xf32>
    %6 = tpu.matmul %4, %5, %cst {dimension_numbers = #tpu.dot_dimension_numbers<[1], [0], [0], [1], [0, 0, 1, 1], [], []>} : vector<2x8192xbf16>, vector<8192x256xbf16>, vector<2x256xf32> -> vector<2x256xf32>
    %7 = arith.addf %3, %6 : vector<2x256xf32>
    %c0_6 = arith.constant 0 : index
    %c0_7 = arith.constant 0 : index
    %8 = vector.load %arg7[%c0_6, %c0_7] : memref<2x256xf32, #tpu.memory_space<vmem>>, vector<2x256xf32>
    tpu.vector_store %arg7[%c0_6, %c0_7], %7 {strides = array<i32>} : memref<2x256xf32, #tpu.memory_space<vmem>>, vector<2x256xf32>,
    %c3_i32 = arith.constant 3 : i32
    %9 = arith.cmpi eq, %arg1, %c3_i32 : i32
    %10 = arith.extui %9 : i1 to i32
    %c0_i32_8 = arith.constant 0 : i32
    %11 = arith.cmpi ne, %10, %c0_i32_8 : i32
    scf.if %11 {
      %c0_9 = arith.constant 0 : index
      %c0_10 = arith.constant 0 : index
      %12 = vector.load %arg7[%c0_9, %c0_10] : memref<2x256xf32, #tpu.memory_space<vmem>>, vector<2x256xf32>
      %c0_11 = arith.constant 0 : index
      %c0_12 = arith.constant 0 : index
      %13 = vector.load %arg4[%c0_11, %c0_12] : memref<1x256xf32, #tpu.memory_space<vmem>>, vector<1x256xf32>
      %14 = vector.broadcast %13 : vector<1x256xf32> to vector<2x256xf32>
      %15 = arith.addf %12, %14 : vector<2x256xf32>
      %cst_13 = arith.constant 0.000000e+00 : f32
      %16 = vector.broadcast %cst_13 : f32 to vector<2x256xf32>
      %17 = arith.maximumf %15, %16 : vector<2x256xf32>
      %c0_14 = arith.constant 0 : index
      %c0_15 = arith.constant 0 : index
      %18 = vector.load %arg5[%c0_14, %c0_15] : memref<256x128xf32, #tpu.memory_space<vmem>>, vector<256x128xf32>
      %cst_16 = arith.constant dense<0.000000e+00> : vector<2x128xf32>
      %19 = tpu.matmul %17, %18, %cst_16 {dimension_numbers = #tpu.dot_dimension_numbers<[1], [0], [0], [1], [0, 0, 1, 1], [], []>} : vector<2x256xf32>, vector<256x128xf32>, vector<2x128xf32> -> vector<2x128xf32>
      %c0_17 = arith.constant 0 : index
      %c0_18 = arith.constant 0 : index
      %c0_19 = arith.constant 0 : index
      %20 = vector.load %arg6[%c0_17, %c0_18, %c0_19] : memref<1x2x128xf32, #tpu.memory_space<vmem>>, vector<1x2x128xf32>
      %21 = vector.shape_cast %20 : vector<1x2x128xf32> to vector<2x128xf32>
      %22 = vector.shape_cast %19 : vector<2x128xf32> to vector<1x2x128xf32>
      tpu.vector_store %arg6[%c0_17, %c0_18, %c0_19], %22 {strides = array<i32>} : memref<1x2x128xf32, #tpu.memory_space<vmem>>, vector<1x2x128xf32>,
    } else {
    }
    return
  }
  func.func @transform_0(%arg0: i32, %arg1: i32) -> (i32, i32) {
    %c0_i32 = arith.constant 0 : i32
    %c0_i32_0 = arith.constant 0 : i32
    return %c0_i32, %arg1 : i32, i32
  }
  func.func @transform_1(%arg0: i32, %arg1: i32) -> (i32, i32) {
    %c0_i32 = arith.constant 0 : i32
    return %arg1, %arg0 : i32, i32
  }
  func.func @transform_2(%arg0: i32, %arg1: i32) -> (i32, i32) {
    %c0_i32 = arith.constant 0 : i32
    %c0_i32_0 = arith.constant 0 : i32
    return %c0_i32, %arg0 : i32, i32
  }
  func.func @transform_3(%arg0: i32, %arg1: i32) -> (i32, i32) {
    %c0_i32 = arith.constant 0 : i32
    %c0_i32_0 = arith.constant 0 : i32
    return %arg0, %c0_i32 : i32, i32
  }
  func.func @transform_4(%arg0: i32, %arg1: i32) -> (i32, i32, i32) {
    %c0_i32 = arith.constant 0 : i32
    %c0_i32_0 = arith.constant 0 : i32
    %c0_i32_1 = arith.constant 0 : i32
    return %arg0, %c0_i32, %c0_i32_0 : i32, i32, i32
  }
}

</mosaic_0001>

<bundles_post_ra>
// kernel: cnn_forward.4
= control target key start
LH: loop header
LB: loop body
LE: loop exit
PB: predicated region body
PF: predicated region fallthrough
CT: control target
= control target key end

     0   :  { %s1561_s12 = smov 0   ;;  %s1563_s13 = smov 0   ;;  %s1954_s0 = inlined_call_operand.vmem [shape: bf16[2,130,65,16], index: 0, kind: input, shape index: {}]   ;;  %s1955_s1 = inlined_call_operand.vmem [shape: bf16[96,64], index: 1, kind: input, shape index: {}]   ;;  %s1956_s2 = inlined_call_operand.vmem [shape: f32[1,32], index: 2, kind: input, shape index: {}]   ;;  %s1957_s3 = inlined_call_operand.vmem [shape: bf16[2,64,64,32], index: 3, kind: output, shape index: {}]  }
   0x1   :  { %s1565_s14 = smov 0   ;;  %s1567_s15 = smov 0  }
   0x2   :  { %s1569_s16 = smov 0  }
   0x3 LB: > { %s22_s17 = sadd.s32 1, %s1521_s14  ;;  %s25_s18 = sadd.s32 1, %s1525_s15  ;;  %s1529_s16 = sphi %s1569_s16, %s13_s16   ;;  %s1525_s15 = sphi %s1567_s15, %s1961_s15   ;;  %s1521_s14 = sphi %s1565_s14, %s1960_s14   ;;  %s1517_s13 = sphi %s1563_s13, %s1959_s13   ;;  %s1513_s12 = sphi %s1561_s12, %s1958_s12  }
   0x4   : > { %p23_p0 = scmp.ge.s32.totalorder %s22_s17, 4  ;;  %p1226_p1 = scmp.ge.s32.totalorder %s1529_s16, 1 }
   0x5   : > { %p151_p2 = scmp.lt.s32.totalorder %s1529_s16, 9 }
   0x6   : > { %s1963_s17 = smov (%p23_p0, %s22_s17), 0  ;;  %s1965_s18 = smov (!%p23_p0, %s25_s18), %s1525_s15 }
   0x7   : > { %p152_p3 = pnand %p1226_p1, %p151_p2  ;;  %p27_p4 = scmp.ge.s32.totalorder %s1965_s18, 2 }
   0x8   : > { %p180_p5 = scmp.lt.s32.totalorder (!%p152_p3), %s1517_s13, 1  ;;  %s1228_s19 = sshll.u32 (!%p152_p3), %s1513_s12, 4  ;;  %v1597_v0 = vld [vmem:[%s1956_s2] ss:$0 sm:$0xff] (!%p152_p3) }
   0x9   : > { %s1967_s18 = smov (%p27_p4, %s1965_s18), 0  ;;  %155 = sbr.rel (%p152_p3) target bundleno = 573 (0x23d), region = 32 }
   0xa   : > { %p188_p6 = scmp.lt.s32.totalorder (!%p152_p3), %s1228_s19, 63  ;;  %s1232_s22 = sshll.u32 (!%p152_p3), %s1513_s12, 5 }
   0xb   : > { %s1610_s7 = smov (!%p152_p3), 0  }
  0x10   : > { %s1969_s13 = smov (!%p180_p5, %s1517_s13), 1  ;;  %s1971_s19 = smov (!%p188_p6, %s1228_s19), 63 }
  0x11   : > { %s1396_s23 = smul.u32 4680, %s1969_s13  ;;  %s1230_s24 = sshll.u32 %s1969_s13, 9 }
  0x12   : > { %s1229_s25 = sshll.u32 %s1971_s19, 3 }
  0x13   : > { %s1603_s28 = scalar_lea.vmem %s1954_s0, %s1396_s23  ;;  %s192_s29 = sadd.s32 %s1230_s24, %s1229_s25 }
  0x14   : > { %s1231_s30 = sshll.u32 %s192_s29, 2 }
  0x15   : > { %s1608_s6 = scalar_lea.vmem %s1957_s3, %s1231_s30 }
  0x16 LB: >> { %s1233_s8 = sshll.u32 %s1533_s7, 1  ;;  %s1535_s13 = smov 32   ;;  %vm318_vm0 = vsmask.f32 7424  ;;  %vm707_vm1 = vcmask 130048   ;;  %vm741_vm2 = vcmask 392192   ;;  %s1533_s7 = sphi %s1610_s7, %s204_s7  }
  0x17   : >> { %s206_s9 = sadd.s32 %s1233_s8, %s1232_s22  ;;  %s1536_s19 = smov 16   ;;  %vm724_vm3 = vcmask 261120   ;;  %vm758_vm4 = vcmask 523264   ;;  %vm775_vm5 = vcmask 654336   ;;  %vm840_vm6 = vcmask 785408  }
  0x18   : >> { %s1332_s10 = smul.u32 36, %s206_s9  ;;  %s1537_s20 = smov 48   ;;  %vm1099_vm7 = vcmask 257024  }
  0x19   : >> { %s1538_s21 = smov 64   ;;  %s1539_s23 = smov 80  }
  0x1a   : >> { %s1619_s11 = scalar_lea.vmem %s1603_s28, %s1332_s10 }
  0x1b   : >> { %v1451_v1 = vld [vmem:[%s1619_s11 + $0x48] sm:$0xff]   ;;  %v1453_v4 = vld [vmem:[%s1619_s11 + $0x50] sm:$0xff]   ;;  %v1637_v10 = vld [vmem:[%s1619_s11] sm:$0xff]  }
  0x1c   : >> { %v1452_v2 = vld [vmem:[%s1619_s11 + $0x24] sm:$0xff]   ;;  %455 = vrot.lane.b32.xlu1 %v1451_v1, %s1535_s13  ;;  %v508_v3 = vshll.u32 %v1451_v1, 16  ;;  %v1627_v5 = vld [vmem:[%s1619_s11 + $0x2c] sm:$0xff]   ;;  %v506_v9 = vshrl.u32 %v1451_v1, 16  ;;  %v320_v16 = vshrl.u32 %v1637_v10, 16  ;;  %v322_v17 = vshll.u32 %v1637_v10, 16 }
  0x1d   : >> { %447 = vrot.lane.b32.xlu0 %v1452_v2, %s1535_s13  ;;  %v472_v6 = vshll.u32 %v1452_v2, 16  ;;  %v1630_v7 = vld [vmem:[%s1619_s11 + $0x8] sm:$0xff]   ;;  %v1633_v8 = vld [vmem:[%s1619_s11 + $0x10] sm:$0xff]   ;;  %v513_v28 = vshll.u32 %v1453_v4, 16  ;;  %v470_v30 = vshrl.u32 %v1452_v2, 16  ;;  %v477_v32 = vshll.u32 %v1627_v5, 16 }
  0x1e   : >> { %v510_v11 = vrot.slane %v508_v3, 1  ;;  %v327_v12 = vshll.u32 %v1630_v7, 16  ;;  %v331_v13 = vshrl.u32 %v1630_v7, 16  ;;  %v335_v14 = vshll.u32 %v1633_v8, 16  ;;  %v1645_v15 = vld [vmem:[%s1619_s11 + $0x2c] sm:$0xff]   ;;  %v1652_v20 = vld [vmem:[%s1619_s11 + $0x34] sm:$0xff]  }
  0x1f   : >> { %v363_v21 = vshll.u32 %v1645_v15, 16  ;;  %v324_v22 = vrot.slane %v322_v17, 1  ;;  %v367_v23 = vshrl.u32 %v1645_v15, 16  ;;  %v371_v26 = vshll.u32 %v1652_v20, 16  ;;  %v1658_v27 = vld [vmem:[%s1619_s11 + $0x24] sm:$0xff]   ;;  %v1662_v33 = vld [vmem:[%s1619_s11 + $0x58] sm:$0xff]  }
  0x20   : >> { %457 = vrot.lane.b32.xlu1 %v1453_v4, %s1535_s13  ;;  %v329_v18 = vrot.slane %v327_v12, 1  ;;  %v1649_v19 = vrot.slane %v335_v14, 1  ;;  %v474_v31 = vrot.slane %v472_v6, 1  ;;  %v356_v37 = vshrl.u32 %v1658_v27, 16  ;;  %v1673_v41 = vld [vmem:[%s1619_s11 + $0x34] sm:$0xff]   ;;  %v1463_v48 = vld [vmem:[%s1619_s11 + $0x6c] sm:$0xff]  }
  0x21   : >> { %449 = vrot.lane.b32.xlu0 %v1627_v5, %s1535_s13  ;;  %v365_v25 = vrot.slane %v363_v21, 1  ;;  %v325_v29 = vor.u32 %v324_v22, %v320_v16  ;;  %v1666_v36 = vrot.slane %v371_v26, 1  ;;  %v358_v39 = vshll.u32 %v1658_v27, 16  ;;  %v1464_v53 = vld [vmem:[%s1619_s11 + $0x48] sm:$0xff]   ;;  %v1465_v59 = vld [vmem:[%s1619_s11 + $0x74] sm:$0xff]   ;;  %v1698_v3 = vld [vmem:[%s1619_s11 + $0x7c] sm:$0xff]  }
  0x22   : >> { %v333_v24 = vor.u32 %v331_v13, %v329_v18  ;;  %v511_v40 = vor.u32 %v510_v11, %v506_v9  ;;  %v515_v43 = vrot.slane %v513_v28, 1  ;;  %v517_v44 = vshrl.u32 %v1453_v4, 16  ;;  %v1466_v2 = vld [vmem:[%s1619_s11 + $0x50] sm:$0xff]   ;;  %v1702_v6 = vld [vmem:[%s1619_s11 + $0x58] sm:$0xff]  }
  0x23   : >> { %v369_v35 = vor.u32 %v367_v23, %v365_v25  ;;  %v330_v38 = vsel %vm318_vm0, %v325_v29, %v329_v18  ;;  %v521_v45 = vshll.u32 %v1662_v33, 16  ;;  %v360_v46 = vrot.slane %v358_v39, 1  ;;  %v1709_v18 = vld [vmem:[%s1619_s11 + $0x3c] sm:$0xff]  }
  0x24   : >> { %v338_v34 = vsel %vm318_vm0, %v333_v24, %v1649_v19  ;;  %v475_v47 = vor.u32 %v474_v31, %v470_v30  ;;  %v479_v50 = vrot.slane %v477_v32, 1  ;;  %v481_v51 = vshrl.u32 %v1627_v5, 16  ;;  %v1716_v31 = vld [vmem:[%s1619_s11 + $0x18] sm:$0xff]   ;;  %v1719_v32 = vld [vmem:[%s1619_s11 + $0x84] sm:$0xff]  }
  0x25   : >> { %393 = vrot.lane.b32.xlu1 %v338_v34, %s1536_s19  ;;  %391 = vrot.lane.b32.xlu0 %v330_v38, %s1536_s19  ;;  %v374_v42 = vsel %vm318_vm0, %v369_v35, %v1666_v36  ;;  %v361_v49 = vor.u32 %v360_v46, %v356_v37  ;;  %v485_v52 = vshll.u32 %v1673_v41, 16  ;;  %v516_v54 = vsel %vm318_vm0, %v511_v40, %v515_v43  ;;  %v1471_v37 = vld [vmem:[%s1619_s11 + $0x44] ss:$0 sps:$4 sm:$0x11]  }
  0x26   : >> { %v519_v55 = vor.u32 %v517_v44, %v515_v43  ;;  %v1685_v56 = vrot.slane %v521_v45, 1  ;;  %v658_v58 = vshll.u32 %v1463_v48, 16  ;;  %v480_v60 = vsel %vm318_vm0, %v475_v47, %v479_v50  ;;  %v1725_v38 = vld [vmem:[%s1619_s11 + $0x60] sm:$0xff]  }
  0x27   : >> { %v366_v57 = vsel %vm318_vm0, %v361_v49, %v365_v25  ;;  %v483_v61 = vor.u32 %v481_v51, %v479_v50  ;;  %v1692_v62 = vrot.slane %v485_v52, 1  ;;  %v622_v63 = vshll.u32 %v1464_v53, 16  ;;  %v1479_v51 = vld [vmem:[%s1619_s11 + $0x8c] ss:$0 sps:$4 sm:$0x11]  }
  0x28   : >> { %v524_v1 = vsel %vm318_vm0, %v519_v55, %v1685_v56  ;;  %v656_v4 = vshrl.u32 %v1463_v48, 16  ;;  %v663_v5 = vshll.u32 %v1465_v59, 16  ;;  %v660_v11 = vrot.slane %v658_v58, 1 }
  0x29   : >> { %401 = vrot.lane.b32.xlu1 %v374_v42, %s1536_s19  ;;  %399 = vrot.lane.b32.xlu0 %v366_v57, %s1536_s19  ;;  %v488_v9 = vsel %vm318_vm0, %v483_v61, %v1692_v62  ;;  %v620_v12 = vshrl.u32 %v1464_v53, 16  ;;  %v624_v13 = vrot.slane %v622_v63, 1  ;;  %v627_v14 = vshll.u32 %v1466_v2, 16  ;;  %v1480_v57 = vld [vmem:[%s1619_s11 + $0x68] ss:$0 sps:$4 sm:$0x11]  }
  0x2a   : >> { %v667_v16 = vshrl.u32 %v1465_v59, 16  ;;  %v671_v17 = vshll.u32 %v1698_v3, 16  ;;  %v665_v21 = vrot.slane %v663_v5, 1  ;;  %v635_v22 = vshll.u32 %v1702_v6, 16  ;;  %v1481_v63 = vld [vmem:[%s1955_s1] sm:$0xff]   ;;  %v1482_v5 = vld [vmem:[%s1955_s1 + $0x8] sm:$0xff]  }
  0x2b   : >> { %v661_v23 = vor.u32 %v660_v11, %v656_v4  ;;  %v625_v24 = vor.u32 %v624_v13, %v620_v12  ;;  %v629_v25 = vrot.slane %v627_v14, 1  ;;  %v631_v29 = vshrl.u32 %v1466_v2, 16  ;;  %1356 = vmatprep.subr.bf16.mxu0 %v1481_v63  ;;  %1384 = vmatprep.subr.bf16.mxu1 %v1481_v63 }
  0x2c   : >> { %v669_v26 = vor.u32 %v667_v16, %v665_v21  ;;  %v673_v28 = vrot.slane %v671_v17, 1  ;;  %v379_v30 = vshll.u32 %v1709_v18, 16  ;;  %v637_v34 = vrot.slane %v635_v22, 1  ;;  %1357 = vmatpush3.bf16.msra.mxu0 %v1481_v63  ;;  %1390 = vmatpush3.bf16.msra.mxu1 %v1481_v63 }
  0x2d   : >> { %549 = vrot.lane.b32.xlu1 %v516_v54, %s1537_s20  ;;  %541 = vrot.lane.b32.xlu0 %v480_v60, %s1537_s20  ;;  %v375_v35 = vshrl.u32 %v1652_v20, 16  ;;  %v339_v39 = vshrl.u32 %v1633_v8, 16  ;;  %v675_v40 = vshrl.u32 %v1698_v3, 16  ;;  %v666_v42 = vsel %vm318_vm0, %v661_v23, %v665_v21 }
  0x2e   : >> { %v630_v43 = vsel %vm318_vm0, %v625_v24, %v629_v25  ;;  %v674_v44 = vsel %vm318_vm0, %v669_v26, %v673_v28  ;;  %v633_v45 = vor.u32 %v631_v29, %v629_v25  ;;  %v381_v46 = vrot.slane %v379_v30, 1  ;;  %1358 = vmatprep.subr.bf16.mxu0 %v1482_v5  ;;  %1385 = vmatprep.subr.bf16.mxu1 %v1482_v5 }
  0x2f   : >> { %v343_v47 = vshll.u32 %v1716_v31, 16  ;;  %v677_v49 = vor.u32 %v675_v40, %v673_v28  ;;  %v679_v50 = vshll.u32 %v1719_v32, 16  ;;  %v377_v52 = vor.u32 %v375_v35, %v1666_v36  ;;  %v1473_v40 = vld [vmem:[%s1619_s11 + $0x60] sm:$0xff]  }
  0x30   : >> { %v643_v54 = vshll.u32 %v1725_v38, 16  ;;  %v683_v55 = vshrl.u32 %v1719_v32, 16  ;;  %v383_v58 = vshrl.u32 %v1709_v18, 16  ;;  %v687_v61 = vshll.u32 %v1479_v51, 16  ;;  %1359 = vmatpush3.bf16.msra.mxu0 %v1482_v5  ;;  %1391 = vmatpush3.bf16.msra.mxu1 %v1482_v5 }
  0x31   : >> { %551 = vrot.lane.b32.xlu1 %v524_v1, %s1537_s20  ;;  %543 = vrot.lane.b32.xlu0 %v488_v9, %s1537_s20  ;;  %v681_v60 = vrot.slane %v679_v50, 1  ;;  %v651_v4 = vshll.u32 %v1480_v57, 16  ;;  %v638_v9 = vsel %vm318_vm0, %v633_v45, %v637_v34  ;;  %v347_v14 = vshrl.u32 %v1716_v31, 16  ;;  %v1476_v51 = vld [vmem:[%s1619_s11 + $0x44] ss:$0 sps:$4 sm:$0x11]  }
  0x32   : >> { %v645_v1 = vrot.slane %v643_v54, 1  ;;  %v689_v13 = vrot.slane %v687_v61, 1  ;;  %v341_v22 = vor.u32 %v339_v39, %v1649_v19  ;;  %v345_v23 = vrot.slane %v343_v47, 1  ;;  %v1483_v19 = vld [vmem:[%s1955_s1 + $0x10] sm:$0xff]   ;;  %v1486_v57 = vld [vmem:[%s1955_s1 + $0x28] sm:$0xff]  }
  0x33   : >> { %v1754_v11 = vsel %vm318_vm0, %v677_v49, %v681_v60  ;;  %v685_v12 = vor.u32 %v683_v55, %v681_v60  ;;  %v653_v21 = vrot.slane %v651_v4, 1  ;;  %v382_v26 = vsel %vm318_vm0, %v377_v52, %v381_v46  ;;  %1360 = vmatprep.subr.bf16.mxu0 %v1483_v19  ;;  %1386 = vmatprep.subr.bf16.mxu1 %v1483_v19  ;;  %v1475_v47 = vld [vmem:[%s1619_s11 + $0x68] ss:$0 sps:$4 sm:$0x11]  }
  0x34   : >> { %v385_v28 = vor.u32 %v383_v58, %v381_v46  ;;  %v349_v35 = vor.u32 %v347_v14, %v345_v23  ;;  %1361 = vmatpush3.bf16.msra.mxu0 %v1483_v19  ;;  %1392 = vmatpush3.bf16.msra.mxu1 %v1483_v19  ;;  %v525_v45 = vshrl.u32 %v1662_v33, 16  ;;  %v529_v46 = vshll.u32 %v1473_v40, 16 }
  0x35   : >> { %605 = vrot.lane.b32.xlu1 %v1463_v48, %s1538_s21  ;;  %597 = vrot.lane.b32.xlu0 %v1464_v53, %s1538_s21  ;;  %v1472_v48 = vld [vmem:[%s1619_s11 + $0x20] ss:$0 sps:$4 sm:$0x11]   ;;  %v639_v53 = vshrl.u32 %v1702_v6, 16  ;;  %v1764_v25 = vsel %vm318_vm0, %v685_v12, %v689_v13  ;;  %v489_v49 = vshrl.u32 %v1673_v41, 16  ;;  %v533_v54 = vshrl.u32 %v1473_v40, 16 }
  0x36   : >> { %v351_v24 = vshll.u32 %v1472_v48, 16  ;;  %v1485_v48 = vld [vmem:[%s1955_s1 + $0x20] sm:$0xff]   ;;  %v527_v52 = vor.u32 %v525_v45, %v1685_v56  ;;  %v537_v55 = vshll.u32 %v1475_v47, 16  ;;  %v501_v56 = vshll.u32 %v1476_v51, 16 }
  0x37   : >> { %v641_v36 = vor.u32 %v639_v53, %v637_v34  ;;  %v346_v34 = vsel %vm318_vm0, %v341_v22, %v345_v23  ;;  %v531_v53 = vrot.slane %v529_v46, 1 }
  0x38   : >> { %v539_v63 = vrot.slane %v537_v55, 1 }
  0x39   : >> { %607 = vrot.lane.b32.xlu1 %v1465_v59, %s1538_s21  ;;  %599 = vrot.lane.b32.xlu0 %v1466_v2, %s1538_s21  ;;  %v387_v59 = vshll.u32 %v1471_v37, 16  ;;  %v647_v2 = vshrl.u32 %v1725_v38, 16  ;;  %v1759_v16 = vsel %vm318_vm0, %v641_v36, %v645_v1  ;;  %v353_v37 = vrot.slane %v351_v24, 1 }
  0x3a   : >> { %v532_v60 = vsel %vm318_vm0, %v527_v52, %v531_v53  ;;  %v535_v61 = vor.u32 %v533_v54, %v531_v53 }
  0x3b   : >> { %v649_v17 = vor.u32 %v647_v2, %v645_v1  ;;  %v389_v29 = vrot.slane %v387_v59, 1  ;;  %v503_v1 = vrot.slane %v501_v56, 1 }
  0x3d   : >> { %699 = vrot.lane.b32.xlu1 %v666_v42, %s1539_s23  ;;  %691 = vrot.lane.b32.xlu0 %v630_v43, %s1539_s23  ;;  %v1768_v30 = vsel %vm318_vm0, %v649_v17, %v653_v21  ;;  %v390_v39 = vsel %vm318_vm0, %v385_v28, %v389_v29  ;;  %v1484_v42 = vld [vmem:[%s1955_s1 + $0x18] sm:$0xff]   ;;  %v354_v43 = vsel %vm318_vm0, %v349_v35, %v353_v37 }
  0x3e   : >> { %1362 = vmatprep.subr.bf16.mxu0 %v1484_v42  ;;  %1387 = vmatprep.subr.bf16.mxu1 %v1484_v42 }
  0x3f   : >> { %1363 = vmatpush3.bf16.msra.mxu0 %v1484_v42  ;;  %1393 = vmatpush3.bf16.msra.mxu1 %v1484_v42 }
  0x40   : >> { %1364 = vmatprep.subr.bf16.mxu0 %v1485_v48  ;;  %1388 = vmatprep.subr.bf16.mxu1 %v1485_v48 }
  0x41   : >> { %701 = vrot.lane.b32.xlu1 %v674_v44, %s1539_s23  ;;  %693 = vrot.lane.b32.xlu0 %v638_v9, %s1539_s23  ;;  %v1474_v44 = vld [vmem:[%s1619_s11 + $0x3c] sm:$0xff]   ;;  %s1540_s11 = smov 96  }
  0x42   : >> { %v493_v50 = vshll.u32 %v1474_v44, 16  ;;  %v497_v59 = vshrl.u32 %v1474_v44, 16 }
  0x43   : >> { %1365 = vmatpush3.bf16.msra.mxu0 %v1485_v48  ;;  %1394 = vmatpush3.bf16.msra.mxu1 %v1485_v48 }
  0x44   : >> { %v495_v58 = vrot.slane %v493_v50, 1  ;;  %1366 = vmatprep.subr.bf16.mxu0 %v1486_v57  ;;  %1389 = vmatprep.subr.bf16.mxu1 %v1486_v57 }
  0x45   : >> { %403 = vrot.lane.b32.xlu1 %v382_v26, %s1536_s19  ;;  %395 = vrot.lane.b32.xlu0 %v346_v34, %s1536_s19 }
  0x46   : >> { %v499_v36 = vor.u32 %v497_v59, %v495_v58 }
  0x47   : >> { %1367 = vmatpush3.bf16.msra.mxu0 %v1486_v57  ;;  %1395 = vmatpush3.bf16.msra.mxu1 %v1486_v57 }
  0x48   : >> { %v504_v2 = vsel %vm318_vm0, %v499_v36, %v503_v1 }
  0x49   : >> { %405 = vrot.lane.b32.xlu1 %v390_v39, %s1536_s19  ;;  %397 = vrot.lane.b32.xlu0 %v354_v43, %s1536_s19 }
  0x4d   : >> { %459 = vrot.lane.b32.xlu1 %v1662_v33, %s1535_s13  ;;  %451 = vrot.lane.b32.xlu0 %v1673_v41, %s1535_s13  ;;  %v491_v33 = vor.u32 %v489_v49, %v1692_v62  ;;  %v540_v62 = vsel %vm318_vm0, %v535_v61, %v539_v63 }
  0x4f   : >> { %v496_v41 = vsel %vm318_vm0, %v491_v33, %v495_v58 }
  0x51   : >> { %461 = vrot.lane.b32.xlu1 %v1473_v40, %s1535_s13  ;;  %453 = vrot.lane.b32.xlu0 %v1474_v44, %s1535_s13  ;;  %s1341_s13 = sshll.u32 %s1533_s7, 5  ;;  %s204_s7 = sadd.s32 1, %s1533_s7  }
  0x52   : >> { %s1906_s19 = scalar_lea.vmem %s1608_s6, %s1341_s13  ;;  %p201_p7 = scmp.ge.s32.totalorder %s204_s7, 16  }
  0x55   : >> { %553 = vrot.lane.b32.xlu1 %v532_v60, %s1537_s20  ;;  %545 = vrot.lane.b32.xlu0 %v496_v41, %s1537_s20 }
  0x59   : >> { %555 = vrot.lane.b32.xlu1 %v540_v62, %s1537_s20  ;;  %547 = vrot.lane.b32.xlu0 %v504_v2, %s1537_s20 }
  0x5d   : >> { %609 = vrot.lane.b32.xlu1 %v1698_v3, %s1538_s21  ;;  %601 = vrot.lane.b32.xlu0 %v1702_v6, %s1538_s21 }
  0x61   : >> { %611 = vrot.lane.b32.xlu1 %v1719_v32, %s1538_s21  ;;  %603 = vrot.lane.b32.xlu0 %v1725_v38, %s1538_s21 }
  0x65   : >> { %703 = vrot.lane.b32.xlu1 %v1754_v11, %s1539_s23  ;;  %695 = vrot.lane.b32.xlu0 %v1759_v16, %s1539_s23 }
  0x69   : >> { %705 = vrot.lane.b32.xlu1 %v1764_v25, %s1539_s23  ;;  %697 = vrot.lane.b32.xlu0 %v1768_v30, %s1539_s23 }
  0x8e   : >> { %v456_v3 = vpop.permute.xlu1 %455 }
  0x8f   : >> { %v448_v6 = vpop.permute.xlu0 %447 }
  0x92   : >> { %v458_v4 = vpop.permute.xlu1 %457 }
  0x93   : >> { %v450_v5 = vpop.permute.xlu0 %449 }
  0x97   : >> { %v394_v32 = vpop.permute.xlu1 %393  ;;  %v392_v9 = vpop.permute.xlu0 %391 }
  0x98   : >> { %v709_v24 = vsel %vm707_vm1, %v1637_v10, %v392_v9  ;;  %v711_v10 = vsel %vm707_vm1, %v1630_v7, %v394_v32 }
  0x99   : >> { %v726_v19 = vsel %vm724_vm3, %v709_v24, %v448_v6  ;;  %v728_v45 = vsel %vm724_vm3, %v711_v10, %v450_v5 }
  0x9b   : >> { %v402_v12 = vpop.permute.xlu1 %401  ;;  %v400_v38 = vpop.permute.xlu0 %399 }
  0x9c   : >> { %v717_v16 = vsel %vm707_vm1, %v1658_v27, %v400_v38  ;;  %v719_v26 = vsel %vm707_vm1, %v1645_v15, %v402_v12 }
  0x9d   : >> { %v734_v25 = vsel %vm724_vm3, %v717_v16, %v456_v3  ;;  %v736_v37 = vsel %vm724_vm3, %v719_v26, %v458_v4 }
  0x9f   : >> { %v550_v13 = vpop.permute.xlu1 %549  ;;  %v542_v14 = vpop.permute.xlu0 %541 }
  0xa0   : >> { %v751_v28 = vsel %vm741_vm2, %v734_v25, %v550_v13  ;;  %v743_v35 = vsel %vm741_vm2, %v726_v19, %v542_v14 }
  0xa3   : >> { %v552_v11 = vpop.permute.xlu1 %551  ;;  %v544_v17 = vpop.permute.xlu0 %543 }
  0xa4   : >> { %v753_v15 = vsel %vm741_vm2, %v736_v37, %v552_v11  ;;  %v745_v46 = vsel %vm741_vm2, %v728_v45, %v544_v17 }
  0xa7   : >> { %v606_v21 = vpop.permute.xlu1 %605  ;;  %v598_v22 = vpop.permute.xlu0 %597 }
  0xa8   : >> { %v768_v27 = vsel %vm758_vm4, %v751_v28, %v606_v21  ;;  %v760_v39 = vsel %vm758_vm4, %v743_v35, %v598_v22 }
  0xab   : >> { %v608_v23 = vpop.permute.xlu1 %607  ;;  %v600_v29 = vpop.permute.xlu0 %599 }
  0xac   : >> { %v770_v42 = vsel %vm758_vm4, %v753_v15, %v608_v23  ;;  %v762_v47 = vsel %vm758_vm4, %v745_v46, %v600_v29 }
  0xaf   : >> { %v700_v30 = vpop.permute.xlu1 %699  ;;  %v692_v40 = vpop.permute.xlu0 %691 }
  0xb0   : >> { %v785_v34 = vsel %vm775_vm5, %v768_v27, %v700_v30  ;;  %v777_v43 = vsel %vm775_vm5, %v760_v39, %v692_v40 }
  0xb1   : >> { %1376 = vmatprep.mubr.msk.bf16.mxu1 %vm840_vm6, %v785_v34  ;;  %1368 = vmatprep.mubr.msk.bf16.mxu0 %vm840_vm6, %v777_v43 }
  0xb3   : >> { %v702_v44 = vpop.permute.xlu1 %701  ;;  %v694_v48 = vpop.permute.xlu0 %693 }
  0xb4   : >> { %v787_v7 = vsel %vm775_vm5, %v770_v42, %v702_v44  ;;  %v779_v49 = vsel %vm775_vm5, %v762_v47, %v694_v48 }
  0xb5   : >> { %1377 = vmatmul.mubr.msk.bf16.vlgmr.msra.gmra.mrb[0].mxu1 %vm840_vm6, %v787_v7  ;;  %1369 = vmatmul.mubr.msk.bf16.vlgmr.msra.gmra.mrb[0].mxu0 %vm840_vm6, %v779_v49 }
  0xb7   : >> { %v404_v50 = vpop.permute.xlu1 %403  ;;  %v396_v51 = vpop.permute.xlu0 %395 }
  0xb8   : >> { %v721_v63 = vsel %vm707_vm1, %v1652_v20, %v404_v50  ;;  %v713_v6 = vsel %vm707_vm1, %v1633_v8, %v396_v51 }
  0xbb   : >> { %v406_v52 = vpop.permute.xlu1 %405  ;;  %v398_v53 = vpop.permute.xlu0 %397 }
  0xbc   : >> { %v723_v62 = vsel %vm707_vm1, %v1709_v18, %v406_v52  ;;  %v715_v8 = vsel %vm707_vm1, %v1716_v31, %v398_v53 }
  0xbf   : >> { %v460_v54 = vpop.permute.xlu1 %459  ;;  %v452_v55 = vpop.permute.xlu0 %451 }
  0xc0   : >> { %v738_v1 = vsel %vm724_vm3, %v721_v63, %v460_v54  ;;  %v730_v32 = vsel %vm724_vm3, %v713_v6, %v452_v55 }
  0xc3   : >> { %v462_v57 = vpop.permute.xlu1 %461  ;;  %v454_v33 = vpop.permute.xlu0 %453 }
  0xc4   : >> { %v740_v9 = vsel %vm724_vm3, %v723_v62, %v462_v57  ;;  %v732_v21 = vsel %vm724_vm3, %v715_v8, %v454_v33 }
  0xc7   : >> { %v554_v58 = vpop.permute.xlu1 %553  ;;  %v546_v59 = vpop.permute.xlu0 %545 }
  0xc8   : >> { %v755_v2 = vsel %vm741_vm2, %v738_v1, %v554_v58  ;;  %v747_v12 = vsel %vm741_vm2, %v730_v32, %v546_v59 }
  0xcb   : >> { %v556_v56 = vpop.permute.xlu1 %555  ;;  %v548_v60 = vpop.permute.xlu0 %547 }
  0xcc   : >> { %v757_v18 = vsel %vm741_vm2, %v740_v9, %v556_v56  ;;  %v749_v22 = vsel %vm741_vm2, %v732_v21, %v548_v60 }
  0xcf   : >> { %v610_v61 = vpop.permute.xlu1 %609  ;;  %v602_v41 = vpop.permute.xlu0 %601 }
  0xd0   : >> { %v772_v4 = vsel %vm758_vm4, %v755_v2, %v610_v61  ;;  %v764_v38 = vsel %vm758_vm4, %v747_v12, %v602_v41 }
  0xd3   : >> { %v612_v36 = vpop.permute.xlu1 %611  ;;  %v604_v3 = vpop.permute.xlu0 %603 }
  0xd4   : >> { %v774_v14 = vsel %vm758_vm4, %v757_v18, %v612_v36  ;;  %v766_v23 = vsel %vm758_vm4, %v749_v22, %v604_v3 }
  0xd7   : >> { %v704_v5 = vpop.permute.xlu1 %703  ;;  %v696_v13 = vpop.permute.xlu0 %695 }
  0xd8   : >> { %v789_v20 = vsel %vm775_vm5, %v772_v4, %v704_v5  ;;  %v781_v11 = vsel %vm775_vm5, %v764_v38, %v696_v13 }
  0xd9   : >> { %1380 = vmatprep.mubr.msk.bf16.mxu1 %vm840_vm6, %v789_v20  ;;  %1372 = vmatprep.mubr.msk.bf16.mxu0 %vm840_vm6, %v781_v11 }
  0xdb   : >> { %v706_v17 = vpop.permute.xlu1 %705  ;;  %v698_v24 = vpop.permute.xlu0 %697 }
  0xdc   : >> { %v791_v16 = vsel %vm775_vm5, %v774_v14, %v706_v17  ;;  %v783_v31 = vsel %vm775_vm5, %v766_v23, %v698_v24 }
  0xdd   : >> { %1381 = vmatmul.mubr.msk.bf16.gmra.mrb[4].mxu1 %vm840_vm6, %v791_v16  ;;  %1373 = vmatmul.mubr.msk.bf16.gmra.mrb[4].mxu0 %vm840_vm6, %v783_v31 }
 0x188   : >> { %v1378_v25 = vpop.f32.mrb[0].mxu1  ;;  %v1370_v29 = vpop.f32.mrb[0].mxu0 }
 0x189   : >> { %v923_v26 = vpop.f32.mrb[1].mxu1  ;;  %974 = vrot.lane.b32.xlu0 %v1370_v29, %s1540_s11  ;;  %v891_v30 = vpop.f32.mrb[1].mxu0 }
 0x18a   : >> { %v1379_v28 = vpop.f32.mrb[2].mxu1  ;;  %v1371_v19 = vpop.f32.mrb[2].mxu0 }
 0x18b   : >> { %v926_v27 = vpop.f32.mrb[3].mxu1  ;;  %976 = vrot.lane.b32.xlu1 %v1371_v19, %s1540_s11  ;;  %v894_v34 = vpop.f32.mrb[3].mxu0 }
 0x18d   : >> { %990 = vrot.lane.b32.xlu0 %v1378_v25, %s1540_s11 }
 0x18f   : >> { %992 = vrot.lane.b32.xlu1 %v1379_v28, %s1540_s11 }
 0x191   : >> { %970 = vrot.lane.b32.xlu0 %v891_v30, %s1540_s11 }
 0x193   : >> { %972 = vrot.lane.b32.xlu1 %v894_v34, %s1540_s11 }
 0x195   : >> { %986 = vrot.lane.b32.xlu0 %v923_v26, %s1540_s11 }
 0x197   : >> { %988 = vrot.lane.b32.xlu1 %v926_v27, %s1540_s11 }
 0x1b0   : >> { %v1884_v10 = vpop.f32.mrb[4].mxu1  ;;  %v1890_v15 = vpop.f32.mrb[4].mxu0 }
 0x1b1   : >> { %v1886_v35 = vpop.f32.mrb[5].mxu1  ;;  %982 = vrot.lane.b32.xlu0 %v1890_v15, %s1540_s11  ;;  %v907_v40 = vpop.f32.mrb[5].mxu0 }
 0x1b2   : >> { %v1888_v37 = vpop.f32.mrb[6].mxu1  ;;  %v1895_v42 = vpop.f32.mrb[6].mxu0 }
 0x1b3   : >> { %v1892_v39 = vpop.f32.mrb[7].mxu1  ;;  %984 = vrot.lane.b32.xlu1 %v1895_v42, %s1540_s11  ;;  %v910_v43 = vpop.f32.mrb[7].mxu0 }
 0x1b5   : >> { %978 = vrot.lane.b32.xlu0 %v907_v40, %s1540_s11 }
 0x1b7   : >> { %980 = vrot.lane.b32.xlu1 %v910_v43, %s1540_s11 }
 0x1b9   : >> { %994 = vrot.lane.b32.xlu0 %v1886_v35, %s1540_s11 }
 0x1bb   : >> { %996 = vrot.lane.b32.xlu1 %v1892_v39, %s1540_s11 }
 0x1bd   : >> { %998 = vrot.lane.b32.xlu0 %v1884_v10, %s1540_s11 }
 0x1bf   : >> { %1000 = vrot.lane.b32.xlu1 %v1888_v37, %s1540_s11 }
 0x1fb   : >> { %v975_v44 = vpop.permute.xlu0 %974 }
 0x1fc   : >> { %v1020_v46 = vmax.f32 %v1370_v29, %v975_v44 }
 0x1fd   : >> { %v977_v45 = vpop.permute.xlu1 %976 }
 0x1fe   : >> { %v1021_v49 = vmax.f32 %v1371_v19, %v977_v45 }
 0x1ff   : >> { %v991_v7 = vpop.permute.xlu0 %990 }
 0x200   : >> { %v1028_v47 = vmax.f32 %v1378_v25, %v991_v7 }
 0x201   : >> { %v993_v48 = vpop.permute.xlu1 %992 }
 0x202   : >> { %v1036_v50 = vmax.f32 %v1020_v46, %v1028_v47  ;;  %v1029_v51 = vmax.f32 %v1379_v28, %v993_v48 }
 0x203   : >> { %v971_v52 = vpop.permute.xlu0 %970 }
 0x204   : >> { %v1050_v53 = vadd.f32 %v1597_v0, %v1036_v50  ;;  %v1037_v54 = vmax.f32 %v1021_v49, %v1029_v51  ;;  %v1018_v60 = vmax.f32 %v891_v30, %v971_v52 }
 0x205   : >> { %v973_v55 = vpop.permute.xlu1 %972 }
 0x206   : >> { %v1058_v57 = vmax.f32 %v1050_v53, 0.0  ;;  %v1051_v33 = vadd.f32 %v1597_v0, %v1037_v54  ;;  %v1019_v36 = vmax.f32 %v894_v34, %v973_v55 }
 0x207   : >> { %v987_v58 = vpop.permute.xlu0 %986 }
 0x208   : >> { %v1335_v59 = vpack.c.bf16 %v1058_v57, %v1058_v57  ;;  %v1059_v56 = vmax.f32 %v1051_v33, 0.0  ;;  %v1026_v61 = vmax.f32 %v923_v26, %v987_v58 }
 0x209   : >> { %v989_v63 = vpop.permute.xlu1 %988 }
 0x20a   : >> { %1102 = vst.msk [vmem:[%s1906_s19 + $0x8] sm:$0xf] %vm1099_vm7, %v1335_v59  ;;  %v1336_v41 = vpack.c.bf16 %v1059_v56, %v1059_v56  ;;  %v1034_v1 = vmax.f32 %v1018_v60, %v1026_v61  ;;  %v1027_v62 = vmax.f32 %v926_v27, %v989_v63 }
 0x20c   : >> { %1103 = vst.msk [vmem:[%s1906_s19 + $0xc] sm:$0xf] %vm1099_vm7, %v1336_v41  ;;  %v1048_v2 = vadd.f32 %v1597_v0, %v1034_v1  ;;  %v1035_v3 = vmax.f32 %v1019_v36, %v1027_v62 }
 0x20e   : >> { %v1056_v6 = vmax.f32 %v1048_v2, 0.0  ;;  %v1049_v4 = vadd.f32 %v1597_v0, %v1035_v3 }
 0x210   : >> { %v1333_v5 = vpack.c.bf16 %v1056_v6, %v1056_v6  ;;  %v1057_v32 = vmax.f32 %v1049_v4, 0.0 }
 0x212   : >> { %1100 = vst.msk [vmem:[%s1906_s19] sm:$0xf] %vm1099_vm7, %v1333_v5  ;;  %v1334_v20 = vpack.c.bf16 %v1057_v32, %v1057_v32 }
 0x214   : >> { %1101 = vst.msk [vmem:[%s1906_s19 + $0x4] sm:$0xf] %vm1099_vm7, %v1334_v20 }
 0x223   : >> { %v983_v9 = vpop.permute.xlu0 %982 }
 0x224   : >> { %v1024_v23 = vmax.f32 %v1890_v15, %v983_v9 }
 0x225   : >> { %v985_v12 = vpop.permute.xlu1 %984 }
 0x226   : >> { %v1025_v26 = vmax.f32 %v1895_v42, %v985_v12 }
 0x227   : >> { %v979_v18 = vpop.permute.xlu0 %978 }
 0x228   : >> { %v1022_v8 = vmax.f32 %v907_v40, %v979_v18 }
 0x229   : >> { %v981_v38 = vpop.permute.xlu1 %980 }
 0x22a   : >> { %v1023_v17 = vmax.f32 %v910_v43, %v981_v38 }
 0x22b   : >> { %v995_v13 = vpop.permute.xlu0 %994 }
 0x22c   : >> { %v1030_v14 = vmax.f32 %v1886_v35, %v995_v13 }
 0x22d   : >> { %v997_v11 = vpop.permute.xlu1 %996 }
 0x22e   : >> { %v1038_v21 = vmax.f32 %v1022_v8, %v1030_v14  ;;  %v1031_v16 = vmax.f32 %v1892_v39, %v997_v11 }
 0x22f   : >> { %v999_v22 = vpop.permute.xlu0 %998 }
 0x230   : >> { %v1052_v24 = vadd.f32 %v1597_v0, %v1038_v21  ;;  %v1039_v31 = vmax.f32 %v1023_v17, %v1031_v16  ;;  %v1032_v25 = vmax.f32 %v1884_v10, %v999_v22 }
 0x231   : >> { %v1001_v28 = vpop.permute.xlu1 %1000 }
 0x232   : >> { %v1060_v29 = vmax.f32 %v1052_v24, 0.0  ;;  %v1053_v27 = vadd.f32 %v1597_v0, %v1039_v31  ;;  %v1040_v30 = vmax.f32 %v1024_v23, %v1032_v25  ;;  %v1033_v19 = vmax.f32 %v1888_v37, %v1001_v28 }
 0x234   : >> { %v1337_v34 = vpack.c.bf16 %v1060_v29, %v1060_v29  ;;  %v1061_v35 = vmax.f32 %v1053_v27, 0.0  ;;  %v1054_v15 = vadd.f32 %v1597_v0, %v1040_v30  ;;  %v1041_v39 = vmax.f32 %v1025_v26, %v1033_v19 }
 0x236   : >> { %1104 = vst.msk [vmem:[%s1906_s19 + $0x10] sm:$0xf] %vm1099_vm7, %v1337_v34  ;;  %v1338_v40 = vpack.c.bf16 %v1061_v35, %v1061_v35  ;;  %v1062_v10 = vmax.f32 %v1054_v15, 0.0  ;;  %v1055_v42 = vadd.f32 %v1597_v0, %v1041_v39  ;;  %203 = sbr.rel (!%p201_p7) target bundleno = 22 (0x16), region = 73 }
 0x238   : >> { %1105 = vst.msk [vmem:[%s1906_s19 + $0x14] sm:$0xf] %vm1099_vm7, %v1338_v40  ;;  %v1339_v43 = vpack.c.bf16 %v1062_v10, %v1062_v10  ;;  %v1063_v44 = vmax.f32 %v1055_v42, 0.0 }
 0x23a   : >> { %1106 = vst.msk [vmem:[%s1906_s19 + $0x18] sm:$0xf] %vm1099_vm7, %v1339_v43  ;;  %v1340_v45 = vpack.c.bf16 %v1063_v44, %v1063_v44 }
 0x23c   : >> { %1107 = vst.msk [vmem:[%s1906_s19 + $0x1c] sm:$0xf] %vm1099_vm7, %v1340_v45 }
 0x23d PF: > { %s13_s16 = sadd.s32 1, %s1529_s16   ;;  %s1958_s12 = smov %s1521_s14 }
 0x23e   : > { %p10_p8 = scmp.ge.s32.totalorder %s13_s16, 10   ;;  %s1959_s13 = smov %s1525_s15 }
 0x23f   : > { %s1960_s14 = smov %s1963_s17  ;;  %s1961_s15 = smov %s1967_s18 }
 0x240   :  { %12 = sbr.rel (!%p10_p8) target bundleno = 3 (0x3), region = 84 }

// kernel: cnn_forward.5
= control target key start
LH: loop header
LB: loop body
LE: loop exit
PB: predicated region body
PF: predicated region fallthrough
CT: control target
= control target key end

     0   :  { %s2126_s12 = smov 0   ;;  %s2128_s13 = smov 0   ;;  %s2584_s0 = inlined_call_operand.vmem [shape: bf16[2,66,33,64], index: 0, kind: input, shape index: {}]   ;;  %s2585_s1 = inlined_call_operand.vmem [shape: bf16[3,128,128], index: 1, kind: input, shape index: {}]   ;;  %s2586_s2 = inlined_call_operand.vmem [shape: f32[1,64], index: 2, kind: input, shape index: {}]   ;;  %s2587_s3 = inlined_call_operand.vmem [shape: bf16[2,32,32,64], index: 3, kind: output, shape index: {}]  }
   0x1   :  { %s2130_s14 = smov 0   ;;  %s2132_s15 = smov 0  }
   0x2   :  { %s2134_s16 = smov 0  }
   0x3 LB: > { %s22_s17 = sadd.s32 1, %s2091_s14  ;;  %s25_s18 = sadd.s32 1, %s2095_s15  ;;  %s2099_s16 = sphi %s2134_s16, %s13_s16   ;;  %s2095_s15 = sphi %s2132_s15, %s2591_s15   ;;  %s2091_s14 = sphi %s2130_s14, %s2590_s14   ;;  %s2087_s13 = sphi %s2128_s13, %s2589_s13   ;;  %s2083_s12 = sphi %s2126_s12, %s2588_s12  }
   0x4   : > { %p23_p0 = scmp.ge.s32.totalorder %s22_s17, 4  ;;  %p1578_p1 = scmp.ge.s32.totalorder %s2099_s16, 1 }
   0x5   : > { %p151_p2 = scmp.lt.s32.totalorder %s2099_s16, 9 }
   0x6   : > { %s2593_s17 = smov (%p23_p0, %s22_s17), 0  ;;  %s2595_s18 = smov (!%p23_p0, %s25_s18), %s2095_s15 }
   0x7   : > { %p152_p3 = pnand %p1578_p1, %p151_p2  ;;  %p27_p4 = scmp.ge.s32.totalorder %s2595_s18, 2 }
   0x8   : > { %p180_p5 = scmp.lt.s32.totalorder (!%p152_p3), %s2087_s13, 1  ;;  %s1580_s19 = sshll.u32 (!%p152_p3), %s2083_s12, 3  ;;  %v2162_v0 = vld [vmem:[%s2586_s2] ss:$0 sm:$0xff] (!%p152_p3) }
   0x9   : > { %s2597_s18 = smov (%p27_p4, %s2595_s18), 0  ;;  %155 = sbr.rel (%p152_p3) target bundleno = 557 (0x22d), region = 32 }
   0xa   : > { %p188_p6 = scmp.lt.s32.totalorder (!%p152_p3), %s1580_s19, 31  ;;  %s1584_s22 = sshll.u32 (!%p152_p3), %s2083_s12, 4 }
   0xb   : > { %s2175_s7 = smov (!%p152_p3), 0  }
  0x10   : > { %s2599_s13 = smov (!%p180_p5, %s2087_s13), 1  ;;  %s2601_s19 = smov (!%p188_p6, %s1580_s19), 31 }
  0x11   : > { %s1947_s23 = smul.u32 1320, %s2599_s13  ;;  %s1582_s24 = sshll.u32 %s2599_s13, 7 }
  0x12   : > { %s1581_s25 = sshll.u32 %s2601_s19, 2 }
  0x13   : > { %s2168_s28 = scalar_lea.vmem %s2584_s0, %s1947_s23  ;;  %s192_s29 = sadd.s32 %s1582_s24, %s1581_s25 }
  0x14   : > { %s1583_s30 = sshll.u32 %s192_s29, 2 }
  0x15   : > { %s2173_s6 = scalar_lea.vmem %s2587_s3, %s1583_s30 }
  0x16 LB: >> { %v2033_v1 = vld [vmem:[%s2585_s1] sm:$0xff]   ;;  %s1585_s10 = sshll.u32 %s2103_s7, 2  ;;  %v2035_v3 = vld [vmem:[%s2585_s1 + $0x8] sm:$0xff]   ;;  %vm282_vm0 = vsmask.f32 7424  ;;  %v2037_v5 = vld [vmem:[%s2585_s1 + $0x10] sm:$0xff]   ;;  %s2103_s7 = sphi %s2175_s7, %s204_s7  }
  0x17   : >> { %1835 = vmatprep.subr.bf16.mxu0 %v2033_v1  ;;  %v2034_v2 = vld [vmem:[%s2585_s1 + $0x40] sm:$0xff]   ;;  %s206_s19 = sadd.s32 %s1585_s10, %s1584_s22  ;;  %v2036_v4 = vld [vmem:[%s2585_s1 + $0x48] sm:$0xff]   ;;  %v2038_v6 = vld [vmem:[%s2585_s1 + $0x50] sm:$0xff]   ;;  %s2105_s5 = smov 64   ;;  %vm379_vm1 = vcmask 523264   ;;  %vm1415_vm2 = vcmask 519168  }
  0x18   : >> { %1836 = vmatpush3.bf16.msra.mxu0 %v2033_v1  ;;  %s1743_s23 = smul.u32 20, %s206_s19  ;;  %1803 = vmatprep.subr.bf16.mxu1 %v2034_v2 }
  0x19   : >> { %1804 = vmatpush3.bf16.msra.mxu1 %v2034_v2  ;;  %1837 = vmatprep.subr.bf16.mxu0 %v2035_v3 }
  0x1a   : >> { %s2199_s29 = scalar_lea.vmem %s2168_s28, %s1743_s23  ;;  %1805 = vmatprep.subr.bf16.mxu1 %v2036_v4 }
  0x1b   : >> { %v2205_v7 = vld [vmem:[%s2199_s29] sm:$0xff]   ;;  %v2208_v8 = vld [vmem:[%s2199_s29 + $0x8] sm:$0xff]   ;;  %v1999_v9 = vld [vmem:[%s2199_s29 + $0x10] ss:$0 sps:$4 sm:$0x11]  }
  0x1c   : >> { %1838 = vmatpush3.bf16.msra.mxu0 %v2035_v3  ;;  %v2212_v10 = vld [vmem:[%s2199_s29 + $0x14] sm:$0xff]   ;;  %v284_v11 = vshrl.u32 %v2205_v7, 16  ;;  %v286_v12 = vshll.u32 %v2205_v7, 16  ;;  %v291_v13 = vshll.u32 %v2208_v8, 16  ;;  %v295_v14 = vshrl.u32 %v2208_v8, 16  ;;  %v2219_v16 = vld [vmem:[%s2199_s29 + $0x1c] sm:$0xff]  }
  0x1d   : >> { %1839 = vmatprep.subr.bf16.mxu0 %v2037_v5  ;;  %1806 = vmatpush3.bf16.msra.mxu1 %v2036_v4  ;;  %v299_v15 = vshll.u32 %v1999_v9, 16  ;;  %v497_v19 = vshrl.u32 %v2212_v10, 16  ;;  %v499_v20 = vshll.u32 %v2212_v10, 16  ;;  %v504_v22 = vshll.u32 %v2219_v16, 16  ;;  %v2226_v24 = vld [vmem:[%s2199_s29 + $0x14] sm:$0xff]   ;;  %v2230_v30 = vld [vmem:[%s2199_s29 + $0x1c] sm:$0xff]  }
  0x1e   : >> { %1807 = vmatprep.subr.bf16.mxu1 %v2038_v6  ;;  %v288_v17 = vrot.slane %v286_v12, 1  ;;  %v293_v18 = vrot.slane %v291_v13, 1  ;;  %v508_v23 = vshrl.u32 %v2219_v16, 16  ;;  %v2002_v28 = vld [vmem:[%s2199_s29 + $0x24] ss:$0 sps:$4 sm:$0x11]  }
  0x1f   : >> { %v301_v21 = vrot.slane %v299_v15, 1  ;;  %v501_v27 = vrot.slane %v499_v20, 1  ;;  %v506_v29 = vrot.slane %v504_v22, 1  ;;  %v512_v34 = vshll.u32 %v2002_v28, 16  ;;  %v2235_v35 = vld [vmem:[%s2199_s29 + $0x28] sm:$0xff]   ;;  %v2243_v40 = vld [vmem:[%s2199_s29 + $0x30] sm:$0xff]  }
  0x20   : >> { %1840 = vmatpush3.bf16.msra.mxu0 %v2037_v5  ;;  %v289_v25 = vor.u32 %v288_v17, %v284_v11  ;;  %v297_v26 = vor.u32 %v295_v14, %v293_v18  ;;  %v304_v37 = vshrl.u32 %v2226_v24, 16  ;;  %v306_v38 = vshll.u32 %v2226_v24, 16  ;;  %v2007_v49 = vld [vmem:[%s2199_s29 + $0x24] ss:$0 sps:$4 sm:$0x11]   ;;  %v2257_v58 = vld [vmem:[%s2199_s29 + $0x28] sm:$0xff]  }
  0x21   : >> { %1808 = vmatpush3.bf16.msra.mxu1 %v2038_v6  ;;  %v502_v33 = vor.u32 %v501_v27, %v497_v19  ;;  %v510_v36 = vor.u32 %v508_v23, %v506_v29  ;;  %v311_v39 = vshll.u32 %v2230_v30, 16  ;;  %v514_v42 = vrot.slane %v512_v34, 1  ;;  %v2008_v54 = vld [vmem:[%s2199_s29 + $0x38] ss:$0 sps:$4 sm:$0x11]   ;;  %v2261_v63 = vld [vmem:[%s2199_s29 + $0x30] sm:$0xff]  }
  0x22   : >> { %v294_v31 = vsel %vm282_vm0, %v289_v25, %v293_v18  ;;  %v302_v32 = vsel %vm282_vm0, %v297_v26, %v301_v21  ;;  %v517_v43 = vshrl.u32 %v2235_v35, 16  ;;  %v308_v44 = vrot.slane %v306_v38, 1  ;;  %v2266_v4 = vld [vmem:[%s2199_s29 + $0x3c] sm:$0xff]   ;;  %v2274_v13 = vld [vmem:[%s2199_s29 + $0x44] sm:$0xff]  }
  0x23   : >> { %363 = vrot.lane.b32.xlu0 %v294_v31, %s2105_s5  ;;  %365 = vrot.lane.b32.xlu1 %v302_v32, %s2105_s5  ;;  %v507_v41 = vsel %vm282_vm0, %v502_v33, %v506_v29  ;;  %v313_v45 = vrot.slane %v311_v39, 1  ;;  %v519_v46 = vshll.u32 %v2235_v35, 16  ;;  %v524_v47 = vshll.u32 %v2243_v40, 16  ;;  %v2013_v19 = vld [vmem:[%s2199_s29 + $0x38] ss:$0 sps:$4 sm:$0x11]  }
  0x24   : >> { %v515_v48 = vsel %vm282_vm0, %v510_v36, %v514_v42  ;;  %v315_v50 = vshrl.u32 %v2230_v30, 16  ;;  %v309_v51 = vor.u32 %v308_v44, %v304_v37  ;;  %v528_v55 = vshrl.u32 %v2243_v40, 16  ;;  %v2283_v25 = vld [vmem:[%s2199_s29 + $0x3c] sm:$0xff]   ;;  %v2014_v27 = vld [vmem:[%s2199_s29 + $0x4c] ss:$0 sps:$4 sm:$0x11]  }
  0x25   : >> { %v521_v52 = vrot.slane %v519_v46, 1  ;;  %v526_v53 = vrot.slane %v524_v47, 1  ;;  %v319_v57 = vshll.u32 %v2007_v49, 16  ;;  %v532_v62 = vshll.u32 %v2008_v54, 16  ;;  %v2289_v29 = vld [vmem:[%s2199_s29 + $0x44] sm:$0xff]   ;;  %v2294_v36 = vld [vmem:[%s2199_s29 + $0x50] sm:$0xff]  }
  0x26   : >> { %v317_v56 = vor.u32 %v315_v50, %v313_v45  ;;  %v314_v59 = vsel %vm282_vm0, %v309_v51, %v313_v45  ;;  %v324_v2 = vshrl.u32 %v2257_v58, 16  ;;  %v326_v3 = vshll.u32 %v2257_v58, 16 }
  0x27   : >> { %576 = vrot.lane.b32.xlu0 %v507_v41, %s2105_s5  ;;  %578 = vrot.lane.b32.xlu1 %v515_v48, %s2105_s5  ;;  %v522_v60 = vor.u32 %v521_v52, %v517_v43  ;;  %v530_v61 = vor.u32 %v528_v55, %v526_v53  ;;  %v321_v1 = vrot.slane %v319_v57, 1  ;;  %v534_v6 = vrot.slane %v532_v62, 1  ;;  %v2304_v48 = vld [vmem:[%s2199_s29 + $0x58] sm:$0xff]   ;;  %v2312_v55 = vld [vmem:[%s2199_s29 + $0x28] sm:$0xff]  }
  0x28   : >> { %v331_v9 = vshll.u32 %v2261_v63, 16  ;;  %v328_v12 = vrot.slane %v326_v3, 1  ;;  %v537_v14 = vshrl.u32 %v2266_v4, 16  ;;  %v539_v15 = vshll.u32 %v2266_v4, 16 }
  0x29   : >> { %v527_v5 = vsel %vm282_vm0, %v522_v60, %v526_v53  ;;  %v322_v11 = vsel %vm282_vm0, %v317_v56, %v321_v1  ;;  %v535_v17 = vsel %vm282_vm0, %v530_v61, %v534_v6  ;;  %v544_v22 = vshll.u32 %v2274_v13, 16  ;;  %v2019_v53 = vld [vmem:[%s2199_s29 + $0x4c] ss:$0 sps:$4 sm:$0x11]   ;;  %v2317_v61 = vld [vmem:[%s2199_s29 + $0x30] sm:$0xff]  }
  0x2a   : >> { %v333_v18 = vrot.slane %v331_v9, 1  ;;  %v329_v20 = vor.u32 %v328_v12, %v324_v2  ;;  %v541_v21 = vrot.slane %v539_v15, 1  ;;  %v335_v23 = vshrl.u32 %v2261_v63, 16  ;;  %v2020_v2 = vld [vmem:[%s2199_s29 + $0x60] ss:$0 sps:$4 sm:$0x11]  }
  0x2b   : >> { %367 = vrot.lane.b32.xlu0 %v314_v59, %s2105_s5  ;;  %580 = vrot.lane.b32.xlu1 %v527_v5, %s2105_s5  ;;  %v339_v26 = vshll.u32 %v2013_v19, 16  ;;  %v548_v28 = vshrl.u32 %v2274_v13, 16  ;;  %v546_v33 = vrot.slane %v544_v22, 1  ;;  %v552_v38 = vshll.u32 %v2014_v27, 16  ;;  %v2329_v22 = vld [vmem:[%s2199_s29 + $0x50] sm:$0xff]  }
  0x2c   : >> { %v334_v31 = vsel %vm282_vm0, %v329_v20, %v333_v18  ;;  %v542_v32 = vor.u32 %v541_v21, %v537_v14  ;;  %v337_v34 = vor.u32 %v335_v23, %v333_v18  ;;  %v344_v42 = vshrl.u32 %v2283_v25, 16  ;;  %v2025_v27 = vld [vmem:[%s2199_s29 + $0x38] ss:$0 sps:$4 sm:$0x11]  }
  0x2d   : >> { %v341_v37 = vrot.slane %v339_v26, 1  ;;  %v550_v41 = vor.u32 %v548_v28, %v546_v33  ;;  %v346_v43 = vshll.u32 %v2283_v25, 16  ;;  %v554_v44 = vrot.slane %v552_v38, 1  ;;  %v2334_v26 = vld [vmem:[%s2199_s29 + $0x58] sm:$0xff]  }
  0x2e   : >> { %v547_v39 = vsel %vm282_vm0, %v542_v32, %v546_v33  ;;  %v351_v45 = vshll.u32 %v2289_v29, 16  ;;  %v557_v49 = vshrl.u32 %v2294_v36, 16  ;;  %v559_v50 = vshll.u32 %v2294_v36, 16 }
  0x2f   : >> { %369 = vrot.lane.b32.xlu0 %v322_v11, %s2105_s5  ;;  %582 = vrot.lane.b32.xlu1 %v535_v17, %s2105_s5  ;;  %v342_v46 = vsel %vm282_vm0, %v337_v34, %v341_v37  ;;  %v348_v47 = vrot.slane %v346_v43, 1  ;;  %v555_v51 = vsel %vm282_vm0, %v550_v41, %v554_v44  ;;  %v355_v54 = vshrl.u32 %v2289_v29, 16 }
  0x30   : >> { %v353_v52 = vrot.slane %v351_v45, 1  ;;  %v561_v57 = vrot.slane %v559_v50, 1  ;;  %v564_v59 = vshll.u32 %v2304_v48, 16  ;;  %v568_v60 = vshrl.u32 %v2304_v48, 16 }
  0x31   : >> { %v349_v56 = vor.u32 %v348_v47, %v344_v42  ;;  %v359_v1 = vshll.u32 %v2019_v53, 16  ;;  %v1000_v9 = vshrl.u32 %v2312_v55, 16  ;;  %v572_v12 = vshll.u32 %v2020_v2, 16 }
  0x32   : >> { %v357_v62 = vor.u32 %v355_v54, %v353_v52  ;;  %v562_v5 = vor.u32 %v561_v57, %v557_v49  ;;  %v566_v6 = vrot.slane %v564_v59, 1  ;;  %v1002_v14 = vshll.u32 %v2312_v55, 16  ;;  %v2348_v49 = vld [vmem:[%s2199_s29 + $0x3c] sm:$0xff]  }
  0x33   : >> { %371 = vrot.lane.b32.xlu0 %v334_v31, %s2105_s5  ;;  %584 = vrot.lane.b32.xlu1 %v547_v39, %s2105_s5  ;;  %v354_v3 = vsel %vm282_vm0, %v349_v56, %v353_v52  ;;  %v361_v11 = vrot.slane %v359_v1, 1  ;;  %v1007_v15 = vshll.u32 %v2317_v61, 16  ;;  %v574_v19 = vrot.slane %v572_v12, 1  ;;  %v2026_v39 = vld [vmem:[%s2199_s29 + $0x60] ss:$0 sps:$4 sm:$0x11]  }
  0x34   : >> { %v567_v17 = vsel %vm282_vm0, %v562_v5, %v566_v6  ;;  %v570_v18 = vor.u32 %v568_v60, %v566_v6  ;;  %v1004_v20 = vrot.slane %v1002_v14, 1  ;;  %v1040_v32 = vshrl.u32 %v2329_v22, 16  ;;  %v2359_v60 = vld [vmem:[%s2199_s29 + $0x64] sm:$0xff]   ;;  %v2039_v14 = vld [vmem:[%s2585_s1 + $0x18] sm:$0xff]  }
  0x35   : >> { %v1009_v21 = vrot.slane %v1007_v15, 1  ;;  %v362_v23 = vsel %vm282_vm0, %v357_v62, %v361_v11  ;;  %v1042_v33 = vshll.u32 %v2329_v22, 16  ;;  %v1047_v34 = vshll.u32 %v2334_v26, 16  ;;  %v2362_v62 = vld [vmem:[%s2199_s29 + $0x6c] sm:$0xff]   ;;  %v2040_v15 = vld [vmem:[%s2585_s1 + $0x58] sm:$0xff]   ;;  %1841 = vmatprep.subr.bf16.mxu0 %v2039_v14 }
  0x36   : >> { %v575_v28 = vsel %vm282_vm0, %v570_v18, %v574_v19  ;;  %v1005_v31 = vor.u32 %v1004_v20, %v1000_v9  ;;  %v1011_v37 = vshrl.u32 %v2317_v61, 16  ;;  %v1015_v38 = vshll.u32 %v2025_v27, 16  ;;  %v2032_v19 = vld [vmem:[%s2199_s29 + $0x74] ss:$0 sps:$4 sm:$0x11]   ;;  %v2041_v27 = vld [vmem:[%s2585_s1 + $0x20] sm:$0xff]   ;;  %1842 = vmatpush3.bf16.msra.mxu0 %v2039_v14  ;;  %1809 = vmatprep.subr.bf16.mxu1 %v2040_v15 }
  0x37   : >> { %373 = vrot.lane.b32.xlu0 %v342_v46, %s2105_s5  ;;  %586 = vrot.lane.b32.xlu1 %v555_v51, %s2105_s5  ;;  %v1044_v42 = vrot.slane %v1042_v33, 1  ;;  %v1051_v43 = vshrl.u32 %v2334_v26, 16  ;;  %v1049_v44 = vrot.slane %v1047_v34, 1  ;;  %v1055_v47 = vshll.u32 %v2026_v39, 16  ;;  %v2351_v51 = vld [vmem:[%s2199_s29 + $0x44] sm:$0xff]  }
  0x38   : >> { %v1010_v41 = vsel %vm282_vm0, %v1005_v31, %v1009_v21  ;;  %v1013_v45 = vor.u32 %v1011_v37, %v1009_v21  ;;  %v1017_v46 = vrot.slane %v1015_v38, 1  ;;  %v1020_v54 = vshrl.u32 %v2348_v49, 16  ;;  %v2042_v34 = vld [vmem:[%s2585_s1 + $0x60] sm:$0xff]   ;;  %1843 = vmatprep.subr.bf16.mxu0 %v2041_v27  ;;  %1810 = vmatpush3.bf16.msra.mxu1 %v2040_v15 }
  0x39   : >> { %v1045_v50 = vor.u32 %v1044_v42, %v1040_v32  ;;  %v1053_v52 = vor.u32 %v1051_v43, %v1049_v44  ;;  %v1057_v53 = vrot.slane %v1055_v47, 1  ;;  %v1022_v57 = vshll.u32 %v2348_v49, 16  ;;  %v2043_v42 = vld [vmem:[%s2585_s1 + $0x28] sm:$0xff]   ;;  %1811 = vmatprep.subr.bf16.mxu1 %v2042_v34  ;;  %v2045_v47 = vld [vmem:[%s2585_s1 + $0x30] sm:$0xff]  }
  0x3a   : >> { %v1027_v59 = vshll.u32 %v2351_v51, 16  ;;  %v1018_v1 = vsel %vm282_vm0, %v1013_v45, %v1017_v46  ;;  %v1031_v5 = vshrl.u32 %v2351_v51, 16  ;;  %v1060_v11 = vshrl.u32 %v2359_v60, 16  ;;  %1844 = vmatpush3.bf16.msra.mxu0 %v2041_v27 }
  0x3b   : >> { %375 = vrot.lane.b32.xlu0 %v354_v3, %s2105_s5  ;;  %588 = vrot.lane.b32.xlu1 %v567_v17, %s2105_s5  ;;  %v1050_v56 = vsel %vm282_vm0, %v1045_v50, %v1049_v44  ;;  %v1058_v2 = vsel %vm282_vm0, %v1053_v52, %v1057_v53  ;;  %v2031_v3 = vld [vmem:[%s2199_s29 + $0x4c] ss:$0 sps:$4 sm:$0x11]   ;;  %v1024_v6 = vrot.slane %v1022_v57, 1  ;;  %v1062_v12 = vshll.u32 %v2359_v60, 16  ;;  %v2046_v50 = vld [vmem:[%s2585_s1 + $0x70] sm:$0xff]  }
  0x3c   : >> { %v1029_v9 = vrot.slane %v1027_v59, 1  ;;  %v1067_v17 = vshll.u32 %v2362_v62, 16  ;;  %v1035_v18 = vshll.u32 %v2031_v3, 16  ;;  %v1071_v20 = vshrl.u32 %v2362_v62, 16  ;;  %v2044_v44 = vld [vmem:[%s2585_s1 + $0x68] sm:$0xff]   ;;  %1845 = vmatprep.subr.bf16.mxu0 %v2043_v42  ;;  %1812 = vmatpush3.bf16.msra.mxu1 %v2042_v34  ;;  %v2047_v52 = vld [vmem:[%s2585_s1 + $0x38] sm:$0xff]  }
  0x3d   : >> { %v1025_v21 = vor.u32 %v1024_v6, %v1020_v54  ;;  %v1075_v33 = vshll.u32 %v2032_v19, 16  ;;  %1813 = vmatprep.subr.bf16.mxu1 %v2044_v44  ;;  %v2048_v53 = vld [vmem:[%s2585_s1 + $0x78] sm:$0xff]   ;;  %v2049_v54 = vld [vmem:[%s2585_s1 + $0x80] sm:$0xff]  }
  0x3e   : >> { %v1033_v31 = vor.u32 %v1031_v5, %v1029_v9  ;;  %v1037_v32 = vrot.slane %v1035_v18, 1  ;;  %1846 = vmatpush3.bf16.msra.mxu0 %v2043_v42 }
  0x3f   : >> { %377 = vrot.lane.b32.xlu0 %v362_v23, %s2105_s5  ;;  %590 = vrot.lane.b32.xlu1 %v575_v28, %s2105_s5  ;;  %v1064_v23 = vrot.slane %v1062_v12, 1  ;;  %v1069_v28 = vrot.slane %v1067_v17, 1  ;;  %v1030_v37 = vsel %vm282_vm0, %v1025_v21, %v1029_v9 }
  0x40   : >> { %v1038_v45 = vsel %vm282_vm0, %v1033_v31, %v1037_v32  ;;  %1847 = vmatprep.subr.bf16.mxu0 %v2045_v47  ;;  %1814 = vmatpush3.bf16.msra.mxu1 %v2044_v44 }
  0x41   : >> { %v1065_v38 = vor.u32 %v1064_v23, %v1060_v11  ;;  %v1073_v39 = vor.u32 %v1071_v20, %v1069_v28  ;;  %1815 = vmatprep.subr.bf16.mxu1 %v2046_v50 }
  0x42   : >> { %1848 = vmatpush3.bf16.msra.mxu0 %v2045_v47 }
  0x43   : >> { %1079 = vrot.lane.b32.xlu0 %v1010_v41, %s2105_s5  ;;  %1087 = vrot.lane.b32.xlu1 %v1050_v56, %s2105_s5  ;;  %v1077_v41 = vrot.slane %v1075_v33, 1  ;;  %v1070_v43 = vsel %vm282_vm0, %v1065_v38, %v1069_v28 }
  0x44   : >> { %1849 = vmatprep.subr.bf16.mxu0 %v2047_v52  ;;  %1816 = vmatpush3.bf16.msra.mxu1 %v2046_v50 }
  0x45   : >> { %v1078_v46 = vsel %vm282_vm0, %v1073_v39, %v1077_v41  ;;  %1817 = vmatprep.subr.bf16.mxu1 %v2048_v53 }
  0x46   : >> { %1850 = vmatpush3.bf16.msra.mxu0 %v2047_v52 }
  0x47   : >> { %1081 = vrot.lane.b32.xlu0 %v1018_v1, %s2105_s5  ;;  %1089 = vrot.lane.b32.xlu1 %v1058_v2, %s2105_s5  ;;  %v2050_v2 = vld [vmem:[%s2585_s1 + $0x88] sm:$0xff]  }
  0x48   : >> { %1867 = vmatprep.subr.bf16.mxu0 %v2049_v54  ;;  %1818 = vmatpush3.bf16.msra.mxu1 %v2048_v53 }
  0x49   : >> { %1899 = vmatprep.subr.bf16.mxu1 %v2049_v54 }
  0x4b   : >> { %1083 = vrot.lane.b32.xlu0 %v1030_v37, %s2105_s5  ;;  %1091 = vrot.lane.b32.xlu1 %v1070_v43, %s2105_s5 }
  0x4f   : >> { %1085 = vrot.lane.b32.xlu0 %v1038_v45, %s2105_s5  ;;  %1093 = vrot.lane.b32.xlu1 %v1078_v46, %s2105_s5 }
  0x95   : >> { %v364_v56 = vpop.permute.xlu0 %363  ;;  %v366_v57 = vpop.permute.xlu1 %365 }
  0x96   : >> { %v381_v59 = vsel %vm379_vm1, %v2205_v7, %v364_v56  ;;  %v384_v1 = vsel %vm379_vm1, %v2208_v8, %v366_v57  ;;  %v2051_v7 = vld [vmem:[%s2585_s1 + $0x90] sm:$0xff]  }
  0x97   : >> { %1851 = vmatprep.mubr.bf16.mxu0 %v381_v59 }
  0x98   : >> { %1852 = vmatmul.mubr.bf16.vlgmr.msra.gmra.mrb[0].mxu0 %v384_v1 }
  0x99   : >> { %v577_v3 = vpop.permute.xlu0 %576  ;;  %v579_v5 = vpop.permute.xlu1 %578  ;;  %1868 = vmatpush3.bf16.msra.mxu0 %v2049_v54 }
  0x9a   : >> { %v593_v6 = vsel %vm379_vm1, %v2212_v10, %v577_v3  ;;  %v596_v9 = vsel %vm379_vm1, %v2219_v16, %v579_v5  ;;  %1869 = vmatprep.subr.bf16.mxu0 %v2050_v2  ;;  %v2052_v10 = vld [vmem:[%s2585_s1 + $0x98] sm:$0xff]  }
  0x9b   : >> { %1819 = vmatprep.mubr.bf16.mxu1 %v593_v6 }
  0x9c   : >> { %1820 = vmatmul.mubr.bf16.vlgmr.msra.gmra.mrb[0].mxu1 %v596_v9 }
  0x9d   : >> { %1907 = vmatpush3.bf16.msra.mxu1 %v2049_v54  ;;  %v368_v8 = vpop.permute.xlu0 %367  ;;  %1870 = vmatpush3.bf16.msra.mxu0 %v2050_v2  ;;  %v581_v11 = vpop.permute.xlu1 %580 }
  0x9e   : >> { %v387_v12 = vsel %vm379_vm1, %v2226_v24, %v368_v8  ;;  %1900 = vmatprep.subr.bf16.mxu1 %v2050_v2  ;;  %1871 = vmatprep.subr.bf16.mxu0 %v2051_v7  ;;  %v599_v16 = vsel %vm379_vm1, %v2235_v35, %v581_v11  ;;  %v2053_v24 = vld [vmem:[%s2585_s1 + $0xa0] sm:$0xff]  }
  0x9f   : >> { %1855 = vmatprep.mubr.bf16.mxu0 %v387_v12  ;;  %1823 = vmatprep.mubr.bf16.mxu1 %v599_v16 }
  0xa1   : >> { %1908 = vmatpush3.bf16.msra.mxu1 %v2050_v2  ;;  %v370_v14 = vpop.permute.xlu0 %369  ;;  %1872 = vmatpush3.bf16.msra.mxu0 %v2051_v7  ;;  %v583_v15 = vpop.permute.xlu1 %582 }
  0xa2   : >> { %v390_v17 = vsel %vm379_vm1, %v2230_v30, %v370_v14  ;;  %1901 = vmatprep.subr.bf16.mxu1 %v2051_v7  ;;  %1873 = vmatprep.subr.bf16.mxu0 %v2052_v10  ;;  %v602_v18 = vsel %vm379_vm1, %v2243_v40, %v583_v15  ;;  %v2054_v30 = vld [vmem:[%s2585_s1 + $0xa8] sm:$0xff]  }
  0xa3   : >> { %1856 = vmatmul.mubr.bf16.gmra.mrb[4].mxu0 %v390_v17 }
  0xa4   : >> { %1824 = vmatmul.mubr.bf16.gmra.mrb[4].mxu1 %v602_v18 }
  0xa5   : >> { %1909 = vmatpush3.bf16.msra.mxu1 %v2051_v7  ;;  %v372_v35 = vpop.permute.xlu0 %371  ;;  %1874 = vmatpush3.bf16.msra.mxu0 %v2052_v10  ;;  %v585_v19 = vpop.permute.xlu1 %584 }
  0xa6   : >> { %v393_v20 = vsel %vm379_vm1, %v2257_v58, %v372_v35  ;;  %1902 = vmatprep.subr.bf16.mxu1 %v2052_v10  ;;  %1875 = vmatprep.subr.bf16.mxu0 %v2053_v24  ;;  %v605_v21 = vsel %vm379_vm1, %v2266_v4, %v585_v19  ;;  %v2055_v58 = vld [vmem:[%s2585_s1 + $0xb0] sm:$0xff]  }
  0xa7   : >> { %1859 = vmatprep.mubr.bf16.mxu0 %v393_v20  ;;  %1827 = vmatprep.mubr.bf16.mxu1 %v605_v21 }
  0xa9   : >> { %1910 = vmatpush3.bf16.msra.mxu1 %v2052_v10  ;;  %v374_v40 = vpop.permute.xlu0 %373  ;;  %1876 = vmatpush3.bf16.msra.mxu0 %v2053_v24  ;;  %v587_v23 = vpop.permute.xlu1 %586 }
  0xaa   : >> { %v396_v27 = vsel %vm379_vm1, %v2261_v63, %v374_v40  ;;  %1903 = vmatprep.subr.bf16.mxu1 %v2053_v24  ;;  %1877 = vmatprep.subr.bf16.mxu0 %v2054_v30  ;;  %v608_v28 = vsel %vm379_vm1, %v2274_v13, %v587_v23  ;;  %v2056_v63 = vld [vmem:[%s2585_s1 + $0xb8] sm:$0xff]  }
  0xab   : >> { %1860 = vmatmul.mubr.bf16.gmra.mrb[8].mxu0 %v396_v27 }
  0xac   : >> { %1828 = vmatmul.mubr.bf16.gmra.mrb[8].mxu1 %v608_v28 }
  0xad   : >> { %1911 = vmatpush3.bf16.msra.mxu1 %v2053_v24  ;;  %v376_v4 = vpop.permute.xlu0 %375  ;;  %1878 = vmatpush3.bf16.msra.mxu0 %v2054_v30  ;;  %v589_v31 = vpop.permute.xlu1 %588 }
  0xae   : >> { %v399_v32 = vsel %vm379_vm1, %v2283_v25, %v376_v4  ;;  %1904 = vmatprep.subr.bf16.mxu1 %v2054_v30  ;;  %1879 = vmatprep.subr.bf16.mxu0 %v2055_v58  ;;  %v611_v33 = vsel %vm379_vm1, %v2294_v36, %v589_v31 }
  0xaf   : >> { %1863 = vmatprep.mubr.bf16.mxu0 %v399_v32  ;;  %1831 = vmatprep.mubr.bf16.mxu1 %v611_v33 }
  0xb1   : >> { %1912 = vmatpush3.bf16.msra.mxu1 %v2054_v30  ;;  %v378_v13 = vpop.permute.xlu0 %377  ;;  %1880 = vmatpush3.bf16.msra.mxu0 %v2055_v58  ;;  %v591_v34 = vpop.permute.xlu1 %590 }
  0xb2   : >> { %v402_v37 = vsel %vm379_vm1, %v2289_v29, %v378_v13  ;;  %1905 = vmatprep.subr.bf16.mxu1 %v2055_v58  ;;  %1881 = vmatprep.subr.bf16.mxu0 %v2056_v63  ;;  %v614_v25 = vsel %vm379_vm1, %v2304_v48, %v591_v34 }
  0xb3   : >> { %1864 = vmatmul.mubr.bf16.gmra.mrb[12].mxu0 %v402_v37 }
  0xb4   : >> { %1832 = vmatmul.mubr.bf16.gmra.mrb[12].mxu1 %v614_v25 }
  0xb5   : >> { %1913 = vmatpush3.bf16.msra.mxu1 %v2055_v58  ;;  %v1080_v38 = vpop.permute.xlu0 %1079  ;;  %1882 = vmatpush3.bf16.msra.mxu0 %v2056_v63  ;;  %v1088_v39 = vpop.permute.xlu1 %1087 }
  0xb6   : >> { %v1096_v36 = vsel %vm379_vm1, %v2312_v55, %v1080_v38  ;;  %1906 = vmatprep.subr.bf16.mxu1 %v2056_v63  ;;  %v1108_v41 = vsel %vm379_vm1, %v2329_v22, %v1088_v39 }
  0xb7   : >> { %1883 = vmatprep.mubr.bf16.mxu0 %v1096_v36  ;;  %1891 = vmatprep.mubr.bf16.mxu1 %v1108_v41 }
  0xb9   : >> { %1914 = vmatpush3.bf16.msra.mxu1 %v2056_v63  ;;  %v1082_v29 = vpop.permute.xlu0 %1081  ;;  %v1090_v48 = vpop.permute.xlu1 %1089 }
  0xba   : >> { %v1099_v42 = vsel %vm379_vm1, %v2317_v61, %v1082_v29  ;;  %v1111_v43 = vsel %vm379_vm1, %v2334_v26, %v1090_v48 }
  0xbb   : >> { %1884 = vmatmul.mubr.bf16.vlgmr.msra.gmra.mrb[0].mxu0 %v1099_v42 }
  0xbc   : >> { %1892 = vmatmul.mubr.bf16.vlgmr.msra.gmra.mrb[16].mxu1 %v1111_v43 }
  0xbd   : >> { %v1084_v44 = vpop.permute.xlu0 %1083  ;;  %v1092_v45 = vpop.permute.xlu1 %1091 }
  0xbe   : >> { %v1102_v55 = vsel %vm379_vm1, %v2348_v49, %v1084_v44  ;;  %v1114_v22 = vsel %vm379_vm1, %v2359_v60, %v1092_v45 }
  0xbf   : >> { %1887 = vmatprep.mubr.bf16.mxu0 %v1102_v55  ;;  %1895 = vmatprep.mubr.bf16.mxu1 %v1114_v22 }
  0xc1   : >> { %v1086_v46 = vpop.permute.xlu0 %1085  ;;  %v1094_v47 = vpop.permute.xlu1 %1093 }
  0xc2   : >> { %v1105_v61 = vsel %vm379_vm1, %v2351_v51, %v1086_v46  ;;  %v1117_v26 = vsel %vm379_vm1, %v2362_v62, %v1094_v47 }
  0xc3   : >> { %1888 = vmatmul.mubr.bf16.gmra.mrb[4].mxu0 %v1105_v61 }
  0xc4   : >> { %1896 = vmatmul.mubr.bf16.gmra.mrb[20].mxu1 %v1117_v26 }
 0x16f   : >> { %v1821_v50 = vpop.f32.mrb[0].mxu1 }
 0x170   : >> { %v715_v52 = vpop.f32.mrb[1].mxu1 }
 0x171   : >> { %v1822_v53 = vpop.f32.mrb[2].mxu1 }
 0x172   : >> { %v718_v54 = vpop.f32.mrb[3].mxu1 }
 0x177   : >> { %v1825_v49 = vpop.f32.mrb[4].mxu1 }
 0x178   : >> { %v731_v56 = vpop.f32.mrb[5].mxu1 }
 0x179   : >> { %v1826_v57 = vpop.f32.mrb[6].mxu1 }
 0x17a   : >> { %v734_v59 = vpop.f32.mrb[7].mxu1 }
 0x17e   : >> { %v1861_v60 = vpop.f32.mrb[8].mxu0 }
 0x17f   : >> { %v1829_v1 = vpop.f32.mrb[8].mxu1  ;;  %v892_v2 = vpop.f32.mrb[9].mxu0 }
 0x180   : >> { %v901_v3 = vadd.f32 %v1861_v60, %v1829_v1  ;;  %v747_v5 = vpop.f32.mrb[9].mxu1  ;;  %v1862_v6 = vpop.f32.mrb[10].mxu0 }
 0x181   : >> { %v893_v51 = vadd.f32 %v892_v2, %v747_v5  ;;  %v1830_v9 = vpop.f32.mrb[10].mxu1  ;;  %v895_v7 = vpop.f32.mrb[11].mxu0 }
 0x182   : >> { %v904_v8 = vadd.f32 %v1862_v6, %v1830_v9  ;;  %v750_v62 = vpop.f32.mrb[11].mxu1 }
 0x183   : >> { %v896_v11 = vadd.f32 %v895_v7, %v750_v62 }
 0x186   : >> { %v1865_v12 = vpop.f32.mrb[12].mxu0 }
 0x187   : >> { %v1833_v10 = vpop.f32.mrb[12].mxu1  ;;  %v908_v16 = vpop.f32.mrb[13].mxu0 }
 0x188   : >> { %v917_v14 = vadd.f32 %v1865_v12, %v1833_v10  ;;  %v763_v15 = vpop.f32.mrb[13].mxu1  ;;  %v1866_v17 = vpop.f32.mrb[14].mxu0 }
 0x189   : >> { %v909_v24 = vadd.f32 %v908_v16, %v763_v15  ;;  %v1834_v18 = vpop.f32.mrb[14].mxu1  ;;  %v911_v35 = vpop.f32.mrb[15].mxu0 }
 0x18a   : >> { %v920_v19 = vadd.f32 %v1866_v17, %v1834_v18  ;;  %v766_v20 = vpop.f32.mrb[15].mxu1 }
 0x18b   : >> { %v912_v30 = vadd.f32 %v911_v35, %v766_v20 }
 0x18e   : >> { %v1885_v21 = vpop.f32.mrb[0].mxu0 }
 0x18f   : >> { %v1915_v40 = vadd.f32 %v1885_v21, %v1821_v50  ;;  %v1218_v23 = vpop.f32.mrb[1].mxu0  ;;  %v1893_v27 = vpop.f32.mrb[16].mxu1 }
 0x190   : >> { %v2486_v58 = vadd.f32 %v1218_v23, %v715_v52  ;;  %v2488_v28 = vadd.f32 %v1893_v27, %v901_v3  ;;  %v1886_v4 = vpop.f32.mrb[2].mxu0  ;;  %v1250_v31 = vpop.f32.mrb[17].mxu1 }
 0x191   : >> { %v1917_v32 = vadd.f32 %v1886_v4, %v1822_v53  ;;  %v2490_v63 = vadd.f32 %v1250_v31, %v893_v51  ;;  %v1894_v33 = vpop.f32.mrb[18].mxu1  ;;  %1317 = vrot.lane.b32.xlu0 %v1915_v40, %s2105_s5  ;;  %v1221_v13 = vpop.f32.mrb[3].mxu0 }
 0x192   : >> { %v2493_v34 = vadd.f32 %v1894_v33, %v904_v8  ;;  %v2495_v37 = vadd.f32 %v1221_v13, %v718_v54  ;;  %v1253_v25 = vpop.f32.mrb[19].mxu1 }
 0x193   : >> { %v2497_v38 = vadd.f32 %v1253_v25, %v896_v11  ;;  %1319 = vrot.lane.b32.xlu1 %v1917_v32, %s2105_s5 }
 0x195   : >> { %1333 = vrot.lane.b32.xlu0 %v2488_v28, %s2105_s5 }
 0x196   : >> { %v1889_v39 = vpop.f32.mrb[4].mxu0 }
 0x197   : >> { %v1919_v36 = vadd.f32 %v1889_v39, %v1825_v49  ;;  %v1897_v41 = vpop.f32.mrb[20].mxu1  ;;  %1335 = vrot.lane.b32.xlu1 %v2493_v34, %s2105_s5  ;;  %v1234_v29 = vpop.f32.mrb[5].mxu0 }
 0x198   : >> { %v2504_v42 = vadd.f32 %v1897_v41, %v917_v14  ;;  %v1920_v48 = vadd.f32 %v1234_v29, %v731_v56  ;;  %v1890_v43 = vpop.f32.mrb[6].mxu0  ;;  %v1266_v44 = vpop.f32.mrb[21].mxu1 }
 0x199   : >> { %v1921_v45 = vadd.f32 %v1890_v43, %v1826_v57  ;;  %v2506_v55 = vadd.f32 %v1266_v44, %v909_v24  ;;  %v1898_v22 = vpop.f32.mrb[22].mxu1  ;;  %1313 = vrot.lane.b32.xlu0 %v2486_v58, %s2105_s5  ;;  %v1237_v46 = vpop.f32.mrb[7].mxu0 }
 0x19a   : >> { %v2510_v47 = vadd.f32 %v1898_v22, %v920_v19  ;;  %v1922_v61 = vadd.f32 %v1237_v46, %v734_v59  ;;  %v1269_v26 = vpop.f32.mrb[23].mxu1 }
 0x19b   : >> { %v1294_v50 = vadd.f32 %v1269_v26, %v912_v30  ;;  %1315 = vrot.lane.b32.xlu1 %v2495_v37, %s2105_s5 }
 0x19d   : >> { %1329 = vrot.lane.b32.xlu0 %v2490_v63, %s2105_s5 }
 0x19f   : >> { %1331 = vrot.lane.b32.xlu1 %v2497_v38, %s2105_s5 }
 0x1a1   : >> { %1325 = vrot.lane.b32.xlu0 %v1919_v36, %s2105_s5 }
 0x1a3   : >> { %1327 = vrot.lane.b32.xlu1 %v1921_v45, %s2105_s5 }
 0x1a5   : >> { %1321 = vrot.lane.b32.xlu0 %v1920_v48, %s2105_s5 }
 0x1a7   : >> { %1323 = vrot.lane.b32.xlu1 %v1922_v61, %s2105_s5 }
 0x1a9   : >> { %1337 = vrot.lane.b32.xlu0 %v2506_v55, %s2105_s5 }
 0x1ab   : >> { %1339 = vrot.lane.b32.xlu1 %v1294_v50, %s2105_s5 }
 0x1ad   : >> { %1341 = vrot.lane.b32.xlu0 %v2504_v42, %s2105_s5 }
 0x1af   : >> { %1343 = vrot.lane.b32.xlu1 %v2510_v47, %s2105_s5  ;;  %s1749_s5 = sshll.u32 %s2103_s7, 5  ;;  %s204_s7 = sadd.s32 1, %s2103_s7  }
 0x1b0   : >> { %s2535_s13 = scalar_lea.vmem %s2173_s6, %s1749_s5  ;;  %p201_p7 = scmp.ge.s32.totalorder %s204_s7, 4  }
 0x203   : >> { %v1318_v52 = vpop.permute.xlu0 %1317 }
 0x204   : >> { %v1363_v2 = vmax.f32 %v1915_v40, %v1318_v52 }
 0x205   : >> { %v1320_v53 = vpop.permute.xlu1 %1319 }
 0x206   : >> { %v1364_v6 = vmax.f32 %v1917_v32, %v1320_v53 }
 0x207   : >> { %v1334_v54 = vpop.permute.xlu0 %1333 }
 0x208   : >> { %v1371_v33 = vmax.f32 %v2488_v28, %v1334_v54 }
 0x209   : >> { %v1336_v49 = vpop.permute.xlu1 %1335 }
 0x20b   : >> { %v1314_v56 = vpop.permute.xlu0 %1313 }
 0x20c   : >> { %v1361_v8 = vmax.f32 %v2486_v58, %v1314_v56 }
 0x20d   : >> { %v1316_v57 = vpop.permute.xlu1 %1315 }
 0x20e   : >> { %v1362_v10 = vmax.f32 %v2495_v37, %v1316_v57 }
 0x20f   : >> { %v1330_v59 = vpop.permute.xlu0 %1329 }
 0x210   : >> { %v1369_v21 = vmax.f32 %v2490_v63, %v1330_v59 }
 0x211   : >> { %v1332_v60 = vpop.permute.xlu1 %1331 }
 0x212   : >> { %v1370_v40 = vmax.f32 %v2497_v38, %v1332_v60 }
 0x213   : >> { %v1326_v1 = vpop.permute.xlu0 %1325 }
 0x214   : >> { %v1367_v3 = vmax.f32 %v1919_v36, %v1326_v1  ;;  %v1372_v36 = vmax.f32 %v2493_v34, %v1336_v49 }
 0x215   : >> { %v1328_v5 = vpop.permute.xlu1 %1327 }
 0x216   : >> { %v1379_v51 = vmax.f32 %v1363_v2, %v1367_v3  ;;  %v1368_v9 = vmax.f32 %v1921_v45, %v1328_v5 }
 0x217   : >> { %v1322_v7 = vpop.permute.xlu0 %1321 }
 0x218   : >> { %v1389_v62 = vadd.f32 %v2162_v0, %v1379_v51  ;;  %v1380_v11 = vmax.f32 %v1364_v6, %v1368_v9  ;;  %v1365_v12 = vmax.f32 %v1920_v48, %v1322_v7 }
 0x219   : >> { %v1324_v16 = vpop.permute.xlu1 %1323 }
 0x21a   : >> { %v1393_v14 = vmax.f32 %v1389_v62, 0.0  ;;  %v1390_v15 = vadd.f32 %v2162_v0, %v1380_v11  ;;  %v1377_v17 = vmax.f32 %v1361_v8, %v1365_v12  ;;  %v1366_v24 = vmax.f32 %v1922_v61, %v1324_v16 }
 0x21b   : >> { %v1338_v18 = vpop.permute.xlu0 %1337 }
 0x21c   : >> { %v1746_v35 = vpack.c.bf16 %v1393_v14, %v1393_v14  ;;  %v1394_v19 = vmax.f32 %v1390_v15, 0.0  ;;  %v1387_v20 = vadd.f32 %v2162_v0, %v1377_v17  ;;  %v1378_v30 = vmax.f32 %v1362_v10, %v1366_v24 }
 0x21d   : >> { %v1373_v23 = vmax.f32 %v2506_v55, %v1338_v18  ;;  %v1340_v27 = vpop.permute.xlu1 %1339 }
 0x21e   : >> { %1418 = vst.msk [vmem:[%s2535_s13 + $0x8] sm:$0xf] %vm1415_vm2, %v1746_v35  ;;  %v1747_v58 = vpack.c.bf16 %v1394_v19, %v1394_v19  ;;  %v1391_v4 = vmax.f32 %v1387_v20, 0.0  ;;  %v1388_v31 = vadd.f32 %v2162_v0, %v1378_v30  ;;  %v1374_v32 = vmax.f32 %v1294_v50, %v1340_v27 }
 0x21f   : >> { %v1420_v13 = vmax.f32 %v1369_v21, %v1373_v23  ;;  %v1342_v37 = vpop.permute.xlu0 %1341 }
 0x220   : >> { %1419 = vst.msk [vmem:[%s2535_s13 + $0xc] sm:$0xf] %vm1415_vm2, %v1747_v58  ;;  %v1744_v63 = vpack.c.bf16 %v1391_v4, %v1391_v4  ;;  %v1392_v25 = vmax.f32 %v1388_v31, 0.0  ;;  %v1421_v38 = vmax.f32 %v1370_v40, %v1374_v32  ;;  %v1375_v39 = vmax.f32 %v2504_v42, %v1342_v37 }
 0x221   : >> { %v1424_v41 = vadd.f32 %v2162_v0, %v1420_v13  ;;  %v1344_v29 = vpop.permute.xlu1 %1343 }
 0x222   : >> { %1416 = vst.msk [vmem:[%s2535_s13] sm:$0xf] %vm1415_vm2, %v1744_v63  ;;  %v1745_v28 = vpack.c.bf16 %v1392_v25, %v1392_v25  ;;  %v1425_v48 = vadd.f32 %v2162_v0, %v1421_v38  ;;  %v1422_v43 = vmax.f32 %v1371_v33, %v1375_v39  ;;  %v1376_v44 = vmax.f32 %v2510_v47, %v1344_v29 }
 0x223   : >> { %v1428_v45 = vmax.f32 %v1424_v41, 0.0 }
 0x224   : >> { %1417 = vst.msk [vmem:[%s2535_s13 + $0x4] sm:$0xf] %vm1415_vm2, %v1745_v28  ;;  %v1429_v42 = vmax.f32 %v1425_v48, 0.0  ;;  %v1426_v34 = vadd.f32 %v2162_v0, %v1422_v43  ;;  %v1423_v55 = vmax.f32 %v1372_v36, %v1376_v44 }
 0x225   : >> { %v1750_v22 = vpack.c.bf16 %v1428_v45, %v1428_v45 }
 0x226   : >> { %v1751_v46 = vpack.c.bf16 %v1429_v42, %v1429_v42  ;;  %v1430_v61 = vmax.f32 %v1426_v34, 0.0  ;;  %v1427_v26 = vadd.f32 %v2162_v0, %v1423_v55  ;;  %203 = sbr.rel (!%p201_p7) target bundleno = 22 (0x16), region = 76 }
 0x227   : >> { %1737 = vst.msk [vmem:[%s2535_s13 + $0x10] sm:$0xf] %vm1415_vm2, %v1750_v22 }
 0x228   : >> { %1738 = vst.msk [vmem:[%s2535_s13 + $0x14] sm:$0xf] %vm1415_vm2, %v1751_v46  ;;  %v1752_v50 = vpack.c.bf16 %v1430_v61, %v1430_v61  ;;  %v1431_v52 = vmax.f32 %v1427_v26, 0.0 }
 0x22a   : >> { %1739 = vst.msk [vmem:[%s2535_s13 + $0x18] sm:$0xf] %vm1415_vm2, %v1752_v50  ;;  %v1753_v47 = vpack.c.bf16 %v1431_v52, %v1431_v52 }
 0x22c   : >> { %1740 = vst.msk [vmem:[%s2535_s13 + $0x1c] sm:$0xf] %vm1415_vm2, %v1753_v47 }
 0x22d PF: > { %s13_s16 = sadd.s32 1, %s2099_s16   ;;  %s2588_s12 = smov %s2091_s14 }
 0x22e   : > { %p10_p8 = scmp.ge.s32.totalorder %s13_s16, 10   ;;  %s2589_s13 = smov %s2095_s15 }
 0x22f   : > { %s2590_s14 = smov %s2593_s17  ;;  %s2591_s15 = smov %s2597_s18 }
 0x230   :  { %12 = sbr.rel (!%p10_p8) target bundleno = 3 (0x3), region = 87 }

// kernel: cnn_forward.6
= control target key start
LH: loop header
LB: loop body
LE: loop exit
PB: predicated region body
PF: predicated region fallthrough
CT: control target
= control target key end

     0   :  { %s2110_s12 = smov 0   ;;  %s2112_s13 = smov 0   ;;  %s2563_s0 = inlined_call_operand.vmem [shape: bf16[2,34,17,128], index: 0, kind: input, shape index: {}]   ;;  %s2564_s1 = inlined_call_operand.vmem [shape: bf16[3,256,256], index: 1, kind: input, shape index: {}]   ;;  %s2565_s2 = inlined_call_operand.vmem [shape: f32[1,128], index: 2, kind: input, shape index: {}]   ;;  %s2566_s3 = inlined_call_operand.vmem [shape: bf16[2,16,16,128], index: 3, kind: output, shape index: {}]  }
   0x1   :  { %s2114_s14 = smov 0   ;;  %s2116_s15 = smov 0  }
   0x2   :  { %s2118_s16 = smov 0  }
   0x3 LB: > { %s22_s17 = sadd.s32 1, %s2076_s14  ;;  %s25_s18 = sadd.s32 1, %s2080_s15  ;;  %s2084_s16 = sphi %s2118_s16, %s13_s16   ;;  %s2080_s15 = sphi %s2116_s15, %s2570_s15   ;;  %s2076_s14 = sphi %s2114_s14, %s2569_s14   ;;  %s2072_s13 = sphi %s2112_s13, %s2568_s13   ;;  %s2068_s12 = sphi %s2110_s12, %s2567_s12  }
   0x4   : > { %p23_p0 = scmp.ge.s32.totalorder %s22_s17, 4  ;;  %p1507_p1 = scmp.ge.s32.totalorder %s2084_s16, 1 }
   0x5   : > { %p151_p2 = scmp.lt.s32.totalorder %s2084_s16, 9 }
   0x6   : > { %s2572_s17 = smov (%p23_p0, %s22_s17), 0  ;;  %s2574_s18 = smov (!%p23_p0, %s25_s18), %s2080_s15 }
   0x7   : > { %p152_p3 = pnand %p1507_p1, %p151_p2  ;;  %p27_p4 = scmp.ge.s32.totalorder %s2574_s18, 2 }
   0x8   : > { %p180_p5 = scmp.lt.s32.totalorder (!%p152_p3), %s2072_s13, 1  ;;  %s1509_s19 = sshll.u32 (!%p152_p3), %s2068_s12, 2  ;;  %v2146_v0 = vld [vmem:[%s2565_s2] ss:$0 sm:$0xff] (!%p152_p3) }
   0x9   : > { %s2576_s18 = smov (%p27_p4, %s2574_s18), 0  ;;  %155 = sbr.rel (%p152_p3) target bundleno = 388 (0x184), region = 32 }
   0xa   : > { %p188_p6 = scmp.lt.s32.totalorder (!%p152_p3), %s1509_s19, 15  ;;  %s1513_s22 = sshll.u32 (!%p152_p3), %s2068_s12, 3 }
   0xb   : > { %s2159_s7 = smov (!%p152_p3), 0  }
  0x10   : > { %s2578_s13 = smov (!%p180_p5, %s2072_s13), 1  ;;  %s2580_s19 = smov (!%p188_p6, %s1509_s19), 15 }
  0x11   : > { %s1825_s23 = smul.u32 408, %s2578_s13  ;;  %s1511_s24 = sshll.u32 %s2578_s13, 5 }
  0x12   : > { %s1510_s25 = sshll.u32 %s2580_s19, 1 }
  0x13   : > { %s2152_s28 = scalar_lea.vmem %s2563_s0, %s1825_s23  ;;  %s192_s29 = sadd.s32 %s1511_s24, %s1510_s25 }
  0x14   : > { %s1512_s30 = sshll.u32 %s192_s29, 2 }
  0x15   : > { %s2157_s6 = scalar_lea.vmem %s2566_s3, %s1512_s30 }
  0x16 LB: >> { %v1874_v1 = vld [vmem:[%s2564_s1 + $0x104] ss:$8 sps:$4 sm:$0xff]   ;;  %v1878_v3 = vld [vmem:[%s2564_s1 + $0x100] ss:$8 sps:$4 sm:$0xff]   ;;  %v1880_v5 = vld [vmem:[%s2564_s1 + $0x114] ss:$8 sps:$4 sm:$0xff]   ;;  %s2088_s7 = sphi %s2159_s7, %s203_s7  }
  0x17   : >> { %v1876_v2 = vld [vmem:[%s2564_s1 + $0x4] ss:$8 sps:$4 sm:$0xff]   ;;  %639 = vmatprep.subr.bf16.mxu1 %v1874_v1  ;;  %v1879_v4 = vld [vmem:[%s2564_s1] ss:$8 sps:$4 sm:$0xff]   ;;  %v1882_v6 = vld [vmem:[%s2564_s1 + $0x14] ss:$8 sps:$4 sm:$0xff]  }
  0x18   : >> { %872 = vmatprep.subr.bf16.mxu0 %v1876_v2  ;;  %640 = vmatpush1.bf16.msra.mxu1 %v1878_v3  ;;  %v1884_v7 = vld [vmem:[%s2564_s1 + $0x110] ss:$8 sps:$4 sm:$0xff]   ;;  %v1886_v9 = vld [vmem:[%s2564_s1 + $0x124] ss:$8 sps:$4 sm:$0xff]   ;;  %v1890_v11 = vld [vmem:[%s2564_s1 + $0x120] ss:$8 sps:$4 sm:$0xff]  }
  0x19   : >> { %873 = vmatpush1.bf16.msra.mxu0 %v1879_v4  ;;  %641 = vmatprep.subr.bf16.mxu1 %v1880_v5  ;;  %v1885_v8 = vld [vmem:[%s2564_s1 + $0x10] ss:$8 sps:$4 sm:$0xff]   ;;  %v1888_v10 = vld [vmem:[%s2564_s1 + $0x24] ss:$8 sps:$4 sm:$0xff]   ;;  %v1891_v12 = vld [vmem:[%s2564_s1 + $0x20] ss:$8 sps:$4 sm:$0xff]  }
  0x1a   : >> { %874 = vmatprep.subr.bf16.mxu0 %v1882_v6  ;;  %v1892_v13 = vld [vmem:[%s2564_s1 + $0x134] ss:$8 sps:$4 sm:$0xff]   ;;  %v1896_v15 = vld [vmem:[%s2564_s1 + $0x130] ss:$8 sps:$4 sm:$0xff]   ;;  %v1898_v17 = vld [vmem:[%s2564_s1 + $0x144] ss:$8 sps:$4 sm:$0xff]  }
  0x1b   : >> { %v1894_v14 = vld [vmem:[%s2564_s1 + $0x34] ss:$8 sps:$4 sm:$0xff]   ;;  %v1897_v16 = vld [vmem:[%s2564_s1 + $0x30] ss:$8 sps:$4 sm:$0xff]   ;;  %v1900_v18 = vld [vmem:[%s2564_s1 + $0x44] ss:$8 sps:$4 sm:$0xff]  }
  0x1c   : >> { %642 = vmatpush1.bf16.msra.mxu1 %v1884_v7  ;;  %v1902_v19 = vld [vmem:[%s2564_s1 + $0x140] ss:$8 sps:$4 sm:$0xff]   ;;  %v1904_v21 = vld [vmem:[%s2564_s1 + $0x154] ss:$8 sps:$4 sm:$0xff]   ;;  %v1908_v23 = vld [vmem:[%s2564_s1 + $0x150] ss:$8 sps:$4 sm:$0xff]  }
  0x1d   : >> { %875 = vmatpush1.bf16.msra.mxu0 %v1885_v8  ;;  %643 = vmatprep.subr.bf16.mxu1 %v1886_v9  ;;  %v1903_v20 = vld [vmem:[%s2564_s1 + $0x40] ss:$8 sps:$4 sm:$0xff]   ;;  %v1906_v22 = vld [vmem:[%s2564_s1 + $0x54] ss:$8 sps:$4 sm:$0xff]   ;;  %v1909_v24 = vld [vmem:[%s2564_s1 + $0x50] ss:$8 sps:$4 sm:$0xff]  }
  0x1e   : >> { %876 = vmatprep.subr.bf16.mxu0 %v1888_v10  ;;  %v1910_v25 = vld [vmem:[%s2564_s1 + $0x164] ss:$8 sps:$4 sm:$0xff]   ;;  %v1914_v27 = vld [vmem:[%s2564_s1 + $0x160] ss:$8 sps:$4 sm:$0xff]   ;;  %v1916_v29 = vld [vmem:[%s2564_s1 + $0x174] ss:$8 sps:$4 sm:$0xff]  }
  0x1f   : >> { %v1912_v26 = vld [vmem:[%s2564_s1 + $0x64] ss:$8 sps:$4 sm:$0xff]   ;;  %v1915_v28 = vld [vmem:[%s2564_s1 + $0x60] ss:$8 sps:$4 sm:$0xff]   ;;  %v1918_v30 = vld [vmem:[%s2564_s1 + $0x74] ss:$8 sps:$4 sm:$0xff]  }
  0x20   : >> { %644 = vmatpush1.bf16.msra.mxu1 %v1890_v11  ;;  %v1920_v31 = vld [vmem:[%s2564_s1 + $0x170] ss:$8 sps:$4 sm:$0xff]   ;;  %v1922_v33 = vld [vmem:[%s2564_s1 + $0x184] ss:$8 sps:$4 sm:$0xff]   ;;  %s1514_s8 = sshll.u32 %s2088_s7, 2  ;;  %s1746_s29 = sshll.u32 %s2088_s7, 4 }
  0x21   : >> { %877 = vmatpush1.bf16.msra.mxu0 %v1891_v12  ;;  %645 = vmatprep.subr.bf16.mxu1 %v1892_v13  ;;  %v1921_v32 = vld [vmem:[%s2564_s1 + $0x70] ss:$8 sps:$4 sm:$0xff]   ;;  %v1924_v34 = vld [vmem:[%s2564_s1 + $0x84] ss:$8 sps:$4 sm:$0xff]   ;;  %v1926_v35 = vld [vmem:[%s2564_s1 + $0x180] ss:$8 sps:$4 sm:$0xff]   ;;  %s205_s24 = sadd.s32 %s1514_s8, %s1513_s22  ;;  %s1362_s30 = scalar_lea.vmem %s2157_s6, %s1746_s29 }
  0x22   : >> { %878 = vmatprep.subr.bf16.mxu0 %v1894_v14  ;;  %v1927_v36 = vld [vmem:[%s2564_s1 + $0x80] ss:$8 sps:$4 sm:$0xff]   ;;  %v1928_v37 = vld [vmem:[%s2564_s1 + $0x194] ss:$8 sps:$4 sm:$0xff]   ;;  %v1932_v39 = vld [vmem:[%s2564_s1 + $0x190] ss:$8 sps:$4 sm:$0xff]  }
  0x23   : >> { %v1930_v38 = vld [vmem:[%s2564_s1 + $0x94] ss:$8 sps:$4 sm:$0xff]   ;;  %v1933_v40 = vld [vmem:[%s2564_s1 + $0x90] ss:$8 sps:$4 sm:$0xff]   ;;  %v1934_v41 = vld [vmem:[%s2564_s1 + $0x1a4] ss:$8 sps:$4 sm:$0xff]  }
  0x24   : >> { %646 = vmatpush1.bf16.msra.mxu1 %v1896_v15  ;;  %s1742_s5 = smul.u32 12, %s205_s24  ;;  %v1936_v42 = vld [vmem:[%s2564_s1 + $0xa4] ss:$8 sps:$4 sm:$0xff]   ;;  %v1938_v43 = vld [vmem:[%s2564_s1 + $0x1a0] ss:$8 sps:$4 sm:$0xff]   ;;  %s203_s7 = sadd.s32 1, %s2088_s7  }
  0x25   : >> { %879 = vmatpush1.bf16.msra.mxu0 %v1897_v16  ;;  %647 = vmatprep.subr.bf16.mxu1 %v1898_v17  ;;  %v1939_v44 = vld [vmem:[%s2564_s1 + $0xa0] ss:$8 sps:$4 sm:$0xff]   ;;  %v1940_v45 = vld [vmem:[%s2564_s1 + $0x1b4] ss:$8 sps:$4 sm:$0xff]   ;;  %vm257_vm0 = vsmask.f32 7424 }
  0x26   : >> { %880 = vmatprep.subr.bf16.mxu0 %v1900_v18  ;;  %s2303_s23 = scalar_lea.vmem %s2152_s28, %s1742_s5  ;;  %v1942_v46 = vld [vmem:[%s2564_s1 + $0xb4] ss:$8 sps:$4 sm:$0xff]   ;;  %v1944_v47 = vld [vmem:[%s2564_s1 + $0x1b0] ss:$8 sps:$4 sm:$0xff]   ;;  %v1946_v49 = vld [vmem:[%s2564_s1 + $0x1c4] ss:$8 sps:$4 sm:$0xff]  }
  0x27   : >> { %v1945_v48 = vld [vmem:[%s2564_s1 + $0xb0] ss:$8 sps:$4 sm:$0xff]   ;;  %v1948_v50 = vld [vmem:[%s2564_s1 + $0xc4] ss:$8 sps:$4 sm:$0xff]   ;;  %v1950_v60 = vld [vmem:[%s2564_s1 + $0x1c0] ss:$8 sps:$4 sm:$0xff]  }
  0x28   : >> { %648 = vmatpush1.bf16.msra.mxu1 %v1902_v19  ;;  %v2321_v51 = vld [vmem:[%s2303_s23 + $0xc] sm:$0xff]   ;;  %v1971_v52 = vld [vmem:[%s2303_s23 + $0x14] ss:$0 sps:$4 sm:$0x11]   ;;  %v2325_v53 = vld [vmem:[%s2303_s23] sm:$0xff]   ;;  %p200_p7 = scmp.ge.s32.totalorder %s203_s7, 2  }
  0x29   : >> { %881 = vmatpush1.bf16.msra.mxu0 %v1903_v20  ;;  %649 = vmatprep.subr.bf16.mxu1 %v1904_v21  ;;  %v395_v54 = vshrl.u32 %v2321_v51, 16  ;;  %v397_v55 = vshll.u32 %v2321_v51, 16  ;;  %v402_v56 = vshll.u32 %v1971_v52, 16  ;;  %v1973_v57 = vld [vmem:[%s2303_s23 + $0x8] ss:$0 sps:$4 sm:$0x11]  }
  0x2a   : >> { %882 = vmatprep.subr.bf16.mxu0 %v1906_v22  ;;  %v259_v58 = vshrl.u32 %v2325_v53, 16  ;;  %v261_v59 = vshll.u32 %v2325_v53, 16  ;;  %v1951_v62 = vld [vmem:[%s2564_s1 + $0xc0] ss:$8 sps:$4 sm:$0xff]   ;;  %v266_v2 = vshll.u32 %v1973_v57, 16  ;;  %v2001_v21 = vld [vmem:[%s2303_s23 + $0x18] sm:$0xff]  }
  0x2b   : >> { %v399_v61 = vrot.slane %v397_v55, 1  ;;  %v404_v63 = vrot.slane %v402_v56, 1  ;;  %v1952_v3 = vld [vmem:[%s2564_s1 + $0x1d4] ss:$8 sps:$4 sm:$0xff]   ;;  %v1956_v9 = vld [vmem:[%s2564_s1 + $0x1d0] ss:$8 sps:$4 sm:$0xff]  }
  0x2c   : >> { %650 = vmatpush1.bf16.msra.mxu1 %v1908_v23  ;;  %v263_v1 = vrot.slane %v261_v59, 1  ;;  %v1954_v4 = vld [vmem:[%s2564_s1 + $0xd4] ss:$8 sps:$4 sm:$0xff]   ;;  %v268_v7 = vrot.slane %v266_v2, 1  ;;  %v1957_v10 = vld [vmem:[%s2564_s1 + $0xd0] ss:$8 sps:$4 sm:$0xff]  }
  0x2d   : >> { %883 = vmatpush1.bf16.msra.mxu0 %v1909_v24  ;;  %651 = vmatprep.subr.bf16.mxu1 %v1910_v25  ;;  %v400_v5 = vor.u32 %v399_v61, %v395_v54  ;;  %v1958_v12 = vld [vmem:[%s2564_s1 + $0x1e4] ss:$8 sps:$4 sm:$0xff]   ;;  %v1962_v14 = vld [vmem:[%s2564_s1 + $0x1e0] ss:$8 sps:$4 sm:$0xff]   ;;  %v1964_v16 = vld [vmem:[%s2564_s1 + $0x1f4] ss:$8 sps:$4 sm:$0xff]  }
  0x2e   : >> { %884 = vmatprep.subr.bf16.mxu0 %v1912_v26  ;;  %v264_v6 = vor.u32 %v263_v1, %v259_v58  ;;  %v1960_v13 = vld [vmem:[%s2564_s1 + $0xe4] ss:$8 sps:$4 sm:$0xff]   ;;  %v1963_v15 = vld [vmem:[%s2564_s1 + $0xe0] ss:$8 sps:$4 sm:$0xff]   ;;  %v1966_v17 = vld [vmem:[%s2564_s1 + $0xf4] ss:$8 sps:$4 sm:$0xff]  }
  0x2f   : >> { %v405_v8 = vsel %vm257_vm0, %v400_v5, %v404_v63  ;;  %v1968_v18 = vld [vmem:[%s2564_s1 + $0x1f0] ss:$8 sps:$4 sm:$0xff]   ;;  %v1976_v20 = vld [vmem:[%s2564_s1 + $0x204] ss:$8 sps:$4 sm:$0xff]   ;;  %v407_v23 = vshrl.u32 %v2001_v21, 16  ;;  %v409_v24 = vshll.u32 %v2001_v21, 16 }
  0x30   : >> { %652 = vmatpush1.bf16.msra.mxu1 %v1914_v27  ;;  %v269_v11 = vsel %vm257_vm0, %v264_v6, %v268_v7  ;;  %671 = vmatprep.mubr.bf16.mxu1 %v405_v8  ;;  %v1969_v19 = vld [vmem:[%s2564_s1 + $0xf0] ss:$8 sps:$4 sm:$0xff]   ;;  %v2002_v22 = vld [vmem:[%s2303_s23 + $0x20] ss:$0 sps:$4 sm:$0x11]  }
  0x31   : >> { %885 = vmatpush1.bf16.msra.mxu0 %v1915_v28  ;;  %653 = vmatprep.subr.bf16.mxu1 %v1916_v29  ;;  %v414_v25 = vshll.u32 %v2002_v22, 16  ;;  %v2003_v26 = vld [vmem:[%s2303_s23 + $0xc] sm:$0xff]   ;;  %v2004_v27 = vld [vmem:[%s2303_s23 + $0x14] ss:$0 sps:$4 sm:$0x11]   ;;  %v411_v29 = vrot.slane %v409_v24, 1 }
  0x32   : >> { %886 = vmatprep.subr.bf16.mxu0 %v1918_v30  ;;  %904 = vmatprep.mubr.bf16.mxu0 %v269_v11  ;;  %v1974_v28 = vld [vmem:[%s2564_s1 + $0x200] ss:$8 sps:$4 sm:$0xff]   ;;  %v2411_v57 = vld [vmem:[%s2303_s23 + $0x30] sm:$0xff]   ;;  %v1988_v1 = vld [vmem:[%s2564_s1 + $0x244] ss:$8 sps:$4 sm:$0xff]  }
  0x33   : >> { %v416_v30 = vrot.slane %v414_v25, 1  ;;  %v1980_v54 = vld [vmem:[%s2564_s1 + $0x220] ss:$8 sps:$4 sm:$0xff]   ;;  %v1985_v58 = vld [vmem:[%s2564_s1 + $0x234] ss:$8 sps:$4 sm:$0xff]   ;;  %v431_v63 = vshrl.u32 %v2411_v57, 16 }
  0x34   : >> { %654 = vmatpush1.bf16.msra.mxu1 %v1920_v31  ;;  %v271_v31 = vshrl.u32 %v2003_v26, 16  ;;  %v1983_v61 = vld [vmem:[%s2564_s1 + $0x230] ss:$8 sps:$4 sm:$0xff]   ;;  %v433_v5 = vshll.u32 %v2411_v57, 16  ;;  %v1994_v22 = vld [vmem:[%s2564_s1 + $0x264] ss:$8 sps:$4 sm:$0xff]  }
  0x35   : >> { %887 = vmatpush1.bf16.msra.mxu0 %v1921_v32  ;;  %655 = vmatprep.subr.bf16.mxu1 %v1922_v33  ;;  %v273_v32 = vshll.u32 %v2003_v26, 16  ;;  %v1979_v33 = vld [vmem:[%s2564_s1 + $0x214] ss:$8 sps:$4 sm:$0xff]   ;;  %v2024_v11 = vld [vmem:[%s2303_s23 + $0x2c] ss:$0 sps:$4 sm:$0x11]  }
  0x36   : >> { %888 = vmatprep.subr.bf16.mxu0 %v1924_v34  ;;  %v278_v34 = vshll.u32 %v2004_v27, 16  ;;  %v2035_v25 = vld [vmem:[%s2303_s23 + $0x20] ss:$0 sps:$4 sm:$0x11]  }
  0x38   : >> { %656 = vmatpush1.bf16.msra.mxu1 %v1926_v35  ;;  %v1977_v35 = vld [vmem:[%s2564_s1 + $0x210] ss:$8 sps:$4 sm:$0xff]  }
  0x39   : >> { %889 = vmatpush1.bf16.msra.mxu0 %v1927_v36  ;;  %657 = vmatprep.subr.bf16.mxu1 %v1928_v37  ;;  %v412_v36 = vor.u32 %v411_v29, %v407_v23  ;;  %v275_v37 = vrot.slane %v273_v32, 1 }
  0x3a   : >> { %890 = vmatprep.subr.bf16.mxu0 %v1930_v38  ;;  %v2393_v38 = vld [vmem:[%s2303_s23 + $0x24] sm:$0xff]  }
  0x3c   : >> { %658 = vmatpush1.bf16.msra.mxu1 %v1932_v39  ;;  %v1982_v39 = vld [vmem:[%s2564_s1 + $0x224] ss:$8 sps:$4 sm:$0xff]  }
  0x3d   : >> { %891 = vmatpush1.bf16.msra.mxu0 %v1933_v40  ;;  %659 = vmatprep.subr.bf16.mxu1 %v1934_v41  ;;  %v280_v40 = vrot.slane %v278_v34, 1  ;;  %v2012_v41 = vld [vmem:[%s2303_s23 + $0x2c] ss:$0 sps:$4 sm:$0x11]  }
  0x3e   : >> { %892 = vmatprep.subr.bf16.mxu0 %v1936_v42  ;;  %v417_v42 = vsel %vm257_vm0, %v412_v36, %v416_v30  ;;  %v1005_v30 = vshll.u32 %v2035_v25, 16  ;;  %v1997_v36 = vld [vmem:[%s2564_s1 + $0x274] ss:$8 sps:$4 sm:$0xff]  }
  0x40   : >> { %660 = vmatpush1.bf16.msra.mxu1 %v1938_v43  ;;  %v276_v43 = vor.u32 %v275_v37, %v271_v31  ;;  %v2037_v31 = vld [vmem:[%s2303_s23 + $0x38] ss:$0 sps:$4 sm:$0x11]  }
  0x41   : >> { %893 = vmatpush1.bf16.msra.mxu0 %v1939_v44  ;;  %661 = vmatprep.subr.bf16.mxu1 %v1940_v45  ;;  %v419_v44 = vshrl.u32 %v2393_v38, 16  ;;  %v421_v45 = vshll.u32 %v2393_v38, 16 }
  0x42   : >> { %894 = vmatprep.subr.bf16.mxu0 %v1942_v46  ;;  %v426_v46 = vshll.u32 %v2012_v41, 16  ;;  %v2039_v41 = vld [vmem:[%s2303_s23 + $0x2c] ss:$0 sps:$4 sm:$0x11]  }
  0x44   : >> { %662 = vmatpush1.bf16.msra.mxu1 %v1944_v47  ;;  %v2013_v47 = vld [vmem:[%s2303_s23 + $0x18] sm:$0xff]  }
  0x45   : >> { %895 = vmatpush1.bf16.msra.mxu0 %v1945_v48  ;;  %663 = vmatprep.subr.bf16.mxu1 %v1946_v49  ;;  %v281_v48 = vsel %vm257_vm0, %v276_v43, %v280_v40  ;;  %v423_v49 = vrot.slane %v421_v45, 1  ;;  %v283_v52 = vshrl.u32 %v2013_v47, 16  ;;  %v2473_v45 = vld [vmem:[%s2303_s23 + $0x3c] sm:$0xff]  }
  0x46   : >> { %896 = vmatprep.subr.bf16.mxu0 %v1948_v50  ;;  %v2014_v50 = vld [vmem:[%s2303_s23 + $0x20] ss:$0 sps:$4 sm:$0x11]  }
  0x47   : >> { %v424_v55 = vor.u32 %v423_v49, %v419_v44  ;;  %v290_v56 = vshll.u32 %v2014_v50, 16  ;;  %v2041_v49 = vld [vmem:[%s2303_s23 + $0x44] ss:$0 sps:$4 sm:$0x11]  }
  0x48   : >> { %664 = vmatpush1.bf16.msra.mxu1 %v1950_v60  ;;  %v2417_v60 = vld [vmem:[%s2303_s23 + $0x24] sm:$0xff]  }
  0x49   : >> { %897 = vmatpush1.bf16.msra.mxu0 %v1951_v62  ;;  %665 = vmatprep.subr.bf16.mxu1 %v1952_v3  ;;  %v292_v62 = vrot.slane %v290_v56, 1  ;;  %v295_v6 = vshrl.u32 %v2417_v60, 16  ;;  %v297_v7 = vshll.u32 %v2417_v60, 16 }
  0x4a   : >> { %898 = vmatprep.subr.bf16.mxu0 %v1954_v4  ;;  %v2022_v4 = vld [vmem:[%s2303_s23 + $0x38] ss:$0 sps:$4 sm:$0x11]  }
  0x4c   : >> { %666 = vmatpush1.bf16.msra.mxu1 %v1956_v9  ;;  %v435_v9 = vrot.slane %v433_v5, 1  ;;  %v2008_v5 = vld [vmem:[%s2564_s1 + $0x2a0] ss:$8 sps:$4 sm:$0xff]  }
  0x4d   : >> { %899 = vmatpush1.bf16.msra.mxu0 %v1957_v10  ;;  %667 = vmatprep.subr.bf16.mxu1 %v1958_v12  ;;  %v438_v10 = vshll.u32 %v2022_v4, 16  ;;  %v299_v12 = vrot.slane %v297_v7, 1  ;;  %v2010_v4 = vld [vmem:[%s2564_s1 + $0x2a4] ss:$8 sps:$4 sm:$0xff]   ;;  %v2015_v7 = vld [vmem:[%s2564_s1 + $0x2b0] ss:$8 sps:$4 sm:$0xff]  }
  0x4e   : >> { %900 = vmatprep.subr.bf16.mxu0 %v1960_v13  ;;  %v436_v13 = vor.u32 %v435_v9, %v431_v63  ;;  %v1998_v63 = vld [vmem:[%s2564_s1 + $0x280] ss:$8 sps:$4 sm:$0xff]  }
  0x4f   : >> { %v2018_v9 = vld [vmem:[%s2564_s1 + $0x2c0] ss:$8 sps:$4 sm:$0xff]  }
  0x50   : >> { %668 = vmatpush1.bf16.msra.mxu1 %v1962_v14  ;;  %v440_v14 = vrot.slane %v438_v10, 1  ;;  %v2027_v10 = vld [vmem:[%s2564_s1 + $0x2d4] ss:$8 sps:$4 sm:$0xff]  }
  0x51   : >> { %901 = vmatpush1.bf16.msra.mxu0 %v1963_v15  ;;  %669 = vmatprep.subr.bf16.mxu1 %v1964_v16  ;;  %v302_v15 = vshll.u32 %v2024_v11, 16  ;;  %v1986_v16 = vld [vmem:[%s2564_s1 + $0x240] ss:$8 sps:$4 sm:$0xff]   ;;  %v2025_v11 = vld [vmem:[%s2564_s1 + $0x2d0] ss:$8 sps:$4 sm:$0xff]  }
  0x52   : >> { %902 = vmatprep.subr.bf16.mxu0 %v1966_v17  ;;  %v300_v17 = vor.u32 %v299_v12, %v295_v6  ;;  %v441_v23 = vsel %vm257_vm0, %v436_v13, %v440_v14  ;;  %v2017_v6 = vld [vmem:[%s2564_s1 + $0x2b4] ss:$8 sps:$4 sm:$0xff]   ;;  %v2030_v12 = vld [vmem:[%s2564_s1 + $0x2e4] ss:$8 sps:$4 sm:$0xff]   ;;  %v2028_v13 = vld [vmem:[%s2564_s1 + $0x2e0] ss:$8 sps:$4 sm:$0xff]  }
  0x53   : >> { %v2033_v14 = vld [vmem:[%s2564_s1 + $0x2f4] ss:$8 sps:$4 sm:$0xff]  }
  0x54   : >> { %670 = vmatpush1.bf16.msra.mxu1 %v1968_v18  ;;  %v1991_v18 = vld [vmem:[%s2564_s1 + $0x254] ss:$8 sps:$4 sm:$0xff]  }
  0x55   : >> { %903 = vmatpush1.bf16.msra.mxu0 %v1969_v19  ;;  %1761 = vmatprep.subr.bf16.mxu1 %v1976_v20  ;;  %v304_v19 = vrot.slane %v302_v15, 1  ;;  %v2031_v15 = vld [vmem:[%s2564_s1 + $0x2f0] ss:$8 sps:$4 sm:$0xff]  }
  0x56   : >> { %1242 = vmatprep.subr.bf16.mxu0 %v1976_v20  ;;  %v2440_v20 = vld [vmem:[%s2303_s23 + $0x18] sm:$0xff]  }
  0x57   : >> { %672 = vmatmul.mubr.bf16.vlgmr.msra.gmra.mrb[0].mxu1 %v2321_v51  ;;  %v428_v51 = vrot.slane %v426_v46, 1  ;;  %v305_v24 = vsel %vm257_vm0, %v300_v17, %v304_v19  ;;  %v1000_v27 = vshll.u32 %v2440_v20, 16 }
  0x58   : >> { %905 = vmatmul.mubr.bf16.vlgmr.msra.gmra.mrb[0].mxu0 %v2325_v53  ;;  %1777 = vmatpush1.bf16.msra.mxu1 %v1974_v28  ;;  %v285_v53 = vshll.u32 %v2013_v47, 16 }
  0x59   : >> { %1243 = vmatpush1.bf16.msra.mxu0 %v1974_v28  ;;  %1762 = vmatprep.subr.bf16.mxu1 %v1979_v33  ;;  %v429_v2 = vsel %vm257_vm0, %v424_v55, %v428_v51  ;;  %v2455_v28 = vld [vmem:[%s2303_s23 + $0x30] sm:$0xff]   ;;  %v1002_v29 = vrot.slane %v1000_v27, 1  ;;  %v1034_v51 = vshrl.u32 %v2473_v45, 16 }
  0x5a   : >> { %1244 = vmatprep.subr.bf16.mxu0 %v1979_v33  ;;  %681 = vmatprep.mubr.bf16.mxu1 %v417_v42  ;;  %v287_v59 = vrot.slane %v285_v53, 1  ;;  %v1022_v32 = vshrl.u32 %v2455_v28, 16  ;;  %v1992_v33 = vld [vmem:[%s2564_s1 + $0x260] ss:$8 sps:$4 sm:$0xff]   ;;  %v1024_v34 = vshll.u32 %v2455_v28, 16 }
  0x5b   : >> { %914 = vmatprep.mubr.bf16.mxu0 %v281_v48  ;;  %v1017_v48 = vshll.u32 %v2039_v41, 16  ;;  %v1995_v53 = vld [vmem:[%s2564_s1 + $0x270] ss:$8 sps:$4 sm:$0xff]  }
  0x5c   : >> { %1778 = vmatpush1.bf16.msra.mxu1 %v1977_v35  ;;  %v288_v3 = vor.u32 %v287_v59, %v283_v52  ;;  %v1026_v40 = vrot.slane %v1024_v34, 1  ;;  %v1036_v52 = vshll.u32 %v2473_v45, 16 }
  0x5d   : >> { %1245 = vmatpush1.bf16.msra.mxu0 %v1977_v35  ;;  %1763 = vmatprep.subr.bf16.mxu1 %v1982_v39  ;;  %v2464_v35 = vld [vmem:[%s2303_s23 + $0x24] sm:$0xff]   ;;  %v1019_v56 = vrot.slane %v1017_v48, 1 }
  0x5e   : >> { %1246 = vmatprep.subr.bf16.mxu0 %v1982_v39  ;;  %v293_v8 = vsel %vm257_vm0, %v288_v3, %v292_v62  ;;  %v1029_v39 = vshll.u32 %v2037_v31, 16  ;;  %v1010_v42 = vshrl.u32 %v2464_v35, 16  ;;  %v1012_v43 = vshll.u32 %v2464_v35, 16  ;;  %v2005_v3 = vld [vmem:[%s2564_s1 + $0x290] ss:$8 sps:$4 sm:$0xff]  }
  0x5f   : >> { %682 = vmatmul.mubr.bf16.gmra.mrb[4].mxu1 %v2001_v21  ;;  %v1989_v21 = vld [vmem:[%s2564_s1 + $0x250] ss:$8 sps:$4 sm:$0xff]   ;;  %v1027_v46 = vor.u32 %v1026_v40, %v1022_v32  ;;  %v1038_v59 = vrot.slane %v1036_v52, 1 }
  0x60   : >> { %915 = vmatmul.mubr.bf16.gmra.mrb[4].mxu0 %v2003_v26  ;;  %1779 = vmatpush1.bf16.msra.mxu1 %v1980_v54  ;;  %v998_v26 = vshrl.u32 %v2440_v20, 16  ;;  %v1031_v44 = vrot.slane %v1029_v39, 1 }
  0x61   : >> { %1247 = vmatpush1.bf16.msra.mxu0 %v1980_v54  ;;  %1764 = vmatprep.subr.bf16.mxu1 %v1985_v58  ;;  %v1039_v62 = vor.u32 %v1038_v59, %v1034_v51 }
  0x62   : >> { %1248 = vmatprep.subr.bf16.mxu0 %v1985_v58  ;;  %691 = vmatprep.mubr.bf16.mxu1 %v429_v2  ;;  %v1003_v37 = vor.u32 %v1002_v29, %v998_v26  ;;  %v1032_v54 = vsel %vm257_vm0, %v1027_v46, %v1031_v44  ;;  %v1041_v58 = vshll.u32 %v2041_v49, 16 }
  0x63   : >> { %924 = vmatprep.mubr.bf16.mxu0 %v293_v8  ;;  %v2020_v8 = vld [vmem:[%s2564_s1 + $0x2c4] ss:$8 sps:$4 sm:$0xff]  }
  0x64   : >> { %1780 = vmatpush1.bf16.msra.mxu1 %v1983_v61 }
  0x65   : >> { %1249 = vmatpush1.bf16.msra.mxu0 %v1983_v61  ;;  %1765 = vmatprep.subr.bf16.mxu1 %v1988_v1  ;;  %v1043_v61 = vrot.slane %v1041_v58, 1 }
  0x66   : >> { %1250 = vmatprep.subr.bf16.mxu0 %v1988_v1  ;;  %v2007_v1 = vld [vmem:[%s2564_s1 + $0x294] ss:$8 sps:$4 sm:$0xff]  }
  0x67   : >> { %692 = vmatmul.mubr.bf16.gmra.mrb[8].mxu1 %v2393_v38  ;;  %v1007_v38 = vrot.slane %v1005_v30, 1  ;;  %v1044_v2 = vsel %vm257_vm0, %v1039_v62, %v1043_v61 }
  0x68   : >> { %925 = vmatmul.mubr.bf16.gmra.mrb[8].mxu0 %v2013_v47  ;;  %1781 = vmatpush1.bf16.msra.mxu1 %v1986_v16  ;;  %v1014_v47 = vrot.slane %v1012_v43, 1 }
  0x69   : >> { %1251 = vmatpush1.bf16.msra.mxu0 %v1986_v16  ;;  %1766 = vmatprep.subr.bf16.mxu1 %v1991_v18  ;;  %v1008_v50 = vsel %vm257_vm0, %v1003_v37, %v1007_v38 }
  0x6a   : >> { %1252 = vmatprep.subr.bf16.mxu0 %v1991_v18  ;;  %701 = vmatprep.mubr.bf16.mxu1 %v441_v23  ;;  %v1015_v55 = vor.u32 %v1014_v47, %v1010_v42 }
  0x6b   : >> { %934 = vmatprep.mubr.bf16.mxu0 %v305_v24 }
  0x6c   : >> { %1782 = vmatpush1.bf16.msra.mxu1 %v1989_v21 }
  0x6d   : >> { %1253 = vmatpush1.bf16.msra.mxu0 %v1989_v21  ;;  %1767 = vmatprep.subr.bf16.mxu1 %v1994_v22 }
  0x6e   : >> { %1254 = vmatprep.subr.bf16.mxu0 %v1994_v22 }
  0x6f   : >> { %702 = vmatmul.mubr.bf16.gmra.mrb[12].mxu1 %v2411_v57  ;;  %v2000_v57 = vld [vmem:[%s2564_s1 + $0x284] ss:$8 sps:$4 sm:$0xff]  }
  0x70   : >> { %935 = vmatmul.mubr.bf16.gmra.mrb[12].mxu0 %v2417_v60  ;;  %1783 = vmatpush1.bf16.msra.mxu1 %v1992_v33  ;;  %v1020_v60 = vsel %vm257_vm0, %v1015_v55, %v1019_v56 }
  0x71   : >> { %1255 = vmatpush1.bf16.msra.mxu0 %v1992_v33  ;;  %1768 = vmatprep.subr.bf16.mxu1 %v1997_v36 }
  0x72   : >> { %1256 = vmatprep.subr.bf16.mxu0 %v1997_v36  ;;  %1274 = vmatprep.mubr.bf16.mxu0 %v1008_v50 }
  0x73   : >> { %1294 = vmatprep.mubr.bf16.mxu1 %v1032_v54 }
  0x74   : >> { %1784 = vmatpush1.bf16.msra.mxu1 %v1995_v53 }
  0x75   : >> { %1257 = vmatpush1.bf16.msra.mxu0 %v1995_v53  ;;  %1769 = vmatprep.subr.bf16.mxu1 %v2000_v57 }
  0x76   : >> { %1258 = vmatprep.subr.bf16.mxu0 %v2000_v57 }
  0x78   : >> { %1785 = vmatpush1.bf16.msra.mxu1 %v1998_v63 }
  0x79   : >> { %1259 = vmatpush1.bf16.msra.mxu0 %v1998_v63  ;;  %1770 = vmatprep.subr.bf16.mxu1 %v2007_v1 }
  0x7a   : >> { %1260 = vmatprep.subr.bf16.mxu0 %v2007_v1 }
  0x7c   : >> { %1786 = vmatpush1.bf16.msra.mxu1 %v2005_v3 }
  0x7d   : >> { %1261 = vmatpush1.bf16.msra.mxu0 %v2005_v3  ;;  %1771 = vmatprep.subr.bf16.mxu1 %v2010_v4 }
  0x7e   : >> { %1262 = vmatprep.subr.bf16.mxu0 %v2010_v4 }
  0x80   : >> { %1787 = vmatpush1.bf16.msra.mxu1 %v2008_v5 }
  0x81   : >> { %1263 = vmatpush1.bf16.msra.mxu0 %v2008_v5  ;;  %1772 = vmatprep.subr.bf16.mxu1 %v2017_v6 }
  0x82   : >> { %1264 = vmatprep.subr.bf16.mxu0 %v2017_v6 }
  0x84   : >> { %1788 = vmatpush1.bf16.msra.mxu1 %v2015_v7 }
  0x85   : >> { %1265 = vmatpush1.bf16.msra.mxu0 %v2015_v7  ;;  %1773 = vmatprep.subr.bf16.mxu1 %v2020_v8 }
  0x86   : >> { %1266 = vmatprep.subr.bf16.mxu0 %v2020_v8 }
  0x88   : >> { %1789 = vmatpush1.bf16.msra.mxu1 %v2018_v9 }
  0x89   : >> { %1267 = vmatpush1.bf16.msra.mxu0 %v2018_v9  ;;  %1774 = vmatprep.subr.bf16.mxu1 %v2027_v10 }
  0x8a   : >> { %1268 = vmatprep.subr.bf16.mxu0 %v2027_v10 }
  0x8c   : >> { %1790 = vmatpush1.bf16.msra.mxu1 %v2025_v11 }
  0x8d   : >> { %1269 = vmatpush1.bf16.msra.mxu0 %v2025_v11  ;;  %1775 = vmatprep.subr.bf16.mxu1 %v2030_v12 }
  0x8e   : >> { %1270 = vmatprep.subr.bf16.mxu0 %v2030_v12 }
  0x90   : >> { %1791 = vmatpush1.bf16.msra.mxu1 %v2028_v13 }
  0x91   : >> { %1271 = vmatpush1.bf16.msra.mxu0 %v2028_v13  ;;  %1776 = vmatprep.subr.bf16.mxu1 %v2033_v14 }
  0x92   : >> { %1272 = vmatprep.subr.bf16.mxu0 %v2033_v14 }
  0x94   : >> { %1792 = vmatpush1.bf16.msra.mxu1 %v2031_v15 }
  0x95   : >> { %1273 = vmatpush1.bf16.msra.mxu0 %v2031_v15 }
  0x97   : >> { %1295 = vmatmul.mubr.bf16.vlgmr.msra.gmra.mrb[16].mxu1 %v2455_v28 }
  0x98   : >> { %1275 = vmatmul.mubr.bf16.vlgmr.msra.gmra.mrb[0].mxu0 %v2440_v20  ;;  %1304 = vmatprep.mubr.bf16.mxu1 %v1044_v2 }
  0x99   : >> { %1284 = vmatprep.mubr.bf16.mxu0 %v1020_v60 }
  0x9f   : >> { %1305 = vmatmul.mubr.bf16.gmra.mrb[20].mxu1 %v2473_v45 }
  0xa0   : >> { %1285 = vmatmul.mubr.bf16.gmra.mrb[4].mxu0 %v2464_v35 }
 0x12a   : >> { %v673_v16 = vpop.f32.mrb[0].mxu1 }
 0x12b   : >> { %v675_v17 = vpop.f32.mrb[1].mxu1 }
 0x12c   : >> { %v677_v18 = vpop.f32.mrb[2].mxu1 }
 0x12d   : >> { %v679_v19 = vpop.f32.mrb[3].mxu1 }
 0x132   : >> { %v683_v21 = vpop.f32.mrb[4].mxu1 }
 0x133   : >> { %v685_v22 = vpop.f32.mrb[5].mxu1 }
 0x134   : >> { %v687_v23 = vpop.f32.mrb[6].mxu1 }
 0x135   : >> { %v689_v24 = vpop.f32.mrb[7].mxu1 }
 0x13a   : >> { %v693_v25 = vpop.f32.mrb[8].mxu1 }
 0x13b   : >> { %v926_v26 = vpop.f32.mrb[8].mxu0  ;;  %v695_v20 = vpop.f32.mrb[9].mxu1 }
 0x13c   : >> { %v927_v27 = vadd.f32 %v926_v26, %v693_v25  ;;  %v928_v29 = vpop.f32.mrb[9].mxu0  ;;  %v697_v30 = vpop.f32.mrb[10].mxu1 }
 0x13d   : >> { %v929_v28 = vadd.f32 %v928_v29, %v695_v20  ;;  %v930_v31 = vpop.f32.mrb[10].mxu0  ;;  %v699_v33 = vpop.f32.mrb[11].mxu1 }
 0x13e   : >> { %v931_v32 = vadd.f32 %v930_v31, %v697_v30  ;;  %v932_v34 = vpop.f32.mrb[11].mxu0 }
 0x13f   : >> { %v933_v35 = vadd.f32 %v932_v34, %v699_v33 }
 0x142   : >> { %v703_v36 = vpop.f32.mrb[12].mxu1 }
 0x143   : >> { %v936_v37 = vpop.f32.mrb[12].mxu0  ;;  %v705_v39 = vpop.f32.mrb[13].mxu1 }
 0x144   : >> { %v937_v38 = vadd.f32 %v936_v37, %v703_v36  ;;  %v938_v40 = vpop.f32.mrb[13].mxu0  ;;  %v707_v42 = vpop.f32.mrb[14].mxu1 }
 0x145   : >> { %v939_v41 = vadd.f32 %v938_v40, %v705_v39  ;;  %v940_v43 = vpop.f32.mrb[14].mxu0  ;;  %v709_v45 = vpop.f32.mrb[15].mxu1 }
 0x146   : >> { %v941_v44 = vadd.f32 %v940_v43, %v707_v42  ;;  %v942_v46 = vpop.f32.mrb[15].mxu0 }
 0x147   : >> { %v943_v47 = vadd.f32 %v942_v46, %v709_v45 }
 0x16a   : >> { %v1296_v49 = vpop.f32.mrb[16].mxu1 }
 0x16b   : >> { %v1276_v48 = vpop.f32.mrb[0].mxu0  ;;  %v1323_v51 = vadd.f32 %v1296_v49, %v927_v27  ;;  %v1298_v53 = vpop.f32.mrb[17].mxu1 }
 0x16c   : >> { %v1793_v50 = vadd.f32 %v1276_v48, %v673_v16  ;;  %v1278_v52 = vpop.f32.mrb[1].mxu0  ;;  %v1324_v55 = vadd.f32 %v1298_v53, %v929_v28  ;;  %v1300_v58 = vpop.f32.mrb[18].mxu1 }
 0x16d   : >> { %v1794_v54 = vadd.f32 %v1278_v52, %v675_v17  ;;  %v1280_v56 = vpop.f32.mrb[2].mxu0  ;;  %v1325_v59 = vadd.f32 %v1300_v58, %v931_v32  ;;  %v1302_v61 = vpop.f32.mrb[19].mxu1 }
 0x16e   : >> { %v1795_v57 = vadd.f32 %v1280_v56, %v677_v18  ;;  %v1282_v60 = vpop.f32.mrb[3].mxu0  ;;  %v1335_v63 = vmax.f32 %v1323_v51, %v1324_v55  ;;  %v1326_v2 = vadd.f32 %v1302_v61, %v933_v35 }
 0x16f   : >> { %v1331_v62 = vmax.f32 %v1793_v50, %v1794_v54  ;;  %v1796_v1 = vadd.f32 %v1282_v60, %v679_v19 }
 0x170   : >> { %v1336_v4 = vmax.f32 %v1325_v59, %v1326_v2 }
 0x171   : >> { %v1332_v3 = vmax.f32 %v1795_v57, %v1796_v1 }
 0x172   : >> { %v1306_v6 = vpop.f32.mrb[20].mxu1 }
 0x173   : >> { %v1286_v5 = vpop.f32.mrb[4].mxu0  ;;  %v1327_v8 = vadd.f32 %v1306_v6, %v937_v38  ;;  %v1308_v10 = vpop.f32.mrb[21].mxu1 }
 0x174   : >> { %v1797_v7 = vadd.f32 %v1286_v5, %v683_v21  ;;  %v1288_v9 = vpop.f32.mrb[5].mxu0  ;;  %v1328_v12 = vadd.f32 %v1308_v10, %v939_v41  ;;  %v1310_v14 = vpop.f32.mrb[22].mxu1 }
 0x175   : >> { %v1798_v11 = vadd.f32 %v1288_v9, %v685_v22  ;;  %v1290_v13 = vpop.f32.mrb[6].mxu0  ;;  %v1329_v16 = vadd.f32 %v1310_v14, %v941_v44  ;;  %v1312_v18 = vpop.f32.mrb[23].mxu1 }
 0x176   : >> { %v1799_v15 = vadd.f32 %v1290_v13, %v687_v23  ;;  %v1292_v17 = vpop.f32.mrb[7].mxu0  ;;  %v1337_v19 = vmax.f32 %v1327_v8, %v1328_v12  ;;  %v1330_v27 = vadd.f32 %v1312_v18, %v943_v47 }
 0x177   : >> { %v1333_v25 = vmax.f32 %v1797_v7, %v1798_v11  ;;  %v1800_v26 = vadd.f32 %v1292_v17, %v689_v24 }
 0x178   : >> { %v1365_v29 = vmax.f32 %v1335_v63, %v1337_v19  ;;  %v1338_v28 = vmax.f32 %v1329_v16, %v1330_v27 }
 0x179   : >> { %v1339_v20 = vmax.f32 %v1331_v62, %v1333_v25  ;;  %v1334_v21 = vmax.f32 %v1799_v15, %v1800_v26 }
 0x17a   : >> { %v1367_v22 = vadd.f32 %v2146_v0, %v1365_v29  ;;  %v1366_v32 = vmax.f32 %v1336_v4, %v1338_v28 }
 0x17b   : >> { %v1347_v30 = vadd.f32 %v2146_v0, %v1339_v20  ;;  %v1340_v31 = vmax.f32 %v1332_v3, %v1334_v21 }
 0x17c   : >> { %v1368_v33 = vadd.f32 %v2146_v0, %v1366_v32  ;;  %v1369_v35 = vmax.f32 %v1367_v22, 0.0 }
 0x17d   : >> { %v1348_v23 = vadd.f32 %v2146_v0, %v1340_v31  ;;  %v1349_v34 = vmax.f32 %v1347_v30, 0.0  ;;  %202 = sbr.rel (!%p200_p7) target bundleno = 22 (0x16), region = 76 }
 0x17e   : >> { %v1370_v36 = vmax.f32 %v1368_v33, 0.0 }
 0x17f   : >> { %v1350_v24 = vmax.f32 %v1348_v23, 0.0 }
 0x180   : >> { %v1758_v38 = vpack.c.bf16 %v1370_v36, %v1369_v35 }
 0x181   : >> { %v1753_v37 = vpack.c.bf16 %v1350_v24, %v1349_v34 }
 0x182   : >> { %1760 = vst [vmem:[%s1362_s30 + $0x8] sm:$0xff] %v1758_v38  }
 0x183   : >> { %1754 = vst [vmem:[%s1362_s30] sm:$0xff] %v1753_v37  }
 0x184 PF: > { %s13_s16 = sadd.s32 1, %s2084_s16   ;;  %s2567_s12 = smov %s2076_s14 }
 0x185   : > { %p10_p8 = scmp.ge.s32.totalorder %s13_s16, 10   ;;  %s2568_s13 = smov %s2080_s15 }
 0x186   : > { %s2569_s14 = smov %s2572_s17  ;;  %s2570_s15 = smov %s2576_s18 }
 0x187   :  { %12 = sbr.rel (!%p10_p8) target bundleno = 3 (0x3), region = 87 }

// kernel: cnn_forward.7
= control target key start
LH: loop header
LB: loop body
LE: loop exit
PB: predicated region body
PF: predicated region fallthrough
CT: control target
= control target key end

     0   :  { %9 = vsyncpa [#allocation4], 0  ;;  %s13035_s0 = inlined_call_operand.vmem [shape: bf16[2,32768], index: 0, kind: input, shape index: {}]   ;;  %s13036_s1 = inlined_call_operand.hbm [shape: bf16[32768,512], index: 1, kind: input, shape index: {}]   ;;  %s13037_s2 = inlined_call_operand.vmem [shape: f32[1,512], index: 2, kind: input, shape index: {}]   ;;  %s13038_s3 = inlined_call_operand.vmem [shape: f32[512,128], index: 3, kind: input, shape index: {}]   ;;  %s13039_s4 = inlined_call_operand.vmem [shape: f32[2,2,128], index: 4, kind: output, shape index: {}]  }
   0x1   :  { %11 = vsyncpa [#allocation4 + $0x1], 0  ;;  %s11480_s15 = smov 0   ;;  %s11482_s16 = smov 0  }
   0x2   :  { %s11484_s17 = smov 0   ;;  %s11486_s18 = smov 0  }
   0x3   :  { %s11488_s19 = smov 0   ;;  %s11490_s20 = smov 0  }
   0x4   :  { %s11492_s21 = smov 0   ;;  %s11494_s22 = smov 0  }
   0x5 LB: > { %s8491_s23 = sadd.s32 4294967295, %s11446_s22   ;;  %s26_s24 = sadd.s32 1, %s11438_s20  ;;  %s11446_s22 = sphi %s11494_s22, %s17_s22   ;;  %s11442_s21 = sphi %s11492_s21, %s13052_s21   ;;  %s11438_s20 = sphi %s11490_s20, %s13051_s20   ;;  %s11434_s19 = sphi %s11488_s19, %s13050_s19   ;;  %s11430_s18 = sphi %s11486_s18, %s13049_s18   ;;  %s11426_s17 = sphi %s11484_s17, %s13048_s17   ;;  %s11422_s16 = sphi %s11482_s16, %s13047_s16   ;;  %s11418_s15 = sphi %s11480_s15, %s13046_s15  }
   0x6   : > { %p27_p0 = scmp.ge.s32.totalorder %s26_s24, 4  ;;  %s29_s25 = sadd.s32 1, %s11442_s21 }
   0x7   : > { %s64_s26 = sadd.s32 1, %s11426_s17  ;;  %p71_p1 = scmp.ne.s32.totalorder %s11426_s17, %s11422_s16 }
   0x8   : > { %s13054_s24 = smov (%p27_p0, %s26_s24), 0  ;;  %s13056_s25 = smov (!%p27_p0, %s29_s25), %s11442_s21 }
   0x9   : > { %13041 = sst [smem:[#allocation6_spill]] %s13054_s24  ;;  %s59_s27 = ssub.s32 %s11438_s20, %s13054_s24 }
   0xa   : > { %p72_p2 = scmp.eq.s32.totalorder %s11446_s22, 0  ;;  %p31_p3 = scmp.ge.s32.totalorder %s13056_s25, 2 }
   0xb   : > { %p77_p4 = scmp.ne.s32.totalorder %s11422_s16, %s11418_s15  ;;  %p78_p6 = scmp.eq.s32.totalorder %s8491_s23, 0 }
   0xc   : > { %p11531_p5 = por %p72_p2, %p71_p1  ;;  %s13058_s25 = smov (%p31_p3, %s13056_s25), 0 }
   0xd   : > { %p11537_p7 = por %p78_p6, %p77_p4  ;;  %s60_s30 = ssub.s32 %s11442_s21, %s13058_s25 }
   0xe   : > { %p9731_p8 = scmp.lt.s32.totalorder %s11446_s22, 8  ;;  %s61_s5 = sor.u32 %s60_s30, %s59_s27 }
   0xf   : > { %s187_s6 = sand.u32 1, %s11426_s17   ;;  %p62_p9 = scmp.eq.s32.totalorder %s61_s5, 0 }
  0x10   : > { %s8495_s7 = sshll.u32 %s187_s6, 13  ;;  %s8497_s8 = sshll.u32 %s11442_s21, 1 }
  0x11   : > { %s11547_s9 = scalar_select %p62_p9, %s11426_s17, %s64_s26  }
  0x12   : > { %s9535_s10 = sshll.u32 %s11438_s20, 12  ;;  %s191_s12 = scalar_lea.vmem [#allocation3], %s8495_s7 }
  0x13   : > { %s198_s11 = sadd.s32 %s9535_s10, %s8497_s8  ;;  %s201_s13 = sshll.u32 %s191_s12, 4  ;;  %s11550_s13 = int_to_ptr.vmem [resolvable:$true] %s201_s13 }
  0x14   : > { %s8499_s14 = sshll.u32 %s198_s11, 6  ;;  %p11561_p10 = pnand %p9731_p8, %p11531_p5 }
  0x15   : > { %s11555_s24 = scalar_lea.hbm %s13036_s1, %s8499_s14  ;;  %s11565_s27 = scalar_lea.sflag [#allocation4], %s187_s6 }
  0x16   : > { %s11350_s30 = scalar_lea.hbm %s11555_s24, 131072  ;;  %p11352_p12 = pneg %p11561_p10 }
  0x17   : > { %p11351_p11 = scmp.ne.s32.totalorder %s11555_s24, %s11350_s30  ;;  %s11355_s7 = scalar_lea.hbm %s13036_s1, 1048576 }
  0x18   : > { %p11356_p1 = scmp.lt.u32.totalorder %s11555_s24, %s13036_s1  ;;  %p11357_p2 = scmp.lt.u32.totalorder %s11355_s7, %s11350_s30 }
  0x19   : > { %p11353_p13 = pnand %p11352_p12, %p11351_p11  ;;  %p11359_p4 = scmp.lt.u32.totalorder %s11350_s30, %s11555_s24 }
  0x1a   : > { %p11358_p3 = por %p11357_p2, %p11356_p1 }
  0x1b   : > { %p11354_p0 = pneg %p11353_p13 }
  0x1c   : > { %p11360_p5 = por %p11359_p4, %p11358_p3 }
  0x1e   : > { %p11361_p6 = pnand %p11360_p5, %p11354_p0 }
  0x20   : > { %11364 = shalt.err (!%p11361_p6)
}
  0x21   : > { %s11365_s6 = scalar_lea.vmem %s11550_s13, 131072  ;;  %s11448_s11 = smov [#allocation3]  }
  0x22   : > { %p11366_p8 = scmp.ne.s32.totalorder %s11550_s13, %s11365_s6  ;;  %s11370_s12 = sshll.u32 %s11448_s11, 4  ;;  %s11371_s12 = int_to_ptr.vmem [resolvable:$false] %s11370_s12 }
  0x23   : > { %s11372_s14 = scalar_lea.vmem %s11371_s12, 262144  ;;  %p11373_p13 = scmp.lt.s32.totalorder %s11550_s13, %s11371_s12 }
  0x24   : > { %p11368_p9 = pnand %p11366_p8, %p11352_p12  ;;  %p11374_p1 = scmp.lt.s32.totalorder %s11372_s14, %s11365_s6 }
  0x26   : > { %p11369_p11 = pneg %p11368_p9  ;;  %p11375_p2 = por %p11374_p1, %p11373_p13 }
  0x28   : > { %p11376_p3 = pnand %p11375_p2, %p11369_p11 }
  0x2a   : > { %11379 = shalt.err (!%p11376_p3)
}
  0x2b   : > { %s11449_s15 = smov 256   ;;  %s11450_s23 = smov 128  }
  0x2c   : > { %s11451_s30 = smov 8   ;;  %p8500_p12 = scmp.ge.s32.totalorder %s11446_s22, 1 }
  0x2d   : > { %9730 = dma.hbm_to_vmem [thread:$0]  (!%p11561_p10), %s11555_s24, 131072, %s11550_s13, %s11565_s27, %s11449_s15, %s11450_s23, %s11451_s30  }
  0x2e   : > { %p226_p0 = scmp.lt.s32.totalorder %s11446_s22, 9 }
  0x30   : > { %p227_p4 = pnand %p8500_p12, %p226_p0 }
  0x31   : > { %s232_s28 = sand.u32 (!%p227_p4), 1, %s11422_s16  }
  0x32   : > { %230 = sbr.rel (%p227_p4) target bundleno = 1555 (0x613), region = 36  ;;  %s8501_s5 = sshll.u32 (!%p227_p4), %s232_s28, 13 }
  0x33   : > { %s233_s7 = scalar_lea.sflag (!%p227_p4), [#allocation4], %s232_s28  ;;  %s11596_s8 = scalar_lea.vmem (!%p227_p4), [#allocation3], %s8501_s5 }
  0x39   : > { %11413 = dma.done.wait (%p11537_p7), %s233_s7, 131072  }
  0x3a   : > { %11415 = vsyncadd (%p11537_p7), %s233_s7, 4294836224  ;;  %s8502_s24 = sshll.u32 %s11430_s18, 6  ;;  %s8503_s13 = sshll.u32 %s11434_s19, 1 }
  0x3b   : > { %p274_p10 = scmp.lt.s32.totalorder %s8502_s24, 255  ;;  %p281_p5 = scmp.lt.s32.totalorder %s8503_s13, 3 }
  0x3c   : > { %s8504_s26 = sshll.u32 %s11434_s19, 5  ;;  %p291_p6 = scmp.lt.s32.totalorder %s11434_s19, 1 }
  0x3d   : > { %s13060_s24 = smov (!%p274_p10, %s8502_s24), 255  ;;  %s13062_s13 = smov (!%p281_p5, %s8503_s13), 3 }
  0x3e   : > { %s11611_s29 = scalar_lea.vmem %s13035_s0, %s13060_s24  ;;  %p286_p7 = scmp.lt.s32.totalorder %s8504_s26, 63 }
  0x3f   : > { %s283_s12 = scalar_lea.vmem %s13037_s2, %s13062_s13  ;;  %s13066_s19 = smov (!%p291_p6, %s11434_s19), 1 }
  0x40   : > { %s13064_s26 = smov (!%p286_p7, %s8504_s26), 63  ;;  %s8506_s28 = sshll.u32 %s13066_s19, 1 }
  0x41   : > { %s8505_s14 = sshll.u32 %s13064_s26, 3  ;;  %s11626_s27 = scalar_lea.vmem %s13039_s4, %s8506_s28 }
  0x42   : > { %s11621_s30 = scalar_lea.vmem %s13038_s3, %s8505_s14  ;;  %p8507_p8 = scmp.ne.s32.totalorder %s11430_s18, 0 }
  0x43   : > { %v11452_v0 = vmov (!%p8507_p8), 0.0  }
  0x44   : > { %298 = sbr.rel (%p8507_p8) target bundleno = 75 (0x4b), region = 44  ;;  %299 = vst [vmem:[#allocation2] sm:$0xf] (!%p8507_p8), %v11452_v0 }
  0x4b PF: > { %v9802_v1 = vld [vmem:[%s11596_s8 + $0x4] ss:$8 sps:$4 sm:$0xff]   ;;  %v9806_v3 = vld [vmem:[%s11596_s8] ss:$8 sps:$4 sm:$0xff]   ;;  %v9808_v5 = vld [vmem:[%s11596_s8 + $0x14] ss:$8 sps:$4 sm:$0xff]   ;;  %v1345_v39 = vlaneseq }
  0x4c   : > { %v9804_v2 = vld [vmem:[%s11596_s8 + $0x1004] ss:$8 sps:$4 sm:$0xff]   ;;  %6917 = vmatprep.subr.bf16.mxu1 %v9802_v1  ;;  %v9807_v4 = vld [vmem:[%s11596_s8 + $0x1000] ss:$8 sps:$4 sm:$0xff]   ;;  %v9810_v6 = vld [vmem:[%s11596_s8 + $0x1014] ss:$8 sps:$4 sm:$0xff]  }
  0x4d   : > { %7573 = vmatprep.subr.bf16.mxu0 %v9804_v2  ;;  %6918 = vmatpush1.bf16.msra.mxu1 %v9806_v3  ;;  %v9812_v7 = vld [vmem:[%s11596_s8 + $0x10] ss:$8 sps:$4 sm:$0xff]   ;;  %v9814_v9 = vld [vmem:[%s11596_s8 + $0x24] ss:$8 sps:$4 sm:$0xff]   ;;  %v9818_v11 = vld [vmem:[%s11596_s8 + $0x20] ss:$8 sps:$4 sm:$0xff]  }
  0x4e   : > { %7574 = vmatpush1.bf16.msra.mxu0 %v9807_v4  ;;  %6919 = vmatprep.subr.bf16.mxu1 %v9808_v5  ;;  %v9813_v8 = vld [vmem:[%s11596_s8 + $0x1010] ss:$8 sps:$4 sm:$0xff]   ;;  %v9816_v10 = vld [vmem:[%s11596_s8 + $0x1024] ss:$8 sps:$4 sm:$0xff]   ;;  %v9819_v12 = vld [vmem:[%s11596_s8 + $0x1020] ss:$8 sps:$4 sm:$0xff]  }
  0x4f   : > { %7575 = vmatprep.subr.bf16.mxu0 %v9810_v6  ;;  %v9820_v13 = vld [vmem:[%s11596_s8 + $0x34] ss:$8 sps:$4 sm:$0xff]   ;;  %v9824_v15 = vld [vmem:[%s11596_s8 + $0x30] ss:$8 sps:$4 sm:$0xff]   ;;  %v9826_v17 = vld [vmem:[%s11596_s8 + $0x44] ss:$8 sps:$4 sm:$0xff]  }
  0x50   : > { %v9822_v14 = vld [vmem:[%s11596_s8 + $0x1034] ss:$8 sps:$4 sm:$0xff]   ;;  %v9825_v16 = vld [vmem:[%s11596_s8 + $0x1030] ss:$8 sps:$4 sm:$0xff]   ;;  %v9828_v18 = vld [vmem:[%s11596_s8 + $0x1044] ss:$8 sps:$4 sm:$0xff]  }
  0x51   : > { %6920 = vmatpush1.bf16.msra.mxu1 %v9812_v7  ;;  %v9830_v19 = vld [vmem:[%s11596_s8 + $0x40] ss:$8 sps:$4 sm:$0xff]   ;;  %v9832_v21 = vld [vmem:[%s11596_s8 + $0x54] ss:$8 sps:$4 sm:$0xff]   ;;  %v9836_v23 = vld [vmem:[%s11596_s8 + $0x50] ss:$8 sps:$4 sm:$0xff]  }
  0x52   : > { %7576 = vmatpush1.bf16.msra.mxu0 %v9813_v8  ;;  %6921 = vmatprep.subr.bf16.mxu1 %v9814_v9  ;;  %v9831_v20 = vld [vmem:[%s11596_s8 + $0x1040] ss:$8 sps:$4 sm:$0xff]   ;;  %v9834_v22 = vld [vmem:[%s11596_s8 + $0x1054] ss:$8 sps:$4 sm:$0xff]   ;;  %v9837_v24 = vld [vmem:[%s11596_s8 + $0x1050] ss:$8 sps:$4 sm:$0xff]  }
  0x53   : > { %7577 = vmatprep.subr.bf16.mxu0 %v9816_v10  ;;  %v9838_v25 = vld [vmem:[%s11596_s8 + $0x64] ss:$8 sps:$4 sm:$0xff]   ;;  %v9842_v27 = vld [vmem:[%s11596_s8 + $0x60] ss:$8 sps:$4 sm:$0xff]   ;;  %v9844_v29 = vld [vmem:[%s11596_s8 + $0x74] ss:$8 sps:$4 sm:$0xff]  }
  0x54   : > { %v9840_v26 = vld [vmem:[%s11596_s8 + $0x1064] ss:$8 sps:$4 sm:$0xff]   ;;  %v9843_v28 = vld [vmem:[%s11596_s8 + $0x1060] ss:$8 sps:$4 sm:$0xff]   ;;  %v9846_v30 = vld [vmem:[%s11596_s8 + $0x1074] ss:$8 sps:$4 sm:$0xff]  }
  0x55   : > { %6922 = vmatpush1.bf16.msra.mxu1 %v9818_v11  ;;  %v9848_v31 = vld [vmem:[%s11596_s8 + $0x70] ss:$8 sps:$4 sm:$0xff]   ;;  %v9850_v33 = vld [vmem:[%s11596_s8 + $0x84] ss:$8 sps:$4 sm:$0xff]   ;;  %v9854_v35 = vld [vmem:[%s11596_s8 + $0x80] ss:$8 sps:$4 sm:$0xff]  }
  0x56   : > { %7578 = vmatpush1.bf16.msra.mxu0 %v9819_v12  ;;  %6923 = vmatprep.subr.bf16.mxu1 %v9820_v13  ;;  %v9849_v32 = vld [vmem:[%s11596_s8 + $0x1070] ss:$8 sps:$4 sm:$0xff]   ;;  %v9852_v34 = vld [vmem:[%s11596_s8 + $0x1084] ss:$8 sps:$4 sm:$0xff]   ;;  %v9855_v36 = vld [vmem:[%s11596_s8 + $0x1080] ss:$8 sps:$4 sm:$0xff]  }
  0x57   : > { %7579 = vmatprep.subr.bf16.mxu0 %v9822_v14  ;;  %v11453_v37 = vmov 1966171168   ;;  %v9856_v40 = vld [vmem:[%s11596_s8 + $0x94] ss:$8 sps:$4 sm:$0xff]   ;;  %v9860_v42 = vld [vmem:[%s11596_s8 + $0x90] ss:$8 sps:$4 sm:$0xff]  }
  0x58   : > { %v1343_v38 = vunpack.c.l.s4 %v11453_v37  ;;  %v9858_v41 = vld [vmem:[%s11596_s8 + $0x1094] ss:$8 sps:$4 sm:$0xff]   ;;  %v11668_v44 = vshrl.u32 %v1345_v39, 7  ;;  %v9861_v45 = vld [vmem:[%s11596_s8 + $0x1090] ss:$8 sps:$4 sm:$0xff]   ;;  %p9532_p9 = scmp.ne.s32.totalorder %s11430_s18, 3 }
  0x59   : > { %6924 = vmatpush1.bf16.msra.mxu1 %v9824_v15  ;;  %v9862_v46 = vld [vmem:[%s11596_s8 + $0xa4] ss:$8 sps:$4 sm:$0xff]   ;;  %v9866_v48 = vld [vmem:[%s11596_s8 + $0xa0] ss:$8 sps:$4 sm:$0xff]   ;;  %v9868_v51 = vld [vmem:[%s11596_s8 + $0xb4] ss:$8 sps:$4 sm:$0xff]  }
  0x5a   : > { %7580 = vmatpush1.bf16.msra.mxu0 %v9825_v16  ;;  %6925 = vmatprep.subr.bf16.mxu1 %v9826_v17  ;;  %v1344_v43 = vunpack.c.0.s8 %v1343_v38  ;;  %v9864_v47 = vld [vmem:[%s11596_s8 + $0x10a4] ss:$8 sps:$4 sm:$0xff]   ;;  %v9867_v49 = vld [vmem:[%s11596_s8 + $0x10a0] ss:$8 sps:$4 sm:$0xff]   ;;  %v9870_v52 = vld [vmem:[%s11596_s8 + $0x10b4] ss:$8 sps:$4 sm:$0xff]  }
  0x5b   : > { %7581 = vmatprep.subr.bf16.mxu0 %v9828_v18  ;;  %v11681_v53 = vld [vmem:[%s11611_s29] sm:$0xff]  ;;  %v9872_v54 = vld [vmem:[%s11596_s8 + $0xb0] ss:$8 sps:$4 sm:$0xff]   ;;  %v9874_v58 = vld [vmem:[%s11596_s8 + $0xc4] ss:$8 sps:$4 sm:$0xff]  }
  0x5c   : > { %v11676_v50 = vsub.s32 %v1344_v43, %v11668_v44  ;;  %v9873_v56 = vld [vmem:[%s11596_s8 + $0x10b0] ss:$8 sps:$4 sm:$0xff]   ;;  %v11688_v57 = vld [vmem:[%s11611_s29 + $0x20] sm:$0xff]  ;;  %v9876_v59 = vld [vmem:[%s11596_s8 + $0x10c4] ss:$8 sps:$4 sm:$0xff]  }
  0x5d   : > { %6926 = vmatpush1.bf16.msra.mxu1 %v9830_v19  ;;  %v9878_v0 = vld [vmem:[%s11596_s8 + $0xc0] ss:$8 sps:$4 sm:$0xff]   ;;  %v9880_v2 = vld [vmem:[%s11596_s8 + $0xd4] ss:$8 sps:$4 sm:$0xff]   ;;  %v9884_v5 = vld [vmem:[%s11596_s8 + $0xd0] ss:$8 sps:$4 sm:$0xff]  }
  0x5e   : > { %7582 = vmatpush1.bf16.msra.mxu0 %v9831_v20  ;;  %6927 = vmatprep.subr.bf16.mxu1 %v9832_v21  ;;  %v1348_v55 = vrot.slane %v11681_v53, %v11676_v50  ;;  %v1544_v61 = vrot.slane %v11688_v57, %v11676_v50  ;;  %v9879_v1 = vld [vmem:[%s11596_s8 + $0x10c0] ss:$8 sps:$4 sm:$0xff]   ;;  %v9882_v3 = vld [vmem:[%s11596_s8 + $0x10d4] ss:$8 sps:$4 sm:$0xff]   ;;  %v9885_v6 = vld [vmem:[%s11596_s8 + $0x10d0] ss:$8 sps:$4 sm:$0xff]  }
  0x5f   : > { %7583 = vmatprep.subr.bf16.mxu0 %v9834_v22  ;;  %v9886_v7 = vld [vmem:[%s11596_s8 + $0xe4] ss:$8 sps:$4 sm:$0xff]   ;;  %v9890_v9 = vld [vmem:[%s11596_s8 + $0xe0] ss:$8 sps:$4 sm:$0xff]   ;;  %v9892_v11 = vld [vmem:[%s11596_s8 + $0xf4] ss:$8 sps:$4 sm:$0xff]  }
  0x60   : > { %v1356_v60 = vcombine.high %v1348_v55, %v1348_v55  ;;  %v1552_v63 = vcombine.high %v1544_v61, %v1544_v61  ;;  %v9888_v8 = vld [vmem:[%s11596_s8 + $0x10e4] ss:$8 sps:$4 sm:$0xff]   ;;  %v9891_v10 = vld [vmem:[%s11596_s8 + $0x10e0] ss:$8 sps:$4 sm:$0xff]   ;;  %v9894_v12 = vld [vmem:[%s11596_s8 + $0x10f4] ss:$8 sps:$4 sm:$0xff]   ;;  %v11713_v17 = vrot.slane %v1348_v55, %v11676_v50  ;;  %v11716_v18 = vrot.slane %v1544_v61, %v11676_v50 }
  0x61   : > { %6928 = vmatpush1.bf16.msra.mxu1 %v9836_v23  ;;  %v9896_v13 = vld [vmem:[%s11596_s8 + $0xf0] ss:$8 sps:$4 sm:$0xff]   ;;  %v9901_v15 = vld [vmem:[%s11596_s8 + $0x104] ss:$8 sps:$4 sm:$0xff]   ;;  %v9899_v19 = vld [vmem:[%s11596_s8 + $0x100] ss:$8 sps:$4 sm:$0xff]  }
  0x62   : > { %7584 = vmatpush1.bf16.msra.mxu0 %v9837_v24  ;;  %6929 = vmatprep.subr.bf16.mxu1 %v9838_v25  ;;  %v1378_v62 = vrot.slane %v1356_v60, %v11676_v50  ;;  %v1574_v4 = vrot.slane %v1552_v63, %v11676_v50  ;;  %v9897_v14 = vld [vmem:[%s11596_s8 + $0x10f0] ss:$8 sps:$4 sm:$0xff]   ;;  %v9905_v16 = vld [vmem:[%s11596_s8 + $0x1104] ss:$8 sps:$4 sm:$0xff]   ;;  %v9903_v20 = vld [vmem:[%s11596_s8 + $0x1100] ss:$8 sps:$4 sm:$0xff]  }
  0x63   : > { %7585 = vmatprep.subr.bf16.mxu0 %v9840_v26  ;;  %v9908_v21 = vld [vmem:[%s11596_s8 + $0x114] ss:$8 sps:$4 sm:$0xff]   ;;  %v9906_v25 = vld [vmem:[%s11596_s8 + $0x110] ss:$8 sps:$4 sm:$0xff]   ;;  %v9924_v37 = vld [vmem:[%s11596_s8 + $0x140] ss:$8 sps:$4 sm:$0xff]  }
  0x64   : > { %6949 = vmatprep.mubr.bf16.mxu1 %v1378_v62  ;;  %7605 = vmatprep.mubr.bf16.mxu0 %v1574_v4  ;;  %v9911_v22 = vld [vmem:[%s11596_s8 + $0x1114] ss:$8 sps:$4 sm:$0xff]   ;;  %v1388_v23 = vcombine.high %v1378_v62, %v1378_v62  ;;  %v1584_v24 = vcombine.high %v1574_v4, %v1574_v4  ;;  %v9909_v26 = vld [vmem:[%s11596_s8 + $0x1110] ss:$8 sps:$4 sm:$0xff]   ;;  %v9927_v38 = vld [vmem:[%s11596_s8 + $0x1140] ss:$8 sps:$4 sm:$0xff]  }
  0x65   : > { %6930 = vmatpush1.bf16.msra.mxu1 %v9842_v27  ;;  %v9914_v27 = vld [vmem:[%s11596_s8 + $0x124] ss:$8 sps:$4 sm:$0xff]   ;;  %v9932_v39 = vld [vmem:[%s11596_s8 + $0x154] ss:$8 sps:$4 sm:$0xff]   ;;  %v9954_v61 = vld [vmem:[%s11596_s8 + $0x190] ss:$8 sps:$4 sm:$0xff]  }
  0x66   : > { %7586 = vmatpush1.bf16.msra.mxu0 %v9843_v28  ;;  %6931 = vmatprep.subr.bf16.mxu1 %v9844_v29  ;;  %v9917_v28 = vld [vmem:[%s11596_s8 + $0x1124] ss:$8 sps:$4 sm:$0xff]   ;;  %v9912_v29 = vld [vmem:[%s11596_s8 + $0x120] ss:$8 sps:$4 sm:$0xff]   ;;  %v9959_v60 = vld [vmem:[%s11596_s8 + $0x1194] ss:$8 sps:$4 sm:$0xff]  }
  0x67   : > { %7587 = vmatprep.subr.bf16.mxu0 %v9846_v30  ;;  %v9915_v30 = vld [vmem:[%s11596_s8 + $0x1120] ss:$8 sps:$4 sm:$0xff]   ;;  %v9938_v43 = vld [vmem:[%s11596_s8 + $0x164] ss:$8 sps:$4 sm:$0xff]   ;;  %v9957_v62 = vld [vmem:[%s11596_s8 + $0x1190] ss:$8 sps:$4 sm:$0xff]  }
  0x68   : > { %v9953_v55 = vld [vmem:[%s11596_s8 + $0x1184] ss:$8 sps:$4 sm:$0xff]   ;;  %v9971_v4 = vld [vmem:[%s11596_s8 + $0x11b4] ss:$8 sps:$4 sm:$0xff]  }
  0x69   : > { %6932 = vmatpush1.bf16.msra.mxu1 %v9848_v31  ;;  %v9920_v31 = vld [vmem:[%s11596_s8 + $0x134] ss:$8 sps:$4 sm:$0xff]   ;;  %v9962_v63 = vld [vmem:[%s11596_s8 + $0x1a4] ss:$8 sps:$4 sm:$0xff]  }
  0x6a   : > { %7588 = vmatpush1.bf16.msra.mxu0 %v9849_v32  ;;  %6933 = vmatprep.subr.bf16.mxu1 %v9850_v33  ;;  %v9923_v32 = vld [vmem:[%s11596_s8 + $0x1134] ss:$8 sps:$4 sm:$0xff]   ;;  %v9918_v33 = vld [vmem:[%s11596_s8 + $0x130] ss:$8 sps:$4 sm:$0xff]  }
  0x6b   : > { %7589 = vmatprep.subr.bf16.mxu0 %v9852_v34  ;;  %v9921_v34 = vld [vmem:[%s11596_s8 + $0x1130] ss:$8 sps:$4 sm:$0xff]  }
  0x6d   : > { %6934 = vmatpush1.bf16.msra.mxu1 %v9854_v35  ;;  %v9926_v35 = vld [vmem:[%s11596_s8 + $0x144] ss:$8 sps:$4 sm:$0xff]  }
  0x6e   : > { %7590 = vmatpush1.bf16.msra.mxu0 %v9855_v36  ;;  %6935 = vmatprep.subr.bf16.mxu1 %v9856_v40  ;;  %v9929_v36 = vld [vmem:[%s11596_s8 + $0x1144] ss:$8 sps:$4 sm:$0xff]   ;;  %v9935_v40 = vld [vmem:[%s11596_s8 + $0x1154] ss:$8 sps:$4 sm:$0xff]  }
  0x6f   : > { %7591 = vmatprep.subr.bf16.mxu0 %v9858_v41  ;;  %v9930_v41 = vld [vmem:[%s11596_s8 + $0x150] ss:$8 sps:$4 sm:$0xff]  }
  0x71   : > { %6936 = vmatpush1.bf16.msra.mxu1 %v9860_v42  ;;  %v9933_v42 = vld [vmem:[%s11596_s8 + $0x1150] ss:$8 sps:$4 sm:$0xff]  }
  0x72   : > { %7592 = vmatpush1.bf16.msra.mxu0 %v9861_v45  ;;  %6937 = vmatprep.subr.bf16.mxu1 %v9862_v46  ;;  %v9941_v45 = vld [vmem:[%s11596_s8 + $0x1164] ss:$8 sps:$4 sm:$0xff]   ;;  %v9936_v46 = vld [vmem:[%s11596_s8 + $0x160] ss:$8 sps:$4 sm:$0xff]  }
  0x73   : > { %7593 = vmatprep.subr.bf16.mxu0 %v9864_v47  ;;  %v9939_v47 = vld [vmem:[%s11596_s8 + $0x1160] ss:$8 sps:$4 sm:$0xff]  }
  0x75   : > { %6938 = vmatpush1.bf16.msra.mxu1 %v9866_v48  ;;  %v9944_v48 = vld [vmem:[%s11596_s8 + $0x174] ss:$8 sps:$4 sm:$0xff]  }
  0x76   : > { %7594 = vmatpush1.bf16.msra.mxu0 %v9867_v49  ;;  %6939 = vmatprep.subr.bf16.mxu1 %v9868_v51  ;;  %v9947_v49 = vld [vmem:[%s11596_s8 + $0x1174] ss:$8 sps:$4 sm:$0xff]   ;;  %v9942_v51 = vld [vmem:[%s11596_s8 + $0x170] ss:$8 sps:$4 sm:$0xff]  }
  0x77   : > { %7595 = vmatprep.subr.bf16.mxu0 %v9870_v52  ;;  %v9945_v52 = vld [vmem:[%s11596_s8 + $0x1170] ss:$8 sps:$4 sm:$0xff]  }
  0x79   : > { %6940 = vmatpush1.bf16.msra.mxu1 %v9872_v54  ;;  %v9950_v54 = vld [vmem:[%s11596_s8 + $0x184] ss:$8 sps:$4 sm:$0xff]  }
  0x7a   : > { %7596 = vmatpush1.bf16.msra.mxu0 %v9873_v56  ;;  %6941 = vmatprep.subr.bf16.mxu1 %v9874_v58  ;;  %v9948_v56 = vld [vmem:[%s11596_s8 + $0x180] ss:$8 sps:$4 sm:$0xff]  }
  0x7b   : > { %7597 = vmatprep.subr.bf16.mxu0 %v9876_v59  ;;  %v9951_v58 = vld [vmem:[%s11596_s8 + $0x1180] ss:$8 sps:$4 sm:$0xff]   ;;  %v9956_v59 = vld [vmem:[%s11596_s8 + $0x194] ss:$8 sps:$4 sm:$0xff]  }
  0x7d   : > { %6942 = vmatpush1.bf16.msra.mxu1 %v9878_v0  ;;  %v9965_v0 = vld [vmem:[%s11596_s8 + $0x11a4] ss:$8 sps:$4 sm:$0xff]  }
  0x7e   : > { %7598 = vmatpush1.bf16.msra.mxu0 %v9879_v1  ;;  %6943 = vmatprep.subr.bf16.mxu1 %v9880_v2  ;;  %v9960_v1 = vld [vmem:[%s11596_s8 + $0x1a0] ss:$8 sps:$4 sm:$0xff]  }
  0x7f   : > { %7599 = vmatprep.subr.bf16.mxu0 %v9882_v3  ;;  %v9963_v2 = vld [vmem:[%s11596_s8 + $0x11a0] ss:$8 sps:$4 sm:$0xff]   ;;  %v9968_v3 = vld [vmem:[%s11596_s8 + $0x1b4] ss:$8 sps:$4 sm:$0xff]  }
  0x81   : > { %6944 = vmatpush1.bf16.msra.mxu1 %v9884_v5  ;;  %v9966_v5 = vld [vmem:[%s11596_s8 + $0x1b0] ss:$8 sps:$4 sm:$0xff]  }
  0x82   : > { %7600 = vmatpush1.bf16.msra.mxu0 %v9885_v6  ;;  %6945 = vmatprep.subr.bf16.mxu1 %v9886_v7  ;;  %v9969_v6 = vld [vmem:[%s11596_s8 + $0x11b0] ss:$8 sps:$4 sm:$0xff]   ;;  %v9974_v7 = vld [vmem:[%s11596_s8 + $0x1c4] ss:$8 sps:$4 sm:$0xff]  }
  0x83   : > { %7601 = vmatprep.subr.bf16.mxu0 %v9888_v8  ;;  %v9977_v8 = vld [vmem:[%s11596_s8 + $0x11c4] ss:$8 sps:$4 sm:$0xff]  }
  0x85   : > { %6946 = vmatpush1.bf16.msra.mxu1 %v9890_v9  ;;  %v9972_v9 = vld [vmem:[%s11596_s8 + $0x1c0] ss:$8 sps:$4 sm:$0xff]  }
  0x86   : > { %7602 = vmatpush1.bf16.msra.mxu0 %v9891_v10  ;;  %6947 = vmatprep.subr.bf16.mxu1 %v9892_v11  ;;  %v9975_v10 = vld [vmem:[%s11596_s8 + $0x11c0] ss:$8 sps:$4 sm:$0xff]   ;;  %v9980_v11 = vld [vmem:[%s11596_s8 + $0x1d4] ss:$8 sps:$4 sm:$0xff]  }
  0x87   : > { %7603 = vmatprep.subr.bf16.mxu0 %v9894_v12  ;;  %v9983_v12 = vld [vmem:[%s11596_s8 + $0x11d4] ss:$8 sps:$4 sm:$0xff]  }
  0x89   : > { %6948 = vmatpush1.bf16.msra.mxu1 %v9896_v13  ;;  %v9978_v13 = vld [vmem:[%s11596_s8 + $0x1d0] ss:$8 sps:$4 sm:$0xff]  }
  0x8a   : > { %7604 = vmatpush1.bf16.msra.mxu0 %v9897_v14  ;;  %6958 = vmatprep.subr.bf16.mxu1 %v9901_v15  ;;  %v9981_v14 = vld [vmem:[%s11596_s8 + $0x11d0] ss:$8 sps:$4 sm:$0xff]   ;;  %v9986_v15 = vld [vmem:[%s11596_s8 + $0x1e4] ss:$8 sps:$4 sm:$0xff]  }
  0x8b   : > { %7614 = vmatprep.subr.bf16.mxu0 %v9905_v16  ;;  %v9989_v16 = vld [vmem:[%s11596_s8 + $0x11e4] ss:$8 sps:$4 sm:$0xff]  }
  0x8c   : > { %6950 = vmatmul.mubr.bf16.vlgmr.msra.gmra.mrb[0].mxu1 %v11713_v17 }
  0x8d   : > { %7606 = vmatmul.mubr.bf16.vlgmr.msra.gmra.mrb[0].mxu0 %v11716_v18  ;;  %6959 = vmatpush1.bf16.msra.mxu1 %v9899_v19  ;;  %v1341_v19 = vcombine.high %v11681_v53, %v11681_v53  ;;  %v9990_v53 = vld [vmem:[%s11596_s8 + $0x1f0] ss:$8 sps:$4 sm:$0xff]  }
  0x8e   : > { %7615 = vmatpush1.bf16.msra.mxu0 %v9903_v20  ;;  %6960 = vmatprep.subr.bf16.mxu1 %v9908_v21  ;;  %v1537_v20 = vcombine.high %v11688_v57, %v11688_v57  ;;  %v9984_v21 = vld [vmem:[%s11596_s8 + $0x1e0] ss:$8 sps:$4 sm:$0xff]   ;;  %v9993_v57 = vld [vmem:[%s11596_s8 + $0x11f0] ss:$8 sps:$4 sm:$0xff]  }
  0x8f   : > { %7616 = vmatprep.subr.bf16.mxu0 %v9911_v22  ;;  %6990 = vmatprep.mubr.bf16.mxu1 %v1388_v23  ;;  %v9987_v22 = vld [vmem:[%s11596_s8 + $0x11e0] ss:$8 sps:$4 sm:$0xff]   ;;  %v9992_v23 = vld [vmem:[%s11596_s8 + $0x1f4] ss:$8 sps:$4 sm:$0xff]  }
  0x90   : > { %7646 = vmatprep.mubr.bf16.mxu0 %v1584_v24  ;;  %v9995_v24 = vld [vmem:[%s11596_s8 + $0x11f4] ss:$8 sps:$4 sm:$0xff]  }
  0x91   : > { %6961 = vmatpush1.bf16.msra.mxu1 %v9906_v25  ;;  %v11785_v25 = vrot.slane %v1341_v19, %v11676_v50  ;;  %v10062_v19 = vld [vmem:[%s11596_s8 + $0x2b0] ss:$8 sps:$4 sm:$0xff]  }
  0x92   : > { %7617 = vmatpush1.bf16.msra.mxu0 %v9909_v26  ;;  %6962 = vmatprep.subr.bf16.mxu1 %v9914_v27  ;;  %v11788_v26 = vrot.slane %v1537_v20, %v11676_v50  ;;  %v9998_v27 = vld [vmem:[%s11596_s8 + $0x204] ss:$8 sps:$4 sm:$0xff]   ;;  %v10065_v20 = vld [vmem:[%s11596_s8 + $0x12b0] ss:$8 sps:$4 sm:$0xff]  }
  0x93   : > { %7618 = vmatprep.subr.bf16.mxu0 %v9917_v28  ;;  %v10001_v28 = vld [vmem:[%s11596_s8 + $0x1204] ss:$8 sps:$4 sm:$0xff]  }
  0x95   : > { %6963 = vmatpush1.bf16.msra.mxu1 %v9912_v29  ;;  %v1357_v29 = vcombine.high %v11785_v25, %v11785_v25 }
  0x96   : > { %7619 = vmatpush1.bf16.msra.mxu0 %v9915_v30  ;;  %6964 = vmatprep.subr.bf16.mxu1 %v9920_v31  ;;  %v1553_v30 = vcombine.high %v11788_v26, %v11788_v26  ;;  %v1386_v31 = vcombine.high %v11713_v17, %v11713_v17 }
  0x97   : > { %7620 = vmatprep.subr.bf16.mxu0 %v9923_v32  ;;  %v1582_v32 = vcombine.high %v11716_v18, %v11716_v18  ;;  %v10002_v18 = vld [vmem:[%s11596_s8 + $0x210] ss:$8 sps:$4 sm:$0xff]  }
  0x98   : > { %v11810_v17 = vrot.slane %v1553_v30, %v11676_v50  ;;  %v10085_v30 = vld [vmem:[%s11596_s8 + $0x12e4] ss:$8 sps:$4 sm:$0xff]  }
  0x99   : > { %6965 = vmatpush1.bf16.msra.mxu1 %v9918_v33  ;;  %v9996_v33 = vld [vmem:[%s11596_s8 + $0x200] ss:$8 sps:$4 sm:$0xff]  }
  0x9a   : > { %7621 = vmatpush1.bf16.msra.mxu0 %v9921_v34  ;;  %6966 = vmatprep.subr.bf16.mxu1 %v9926_v35  ;;  %v9999_v34 = vld [vmem:[%s11596_s8 + $0x1200] ss:$8 sps:$4 sm:$0xff]   ;;  %v10004_v35 = vld [vmem:[%s11596_s8 + $0x214] ss:$8 sps:$4 sm:$0xff]  }
  0x9b   : > { %7622 = vmatprep.subr.bf16.mxu0 %v9929_v36  ;;  %v10007_v36 = vld [vmem:[%s11596_s8 + $0x1214] ss:$8 sps:$4 sm:$0xff]  }
  0x9d   : > { %6967 = vmatpush1.bf16.msra.mxu1 %v9924_v37  ;;  %v11807_v37 = vrot.slane %v1357_v29, %v11676_v50  ;;  %v10082_v29 = vld [vmem:[%s11596_s8 + $0x2e4] ss:$8 sps:$4 sm:$0xff]  }
  0x9e   : > { %7623 = vmatpush1.bf16.msra.mxu0 %v9927_v38  ;;  %6968 = vmatprep.subr.bf16.mxu1 %v9932_v39  ;;  %v10005_v38 = vld [vmem:[%s11596_s8 + $0x1210] ss:$8 sps:$4 sm:$0xff]   ;;  %v10010_v39 = vld [vmem:[%s11596_s8 + $0x224] ss:$8 sps:$4 sm:$0xff]  }
  0x9f   : > { %7624 = vmatprep.subr.bf16.mxu0 %v9935_v40  ;;  %v10013_v40 = vld [vmem:[%s11596_s8 + $0x1224] ss:$8 sps:$4 sm:$0xff]  }
  0xa1   : > { %6969 = vmatpush1.bf16.msra.mxu1 %v9930_v41  ;;  %v10008_v41 = vld [vmem:[%s11596_s8 + $0x220] ss:$8 sps:$4 sm:$0xff]  }
  0xa2   : > { %7625 = vmatpush1.bf16.msra.mxu0 %v9933_v42  ;;  %6970 = vmatprep.subr.bf16.mxu1 %v9938_v43  ;;  %v10011_v42 = vld [vmem:[%s11596_s8 + $0x1220] ss:$8 sps:$4 sm:$0xff]   ;;  %v10016_v43 = vld [vmem:[%s11596_s8 + $0x234] ss:$8 sps:$4 sm:$0xff]  }
  0xa3   : > { %7626 = vmatprep.subr.bf16.mxu0 %v9941_v45  ;;  %v10019_v45 = vld [vmem:[%s11596_s8 + $0x1234] ss:$8 sps:$4 sm:$0xff]  }
  0xa5   : > { %6971 = vmatpush1.bf16.msra.mxu1 %v9936_v46  ;;  %v10014_v46 = vld [vmem:[%s11596_s8 + $0x230] ss:$8 sps:$4 sm:$0xff]  }
  0xa6   : > { %7627 = vmatpush1.bf16.msra.mxu0 %v9939_v47  ;;  %6972 = vmatprep.subr.bf16.mxu1 %v9944_v48  ;;  %v10017_v47 = vld [vmem:[%s11596_s8 + $0x1230] ss:$8 sps:$4 sm:$0xff]   ;;  %v10022_v48 = vld [vmem:[%s11596_s8 + $0x244] ss:$8 sps:$4 sm:$0xff]  }
  0xa7   : > { %7628 = vmatprep.subr.bf16.mxu0 %v9947_v49  ;;  %v10025_v49 = vld [vmem:[%s11596_s8 + $0x1244] ss:$8 sps:$4 sm:$0xff]  }
  0xa9   : > { %6973 = vmatpush1.bf16.msra.mxu1 %v9942_v51  ;;  %v10020_v51 = vld [vmem:[%s11596_s8 + $0x240] ss:$8 sps:$4 sm:$0xff]  }
  0xaa   : > { %7629 = vmatpush1.bf16.msra.mxu0 %v9945_v52  ;;  %6974 = vmatprep.subr.bf16.mxu1 %v9950_v54  ;;  %v10023_v52 = vld [vmem:[%s11596_s8 + $0x1240] ss:$8 sps:$4 sm:$0xff]   ;;  %v10028_v54 = vld [vmem:[%s11596_s8 + $0x254] ss:$8 sps:$4 sm:$0xff]  }
  0xab   : > { %7630 = vmatprep.subr.bf16.mxu0 %v9953_v55  ;;  %v10031_v55 = vld [vmem:[%s11596_s8 + $0x1254] ss:$8 sps:$4 sm:$0xff]  }
  0xad   : > { %6975 = vmatpush1.bf16.msra.mxu1 %v9948_v56  ;;  %v10026_v56 = vld [vmem:[%s11596_s8 + $0x250] ss:$8 sps:$4 sm:$0xff]  }
  0xae   : > { %7631 = vmatpush1.bf16.msra.mxu0 %v9951_v58  ;;  %6976 = vmatprep.subr.bf16.mxu1 %v9956_v59  ;;  %v10029_v58 = vld [vmem:[%s11596_s8 + $0x1250] ss:$8 sps:$4 sm:$0xff]   ;;  %v10034_v59 = vld [vmem:[%s11596_s8 + $0x264] ss:$8 sps:$4 sm:$0xff]  }
  0xaf   : > { %7632 = vmatprep.subr.bf16.mxu0 %v9959_v60  ;;  %v10037_v60 = vld [vmem:[%s11596_s8 + $0x1264] ss:$8 sps:$4 sm:$0xff]  }
  0xb1   : > { %6977 = vmatpush1.bf16.msra.mxu1 %v9954_v61  ;;  %v10032_v61 = vld [vmem:[%s11596_s8 + $0x260] ss:$8 sps:$4 sm:$0xff]  }
  0xb2   : > { %7633 = vmatpush1.bf16.msra.mxu0 %v9957_v62  ;;  %6978 = vmatprep.subr.bf16.mxu1 %v9962_v63  ;;  %v10035_v62 = vld [vmem:[%s11596_s8 + $0x1260] ss:$8 sps:$4 sm:$0xff]   ;;  %v10040_v63 = vld [vmem:[%s11596_s8 + $0x274] ss:$8 sps:$4 sm:$0xff]  }
  0xb3   : > { %7634 = vmatprep.subr.bf16.mxu0 %v9965_v0  ;;  %v10043_v0 = vld [vmem:[%s11596_s8 + $0x1274] ss:$8 sps:$4 sm:$0xff]  }
  0xb5   : > { %6979 = vmatpush1.bf16.msra.mxu1 %v9960_v1  ;;  %v10038_v1 = vld [vmem:[%s11596_s8 + $0x270] ss:$8 sps:$4 sm:$0xff]  }
  0xb6   : > { %7635 = vmatpush1.bf16.msra.mxu0 %v9963_v2  ;;  %6980 = vmatprep.subr.bf16.mxu1 %v9968_v3  ;;  %v10041_v2 = vld [vmem:[%s11596_s8 + $0x1270] ss:$8 sps:$4 sm:$0xff]   ;;  %v10046_v3 = vld [vmem:[%s11596_s8 + $0x284] ss:$8 sps:$4 sm:$0xff]  }
  0xb7   : > { %7636 = vmatprep.subr.bf16.mxu0 %v9971_v4  ;;  %v10049_v4 = vld [vmem:[%s11596_s8 + $0x1284] ss:$8 sps:$4 sm:$0xff]  }
  0xb9   : > { %6981 = vmatpush1.bf16.msra.mxu1 %v9966_v5  ;;  %v10044_v5 = vld [vmem:[%s11596_s8 + $0x280] ss:$8 sps:$4 sm:$0xff]  }
  0xba   : > { %7637 = vmatpush1.bf16.msra.mxu0 %v9969_v6  ;;  %6982 = vmatprep.subr.bf16.mxu1 %v9974_v7  ;;  %v10047_v6 = vld [vmem:[%s11596_s8 + $0x1280] ss:$8 sps:$4 sm:$0xff]   ;;  %v10052_v7 = vld [vmem:[%s11596_s8 + $0x294] ss:$8 sps:$4 sm:$0xff]  }
  0xbb   : > { %7638 = vmatprep.subr.bf16.mxu0 %v9977_v8  ;;  %v10055_v8 = vld [vmem:[%s11596_s8 + $0x1294] ss:$8 sps:$4 sm:$0xff]  }
  0xbd   : > { %6983 = vmatpush1.bf16.msra.mxu1 %v9972_v9  ;;  %v10050_v9 = vld [vmem:[%s11596_s8 + $0x290] ss:$8 sps:$4 sm:$0xff]  }
  0xbe   : > { %7639 = vmatpush1.bf16.msra.mxu0 %v9975_v10  ;;  %6984 = vmatprep.subr.bf16.mxu1 %v9980_v11  ;;  %v10053_v10 = vld [vmem:[%s11596_s8 + $0x1290] ss:$8 sps:$4 sm:$0xff]   ;;  %v10058_v11 = vld [vmem:[%s11596_s8 + $0x2a4] ss:$8 sps:$4 sm:$0xff]  }
  0xbf   : > { %7640 = vmatprep.subr.bf16.mxu0 %v9983_v12  ;;  %v10061_v12 = vld [vmem:[%s11596_s8 + $0x12a4] ss:$8 sps:$4 sm:$0xff]  }
  0xc1   : > { %6985 = vmatpush1.bf16.msra.mxu1 %v9978_v13  ;;  %v10056_v13 = vld [vmem:[%s11596_s8 + $0x2a0] ss:$8 sps:$4 sm:$0xff]  }
  0xc2   : > { %7641 = vmatpush1.bf16.msra.mxu0 %v9981_v14  ;;  %6986 = vmatprep.subr.bf16.mxu1 %v9986_v15  ;;  %v10059_v14 = vld [vmem:[%s11596_s8 + $0x12a0] ss:$8 sps:$4 sm:$0xff]   ;;  %v10064_v15 = vld [vmem:[%s11596_s8 + $0x2b4] ss:$8 sps:$4 sm:$0xff]  }
  0xc3   : > { %7642 = vmatprep.subr.bf16.mxu0 %v9989_v16  ;;  %v10067_v16 = vld [vmem:[%s11596_s8 + $0x12b4] ss:$8 sps:$4 sm:$0xff]  }
  0xc5   : > { %6987 = vmatpush1.bf16.msra.mxu1 %v9984_v21  ;;  %v10070_v21 = vld [vmem:[%s11596_s8 + $0x2c4] ss:$8 sps:$4 sm:$0xff]  }
  0xc6   : > { %7643 = vmatpush1.bf16.msra.mxu0 %v9987_v22  ;;  %6988 = vmatprep.subr.bf16.mxu1 %v9992_v23  ;;  %v10073_v22 = vld [vmem:[%s11596_s8 + $0x12c4] ss:$8 sps:$4 sm:$0xff]   ;;  %v10068_v23 = vld [vmem:[%s11596_s8 + $0x2c0] ss:$8 sps:$4 sm:$0xff]  }
  0xc7   : > { %7644 = vmatprep.subr.bf16.mxu0 %v9995_v24  ;;  %v10071_v24 = vld [vmem:[%s11596_s8 + $0x12c0] ss:$8 sps:$4 sm:$0xff]  }
  0xc9   : > { %6989 = vmatpush1.bf16.msra.mxu1 %v9990_v53  ;;  %v10076_v53 = vld [vmem:[%s11596_s8 + $0x2d4] ss:$8 sps:$4 sm:$0xff]  }
  0xca   : > { %7645 = vmatpush1.bf16.msra.mxu0 %v9993_v57  ;;  %6999 = vmatprep.subr.bf16.mxu1 %v9998_v27  ;;  %v10079_v57 = vld [vmem:[%s11596_s8 + $0x12d4] ss:$8 sps:$4 sm:$0xff]   ;;  %v10074_v27 = vld [vmem:[%s11596_s8 + $0x2d0] ss:$8 sps:$4 sm:$0xff]  }
  0xcb   : > { %7655 = vmatprep.subr.bf16.mxu0 %v10001_v28  ;;  %v10077_v28 = vld [vmem:[%s11596_s8 + $0x12d0] ss:$8 sps:$4 sm:$0xff]  }
  0xcc   : > { %6991 = vmatmul.mubr.bf16.vlgmr.msra.gmra.mrb[0].mxu1 %v1386_v31  ;;  %v10080_v31 = vld [vmem:[%s11596_s8 + $0x2e0] ss:$8 sps:$4 sm:$0xff]  }
  0xcd   : > { %7647 = vmatmul.mubr.bf16.vlgmr.msra.gmra.mrb[0].mxu0 %v1582_v32  ;;  %7000 = vmatpush1.bf16.msra.mxu1 %v9996_v33  ;;  %v10083_v32 = vld [vmem:[%s11596_s8 + $0x12e0] ss:$8 sps:$4 sm:$0xff]   ;;  %v10088_v33 = vld [vmem:[%s11596_s8 + $0x2f4] ss:$8 sps:$4 sm:$0xff]  }
  0xce   : > { %7656 = vmatpush1.bf16.msra.mxu0 %v9999_v34  ;;  %7001 = vmatprep.subr.bf16.mxu1 %v10004_v35  ;;  %v10091_v34 = vld [vmem:[%s11596_s8 + $0x12f4] ss:$8 sps:$4 sm:$0xff]   ;;  %v10086_v35 = vld [vmem:[%s11596_s8 + $0x2f0] ss:$8 sps:$4 sm:$0xff]  }
  0xcf   : > { %7657 = vmatprep.subr.bf16.mxu0 %v10007_v36  ;;  %7031 = vmatprep.mubr.bf16.mxu1 %v11807_v37  ;;  %v10089_v36 = vld [vmem:[%s11596_s8 + $0x12f0] ss:$8 sps:$4 sm:$0xff]  }
  0xd0   : > { %7687 = vmatprep.mubr.bf16.mxu0 %v11810_v17 }
  0xd1   : > { %7002 = vmatpush1.bf16.msra.mxu1 %v10002_v18  ;;  %v10094_v18 = vld [vmem:[%s11596_s8 + $0x304] ss:$8 sps:$4 sm:$0xff]  }
  0xd2   : > { %7658 = vmatpush1.bf16.msra.mxu0 %v10005_v38  ;;  %7003 = vmatprep.subr.bf16.mxu1 %v10010_v39  ;;  %v10097_v38 = vld [vmem:[%s11596_s8 + $0x1304] ss:$8 sps:$4 sm:$0xff]   ;;  %v11876_v39 = vrot.slane %v11785_v25, %v11676_v50  ;;  %v1389_v25 = vcombine.high %v11807_v37, %v11807_v37 }
  0xd3   : > { %7659 = vmatprep.subr.bf16.mxu0 %v10013_v40  ;;  %v11880_v40 = vrot.slane %v11788_v26, %v11676_v50  ;;  %v10098_v26 = vld [vmem:[%s11596_s8 + $0x310] ss:$8 sps:$4 sm:$0xff]   ;;  %v10106_v37 = vld [vmem:[%s11596_s8 + $0x324] ss:$8 sps:$4 sm:$0xff]  }
  0xd5   : > { %7004 = vmatpush1.bf16.msra.mxu1 %v10008_v41  ;;  %v10092_v41 = vld [vmem:[%s11596_s8 + $0x300] ss:$8 sps:$4 sm:$0xff]  }
  0xd6   : > { %7660 = vmatpush1.bf16.msra.mxu0 %v10011_v42  ;;  %7005 = vmatprep.subr.bf16.mxu1 %v10016_v43  ;;  %v10095_v42 = vld [vmem:[%s11596_s8 + $0x1300] ss:$8 sps:$4 sm:$0xff]   ;;  %v10100_v43 = vld [vmem:[%s11596_s8 + $0x314] ss:$8 sps:$4 sm:$0xff]  }
  0xd7   : > { %7661 = vmatprep.subr.bf16.mxu0 %v10019_v45  ;;  %v10103_v45 = vld [vmem:[%s11596_s8 + $0x1314] ss:$8 sps:$4 sm:$0xff]  }
  0xd9   : > { %7006 = vmatpush1.bf16.msra.mxu1 %v10014_v46  ;;  %v1585_v46 = vcombine.high %v11810_v17, %v11810_v17  ;;  %v10104_v17 = vld [vmem:[%s11596_s8 + $0x320] ss:$8 sps:$4 sm:$0xff]  }
  0xda   : > { %7662 = vmatpush1.bf16.msra.mxu0 %v10017_v47  ;;  %7007 = vmatprep.subr.bf16.mxu1 %v10022_v48  ;;  %v10101_v47 = vld [vmem:[%s11596_s8 + $0x1310] ss:$8 sps:$4 sm:$0xff]   ;;  %v10109_v48 = vld [vmem:[%s11596_s8 + $0x1324] ss:$8 sps:$4 sm:$0xff]  }
  0xdb   : > { %7663 = vmatprep.subr.bf16.mxu0 %v10025_v49  ;;  %v10107_v49 = vld [vmem:[%s11596_s8 + $0x1320] ss:$8 sps:$4 sm:$0xff]  }
  0xdd   : > { %7008 = vmatpush1.bf16.msra.mxu1 %v10020_v51  ;;  %v10112_v51 = vld [vmem:[%s11596_s8 + $0x334] ss:$8 sps:$4 sm:$0xff]  }
  0xde   : > { %7664 = vmatpush1.bf16.msra.mxu0 %v10023_v52  ;;  %7009 = vmatprep.subr.bf16.mxu1 %v10028_v54  ;;  %v10115_v52 = vld [vmem:[%s11596_s8 + $0x1334] ss:$8 sps:$4 sm:$0xff]   ;;  %v10110_v54 = vld [vmem:[%s11596_s8 + $0x330] ss:$8 sps:$4 sm:$0xff]  }
  0xdf   : > { %7665 = vmatprep.subr.bf16.mxu0 %v10031_v55  ;;  %v10113_v55 = vld [vmem:[%s11596_s8 + $0x1330] ss:$8 sps:$4 sm:$0xff]  }
  0xe1   : > { %7010 = vmatpush1.bf16.msra.mxu1 %v10026_v56  ;;  %v10118_v56 = vld [vmem:[%s11596_s8 + $0x344] ss:$8 sps:$4 sm:$0xff]  }
  0xe2   : > { %7666 = vmatpush1.bf16.msra.mxu0 %v10029_v58  ;;  %7011 = vmatprep.subr.bf16.mxu1 %v10034_v59  ;;  %v10121_v58 = vld [vmem:[%s11596_s8 + $0x1344] ss:$8 sps:$4 sm:$0xff]   ;;  %v10116_v59 = vld [vmem:[%s11596_s8 + $0x340] ss:$8 sps:$4 sm:$0xff]  }
  0xe3   : > { %7667 = vmatprep.subr.bf16.mxu0 %v10037_v60  ;;  %v10119_v60 = vld [vmem:[%s11596_s8 + $0x1340] ss:$8 sps:$4 sm:$0xff]  }
  0xe5   : > { %7012 = vmatpush1.bf16.msra.mxu1 %v10032_v61  ;;  %v10124_v61 = vld [vmem:[%s11596_s8 + $0x354] ss:$8 sps:$4 sm:$0xff]  }
  0xe6   : > { %7668 = vmatpush1.bf16.msra.mxu0 %v10035_v62  ;;  %7013 = vmatprep.subr.bf16.mxu1 %v10040_v63  ;;  %v10127_v62 = vld [vmem:[%s11596_s8 + $0x1354] ss:$8 sps:$4 sm:$0xff]   ;;  %v10122_v63 = vld [vmem:[%s11596_s8 + $0x350] ss:$8 sps:$4 sm:$0xff]  }
  0xe7   : > { %7669 = vmatprep.subr.bf16.mxu0 %v10043_v0  ;;  %v10125_v0 = vld [vmem:[%s11596_s8 + $0x1350] ss:$8 sps:$4 sm:$0xff]  }
  0xe9   : > { %7014 = vmatpush1.bf16.msra.mxu1 %v10038_v1  ;;  %v10130_v1 = vld [vmem:[%s11596_s8 + $0x364] ss:$8 sps:$4 sm:$0xff]  }
  0xea   : > { %7670 = vmatpush1.bf16.msra.mxu0 %v10041_v2  ;;  %7015 = vmatprep.subr.bf16.mxu1 %v10046_v3  ;;  %v10133_v2 = vld [vmem:[%s11596_s8 + $0x1364] ss:$8 sps:$4 sm:$0xff]   ;;  %v10128_v3 = vld [vmem:[%s11596_s8 + $0x360] ss:$8 sps:$4 sm:$0xff]  }
  0xeb   : > { %7671 = vmatprep.subr.bf16.mxu0 %v10049_v4  ;;  %v10131_v4 = vld [vmem:[%s11596_s8 + $0x1360] ss:$8 sps:$4 sm:$0xff]  }
  0xed   : > { %7016 = vmatpush1.bf16.msra.mxu1 %v10044_v5  ;;  %v10136_v5 = vld [vmem:[%s11596_s8 + $0x374] ss:$8 sps:$4 sm:$0xff]  }
  0xee   : > { %7672 = vmatpush1.bf16.msra.mxu0 %v10047_v6  ;;  %7017 = vmatprep.subr.bf16.mxu1 %v10052_v7  ;;  %v10139_v6 = vld [vmem:[%s11596_s8 + $0x1374] ss:$8 sps:$4 sm:$0xff]   ;;  %v10134_v7 = vld [vmem:[%s11596_s8 + $0x370] ss:$8 sps:$4 sm:$0xff]  }
  0xef   : > { %7673 = vmatprep.subr.bf16.mxu0 %v10055_v8  ;;  %v10137_v8 = vld [vmem:[%s11596_s8 + $0x1370] ss:$8 sps:$4 sm:$0xff]  }
  0xf1   : > { %7018 = vmatpush1.bf16.msra.mxu1 %v10050_v9  ;;  %v10142_v9 = vld [vmem:[%s11596_s8 + $0x384] ss:$8 sps:$4 sm:$0xff]  }
  0xf2   : > { %7674 = vmatpush1.bf16.msra.mxu0 %v10053_v10  ;;  %7019 = vmatprep.subr.bf16.mxu1 %v10058_v11  ;;  %v10145_v10 = vld [vmem:[%s11596_s8 + $0x1384] ss:$8 sps:$4 sm:$0xff]   ;;  %v10140_v11 = vld [vmem:[%s11596_s8 + $0x380] ss:$8 sps:$4 sm:$0xff]  }
  0xf3   : > { %7675 = vmatprep.subr.bf16.mxu0 %v10061_v12  ;;  %v10143_v12 = vld [vmem:[%s11596_s8 + $0x1380] ss:$8 sps:$4 sm:$0xff]  }
  0xf5   : > { %7020 = vmatpush1.bf16.msra.mxu1 %v10056_v13  ;;  %v10148_v13 = vld [vmem:[%s11596_s8 + $0x394] ss:$8 sps:$4 sm:$0xff]  }
  0xf6   : > { %7676 = vmatpush1.bf16.msra.mxu0 %v10059_v14  ;;  %7021 = vmatprep.subr.bf16.mxu1 %v10064_v15  ;;  %v10151_v14 = vld [vmem:[%s11596_s8 + $0x1394] ss:$8 sps:$4 sm:$0xff]   ;;  %v10146_v15 = vld [vmem:[%s11596_s8 + $0x390] ss:$8 sps:$4 sm:$0xff]  }
  0xf7   : > { %7677 = vmatprep.subr.bf16.mxu0 %v10067_v16  ;;  %v10149_v16 = vld [vmem:[%s11596_s8 + $0x1390] ss:$8 sps:$4 sm:$0xff]  }
  0xf9   : > { %7022 = vmatpush1.bf16.msra.mxu1 %v10062_v19  ;;  %v10154_v19 = vld [vmem:[%s11596_s8 + $0x3a4] ss:$8 sps:$4 sm:$0xff]  }
  0xfa   : > { %7678 = vmatpush1.bf16.msra.mxu0 %v10065_v20  ;;  %7023 = vmatprep.subr.bf16.mxu1 %v10070_v21  ;;  %v10157_v20 = vld [vmem:[%s11596_s8 + $0x13a4] ss:$8 sps:$4 sm:$0xff]   ;;  %v10152_v21 = vld [vmem:[%s11596_s8 + $0x3a0] ss:$8 sps:$4 sm:$0xff]  }
  0xfb   : > { %7679 = vmatprep.subr.bf16.mxu0 %v10073_v22  ;;  %v10155_v22 = vld [vmem:[%s11596_s8 + $0x13a0] ss:$8 sps:$4 sm:$0xff]  }
  0xfd   : > { %7024 = vmatpush1.bf16.msra.mxu1 %v10068_v23  ;;  %v10160_v23 = vld [vmem:[%s11596_s8 + $0x3b4] ss:$8 sps:$4 sm:$0xff]  }
  0xfe   : > { %7680 = vmatpush1.bf16.msra.mxu0 %v10071_v24  ;;  %7025 = vmatprep.subr.bf16.mxu1 %v10076_v53  ;;  %v10163_v24 = vld [vmem:[%s11596_s8 + $0x13b4] ss:$8 sps:$4 sm:$0xff]   ;;  %v10158_v53 = vld [vmem:[%s11596_s8 + $0x3b0] ss:$8 sps:$4 sm:$0xff]  }
  0xff   : > { %7681 = vmatprep.subr.bf16.mxu0 %v10079_v57  ;;  %v10161_v57 = vld [vmem:[%s11596_s8 + $0x13b0] ss:$8 sps:$4 sm:$0xff]  }
 0x101   : > { %7026 = vmatpush1.bf16.msra.mxu1 %v10074_v27  ;;  %v10166_v27 = vld [vmem:[%s11596_s8 + $0x3c4] ss:$8 sps:$4 sm:$0xff]  }
 0x102   : > { %7682 = vmatpush1.bf16.msra.mxu0 %v10077_v28  ;;  %7027 = vmatprep.subr.bf16.mxu1 %v10082_v29  ;;  %v10169_v28 = vld [vmem:[%s11596_s8 + $0x13c4] ss:$8 sps:$4 sm:$0xff]   ;;  %v10164_v29 = vld [vmem:[%s11596_s8 + $0x3c0] ss:$8 sps:$4 sm:$0xff]  }
 0x103   : > { %7683 = vmatprep.subr.bf16.mxu0 %v10085_v30  ;;  %v10167_v30 = vld [vmem:[%s11596_s8 + $0x13c0] ss:$8 sps:$4 sm:$0xff]  }
 0x105   : > { %7028 = vmatpush1.bf16.msra.mxu1 %v10080_v31  ;;  %v10172_v31 = vld [vmem:[%s11596_s8 + $0x3d4] ss:$8 sps:$4 sm:$0xff]  }
 0x106   : > { %7684 = vmatpush1.bf16.msra.mxu0 %v10083_v32  ;;  %7029 = vmatprep.subr.bf16.mxu1 %v10088_v33  ;;  %v10175_v32 = vld [vmem:[%s11596_s8 + $0x13d4] ss:$8 sps:$4 sm:$0xff]   ;;  %v10170_v33 = vld [vmem:[%s11596_s8 + $0x3d0] ss:$8 sps:$4 sm:$0xff]  }
 0x107   : > { %7685 = vmatprep.subr.bf16.mxu0 %v10091_v34  ;;  %v10173_v34 = vld [vmem:[%s11596_s8 + $0x13d0] ss:$8 sps:$4 sm:$0xff]  }
 0x109   : > { %7030 = vmatpush1.bf16.msra.mxu1 %v10086_v35  ;;  %v10178_v35 = vld [vmem:[%s11596_s8 + $0x3e4] ss:$8 sps:$4 sm:$0xff]  }
 0x10a   : > { %7686 = vmatpush1.bf16.msra.mxu0 %v10089_v36  ;;  %7040 = vmatprep.subr.bf16.mxu1 %v10094_v18  ;;  %v10181_v36 = vld [vmem:[%s11596_s8 + $0x13e4] ss:$8 sps:$4 sm:$0xff]   ;;  %v10176_v18 = vld [vmem:[%s11596_s8 + $0x3e0] ss:$8 sps:$4 sm:$0xff]  }
 0x10b   : > { %7696 = vmatprep.subr.bf16.mxu0 %v10097_v38  ;;  %v10179_v38 = vld [vmem:[%s11596_s8 + $0x13e0] ss:$8 sps:$4 sm:$0xff]  }
 0x10c   : > { %7032 = vmatmul.mubr.bf16.vlgmr.msra.gmra.mrb[0].mxu1 %v11876_v39 }
 0x10d   : > { %7688 = vmatmul.mubr.bf16.vlgmr.msra.gmra.mrb[0].mxu0 %v11880_v40  ;;  %7041 = vmatpush1.bf16.msra.mxu1 %v10092_v41  ;;  %v11947_v41 = vld.sshfl [vmem:[%s11611_s29 + $0x8] sm:$0xff pattern:$0x75316420] }
 0x10e   : > { %7697 = vmatpush1.bf16.msra.mxu0 %v10095_v42  ;;  %7042 = vmatprep.subr.bf16.mxu1 %v10100_v43  ;;  %v11950_v42 = vld.sshfl [vmem:[%s11611_s29 + $0x28] sm:$0xff pattern:$0x75316420]  ;;  %v10184_v43 = vld [vmem:[%s11596_s8 + $0x3f4] ss:$8 sps:$4 sm:$0xff]  }
 0x10f   : > { %7698 = vmatprep.subr.bf16.mxu0 %v10103_v45  ;;  %7072 = vmatprep.mubr.bf16.mxu1 %v1389_v25  ;;  %v10187_v45 = vld [vmem:[%s11596_s8 + $0x13f4] ss:$8 sps:$4 sm:$0xff]   ;;  %v10182_v25 = vld [vmem:[%s11596_s8 + $0x3f0] ss:$8 sps:$4 sm:$0xff]  }
 0x110   : > { %7728 = vmatprep.mubr.bf16.mxu0 %v1585_v46  ;;  %v10185_v46 = vld [vmem:[%s11596_s8 + $0x13f0] ss:$8 sps:$4 sm:$0xff]  }
 0x111   : > { %7043 = vmatpush1.bf16.msra.mxu1 %v10098_v26  ;;  %v10190_v26 = vld [vmem:[%s11596_s8 + $0x404] ss:$8 sps:$4 sm:$0xff]  }
 0x112   : > { %7699 = vmatpush1.bf16.msra.mxu0 %v10101_v47  ;;  %7044 = vmatprep.subr.bf16.mxu1 %v10106_v37  ;;  %v10193_v47 = vld [vmem:[%s11596_s8 + $0x1404] ss:$8 sps:$4 sm:$0xff]   ;;  %v1405_v37 = vcombine.high %v11947_v41, %v11947_v41 }
 0x113   : > { %7700 = vmatprep.subr.bf16.mxu0 %v10109_v48  ;;  %v1601_v48 = vcombine.high %v11950_v42, %v11950_v42 }
 0x115   : > { %7045 = vmatpush1.bf16.msra.mxu1 %v10104_v17  ;;  %v10188_v17 = vld [vmem:[%s11596_s8 + $0x400] ss:$8 sps:$4 sm:$0xff]  }
 0x116   : > { %7701 = vmatpush1.bf16.msra.mxu0 %v10107_v49  ;;  %7046 = vmatprep.subr.bf16.mxu1 %v10112_v51  ;;  %v10191_v49 = vld [vmem:[%s11596_s8 + $0x1400] ss:$8 sps:$4 sm:$0xff]   ;;  %v1387_v51 = vcombine.high %v11876_v39, %v11876_v39  ;;  %v10194_v39 = vld [vmem:[%s11596_s8 + $0x410] ss:$8 sps:$4 sm:$0xff]  }
 0x117   : > { %7702 = vmatprep.subr.bf16.mxu0 %v10115_v52  ;;  %v1583_v52 = vcombine.high %v11880_v40, %v11880_v40  ;;  %v10197_v40 = vld [vmem:[%s11596_s8 + $0x1410] ss:$8 sps:$4 sm:$0xff]  }
 0x119   : > { %7047 = vmatpush1.bf16.msra.mxu1 %v10110_v54  ;;  %v10196_v54 = vld [vmem:[%s11596_s8 + $0x414] ss:$8 sps:$4 sm:$0xff]  }
 0x11a   : > { %7703 = vmatpush1.bf16.msra.mxu0 %v10113_v55  ;;  %7048 = vmatprep.subr.bf16.mxu1 %v10118_v56  ;;  %v10199_v55 = vld [vmem:[%s11596_s8 + $0x1414] ss:$8 sps:$4 sm:$0xff]   ;;  %v11971_v56 = vrot.slane %v1405_v37, %v11676_v50  ;;  %v10274_v37 = vld [vmem:[%s11596_s8 + $0x4e4] ss:$8 sps:$4 sm:$0xff]  }
 0x11b   : > { %7704 = vmatprep.subr.bf16.mxu0 %v10121_v58  ;;  %v11974_v58 = vrot.slane %v1601_v48, %v11676_v50  ;;  %v10277_v48 = vld [vmem:[%s11596_s8 + $0x14e4] ss:$8 sps:$4 sm:$0xff]  }
 0x11d   : > { %7049 = vmatpush1.bf16.msra.mxu1 %v10116_v59  ;;  %v10202_v59 = vld [vmem:[%s11596_s8 + $0x424] ss:$8 sps:$4 sm:$0xff]  }
 0x11e   : > { %7705 = vmatpush1.bf16.msra.mxu0 %v10119_v60  ;;  %7050 = vmatprep.subr.bf16.mxu1 %v10124_v61  ;;  %v10205_v60 = vld [vmem:[%s11596_s8 + $0x1424] ss:$8 sps:$4 sm:$0xff]   ;;  %v10200_v61 = vld [vmem:[%s11596_s8 + $0x420] ss:$8 sps:$4 sm:$0xff]  }
 0x11f   : > { %7706 = vmatprep.subr.bf16.mxu0 %v10127_v62  ;;  %v10203_v62 = vld [vmem:[%s11596_s8 + $0x1420] ss:$8 sps:$4 sm:$0xff]  }
 0x121   : > { %7051 = vmatpush1.bf16.msra.mxu1 %v10122_v63  ;;  %v10208_v63 = vld [vmem:[%s11596_s8 + $0x434] ss:$8 sps:$4 sm:$0xff]  }
 0x122   : > { %7707 = vmatpush1.bf16.msra.mxu0 %v10125_v0  ;;  %7052 = vmatprep.subr.bf16.mxu1 %v10130_v1  ;;  %v10211_v0 = vld [vmem:[%s11596_s8 + $0x1434] ss:$8 sps:$4 sm:$0xff]   ;;  %v10206_v1 = vld [vmem:[%s11596_s8 + $0x430] ss:$8 sps:$4 sm:$0xff]  }
 0x123   : > { %7708 = vmatprep.subr.bf16.mxu0 %v10133_v2  ;;  %v10209_v2 = vld [vmem:[%s11596_s8 + $0x1430] ss:$8 sps:$4 sm:$0xff]  }
 0x125   : > { %7053 = vmatpush1.bf16.msra.mxu1 %v10128_v3  ;;  %v10214_v3 = vld [vmem:[%s11596_s8 + $0x444] ss:$8 sps:$4 sm:$0xff]  }
 0x126   : > { %7709 = vmatpush1.bf16.msra.mxu0 %v10131_v4  ;;  %7054 = vmatprep.subr.bf16.mxu1 %v10136_v5  ;;  %v10217_v4 = vld [vmem:[%s11596_s8 + $0x1444] ss:$8 sps:$4 sm:$0xff]   ;;  %v10212_v5 = vld [vmem:[%s11596_s8 + $0x440] ss:$8 sps:$4 sm:$0xff]  }
 0x127   : > { %7710 = vmatprep.subr.bf16.mxu0 %v10139_v6  ;;  %v10215_v6 = vld [vmem:[%s11596_s8 + $0x1440] ss:$8 sps:$4 sm:$0xff]  }
 0x129   : > { %7055 = vmatpush1.bf16.msra.mxu1 %v10134_v7  ;;  %v10220_v7 = vld [vmem:[%s11596_s8 + $0x454] ss:$8 sps:$4 sm:$0xff]  }
 0x12a   : > { %7711 = vmatpush1.bf16.msra.mxu0 %v10137_v8  ;;  %7056 = vmatprep.subr.bf16.mxu1 %v10142_v9  ;;  %v10223_v8 = vld [vmem:[%s11596_s8 + $0x1454] ss:$8 sps:$4 sm:$0xff]   ;;  %v10218_v9 = vld [vmem:[%s11596_s8 + $0x450] ss:$8 sps:$4 sm:$0xff]  }
 0x12b   : > { %7712 = vmatprep.subr.bf16.mxu0 %v10145_v10  ;;  %v10221_v10 = vld [vmem:[%s11596_s8 + $0x1450] ss:$8 sps:$4 sm:$0xff]  }
 0x12d   : > { %7057 = vmatpush1.bf16.msra.mxu1 %v10140_v11  ;;  %v10226_v11 = vld [vmem:[%s11596_s8 + $0x464] ss:$8 sps:$4 sm:$0xff]  }
 0x12e   : > { %7713 = vmatpush1.bf16.msra.mxu0 %v10143_v12  ;;  %7058 = vmatprep.subr.bf16.mxu1 %v10148_v13  ;;  %v10229_v12 = vld [vmem:[%s11596_s8 + $0x1464] ss:$8 sps:$4 sm:$0xff]   ;;  %v10224_v13 = vld [vmem:[%s11596_s8 + $0x460] ss:$8 sps:$4 sm:$0xff]  }
 0x12f   : > { %7714 = vmatprep.subr.bf16.mxu0 %v10151_v14  ;;  %v10227_v14 = vld [vmem:[%s11596_s8 + $0x1460] ss:$8 sps:$4 sm:$0xff]  }
 0x131   : > { %7059 = vmatpush1.bf16.msra.mxu1 %v10146_v15  ;;  %v10232_v15 = vld [vmem:[%s11596_s8 + $0x474] ss:$8 sps:$4 sm:$0xff]  }
 0x132   : > { %7715 = vmatpush1.bf16.msra.mxu0 %v10149_v16  ;;  %7060 = vmatprep.subr.bf16.mxu1 %v10154_v19  ;;  %v10235_v16 = vld [vmem:[%s11596_s8 + $0x1474] ss:$8 sps:$4 sm:$0xff]   ;;  %v10230_v19 = vld [vmem:[%s11596_s8 + $0x470] ss:$8 sps:$4 sm:$0xff]  }
 0x133   : > { %7716 = vmatprep.subr.bf16.mxu0 %v10157_v20  ;;  %v10233_v20 = vld [vmem:[%s11596_s8 + $0x1470] ss:$8 sps:$4 sm:$0xff]  }
 0x135   : > { %7061 = vmatpush1.bf16.msra.mxu1 %v10152_v21  ;;  %v10238_v21 = vld [vmem:[%s11596_s8 + $0x484] ss:$8 sps:$4 sm:$0xff]  }
 0x136   : > { %7717 = vmatpush1.bf16.msra.mxu0 %v10155_v22  ;;  %7062 = vmatprep.subr.bf16.mxu1 %v10160_v23  ;;  %v10241_v22 = vld [vmem:[%s11596_s8 + $0x1484] ss:$8 sps:$4 sm:$0xff]   ;;  %v10236_v23 = vld [vmem:[%s11596_s8 + $0x480] ss:$8 sps:$4 sm:$0xff]  }
 0x137   : > { %7718 = vmatprep.subr.bf16.mxu0 %v10163_v24  ;;  %v10239_v24 = vld [vmem:[%s11596_s8 + $0x1480] ss:$8 sps:$4 sm:$0xff]  }
 0x139   : > { %7063 = vmatpush1.bf16.msra.mxu1 %v10158_v53  ;;  %v10244_v53 = vld [vmem:[%s11596_s8 + $0x494] ss:$8 sps:$4 sm:$0xff]  }
 0x13a   : > { %7719 = vmatpush1.bf16.msra.mxu0 %v10161_v57  ;;  %7064 = vmatprep.subr.bf16.mxu1 %v10166_v27  ;;  %v10247_v57 = vld [vmem:[%s11596_s8 + $0x1494] ss:$8 sps:$4 sm:$0xff]   ;;  %v10242_v27 = vld [vmem:[%s11596_s8 + $0x490] ss:$8 sps:$4 sm:$0xff]  }
 0x13b   : > { %7720 = vmatprep.subr.bf16.mxu0 %v10169_v28  ;;  %v10245_v28 = vld [vmem:[%s11596_s8 + $0x1490] ss:$8 sps:$4 sm:$0xff]  }
 0x13d   : > { %7065 = vmatpush1.bf16.msra.mxu1 %v10164_v29  ;;  %v10250_v29 = vld [vmem:[%s11596_s8 + $0x4a4] ss:$8 sps:$4 sm:$0xff]  }
 0x13e   : > { %7721 = vmatpush1.bf16.msra.mxu0 %v10167_v30  ;;  %7066 = vmatprep.subr.bf16.mxu1 %v10172_v31  ;;  %v10253_v30 = vld [vmem:[%s11596_s8 + $0x14a4] ss:$8 sps:$4 sm:$0xff]   ;;  %v10248_v31 = vld [vmem:[%s11596_s8 + $0x4a0] ss:$8 sps:$4 sm:$0xff]  }
 0x13f   : > { %7722 = vmatprep.subr.bf16.mxu0 %v10175_v32  ;;  %v10251_v32 = vld [vmem:[%s11596_s8 + $0x14a0] ss:$8 sps:$4 sm:$0xff]  }
 0x141   : > { %7067 = vmatpush1.bf16.msra.mxu1 %v10170_v33  ;;  %v10256_v33 = vld [vmem:[%s11596_s8 + $0x4b4] ss:$8 sps:$4 sm:$0xff]  }
 0x142   : > { %7723 = vmatpush1.bf16.msra.mxu0 %v10173_v34  ;;  %7068 = vmatprep.subr.bf16.mxu1 %v10178_v35  ;;  %v10259_v34 = vld [vmem:[%s11596_s8 + $0x14b4] ss:$8 sps:$4 sm:$0xff]   ;;  %v10254_v35 = vld [vmem:[%s11596_s8 + $0x4b0] ss:$8 sps:$4 sm:$0xff]  }
 0x143   : > { %7724 = vmatprep.subr.bf16.mxu0 %v10181_v36  ;;  %v10257_v36 = vld [vmem:[%s11596_s8 + $0x14b0] ss:$8 sps:$4 sm:$0xff]  }
 0x145   : > { %7069 = vmatpush1.bf16.msra.mxu1 %v10176_v18  ;;  %v10262_v18 = vld [vmem:[%s11596_s8 + $0x4c4] ss:$8 sps:$4 sm:$0xff]  }
 0x146   : > { %7725 = vmatpush1.bf16.msra.mxu0 %v10179_v38  ;;  %7070 = vmatprep.subr.bf16.mxu1 %v10184_v43  ;;  %v10265_v38 = vld [vmem:[%s11596_s8 + $0x14c4] ss:$8 sps:$4 sm:$0xff]   ;;  %v10260_v43 = vld [vmem:[%s11596_s8 + $0x4c0] ss:$8 sps:$4 sm:$0xff]  }
 0x147   : > { %7726 = vmatprep.subr.bf16.mxu0 %v10187_v45  ;;  %v10263_v45 = vld [vmem:[%s11596_s8 + $0x14c0] ss:$8 sps:$4 sm:$0xff]  }
 0x149   : > { %7071 = vmatpush1.bf16.msra.mxu1 %v10182_v25  ;;  %v10268_v25 = vld [vmem:[%s11596_s8 + $0x4d4] ss:$8 sps:$4 sm:$0xff]  }
 0x14a   : > { %7727 = vmatpush1.bf16.msra.mxu0 %v10185_v46  ;;  %7081 = vmatprep.subr.bf16.mxu1 %v10190_v26  ;;  %v10271_v46 = vld [vmem:[%s11596_s8 + $0x14d4] ss:$8 sps:$4 sm:$0xff]   ;;  %v10266_v26 = vld [vmem:[%s11596_s8 + $0x4d0] ss:$8 sps:$4 sm:$0xff]  }
 0x14b   : > { %7737 = vmatprep.subr.bf16.mxu0 %v10193_v47  ;;  %v10269_v47 = vld [vmem:[%s11596_s8 + $0x14d0] ss:$8 sps:$4 sm:$0xff]  }
 0x14c   : > { %7073 = vmatmul.mubr.bf16.vlgmr.msra.gmra.mrb[0].mxu1 %v1387_v51  ;;  %v10280_v51 = vld [vmem:[%s11596_s8 + $0x4f4] ss:$8 sps:$4 sm:$0xff]  }
 0x14d   : > { %7729 = vmatmul.mubr.bf16.vlgmr.msra.gmra.mrb[0].mxu0 %v1583_v52  ;;  %7082 = vmatpush1.bf16.msra.mxu1 %v10188_v17  ;;  %v10272_v17 = vld [vmem:[%s11596_s8 + $0x4e0] ss:$8 sps:$4 sm:$0xff]   ;;  %v10283_v52 = vld [vmem:[%s11596_s8 + $0x14f4] ss:$8 sps:$4 sm:$0xff]  }
 0x14e   : > { %7738 = vmatpush1.bf16.msra.mxu0 %v10191_v49  ;;  %7083 = vmatprep.subr.bf16.mxu1 %v10196_v54  ;;  %v10275_v49 = vld [vmem:[%s11596_s8 + $0x14e0] ss:$8 sps:$4 sm:$0xff]   ;;  %v10278_v54 = vld [vmem:[%s11596_s8 + $0x4f0] ss:$8 sps:$4 sm:$0xff]  }
 0x14f   : > { %7739 = vmatprep.subr.bf16.mxu0 %v10199_v55  ;;  %7113 = vmatprep.mubr.bf16.mxu1 %v11971_v56  ;;  %v10281_v55 = vld [vmem:[%s11596_s8 + $0x14f0] ss:$8 sps:$4 sm:$0xff]  }
 0x150   : > { %7769 = vmatprep.mubr.bf16.mxu0 %v11974_v58 }
 0x151   : > { %7084 = vmatpush1.bf16.msra.mxu1 %v10194_v39  ;;  %v10286_v39 = vld [vmem:[%s11596_s8 + $0x504] ss:$8 sps:$4 sm:$0xff]  }
 0x152   : > { %7740 = vmatpush1.bf16.msra.mxu0 %v10197_v40  ;;  %7085 = vmatprep.subr.bf16.mxu1 %v10202_v59  ;;  %v10289_v40 = vld [vmem:[%s11596_s8 + $0x1504] ss:$8 sps:$4 sm:$0xff]   ;;  %v12040_v59 = vrot.slane %v11947_v41, %v11676_v50  ;;  %v1437_v41 = vcombine.high %v11971_v56, %v11971_v56 }
 0x153   : > { %7741 = vmatprep.subr.bf16.mxu0 %v10205_v60  ;;  %v12044_v60 = vrot.slane %v11950_v42, %v11676_v50  ;;  %v10290_v42 = vld [vmem:[%s11596_s8 + $0x510] ss:$8 sps:$4 sm:$0xff]   ;;  %v10298_v56 = vld [vmem:[%s11596_s8 + $0x524] ss:$8 sps:$4 sm:$0xff]  }
 0x155   : > { %7086 = vmatpush1.bf16.msra.mxu1 %v10200_v61  ;;  %v10284_v61 = vld [vmem:[%s11596_s8 + $0x500] ss:$8 sps:$4 sm:$0xff]  }
 0x156   : > { %7742 = vmatpush1.bf16.msra.mxu0 %v10203_v62  ;;  %7087 = vmatprep.subr.bf16.mxu1 %v10208_v63  ;;  %v10287_v62 = vld [vmem:[%s11596_s8 + $0x1500] ss:$8 sps:$4 sm:$0xff]   ;;  %v10292_v63 = vld [vmem:[%s11596_s8 + $0x514] ss:$8 sps:$4 sm:$0xff]  }
 0x157   : > { %7743 = vmatprep.subr.bf16.mxu0 %v10211_v0  ;;  %v10295_v0 = vld [vmem:[%s11596_s8 + $0x1514] ss:$8 sps:$4 sm:$0xff]  }
 0x159   : > { %7088 = vmatpush1.bf16.msra.mxu1 %v10206_v1  ;;  %v1633_v1 = vcombine.high %v11974_v58, %v11974_v58  ;;  %v10296_v58 = vld [vmem:[%s11596_s8 + $0x520] ss:$8 sps:$4 sm:$0xff]  }
 0x15a   : > { %7744 = vmatpush1.bf16.msra.mxu0 %v10209_v2  ;;  %7089 = vmatprep.subr.bf16.mxu1 %v10214_v3  ;;  %v10293_v2 = vld [vmem:[%s11596_s8 + $0x1510] ss:$8 sps:$4 sm:$0xff]   ;;  %v10301_v3 = vld [vmem:[%s11596_s8 + $0x1524] ss:$8 sps:$4 sm:$0xff]  }
 0x15b   : > { %7745 = vmatprep.subr.bf16.mxu0 %v10217_v4  ;;  %v10299_v4 = vld [vmem:[%s11596_s8 + $0x1520] ss:$8 sps:$4 sm:$0xff]  }
 0x15d   : > { %7090 = vmatpush1.bf16.msra.mxu1 %v10212_v5  ;;  %v10304_v5 = vld [vmem:[%s11596_s8 + $0x534] ss:$8 sps:$4 sm:$0xff]  }
 0x15e   : > { %7746 = vmatpush1.bf16.msra.mxu0 %v10215_v6  ;;  %7091 = vmatprep.subr.bf16.mxu1 %v10220_v7  ;;  %v10307_v6 = vld [vmem:[%s11596_s8 + $0x1534] ss:$8 sps:$4 sm:$0xff]   ;;  %v10302_v7 = vld [vmem:[%s11596_s8 + $0x530] ss:$8 sps:$4 sm:$0xff]  }
 0x15f   : > { %7747 = vmatprep.subr.bf16.mxu0 %v10223_v8  ;;  %v10305_v8 = vld [vmem:[%s11596_s8 + $0x1530] ss:$8 sps:$4 sm:$0xff]  }
 0x161   : > { %7092 = vmatpush1.bf16.msra.mxu1 %v10218_v9  ;;  %v10310_v9 = vld [vmem:[%s11596_s8 + $0x544] ss:$8 sps:$4 sm:$0xff]  }
 0x162   : > { %7748 = vmatpush1.bf16.msra.mxu0 %v10221_v10  ;;  %7093 = vmatprep.subr.bf16.mxu1 %v10226_v11  ;;  %v10313_v10 = vld [vmem:[%s11596_s8 + $0x1544] ss:$8 sps:$4 sm:$0xff]   ;;  %v10308_v11 = vld [vmem:[%s11596_s8 + $0x540] ss:$8 sps:$4 sm:$0xff]  }
 0x163   : > { %7749 = vmatprep.subr.bf16.mxu0 %v10229_v12  ;;  %v10311_v12 = vld [vmem:[%s11596_s8 + $0x1540] ss:$8 sps:$4 sm:$0xff]  }
 0x165   : > { %7094 = vmatpush1.bf16.msra.mxu1 %v10224_v13  ;;  %v10316_v13 = vld [vmem:[%s11596_s8 + $0x554] ss:$8 sps:$4 sm:$0xff]  }
 0x166   : > { %7750 = vmatpush1.bf16.msra.mxu0 %v10227_v14  ;;  %7095 = vmatprep.subr.bf16.mxu1 %v10232_v15  ;;  %v10319_v14 = vld [vmem:[%s11596_s8 + $0x1554] ss:$8 sps:$4 sm:$0xff]   ;;  %v10314_v15 = vld [vmem:[%s11596_s8 + $0x550] ss:$8 sps:$4 sm:$0xff]  }
 0x167   : > { %7751 = vmatprep.subr.bf16.mxu0 %v10235_v16  ;;  %v10317_v16 = vld [vmem:[%s11596_s8 + $0x1550] ss:$8 sps:$4 sm:$0xff]  }
 0x169   : > { %7096 = vmatpush1.bf16.msra.mxu1 %v10230_v19  ;;  %v10322_v19 = vld [vmem:[%s11596_s8 + $0x564] ss:$8 sps:$4 sm:$0xff]  }
 0x16a   : > { %7752 = vmatpush1.bf16.msra.mxu0 %v10233_v20  ;;  %7097 = vmatprep.subr.bf16.mxu1 %v10238_v21  ;;  %v10325_v20 = vld [vmem:[%s11596_s8 + $0x1564] ss:$8 sps:$4 sm:$0xff]   ;;  %v10320_v21 = vld [vmem:[%s11596_s8 + $0x560] ss:$8 sps:$4 sm:$0xff]  }
 0x16b   : > { %7753 = vmatprep.subr.bf16.mxu0 %v10241_v22  ;;  %v10323_v22 = vld [vmem:[%s11596_s8 + $0x1560] ss:$8 sps:$4 sm:$0xff]  }
 0x16d   : > { %7098 = vmatpush1.bf16.msra.mxu1 %v10236_v23  ;;  %v10328_v23 = vld [vmem:[%s11596_s8 + $0x574] ss:$8 sps:$4 sm:$0xff]  }
 0x16e   : > { %7754 = vmatpush1.bf16.msra.mxu0 %v10239_v24  ;;  %7099 = vmatprep.subr.bf16.mxu1 %v10244_v53  ;;  %v10331_v24 = vld [vmem:[%s11596_s8 + $0x1574] ss:$8 sps:$4 sm:$0xff]   ;;  %v10326_v53 = vld [vmem:[%s11596_s8 + $0x570] ss:$8 sps:$4 sm:$0xff]  }
 0x16f   : > { %7755 = vmatprep.subr.bf16.mxu0 %v10247_v57  ;;  %v10329_v57 = vld [vmem:[%s11596_s8 + $0x1570] ss:$8 sps:$4 sm:$0xff]  }
 0x171   : > { %7100 = vmatpush1.bf16.msra.mxu1 %v10242_v27  ;;  %v10334_v27 = vld [vmem:[%s11596_s8 + $0x584] ss:$8 sps:$4 sm:$0xff]  }
 0x172   : > { %7756 = vmatpush1.bf16.msra.mxu0 %v10245_v28  ;;  %7101 = vmatprep.subr.bf16.mxu1 %v10250_v29  ;;  %v10337_v28 = vld [vmem:[%s11596_s8 + $0x1584] ss:$8 sps:$4 sm:$0xff]   ;;  %v10332_v29 = vld [vmem:[%s11596_s8 + $0x580] ss:$8 sps:$4 sm:$0xff]  }
 0x173   : > { %7757 = vmatprep.subr.bf16.mxu0 %v10253_v30  ;;  %v10335_v30 = vld [vmem:[%s11596_s8 + $0x1580] ss:$8 sps:$4 sm:$0xff]  }
 0x175   : > { %7102 = vmatpush1.bf16.msra.mxu1 %v10248_v31  ;;  %v10340_v31 = vld [vmem:[%s11596_s8 + $0x594] ss:$8 sps:$4 sm:$0xff]  }
 0x176   : > { %7758 = vmatpush1.bf16.msra.mxu0 %v10251_v32  ;;  %7103 = vmatprep.subr.bf16.mxu1 %v10256_v33  ;;  %v10343_v32 = vld [vmem:[%s11596_s8 + $0x1594] ss:$8 sps:$4 sm:$0xff]   ;;  %v10338_v33 = vld [vmem:[%s11596_s8 + $0x590] ss:$8 sps:$4 sm:$0xff]  }
 0x177   : > { %7759 = vmatprep.subr.bf16.mxu0 %v10259_v34  ;;  %v10341_v34 = vld [vmem:[%s11596_s8 + $0x1590] ss:$8 sps:$4 sm:$0xff]  }
 0x179   : > { %7104 = vmatpush1.bf16.msra.mxu1 %v10254_v35  ;;  %v10346_v35 = vld [vmem:[%s11596_s8 + $0x5a4] ss:$8 sps:$4 sm:$0xff]  }
 0x17a   : > { %7760 = vmatpush1.bf16.msra.mxu0 %v10257_v36  ;;  %7105 = vmatprep.subr.bf16.mxu1 %v10262_v18  ;;  %v10349_v36 = vld [vmem:[%s11596_s8 + $0x15a4] ss:$8 sps:$4 sm:$0xff]   ;;  %v10344_v18 = vld [vmem:[%s11596_s8 + $0x5a0] ss:$8 sps:$4 sm:$0xff]  }
 0x17b   : > { %7761 = vmatprep.subr.bf16.mxu0 %v10265_v38  ;;  %v10347_v38 = vld [vmem:[%s11596_s8 + $0x15a0] ss:$8 sps:$4 sm:$0xff]  }
 0x17d   : > { %7106 = vmatpush1.bf16.msra.mxu1 %v10260_v43  ;;  %v10352_v43 = vld [vmem:[%s11596_s8 + $0x5b4] ss:$8 sps:$4 sm:$0xff]  }
 0x17e   : > { %7762 = vmatpush1.bf16.msra.mxu0 %v10263_v45  ;;  %7107 = vmatprep.subr.bf16.mxu1 %v10268_v25  ;;  %v10355_v45 = vld [vmem:[%s11596_s8 + $0x15b4] ss:$8 sps:$4 sm:$0xff]   ;;  %v10350_v25 = vld [vmem:[%s11596_s8 + $0x5b0] ss:$8 sps:$4 sm:$0xff]  }
 0x17f   : > { %7763 = vmatprep.subr.bf16.mxu0 %v10271_v46  ;;  %v10353_v46 = vld [vmem:[%s11596_s8 + $0x15b0] ss:$8 sps:$4 sm:$0xff]  }
 0x181   : > { %7108 = vmatpush1.bf16.msra.mxu1 %v10266_v26  ;;  %v10358_v26 = vld [vmem:[%s11596_s8 + $0x5c4] ss:$8 sps:$4 sm:$0xff]  }
 0x182   : > { %7764 = vmatpush1.bf16.msra.mxu0 %v10269_v47  ;;  %7109 = vmatprep.subr.bf16.mxu1 %v10274_v37  ;;  %v10361_v47 = vld [vmem:[%s11596_s8 + $0x15c4] ss:$8 sps:$4 sm:$0xff]   ;;  %v10356_v37 = vld [vmem:[%s11596_s8 + $0x5c0] ss:$8 sps:$4 sm:$0xff]  }
 0x183   : > { %7765 = vmatprep.subr.bf16.mxu0 %v10277_v48  ;;  %v10359_v48 = vld [vmem:[%s11596_s8 + $0x15c0] ss:$8 sps:$4 sm:$0xff]  }
 0x185   : > { %7110 = vmatpush1.bf16.msra.mxu1 %v10272_v17  ;;  %v10364_v17 = vld [vmem:[%s11596_s8 + $0x5d4] ss:$8 sps:$4 sm:$0xff]  }
 0x186   : > { %7766 = vmatpush1.bf16.msra.mxu0 %v10275_v49  ;;  %7111 = vmatprep.subr.bf16.mxu1 %v10280_v51  ;;  %v10367_v49 = vld [vmem:[%s11596_s8 + $0x15d4] ss:$8 sps:$4 sm:$0xff]   ;;  %v10362_v51 = vld [vmem:[%s11596_s8 + $0x5d0] ss:$8 sps:$4 sm:$0xff]  }
 0x187   : > { %7767 = vmatprep.subr.bf16.mxu0 %v10283_v52  ;;  %v10365_v52 = vld [vmem:[%s11596_s8 + $0x15d0] ss:$8 sps:$4 sm:$0xff]  }
 0x189   : > { %7112 = vmatpush1.bf16.msra.mxu1 %v10278_v54  ;;  %v10370_v54 = vld [vmem:[%s11596_s8 + $0x5e4] ss:$8 sps:$4 sm:$0xff]  }
 0x18a   : > { %7768 = vmatpush1.bf16.msra.mxu0 %v10281_v55  ;;  %7122 = vmatprep.subr.bf16.mxu1 %v10286_v39  ;;  %v10373_v55 = vld [vmem:[%s11596_s8 + $0x15e4] ss:$8 sps:$4 sm:$0xff]  }
 0x18b   : > { %7778 = vmatprep.subr.bf16.mxu0 %v10289_v40  ;;  %v11346_v39 = vld [vmem:[%s11611_s29 + $0x8] sm:$0xff] }
 0x18c   : > { %7114 = vmatmul.mubr.bf16.vlgmr.msra.gmra.mrb[0].mxu1 %v12040_v59  ;;  %v1390_v40 = vcombine.high %v11346_v39, %v11346_v39  ;;  %v10448_v39 = vld [vmem:[%s11596_s8 + $0x6b4] ss:$8 sps:$4 sm:$0xff]  }
 0x18d   : > { %7770 = vmatmul.mubr.bf16.vlgmr.msra.gmra.mrb[0].mxu0 %v12044_v60  ;;  %7123 = vmatpush1.bf16.msra.mxu1 %v10284_v61  ;;  %v11347_v61 = vld [vmem:[%s11611_s29 + $0x28] sm:$0xff] }
 0x18e   : > { %7779 = vmatpush1.bf16.msra.mxu0 %v10287_v62  ;;  %7124 = vmatprep.subr.bf16.mxu1 %v10292_v63  ;;  %v1586_v62 = vcombine.high %v11347_v61, %v11347_v61  ;;  %v10368_v63 = vld [vmem:[%s11596_s8 + $0x5e0] ss:$8 sps:$4 sm:$0xff]   ;;  %v10446_v61 = vld [vmem:[%s11596_s8 + $0x6b0] ss:$8 sps:$4 sm:$0xff]  }
 0x18f   : > { %7780 = vmatprep.subr.bf16.mxu0 %v10295_v0  ;;  %7154 = vmatprep.mubr.bf16.mxu1 %v1437_v41  ;;  %v10371_v0 = vld [vmem:[%s11596_s8 + $0x15e0] ss:$8 sps:$4 sm:$0xff]   ;;  %v10376_v41 = vld [vmem:[%s11596_s8 + $0x5f4] ss:$8 sps:$4 sm:$0xff]  }
 0x190   : > { %7810 = vmatprep.mubr.bf16.mxu0 %v1633_v1  ;;  %v10379_v1 = vld [vmem:[%s11596_s8 + $0x15f4] ss:$8 sps:$4 sm:$0xff]  }
 0x191   : > { %7125 = vmatpush1.bf16.msra.mxu1 %v10290_v42  ;;  %v12115_v42 = vrot.slane %v1390_v40, %v11676_v50  ;;  %v10451_v40 = vld [vmem:[%s11596_s8 + $0x16b4] ss:$8 sps:$4 sm:$0xff]  }
 0x192   : > { %7781 = vmatpush1.bf16.msra.mxu0 %v10293_v2  ;;  %7126 = vmatprep.subr.bf16.mxu1 %v10298_v56  ;;  %v12118_v2 = vrot.slane %v1586_v62, %v11676_v50  ;;  %v10374_v56 = vld [vmem:[%s11596_s8 + $0x5f0] ss:$8 sps:$4 sm:$0xff]  }
 0x193   : > { %7782 = vmatprep.subr.bf16.mxu0 %v10301_v3  ;;  %v10377_v3 = vld [vmem:[%s11596_s8 + $0x15f0] ss:$8 sps:$4 sm:$0xff]  }
 0x194   : > { %v10449_v62 = vld [vmem:[%s11596_s8 + $0x16b0] ss:$8 sps:$4 sm:$0xff]  }
 0x195   : > { %7127 = vmatpush1.bf16.msra.mxu1 %v10296_v58  ;;  %v10382_v58 = vld [vmem:[%s11596_s8 + $0x604] ss:$8 sps:$4 sm:$0xff]  }
 0x196   : > { %7783 = vmatpush1.bf16.msra.mxu0 %v10299_v4  ;;  %7128 = vmatprep.subr.bf16.mxu1 %v10304_v5  ;;  %v10385_v4 = vld [vmem:[%s11596_s8 + $0x1604] ss:$8 sps:$4 sm:$0xff]   ;;  %v1406_v5 = vcombine.high %v12115_v42, %v12115_v42 }
 0x197   : > { %7784 = vmatprep.subr.bf16.mxu0 %v10307_v6  ;;  %v1602_v6 = vcombine.high %v12118_v2, %v12118_v2 }
 0x199   : > { %7129 = vmatpush1.bf16.msra.mxu1 %v10302_v7  ;;  %v1435_v7 = vcombine.high %v12040_v59, %v12040_v59  ;;  %v12140_v59 = vrot.slane %v1602_v6, %v11676_v50  ;;  %v10469_v6 = vld [vmem:[%s11596_s8 + $0x16e4] ss:$8 sps:$4 sm:$0xff]  }
 0x19a   : > { %7785 = vmatpush1.bf16.msra.mxu0 %v10305_v8  ;;  %7130 = vmatprep.subr.bf16.mxu1 %v10310_v9  ;;  %v1631_v8 = vcombine.high %v12044_v60, %v12044_v60  ;;  %v10380_v9 = vld [vmem:[%s11596_s8 + $0x600] ss:$8 sps:$4 sm:$0xff]   ;;  %v10386_v60 = vld [vmem:[%s11596_s8 + $0x610] ss:$8 sps:$4 sm:$0xff]  }
 0x19b   : > { %7786 = vmatprep.subr.bf16.mxu0 %v10313_v10  ;;  %v10383_v10 = vld [vmem:[%s11596_s8 + $0x1600] ss:$8 sps:$4 sm:$0xff]  }
 0x19d   : > { %7131 = vmatpush1.bf16.msra.mxu1 %v10308_v11  ;;  %v10388_v11 = vld [vmem:[%s11596_s8 + $0x614] ss:$8 sps:$4 sm:$0xff]  }
 0x19e   : > { %7787 = vmatpush1.bf16.msra.mxu0 %v10311_v12  ;;  %7132 = vmatprep.subr.bf16.mxu1 %v10316_v13  ;;  %v10391_v12 = vld [vmem:[%s11596_s8 + $0x1614] ss:$8 sps:$4 sm:$0xff]   ;;  %v12137_v13 = vrot.slane %v1406_v5, %v11676_v50  ;;  %v10466_v5 = vld [vmem:[%s11596_s8 + $0x6e4] ss:$8 sps:$4 sm:$0xff]  }
 0x19f   : > { %7788 = vmatprep.subr.bf16.mxu0 %v10319_v14  ;;  %v10389_v14 = vld [vmem:[%s11596_s8 + $0x1610] ss:$8 sps:$4 sm:$0xff]  }
 0x1a1   : > { %7133 = vmatpush1.bf16.msra.mxu1 %v10314_v15  ;;  %v10394_v15 = vld [vmem:[%s11596_s8 + $0x624] ss:$8 sps:$4 sm:$0xff]  }
 0x1a2   : > { %7789 = vmatpush1.bf16.msra.mxu0 %v10317_v16  ;;  %7134 = vmatprep.subr.bf16.mxu1 %v10322_v19  ;;  %v10397_v16 = vld [vmem:[%s11596_s8 + $0x1624] ss:$8 sps:$4 sm:$0xff]   ;;  %v10392_v19 = vld [vmem:[%s11596_s8 + $0x620] ss:$8 sps:$4 sm:$0xff]  }
 0x1a3   : > { %7790 = vmatprep.subr.bf16.mxu0 %v10325_v20  ;;  %v10395_v20 = vld [vmem:[%s11596_s8 + $0x1620] ss:$8 sps:$4 sm:$0xff]  }
 0x1a5   : > { %7135 = vmatpush1.bf16.msra.mxu1 %v10320_v21  ;;  %v10400_v21 = vld [vmem:[%s11596_s8 + $0x634] ss:$8 sps:$4 sm:$0xff]  }
 0x1a6   : > { %7791 = vmatpush1.bf16.msra.mxu0 %v10323_v22  ;;  %7136 = vmatprep.subr.bf16.mxu1 %v10328_v23  ;;  %v10403_v22 = vld [vmem:[%s11596_s8 + $0x1634] ss:$8 sps:$4 sm:$0xff]   ;;  %v10398_v23 = vld [vmem:[%s11596_s8 + $0x630] ss:$8 sps:$4 sm:$0xff]  }
 0x1a7   : > { %7792 = vmatprep.subr.bf16.mxu0 %v10331_v24  ;;  %v10401_v24 = vld [vmem:[%s11596_s8 + $0x1630] ss:$8 sps:$4 sm:$0xff]  }
 0x1a9   : > { %7137 = vmatpush1.bf16.msra.mxu1 %v10326_v53  ;;  %v10406_v53 = vld [vmem:[%s11596_s8 + $0x644] ss:$8 sps:$4 sm:$0xff]  }
 0x1aa   : > { %7793 = vmatpush1.bf16.msra.mxu0 %v10329_v57  ;;  %7138 = vmatprep.subr.bf16.mxu1 %v10334_v27  ;;  %v10409_v57 = vld [vmem:[%s11596_s8 + $0x1644] ss:$8 sps:$4 sm:$0xff]   ;;  %v10404_v27 = vld [vmem:[%s11596_s8 + $0x640] ss:$8 sps:$4 sm:$0xff]  }
 0x1ab   : > { %7794 = vmatprep.subr.bf16.mxu0 %v10337_v28  ;;  %v10407_v28 = vld [vmem:[%s11596_s8 + $0x1640] ss:$8 sps:$4 sm:$0xff]  }
 0x1ad   : > { %7139 = vmatpush1.bf16.msra.mxu1 %v10332_v29  ;;  %v10412_v29 = vld [vmem:[%s11596_s8 + $0x654] ss:$8 sps:$4 sm:$0xff]  }
 0x1ae   : > { %7795 = vmatpush1.bf16.msra.mxu0 %v10335_v30  ;;  %7140 = vmatprep.subr.bf16.mxu1 %v10340_v31  ;;  %v10415_v30 = vld [vmem:[%s11596_s8 + $0x1654] ss:$8 sps:$4 sm:$0xff]   ;;  %v10410_v31 = vld [vmem:[%s11596_s8 + $0x650] ss:$8 sps:$4 sm:$0xff]  }
 0x1af   : > { %7796 = vmatprep.subr.bf16.mxu0 %v10343_v32  ;;  %v10413_v32 = vld [vmem:[%s11596_s8 + $0x1650] ss:$8 sps:$4 sm:$0xff]  }
 0x1b1   : > { %7141 = vmatpush1.bf16.msra.mxu1 %v10338_v33  ;;  %v10418_v33 = vld [vmem:[%s11596_s8 + $0x664] ss:$8 sps:$4 sm:$0xff]  }
 0x1b2   : > { %7797 = vmatpush1.bf16.msra.mxu0 %v10341_v34  ;;  %7142 = vmatprep.subr.bf16.mxu1 %v10346_v35  ;;  %v10421_v34 = vld [vmem:[%s11596_s8 + $0x1664] ss:$8 sps:$4 sm:$0xff]   ;;  %v10416_v35 = vld [vmem:[%s11596_s8 + $0x660] ss:$8 sps:$4 sm:$0xff]  }
 0x1b3   : > { %7798 = vmatprep.subr.bf16.mxu0 %v10349_v36  ;;  %v10419_v36 = vld [vmem:[%s11596_s8 + $0x1660] ss:$8 sps:$4 sm:$0xff]  }
 0x1b5   : > { %7143 = vmatpush1.bf16.msra.mxu1 %v10344_v18  ;;  %v10424_v18 = vld [vmem:[%s11596_s8 + $0x674] ss:$8 sps:$4 sm:$0xff]  }
 0x1b6   : > { %7799 = vmatpush1.bf16.msra.mxu0 %v10347_v38  ;;  %7144 = vmatprep.subr.bf16.mxu1 %v10352_v43  ;;  %v10427_v38 = vld [vmem:[%s11596_s8 + $0x1674] ss:$8 sps:$4 sm:$0xff]   ;;  %v10422_v43 = vld [vmem:[%s11596_s8 + $0x670] ss:$8 sps:$4 sm:$0xff]  }
 0x1b7   : > { %7800 = vmatprep.subr.bf16.mxu0 %v10355_v45  ;;  %v10425_v45 = vld [vmem:[%s11596_s8 + $0x1670] ss:$8 sps:$4 sm:$0xff]  }
 0x1b9   : > { %7145 = vmatpush1.bf16.msra.mxu1 %v10350_v25  ;;  %v10430_v25 = vld [vmem:[%s11596_s8 + $0x684] ss:$8 sps:$4 sm:$0xff]  }
 0x1ba   : > { %7801 = vmatpush1.bf16.msra.mxu0 %v10353_v46  ;;  %7146 = vmatprep.subr.bf16.mxu1 %v10358_v26  ;;  %v10433_v46 = vld [vmem:[%s11596_s8 + $0x1684] ss:$8 sps:$4 sm:$0xff]   ;;  %v10428_v26 = vld [vmem:[%s11596_s8 + $0x680] ss:$8 sps:$4 sm:$0xff]  }
 0x1bb   : > { %7802 = vmatprep.subr.bf16.mxu0 %v10361_v47  ;;  %v10431_v47 = vld [vmem:[%s11596_s8 + $0x1680] ss:$8 sps:$4 sm:$0xff]  }
 0x1bd   : > { %7147 = vmatpush1.bf16.msra.mxu1 %v10356_v37  ;;  %v10436_v37 = vld [vmem:[%s11596_s8 + $0x694] ss:$8 sps:$4 sm:$0xff]  }
 0x1be   : > { %7803 = vmatpush1.bf16.msra.mxu0 %v10359_v48  ;;  %7148 = vmatprep.subr.bf16.mxu1 %v10364_v17  ;;  %v10439_v48 = vld [vmem:[%s11596_s8 + $0x1694] ss:$8 sps:$4 sm:$0xff]   ;;  %v10434_v17 = vld [vmem:[%s11596_s8 + $0x690] ss:$8 sps:$4 sm:$0xff]  }
 0x1bf   : > { %7804 = vmatprep.subr.bf16.mxu0 %v10367_v49  ;;  %v10437_v49 = vld [vmem:[%s11596_s8 + $0x1690] ss:$8 sps:$4 sm:$0xff]  }
 0x1c1   : > { %7149 = vmatpush1.bf16.msra.mxu1 %v10362_v51  ;;  %v10442_v51 = vld [vmem:[%s11596_s8 + $0x6a4] ss:$8 sps:$4 sm:$0xff]  }
 0x1c2   : > { %7805 = vmatpush1.bf16.msra.mxu0 %v10365_v52  ;;  %7150 = vmatprep.subr.bf16.mxu1 %v10370_v54  ;;  %v10445_v52 = vld [vmem:[%s11596_s8 + $0x16a4] ss:$8 sps:$4 sm:$0xff]   ;;  %v10440_v54 = vld [vmem:[%s11596_s8 + $0x6a0] ss:$8 sps:$4 sm:$0xff]  }
 0x1c3   : > { %7806 = vmatprep.subr.bf16.mxu0 %v10373_v55  ;;  %v10443_v55 = vld [vmem:[%s11596_s8 + $0x16a0] ss:$8 sps:$4 sm:$0xff]  }
 0x1c5   : > { %7151 = vmatpush1.bf16.msra.mxu1 %v10368_v63  ;;  %v10454_v63 = vld [vmem:[%s11596_s8 + $0x6c4] ss:$8 sps:$4 sm:$0xff]  }
 0x1c6   : > { %7807 = vmatpush1.bf16.msra.mxu0 %v10371_v0  ;;  %7152 = vmatprep.subr.bf16.mxu1 %v10376_v41  ;;  %v10457_v0 = vld [vmem:[%s11596_s8 + $0x16c4] ss:$8 sps:$4 sm:$0xff]   ;;  %v10452_v41 = vld [vmem:[%s11596_s8 + $0x6c0] ss:$8 sps:$4 sm:$0xff]  }
 0x1c7   : > { %7808 = vmatprep.subr.bf16.mxu0 %v10379_v1  ;;  %v10455_v1 = vld [vmem:[%s11596_s8 + $0x16c0] ss:$8 sps:$4 sm:$0xff]  }
 0x1c9   : > { %7153 = vmatpush1.bf16.msra.mxu1 %v10374_v56  ;;  %v10460_v56 = vld [vmem:[%s11596_s8 + $0x6d4] ss:$8 sps:$4 sm:$0xff]  }
 0x1ca   : > { %7809 = vmatpush1.bf16.msra.mxu0 %v10377_v3  ;;  %7163 = vmatprep.subr.bf16.mxu1 %v10382_v58  ;;  %v10463_v3 = vld [vmem:[%s11596_s8 + $0x16d4] ss:$8 sps:$4 sm:$0xff]   ;;  %v10458_v58 = vld [vmem:[%s11596_s8 + $0x6d0] ss:$8 sps:$4 sm:$0xff]  }
 0x1cb   : > { %7819 = vmatprep.subr.bf16.mxu0 %v10385_v4  ;;  %v10461_v4 = vld [vmem:[%s11596_s8 + $0x16d0] ss:$8 sps:$4 sm:$0xff]  }
 0x1cc   : > { %7155 = vmatmul.mubr.bf16.vlgmr.msra.gmra.mrb[0].mxu1 %v1435_v7  ;;  %v10464_v7 = vld [vmem:[%s11596_s8 + $0x6e0] ss:$8 sps:$4 sm:$0xff]  }
 0x1cd   : > { %7811 = vmatmul.mubr.bf16.vlgmr.msra.gmra.mrb[0].mxu0 %v1631_v8  ;;  %7164 = vmatpush1.bf16.msra.mxu1 %v10380_v9  ;;  %v10467_v8 = vld [vmem:[%s11596_s8 + $0x16e0] ss:$8 sps:$4 sm:$0xff]   ;;  %v10472_v9 = vld [vmem:[%s11596_s8 + $0x6f4] ss:$8 sps:$4 sm:$0xff]  }
 0x1ce   : > { %7820 = vmatpush1.bf16.msra.mxu0 %v10383_v10  ;;  %7165 = vmatprep.subr.bf16.mxu1 %v10388_v11  ;;  %v10475_v10 = vld [vmem:[%s11596_s8 + $0x16f4] ss:$8 sps:$4 sm:$0xff]   ;;  %v10470_v11 = vld [vmem:[%s11596_s8 + $0x6f0] ss:$8 sps:$4 sm:$0xff]  }
 0x1cf   : > { %7821 = vmatprep.subr.bf16.mxu0 %v10391_v12  ;;  %7195 = vmatprep.mubr.bf16.mxu1 %v12137_v13  ;;  %v10473_v12 = vld [vmem:[%s11596_s8 + $0x16f0] ss:$8 sps:$4 sm:$0xff]  }
 0x1d0   : > { %7851 = vmatprep.mubr.bf16.mxu0 %v12140_v59 }
 0x1d1   : > { %7166 = vmatpush1.bf16.msra.mxu1 %v10386_v60  ;;  %v10479_v60 = vld [vmem:[%s11596_s8 + $0x704] ss:$8 sps:$4 sm:$0xff]  }
 0x1d2   : > { %7822 = vmatpush1.bf16.msra.mxu0 %v10389_v14  ;;  %7167 = vmatprep.subr.bf16.mxu1 %v10394_v15  ;;  %v10483_v14 = vld [vmem:[%s11596_s8 + $0x1704] ss:$8 sps:$4 sm:$0xff]   ;;  %v12206_v15 = vrot.slane %v12115_v42, %v11676_v50  ;;  %v1438_v42 = vcombine.high %v12137_v13, %v12137_v13 }
 0x1d3   : > { %7823 = vmatprep.subr.bf16.mxu0 %v10397_v16  ;;  %v12210_v16 = vrot.slane %v12118_v2, %v11676_v50  ;;  %v10484_v2 = vld [vmem:[%s11596_s8 + $0x710] ss:$8 sps:$4 sm:$0xff]   ;;  %v10492_v13 = vld [vmem:[%s11596_s8 + $0x724] ss:$8 sps:$4 sm:$0xff]  }
 0x1d5   : > { %7168 = vmatpush1.bf16.msra.mxu1 %v10392_v19  ;;  %v10477_v19 = vld [vmem:[%s11596_s8 + $0x700] ss:$8 sps:$4 sm:$0xff]  }
 0x1d6   : > { %7824 = vmatpush1.bf16.msra.mxu0 %v10395_v20  ;;  %7169 = vmatprep.subr.bf16.mxu1 %v10400_v21  ;;  %v10481_v20 = vld [vmem:[%s11596_s8 + $0x1700] ss:$8 sps:$4 sm:$0xff]   ;;  %v10486_v21 = vld [vmem:[%s11596_s8 + $0x714] ss:$8 sps:$4 sm:$0xff]  }
 0x1d7   : > { %7825 = vmatprep.subr.bf16.mxu0 %v10403_v22  ;;  %v10489_v22 = vld [vmem:[%s11596_s8 + $0x1714] ss:$8 sps:$4 sm:$0xff]  }
 0x1d9   : > { %7170 = vmatpush1.bf16.msra.mxu1 %v10398_v23  ;;  %v1634_v23 = vcombine.high %v12140_v59, %v12140_v59  ;;  %v10490_v59 = vld [vmem:[%s11596_s8 + $0x720] ss:$8 sps:$4 sm:$0xff]  }
 0x1da   : > { %7826 = vmatpush1.bf16.msra.mxu0 %v10401_v24  ;;  %7171 = vmatprep.subr.bf16.mxu1 %v10406_v53  ;;  %v10487_v24 = vld [vmem:[%s11596_s8 + $0x1710] ss:$8 sps:$4 sm:$0xff]   ;;  %v10495_v53 = vld [vmem:[%s11596_s8 + $0x1724] ss:$8 sps:$4 sm:$0xff]  }
 0x1db   : > { %7827 = vmatprep.subr.bf16.mxu0 %v10409_v57  ;;  %v10493_v57 = vld [vmem:[%s11596_s8 + $0x1720] ss:$8 sps:$4 sm:$0xff]  }
 0x1dd   : > { %7172 = vmatpush1.bf16.msra.mxu1 %v10404_v27  ;;  %v10498_v27 = vld [vmem:[%s11596_s8 + $0x734] ss:$8 sps:$4 sm:$0xff]  }
 0x1de   : > { %7828 = vmatpush1.bf16.msra.mxu0 %v10407_v28  ;;  %7173 = vmatprep.subr.bf16.mxu1 %v10412_v29  ;;  %v10501_v28 = vld [vmem:[%s11596_s8 + $0x1734] ss:$8 sps:$4 sm:$0xff]   ;;  %v10496_v29 = vld [vmem:[%s11596_s8 + $0x730] ss:$8 sps:$4 sm:$0xff]  }
 0x1df   : > { %7829 = vmatprep.subr.bf16.mxu0 %v10415_v30  ;;  %v10499_v30 = vld [vmem:[%s11596_s8 + $0x1730] ss:$8 sps:$4 sm:$0xff]  }
 0x1e1   : > { %7174 = vmatpush1.bf16.msra.mxu1 %v10410_v31  ;;  %v10504_v31 = vld [vmem:[%s11596_s8 + $0x744] ss:$8 sps:$4 sm:$0xff]  }
 0x1e2   : > { %7830 = vmatpush1.bf16.msra.mxu0 %v10413_v32  ;;  %7175 = vmatprep.subr.bf16.mxu1 %v10418_v33  ;;  %v10507_v32 = vld [vmem:[%s11596_s8 + $0x1744] ss:$8 sps:$4 sm:$0xff]   ;;  %v10502_v33 = vld [vmem:[%s11596_s8 + $0x740] ss:$8 sps:$4 sm:$0xff]  }
 0x1e3   : > { %7831 = vmatprep.subr.bf16.mxu0 %v10421_v34  ;;  %v10505_v34 = vld [vmem:[%s11596_s8 + $0x1740] ss:$8 sps:$4 sm:$0xff]  }
 0x1e5   : > { %7176 = vmatpush1.bf16.msra.mxu1 %v10416_v35  ;;  %v10510_v35 = vld [vmem:[%s11596_s8 + $0x754] ss:$8 sps:$4 sm:$0xff]  }
 0x1e6   : > { %7832 = vmatpush1.bf16.msra.mxu0 %v10419_v36  ;;  %7177 = vmatprep.subr.bf16.mxu1 %v10424_v18  ;;  %v10513_v36 = vld [vmem:[%s11596_s8 + $0x1754] ss:$8 sps:$4 sm:$0xff]   ;;  %v10508_v18 = vld [vmem:[%s11596_s8 + $0x750] ss:$8 sps:$4 sm:$0xff]  }
 0x1e7   : > { %7833 = vmatprep.subr.bf16.mxu0 %v10427_v38  ;;  %v10511_v38 = vld [vmem:[%s11596_s8 + $0x1750] ss:$8 sps:$4 sm:$0xff]  }
 0x1e9   : > { %7178 = vmatpush1.bf16.msra.mxu1 %v10422_v43  ;;  %v10516_v43 = vld [vmem:[%s11596_s8 + $0x764] ss:$8 sps:$4 sm:$0xff]  }
 0x1ea   : > { %7834 = vmatpush1.bf16.msra.mxu0 %v10425_v45  ;;  %7179 = vmatprep.subr.bf16.mxu1 %v10430_v25  ;;  %v10519_v45 = vld [vmem:[%s11596_s8 + $0x1764] ss:$8 sps:$4 sm:$0xff]   ;;  %v10514_v25 = vld [vmem:[%s11596_s8 + $0x760] ss:$8 sps:$4 sm:$0xff]  }
 0x1eb   : > { %7835 = vmatprep.subr.bf16.mxu0 %v10433_v46  ;;  %v10517_v46 = vld [vmem:[%s11596_s8 + $0x1760] ss:$8 sps:$4 sm:$0xff]  }
 0x1ed   : > { %7180 = vmatpush1.bf16.msra.mxu1 %v10428_v26  ;;  %v10522_v26 = vld [vmem:[%s11596_s8 + $0x774] ss:$8 sps:$4 sm:$0xff]  }
 0x1ee   : > { %7836 = vmatpush1.bf16.msra.mxu0 %v10431_v47  ;;  %7181 = vmatprep.subr.bf16.mxu1 %v10436_v37  ;;  %v10525_v47 = vld [vmem:[%s11596_s8 + $0x1774] ss:$8 sps:$4 sm:$0xff]   ;;  %v10520_v37 = vld [vmem:[%s11596_s8 + $0x770] ss:$8 sps:$4 sm:$0xff]  }
 0x1ef   : > { %7837 = vmatprep.subr.bf16.mxu0 %v10439_v48  ;;  %v10523_v48 = vld [vmem:[%s11596_s8 + $0x1770] ss:$8 sps:$4 sm:$0xff]  }
 0x1f1   : > { %7182 = vmatpush1.bf16.msra.mxu1 %v10434_v17  ;;  %v10528_v17 = vld [vmem:[%s11596_s8 + $0x784] ss:$8 sps:$4 sm:$0xff]  }
 0x1f2   : > { %7838 = vmatpush1.bf16.msra.mxu0 %v10437_v49  ;;  %7183 = vmatprep.subr.bf16.mxu1 %v10442_v51  ;;  %v10531_v49 = vld [vmem:[%s11596_s8 + $0x1784] ss:$8 sps:$4 sm:$0xff]   ;;  %v10526_v51 = vld [vmem:[%s11596_s8 + $0x780] ss:$8 sps:$4 sm:$0xff]  }
 0x1f3   : > { %7839 = vmatprep.subr.bf16.mxu0 %v10445_v52  ;;  %v10529_v52 = vld [vmem:[%s11596_s8 + $0x1780] ss:$8 sps:$4 sm:$0xff]  }
 0x1f5   : > { %7184 = vmatpush1.bf16.msra.mxu1 %v10440_v54  ;;  %v10534_v54 = vld [vmem:[%s11596_s8 + $0x794] ss:$8 sps:$4 sm:$0xff]  }
 0x1f6   : > { %7840 = vmatpush1.bf16.msra.mxu0 %v10443_v55  ;;  %7185 = vmatprep.subr.bf16.mxu1 %v10448_v39  ;;  %v10537_v55 = vld [vmem:[%s11596_s8 + $0x1794] ss:$8 sps:$4 sm:$0xff]   ;;  %v10532_v39 = vld [vmem:[%s11596_s8 + $0x790] ss:$8 sps:$4 sm:$0xff]  }
 0x1f7   : > { %7841 = vmatprep.subr.bf16.mxu0 %v10451_v40  ;;  %v10535_v40 = vld [vmem:[%s11596_s8 + $0x1790] ss:$8 sps:$4 sm:$0xff]  }
 0x1f9   : > { %7186 = vmatpush1.bf16.msra.mxu1 %v10446_v61  ;;  %v10540_v61 = vld [vmem:[%s11596_s8 + $0x7a4] ss:$8 sps:$4 sm:$0xff]  }
 0x1fa   : > { %7842 = vmatpush1.bf16.msra.mxu0 %v10449_v62  ;;  %7187 = vmatprep.subr.bf16.mxu1 %v10454_v63  ;;  %v10543_v62 = vld [vmem:[%s11596_s8 + $0x17a4] ss:$8 sps:$4 sm:$0xff]   ;;  %v10538_v63 = vld [vmem:[%s11596_s8 + $0x7a0] ss:$8 sps:$4 sm:$0xff]  }
 0x1fb   : > { %7843 = vmatprep.subr.bf16.mxu0 %v10457_v0  ;;  %v10541_v0 = vld [vmem:[%s11596_s8 + $0x17a0] ss:$8 sps:$4 sm:$0xff]  }
 0x1fd   : > { %7188 = vmatpush1.bf16.msra.mxu1 %v10452_v41  ;;  %v10546_v41 = vld [vmem:[%s11596_s8 + $0x7b4] ss:$8 sps:$4 sm:$0xff]  }
 0x1fe   : > { %7844 = vmatpush1.bf16.msra.mxu0 %v10455_v1  ;;  %7189 = vmatprep.subr.bf16.mxu1 %v10460_v56  ;;  %v10549_v1 = vld [vmem:[%s11596_s8 + $0x17b4] ss:$8 sps:$4 sm:$0xff]   ;;  %v10544_v56 = vld [vmem:[%s11596_s8 + $0x7b0] ss:$8 sps:$4 sm:$0xff]  }
 0x1ff   : > { %7845 = vmatprep.subr.bf16.mxu0 %v10463_v3  ;;  %v10547_v3 = vld [vmem:[%s11596_s8 + $0x17b0] ss:$8 sps:$4 sm:$0xff]  }
 0x201   : > { %7190 = vmatpush1.bf16.msra.mxu1 %v10458_v58  ;;  %v10552_v58 = vld [vmem:[%s11596_s8 + $0x7c4] ss:$8 sps:$4 sm:$0xff]  }
 0x202   : > { %7846 = vmatpush1.bf16.msra.mxu0 %v10461_v4  ;;  %7191 = vmatprep.subr.bf16.mxu1 %v10466_v5  ;;  %v10555_v4 = vld [vmem:[%s11596_s8 + $0x17c4] ss:$8 sps:$4 sm:$0xff]   ;;  %v10550_v5 = vld [vmem:[%s11596_s8 + $0x7c0] ss:$8 sps:$4 sm:$0xff]  }
 0x203   : > { %7847 = vmatprep.subr.bf16.mxu0 %v10469_v6  ;;  %v10553_v6 = vld [vmem:[%s11596_s8 + $0x17c0] ss:$8 sps:$4 sm:$0xff]  }
 0x205   : > { %7192 = vmatpush1.bf16.msra.mxu1 %v10464_v7  ;;  %v10558_v7 = vld [vmem:[%s11596_s8 + $0x7d4] ss:$8 sps:$4 sm:$0xff]  }
 0x206   : > { %7848 = vmatpush1.bf16.msra.mxu0 %v10467_v8  ;;  %7193 = vmatprep.subr.bf16.mxu1 %v10472_v9  ;;  %v10561_v8 = vld [vmem:[%s11596_s8 + $0x17d4] ss:$8 sps:$4 sm:$0xff]   ;;  %v10556_v9 = vld [vmem:[%s11596_s8 + $0x7d0] ss:$8 sps:$4 sm:$0xff]  }
 0x207   : > { %7849 = vmatprep.subr.bf16.mxu0 %v10475_v10  ;;  %v10559_v10 = vld [vmem:[%s11596_s8 + $0x17d0] ss:$8 sps:$4 sm:$0xff]  }
 0x209   : > { %7194 = vmatpush1.bf16.msra.mxu1 %v10470_v11  ;;  %v10564_v11 = vld [vmem:[%s11596_s8 + $0x7e4] ss:$8 sps:$4 sm:$0xff]  }
 0x20a   : > { %7850 = vmatpush1.bf16.msra.mxu0 %v10473_v12  ;;  %7204 = vmatprep.subr.bf16.mxu1 %v10479_v60  ;;  %v10567_v12 = vld [vmem:[%s11596_s8 + $0x17e4] ss:$8 sps:$4 sm:$0xff]  }
 0x20b   : > { %7860 = vmatprep.subr.bf16.mxu0 %v10483_v14  ;;  %v12275_v60 = vld [vmem:[%s11611_s29 + $0x10] sm:$0xff] }
 0x20c   : > { %7196 = vmatmul.mubr.bf16.vlgmr.msra.gmra.mrb[0].mxu1 %v12206_v15  ;;  %v12278_v14 = vld [vmem:[%s11611_s29 + $0x30] sm:$0xff] }
 0x20d   : > { %7852 = vmatmul.mubr.bf16.vlgmr.msra.gmra.mrb[0].mxu0 %v12210_v16  ;;  %7205 = vmatpush1.bf16.msra.mxu1 %v10477_v19  ;;  %v10562_v19 = vld [vmem:[%s11596_s8 + $0x7e0] ss:$8 sps:$4 sm:$0xff]  }
 0x20e   : > { %7861 = vmatpush1.bf16.msra.mxu0 %v10481_v20  ;;  %7206 = vmatprep.subr.bf16.mxu1 %v10486_v21  ;;  %v10565_v20 = vld [vmem:[%s11596_s8 + $0x17e0] ss:$8 sps:$4 sm:$0xff]   ;;  %v10570_v21 = vld [vmem:[%s11596_s8 + $0x7f4] ss:$8 sps:$4 sm:$0xff]  }
 0x20f   : > { %7862 = vmatprep.subr.bf16.mxu0 %v10489_v22  ;;  %7236 = vmatprep.mubr.bf16.mxu1 %v1438_v42  ;;  %v10573_v22 = vld [vmem:[%s11596_s8 + $0x17f4] ss:$8 sps:$4 sm:$0xff]   ;;  %v12286_v42 = vrot.slane %v12275_v60, %v11676_v50 }
 0x210   : > { %7892 = vmatprep.mubr.bf16.mxu0 %v1634_v23  ;;  %v12290_v23 = vrot.slane %v12278_v14, %v11676_v50 }
 0x211   : > { %7207 = vmatpush1.bf16.msra.mxu1 %v10484_v2  ;;  %v10568_v2 = vld [vmem:[%s11596_s8 + $0x7f0] ss:$8 sps:$4 sm:$0xff]  }
 0x212   : > { %7863 = vmatpush1.bf16.msra.mxu0 %v10487_v24  ;;  %7208 = vmatprep.subr.bf16.mxu1 %v10492_v13  ;;  %v10571_v24 = vld [vmem:[%s11596_s8 + $0x17f0] ss:$8 sps:$4 sm:$0xff]   ;;  %v10576_v13 = vld [vmem:[%s11596_s8 + $0x804] ss:$8 sps:$4 sm:$0xff]  }
 0x213   : > { %7864 = vmatprep.subr.bf16.mxu0 %v10495_v53  ;;  %v10579_v53 = vld [vmem:[%s11596_s8 + $0x1804] ss:$8 sps:$4 sm:$0xff]  }
 0x215   : > { %7209 = vmatpush1.bf16.msra.mxu1 %v10490_v59  ;;  %v1454_v59 = vcombine.high %v12286_v42, %v12286_v42 }
 0x216   : > { %7865 = vmatpush1.bf16.msra.mxu0 %v10493_v57  ;;  %7210 = vmatprep.subr.bf16.mxu1 %v10498_v27  ;;  %v1650_v57 = vcombine.high %v12290_v23, %v12290_v23  ;;  %v1436_v27 = vcombine.high %v12206_v15, %v12206_v15 }
 0x217   : > { %7866 = vmatprep.subr.bf16.mxu0 %v10501_v28  ;;  %v1632_v28 = vcombine.high %v12210_v16, %v12210_v16  ;;  %v10580_v16 = vld [vmem:[%s11596_s8 + $0x810] ss:$8 sps:$4 sm:$0xff]  }
 0x218   : > { %v12312_v15 = vrot.slane %v1650_v57, %v11676_v50  ;;  %v10655_v57 = vld [vmem:[%s11596_s8 + $0x18d0] ss:$8 sps:$4 sm:$0xff]  }
 0x219   : > { %7211 = vmatpush1.bf16.msra.mxu1 %v10496_v29  ;;  %v10574_v29 = vld [vmem:[%s11596_s8 + $0x800] ss:$8 sps:$4 sm:$0xff]  }
 0x21a   : > { %7867 = vmatpush1.bf16.msra.mxu0 %v10499_v30  ;;  %7212 = vmatprep.subr.bf16.mxu1 %v10504_v31  ;;  %v10577_v30 = vld [vmem:[%s11596_s8 + $0x1800] ss:$8 sps:$4 sm:$0xff]   ;;  %v10582_v31 = vld [vmem:[%s11596_s8 + $0x814] ss:$8 sps:$4 sm:$0xff]  }
 0x21b   : > { %7868 = vmatprep.subr.bf16.mxu0 %v10507_v32  ;;  %v10585_v32 = vld [vmem:[%s11596_s8 + $0x1814] ss:$8 sps:$4 sm:$0xff]  }
 0x21d   : > { %7213 = vmatpush1.bf16.msra.mxu1 %v10502_v33  ;;  %v12309_v33 = vrot.slane %v1454_v59, %v11676_v50  ;;  %v10652_v59 = vld [vmem:[%s11596_s8 + $0x8d0] ss:$8 sps:$4 sm:$0xff]  }
 0x21e   : > { %7869 = vmatpush1.bf16.msra.mxu0 %v10505_v34  ;;  %7214 = vmatprep.subr.bf16.mxu1 %v10510_v35  ;;  %v10583_v34 = vld [vmem:[%s11596_s8 + $0x1810] ss:$8 sps:$4 sm:$0xff]   ;;  %v10588_v35 = vld [vmem:[%s11596_s8 + $0x824] ss:$8 sps:$4 sm:$0xff]  }
 0x21f   : > { %7870 = vmatprep.subr.bf16.mxu0 %v10513_v36  ;;  %v10591_v36 = vld [vmem:[%s11596_s8 + $0x1824] ss:$8 sps:$4 sm:$0xff]  }
 0x221   : > { %7215 = vmatpush1.bf16.msra.mxu1 %v10508_v18  ;;  %v10586_v18 = vld [vmem:[%s11596_s8 + $0x820] ss:$8 sps:$4 sm:$0xff]  }
 0x222   : > { %7871 = vmatpush1.bf16.msra.mxu0 %v10511_v38  ;;  %7216 = vmatprep.subr.bf16.mxu1 %v10516_v43  ;;  %v10589_v38 = vld [vmem:[%s11596_s8 + $0x1820] ss:$8 sps:$4 sm:$0xff]   ;;  %v10594_v43 = vld [vmem:[%s11596_s8 + $0x834] ss:$8 sps:$4 sm:$0xff]  }
 0x223   : > { %7872 = vmatprep.subr.bf16.mxu0 %v10519_v45  ;;  %v10597_v45 = vld [vmem:[%s11596_s8 + $0x1834] ss:$8 sps:$4 sm:$0xff]  }
 0x225   : > { %7217 = vmatpush1.bf16.msra.mxu1 %v10514_v25  ;;  %v10592_v25 = vld [vmem:[%s11596_s8 + $0x830] ss:$8 sps:$4 sm:$0xff]  }
 0x226   : > { %7873 = vmatpush1.bf16.msra.mxu0 %v10517_v46  ;;  %7218 = vmatprep.subr.bf16.mxu1 %v10522_v26  ;;  %v10595_v46 = vld [vmem:[%s11596_s8 + $0x1830] ss:$8 sps:$4 sm:$0xff]   ;;  %v10600_v26 = vld [vmem:[%s11596_s8 + $0x844] ss:$8 sps:$4 sm:$0xff]  }
 0x227   : > { %7874 = vmatprep.subr.bf16.mxu0 %v10525_v47  ;;  %v10603_v47 = vld [vmem:[%s11596_s8 + $0x1844] ss:$8 sps:$4 sm:$0xff]  }
 0x229   : > { %7219 = vmatpush1.bf16.msra.mxu1 %v10520_v37  ;;  %v10598_v37 = vld [vmem:[%s11596_s8 + $0x840] ss:$8 sps:$4 sm:$0xff]  }
 0x22a   : > { %7875 = vmatpush1.bf16.msra.mxu0 %v10523_v48  ;;  %7220 = vmatprep.subr.bf16.mxu1 %v10528_v17  ;;  %v10601_v48 = vld [vmem:[%s11596_s8 + $0x1840] ss:$8 sps:$4 sm:$0xff]   ;;  %v10606_v17 = vld [vmem:[%s11596_s8 + $0x854] ss:$8 sps:$4 sm:$0xff]  }
 0x22b   : > { %7876 = vmatprep.subr.bf16.mxu0 %v10531_v49  ;;  %v10609_v49 = vld [vmem:[%s11596_s8 + $0x1854] ss:$8 sps:$4 sm:$0xff]  }
 0x22d   : > { %7221 = vmatpush1.bf16.msra.mxu1 %v10526_v51  ;;  %v10604_v51 = vld [vmem:[%s11596_s8 + $0x850] ss:$8 sps:$4 sm:$0xff]  }
 0x22e   : > { %7877 = vmatpush1.bf16.msra.mxu0 %v10529_v52  ;;  %7222 = vmatprep.subr.bf16.mxu1 %v10534_v54  ;;  %v10607_v52 = vld [vmem:[%s11596_s8 + $0x1850] ss:$8 sps:$4 sm:$0xff]   ;;  %v10612_v54 = vld [vmem:[%s11596_s8 + $0x864] ss:$8 sps:$4 sm:$0xff]  }
 0x22f   : > { %7878 = vmatprep.subr.bf16.mxu0 %v10537_v55  ;;  %v10615_v55 = vld [vmem:[%s11596_s8 + $0x1864] ss:$8 sps:$4 sm:$0xff]  }
 0x231   : > { %7223 = vmatpush1.bf16.msra.mxu1 %v10532_v39  ;;  %v10610_v39 = vld [vmem:[%s11596_s8 + $0x860] ss:$8 sps:$4 sm:$0xff]  }
 0x232   : > { %7879 = vmatpush1.bf16.msra.mxu0 %v10535_v40  ;;  %7224 = vmatprep.subr.bf16.mxu1 %v10540_v61  ;;  %v10613_v40 = vld [vmem:[%s11596_s8 + $0x1860] ss:$8 sps:$4 sm:$0xff]   ;;  %v10618_v61 = vld [vmem:[%s11596_s8 + $0x874] ss:$8 sps:$4 sm:$0xff]  }
 0x233   : > { %7880 = vmatprep.subr.bf16.mxu0 %v10543_v62  ;;  %v10621_v62 = vld [vmem:[%s11596_s8 + $0x1874] ss:$8 sps:$4 sm:$0xff]  }
 0x235   : > { %7225 = vmatpush1.bf16.msra.mxu1 %v10538_v63  ;;  %v10616_v63 = vld [vmem:[%s11596_s8 + $0x870] ss:$8 sps:$4 sm:$0xff]  }
 0x236   : > { %7881 = vmatpush1.bf16.msra.mxu0 %v10541_v0  ;;  %7226 = vmatprep.subr.bf16.mxu1 %v10546_v41  ;;  %v10619_v0 = vld [vmem:[%s11596_s8 + $0x1870] ss:$8 sps:$4 sm:$0xff]   ;;  %v10624_v41 = vld [vmem:[%s11596_s8 + $0x884] ss:$8 sps:$4 sm:$0xff]  }
 0x237   : > { %7882 = vmatprep.subr.bf16.mxu0 %v10549_v1  ;;  %v10627_v1 = vld [vmem:[%s11596_s8 + $0x1884] ss:$8 sps:$4 sm:$0xff]  }
 0x239   : > { %7227 = vmatpush1.bf16.msra.mxu1 %v10544_v56  ;;  %v10622_v56 = vld [vmem:[%s11596_s8 + $0x880] ss:$8 sps:$4 sm:$0xff]  }
 0x23a   : > { %7883 = vmatpush1.bf16.msra.mxu0 %v10547_v3  ;;  %7228 = vmatprep.subr.bf16.mxu1 %v10552_v58  ;;  %v10625_v3 = vld [vmem:[%s11596_s8 + $0x1880] ss:$8 sps:$4 sm:$0xff]   ;;  %v10630_v58 = vld [vmem:[%s11596_s8 + $0x894] ss:$8 sps:$4 sm:$0xff]  }
 0x23b   : > { %7884 = vmatprep.subr.bf16.mxu0 %v10555_v4  ;;  %v10633_v4 = vld [vmem:[%s11596_s8 + $0x1894] ss:$8 sps:$4 sm:$0xff]  }
 0x23d   : > { %7229 = vmatpush1.bf16.msra.mxu1 %v10550_v5  ;;  %v10628_v5 = vld [vmem:[%s11596_s8 + $0x890] ss:$8 sps:$4 sm:$0xff]  }
 0x23e   : > { %7885 = vmatpush1.bf16.msra.mxu0 %v10553_v6  ;;  %7230 = vmatprep.subr.bf16.mxu1 %v10558_v7  ;;  %v10631_v6 = vld [vmem:[%s11596_s8 + $0x1890] ss:$8 sps:$4 sm:$0xff]   ;;  %v10636_v7 = vld [vmem:[%s11596_s8 + $0x8a4] ss:$8 sps:$4 sm:$0xff]  }
 0x23f   : > { %7886 = vmatprep.subr.bf16.mxu0 %v10561_v8  ;;  %v10639_v8 = vld [vmem:[%s11596_s8 + $0x18a4] ss:$8 sps:$4 sm:$0xff]  }
 0x241   : > { %7231 = vmatpush1.bf16.msra.mxu1 %v10556_v9  ;;  %v10634_v9 = vld [vmem:[%s11596_s8 + $0x8a0] ss:$8 sps:$4 sm:$0xff]  }
 0x242   : > { %7887 = vmatpush1.bf16.msra.mxu0 %v10559_v10  ;;  %7232 = vmatprep.subr.bf16.mxu1 %v10564_v11  ;;  %v10637_v10 = vld [vmem:[%s11596_s8 + $0x18a0] ss:$8 sps:$4 sm:$0xff]   ;;  %v10642_v11 = vld [vmem:[%s11596_s8 + $0x8b4] ss:$8 sps:$4 sm:$0xff]  }
 0x243   : > { %7888 = vmatprep.subr.bf16.mxu0 %v10567_v12  ;;  %v10645_v12 = vld [vmem:[%s11596_s8 + $0x18b4] ss:$8 sps:$4 sm:$0xff]  }
 0x245   : > { %7233 = vmatpush1.bf16.msra.mxu1 %v10562_v19  ;;  %v10640_v19 = vld [vmem:[%s11596_s8 + $0x8b0] ss:$8 sps:$4 sm:$0xff]  }
 0x246   : > { %7889 = vmatpush1.bf16.msra.mxu0 %v10565_v20  ;;  %7234 = vmatprep.subr.bf16.mxu1 %v10570_v21  ;;  %v10643_v20 = vld [vmem:[%s11596_s8 + $0x18b0] ss:$8 sps:$4 sm:$0xff]   ;;  %v10648_v21 = vld [vmem:[%s11596_s8 + $0x8c4] ss:$8 sps:$4 sm:$0xff]  }
 0x247   : > { %7890 = vmatprep.subr.bf16.mxu0 %v10573_v22  ;;  %v10651_v22 = vld [vmem:[%s11596_s8 + $0x18c4] ss:$8 sps:$4 sm:$0xff]  }
 0x249   : > { %7235 = vmatpush1.bf16.msra.mxu1 %v10568_v2  ;;  %v10646_v2 = vld [vmem:[%s11596_s8 + $0x8c0] ss:$8 sps:$4 sm:$0xff]  }
 0x24a   : > { %7891 = vmatpush1.bf16.msra.mxu0 %v10571_v24  ;;  %7245 = vmatprep.subr.bf16.mxu1 %v10576_v13  ;;  %v10649_v24 = vld [vmem:[%s11596_s8 + $0x18c0] ss:$8 sps:$4 sm:$0xff]   ;;  %v10654_v13 = vld [vmem:[%s11596_s8 + $0x8d4] ss:$8 sps:$4 sm:$0xff]  }
 0x24b   : > { %7901 = vmatprep.subr.bf16.mxu0 %v10579_v53  ;;  %v10657_v53 = vld [vmem:[%s11596_s8 + $0x18d4] ss:$8 sps:$4 sm:$0xff]  }
 0x24c   : > { %7237 = vmatmul.mubr.bf16.vlgmr.msra.gmra.mrb[0].mxu1 %v1436_v27  ;;  %v10660_v27 = vld [vmem:[%s11596_s8 + $0x8e4] ss:$8 sps:$4 sm:$0xff]  }
 0x24d   : > { %7893 = vmatmul.mubr.bf16.vlgmr.msra.gmra.mrb[0].mxu0 %v1632_v28  ;;  %7246 = vmatpush1.bf16.msra.mxu1 %v10574_v29  ;;  %v10663_v28 = vld [vmem:[%s11596_s8 + $0x18e4] ss:$8 sps:$4 sm:$0xff]   ;;  %v10658_v29 = vld [vmem:[%s11596_s8 + $0x8e0] ss:$8 sps:$4 sm:$0xff]  }
 0x24e   : > { %7902 = vmatpush1.bf16.msra.mxu0 %v10577_v30  ;;  %7247 = vmatprep.subr.bf16.mxu1 %v10582_v31  ;;  %v10661_v30 = vld [vmem:[%s11596_s8 + $0x18e0] ss:$8 sps:$4 sm:$0xff]   ;;  %v10666_v31 = vld [vmem:[%s11596_s8 + $0x8f4] ss:$8 sps:$4 sm:$0xff]  }
 0x24f   : > { %7903 = vmatprep.subr.bf16.mxu0 %v10585_v32  ;;  %7277 = vmatprep.mubr.bf16.mxu1 %v12309_v33  ;;  %v10669_v32 = vld [vmem:[%s11596_s8 + $0x18f4] ss:$8 sps:$4 sm:$0xff]  }
 0x250   : > { %7933 = vmatprep.mubr.bf16.mxu0 %v12312_v15 }
 0x251   : > { %7248 = vmatpush1.bf16.msra.mxu1 %v10580_v16  ;;  %v10664_v16 = vld [vmem:[%s11596_s8 + $0x8f0] ss:$8 sps:$4 sm:$0xff]  }
 0x252   : > { %7904 = vmatpush1.bf16.msra.mxu0 %v10583_v34  ;;  %7249 = vmatprep.subr.bf16.mxu1 %v10588_v35  ;;  %v10667_v34 = vld [vmem:[%s11596_s8 + $0x18f0] ss:$8 sps:$4 sm:$0xff]   ;;  %v10672_v35 = vld [vmem:[%s11596_s8 + $0x904] ss:$8 sps:$4 sm:$0xff]  }
 0x253   : > { %7905 = vmatprep.subr.bf16.mxu0 %v10591_v36  ;;  %v10675_v36 = vld [vmem:[%s11596_s8 + $0x1904] ss:$8 sps:$4 sm:$0xff]  }
 0x255   : > { %7250 = vmatpush1.bf16.msra.mxu1 %v10586_v18  ;;  %v12378_v18 = vrot.slane %v12286_v42, %v11676_v50  ;;  %v1486_v42 = vcombine.high %v12309_v33, %v12309_v33  ;;  %v10684_v33 = vld [vmem:[%s11596_s8 + $0x924] ss:$8 sps:$4 sm:$0xff]  }
 0x256   : > { %7906 = vmatpush1.bf16.msra.mxu0 %v10589_v38  ;;  %7251 = vmatprep.subr.bf16.mxu1 %v10594_v43  ;;  %v12382_v38 = vrot.slane %v12290_v23, %v11676_v50  ;;  %v10670_v43 = vld [vmem:[%s11596_s8 + $0x900] ss:$8 sps:$4 sm:$0xff]   ;;  %v10676_v23 = vld [vmem:[%s11596_s8 + $0x910] ss:$8 sps:$4 sm:$0xff]  }
 0x257   : > { %7907 = vmatprep.subr.bf16.mxu0 %v10597_v45  ;;  %v10673_v45 = vld [vmem:[%s11596_s8 + $0x1900] ss:$8 sps:$4 sm:$0xff]  }
 0x259   : > { %7252 = vmatpush1.bf16.msra.mxu1 %v10592_v25  ;;  %v10678_v25 = vld [vmem:[%s11596_s8 + $0x914] ss:$8 sps:$4 sm:$0xff]  }
 0x25a   : > { %7908 = vmatpush1.bf16.msra.mxu0 %v10595_v46  ;;  %7253 = vmatprep.subr.bf16.mxu1 %v10600_v26  ;;  %v10681_v46 = vld [vmem:[%s11596_s8 + $0x1914] ss:$8 sps:$4 sm:$0xff]   ;;  %v1682_v26 = vcombine.high %v12312_v15, %v12312_v15  ;;  %v10682_v15 = vld [vmem:[%s11596_s8 + $0x920] ss:$8 sps:$4 sm:$0xff]  }
 0x25b   : > { %7909 = vmatprep.subr.bf16.mxu0 %v10603_v47  ;;  %v10679_v47 = vld [vmem:[%s11596_s8 + $0x1910] ss:$8 sps:$4 sm:$0xff]  }
 0x25d   : > { %7254 = vmatpush1.bf16.msra.mxu1 %v10598_v37  ;;  %v10687_v37 = vld [vmem:[%s11596_s8 + $0x1924] ss:$8 sps:$4 sm:$0xff]  }
 0x25e   : > { %7910 = vmatpush1.bf16.msra.mxu0 %v10601_v48  ;;  %7255 = vmatprep.subr.bf16.mxu1 %v10606_v17  ;;  %v10685_v48 = vld [vmem:[%s11596_s8 + $0x1920] ss:$8 sps:$4 sm:$0xff]   ;;  %v10690_v17 = vld [vmem:[%s11596_s8 + $0x934] ss:$8 sps:$4 sm:$0xff]  }
 0x25f   : > { %7911 = vmatprep.subr.bf16.mxu0 %v10609_v49  ;;  %v10693_v49 = vld [vmem:[%s11596_s8 + $0x1934] ss:$8 sps:$4 sm:$0xff]  }
 0x261   : > { %7256 = vmatpush1.bf16.msra.mxu1 %v10604_v51  ;;  %v10688_v51 = vld [vmem:[%s11596_s8 + $0x930] ss:$8 sps:$4 sm:$0xff]  }
 0x262   : > { %7912 = vmatpush1.bf16.msra.mxu0 %v10607_v52  ;;  %7257 = vmatprep.subr.bf16.mxu1 %v10612_v54  ;;  %v10691_v52 = vld [vmem:[%s11596_s8 + $0x1930] ss:$8 sps:$4 sm:$0xff]   ;;  %v10696_v54 = vld [vmem:[%s11596_s8 + $0x944] ss:$8 sps:$4 sm:$0xff]  }
 0x263   : > { %7913 = vmatprep.subr.bf16.mxu0 %v10615_v55  ;;  %v10699_v55 = vld [vmem:[%s11596_s8 + $0x1944] ss:$8 sps:$4 sm:$0xff]  }
 0x265   : > { %7258 = vmatpush1.bf16.msra.mxu1 %v10610_v39  ;;  %v10694_v39 = vld [vmem:[%s11596_s8 + $0x940] ss:$8 sps:$4 sm:$0xff]  }
 0x266   : > { %7914 = vmatpush1.bf16.msra.mxu0 %v10613_v40  ;;  %7259 = vmatprep.subr.bf16.mxu1 %v10618_v61  ;;  %v10697_v40 = vld [vmem:[%s11596_s8 + $0x1940] ss:$8 sps:$4 sm:$0xff]   ;;  %v10702_v61 = vld [vmem:[%s11596_s8 + $0x954] ss:$8 sps:$4 sm:$0xff]  }
 0x267   : > { %7915 = vmatprep.subr.bf16.mxu0 %v10621_v62  ;;  %v10705_v62 = vld [vmem:[%s11596_s8 + $0x1954] ss:$8 sps:$4 sm:$0xff]  }
 0x269   : > { %7260 = vmatpush1.bf16.msra.mxu1 %v10616_v63  ;;  %v10700_v63 = vld [vmem:[%s11596_s8 + $0x950] ss:$8 sps:$4 sm:$0xff]  }
 0x26a   : > { %7916 = vmatpush1.bf16.msra.mxu0 %v10619_v0  ;;  %7261 = vmatprep.subr.bf16.mxu1 %v10624_v41  ;;  %v10703_v0 = vld [vmem:[%s11596_s8 + $0x1950] ss:$8 sps:$4 sm:$0xff]   ;;  %v10708_v41 = vld [vmem:[%s11596_s8 + $0x964] ss:$8 sps:$4 sm:$0xff]  }
 0x26b   : > { %7917 = vmatprep.subr.bf16.mxu0 %v10627_v1  ;;  %v10711_v1 = vld [vmem:[%s11596_s8 + $0x1964] ss:$8 sps:$4 sm:$0xff]  }
 0x26d   : > { %7262 = vmatpush1.bf16.msra.mxu1 %v10622_v56  ;;  %v10706_v56 = vld [vmem:[%s11596_s8 + $0x960] ss:$8 sps:$4 sm:$0xff]  }
 0x26e   : > { %7918 = vmatpush1.bf16.msra.mxu0 %v10625_v3  ;;  %7263 = vmatprep.subr.bf16.mxu1 %v10630_v58  ;;  %v10709_v3 = vld [vmem:[%s11596_s8 + $0x1960] ss:$8 sps:$4 sm:$0xff]   ;;  %v10714_v58 = vld [vmem:[%s11596_s8 + $0x974] ss:$8 sps:$4 sm:$0xff]  }
 0x26f   : > { %7919 = vmatprep.subr.bf16.mxu0 %v10633_v4  ;;  %v10717_v4 = vld [vmem:[%s11596_s8 + $0x1974] ss:$8 sps:$4 sm:$0xff]  }
 0x271   : > { %7264 = vmatpush1.bf16.msra.mxu1 %v10628_v5  ;;  %v10712_v5 = vld [vmem:[%s11596_s8 + $0x970] ss:$8 sps:$4 sm:$0xff]  }
 0x272   : > { %7920 = vmatpush1.bf16.msra.mxu0 %v10631_v6  ;;  %7265 = vmatprep.subr.bf16.mxu1 %v10636_v7  ;;  %v10715_v6 = vld [vmem:[%s11596_s8 + $0x1970] ss:$8 sps:$4 sm:$0xff]   ;;  %v10720_v7 = vld [vmem:[%s11596_s8 + $0x984] ss:$8 sps:$4 sm:$0xff]  }
 0x273   : > { %7921 = vmatprep.subr.bf16.mxu0 %v10639_v8  ;;  %v10723_v8 = vld [vmem:[%s11596_s8 + $0x1984] ss:$8 sps:$4 sm:$0xff]  }
 0x275   : > { %7266 = vmatpush1.bf16.msra.mxu1 %v10634_v9  ;;  %v10718_v9 = vld [vmem:[%s11596_s8 + $0x980] ss:$8 sps:$4 sm:$0xff]  }
 0x276   : > { %7922 = vmatpush1.bf16.msra.mxu0 %v10637_v10  ;;  %7267 = vmatprep.subr.bf16.mxu1 %v10642_v11  ;;  %v10721_v10 = vld [vmem:[%s11596_s8 + $0x1980] ss:$8 sps:$4 sm:$0xff]   ;;  %v10726_v11 = vld [vmem:[%s11596_s8 + $0x994] ss:$8 sps:$4 sm:$0xff]  }
 0x277   : > { %7923 = vmatprep.subr.bf16.mxu0 %v10645_v12  ;;  %v10729_v12 = vld [vmem:[%s11596_s8 + $0x1994] ss:$8 sps:$4 sm:$0xff]  }
 0x279   : > { %7268 = vmatpush1.bf16.msra.mxu1 %v10640_v19  ;;  %v10724_v19 = vld [vmem:[%s11596_s8 + $0x990] ss:$8 sps:$4 sm:$0xff]  }
 0x27a   : > { %7924 = vmatpush1.bf16.msra.mxu0 %v10643_v20  ;;  %7269 = vmatprep.subr.bf16.mxu1 %v10648_v21  ;;  %v10727_v20 = vld [vmem:[%s11596_s8 + $0x1990] ss:$8 sps:$4 sm:$0xff]   ;;  %v10732_v21 = vld [vmem:[%s11596_s8 + $0x9a4] ss:$8 sps:$4 sm:$0xff]  }
 0x27b   : > { %7925 = vmatprep.subr.bf16.mxu0 %v10651_v22  ;;  %v10735_v22 = vld [vmem:[%s11596_s8 + $0x19a4] ss:$8 sps:$4 sm:$0xff]  }
 0x27d   : > { %7270 = vmatpush1.bf16.msra.mxu1 %v10646_v2  ;;  %v10730_v2 = vld [vmem:[%s11596_s8 + $0x9a0] ss:$8 sps:$4 sm:$0xff]  }
 0x27e   : > { %7926 = vmatpush1.bf16.msra.mxu0 %v10649_v24  ;;  %7271 = vmatprep.subr.bf16.mxu1 %v10654_v13  ;;  %v10733_v24 = vld [vmem:[%s11596_s8 + $0x19a0] ss:$8 sps:$4 sm:$0xff]   ;;  %v10738_v13 = vld [vmem:[%s11596_s8 + $0x9b4] ss:$8 sps:$4 sm:$0xff]  }
 0x27f   : > { %7927 = vmatprep.subr.bf16.mxu0 %v10657_v53  ;;  %v10741_v53 = vld [vmem:[%s11596_s8 + $0x19b4] ss:$8 sps:$4 sm:$0xff]  }
 0x281   : > { %7272 = vmatpush1.bf16.msra.mxu1 %v10652_v59  ;;  %v10736_v59 = vld [vmem:[%s11596_s8 + $0x9b0] ss:$8 sps:$4 sm:$0xff]  }
 0x282   : > { %7928 = vmatpush1.bf16.msra.mxu0 %v10655_v57  ;;  %7273 = vmatprep.subr.bf16.mxu1 %v10660_v27  ;;  %v10739_v57 = vld [vmem:[%s11596_s8 + $0x19b0] ss:$8 sps:$4 sm:$0xff]   ;;  %v10744_v27 = vld [vmem:[%s11596_s8 + $0x9c4] ss:$8 sps:$4 sm:$0xff]  }
 0x283   : > { %7929 = vmatprep.subr.bf16.mxu0 %v10663_v28  ;;  %v10747_v28 = vld [vmem:[%s11596_s8 + $0x19c4] ss:$8 sps:$4 sm:$0xff]  }
 0x285   : > { %7274 = vmatpush1.bf16.msra.mxu1 %v10658_v29  ;;  %v10742_v29 = vld [vmem:[%s11596_s8 + $0x9c0] ss:$8 sps:$4 sm:$0xff]  }
 0x286   : > { %7930 = vmatpush1.bf16.msra.mxu0 %v10661_v30  ;;  %7275 = vmatprep.subr.bf16.mxu1 %v10666_v31  ;;  %v10745_v30 = vld [vmem:[%s11596_s8 + $0x19c0] ss:$8 sps:$4 sm:$0xff]   ;;  %v10750_v31 = vld [vmem:[%s11596_s8 + $0x9d4] ss:$8 sps:$4 sm:$0xff]  }
 0x287   : > { %7931 = vmatprep.subr.bf16.mxu0 %v10669_v32  ;;  %v10753_v32 = vld [vmem:[%s11596_s8 + $0x19d4] ss:$8 sps:$4 sm:$0xff]  }
 0x289   : > { %7276 = vmatpush1.bf16.msra.mxu1 %v10664_v16  ;;  %v10748_v16 = vld [vmem:[%s11596_s8 + $0x9d0] ss:$8 sps:$4 sm:$0xff]  }
 0x28a   : > { %7932 = vmatpush1.bf16.msra.mxu0 %v10667_v34  ;;  %7286 = vmatprep.subr.bf16.mxu1 %v10672_v35  ;;  %v10751_v34 = vld [vmem:[%s11596_s8 + $0x19d0] ss:$8 sps:$4 sm:$0xff]   ;;  %v10756_v35 = vld [vmem:[%s11596_s8 + $0x9e4] ss:$8 sps:$4 sm:$0xff]  }
 0x28b   : > { %7942 = vmatprep.subr.bf16.mxu0 %v10675_v36  ;;  %v10759_v36 = vld [vmem:[%s11596_s8 + $0x19e4] ss:$8 sps:$4 sm:$0xff]  }
 0x28c   : > { %7278 = vmatmul.mubr.bf16.vlgmr.msra.gmra.mrb[0].mxu1 %v12378_v18 }
 0x28d   : > { %7934 = vmatmul.mubr.bf16.vlgmr.msra.gmra.mrb[0].mxu0 %v12382_v38  ;;  %7287 = vmatpush1.bf16.msra.mxu1 %v10670_v43  ;;  %v1439_v43 = vcombine.high %v12275_v60, %v12275_v60  ;;  %v10760_v60 = vld [vmem:[%s11596_s8 + $0x9f0] ss:$8 sps:$4 sm:$0xff]  }
 0x28e   : > { %7943 = vmatpush1.bf16.msra.mxu0 %v10673_v45  ;;  %7288 = vmatprep.subr.bf16.mxu1 %v10678_v25  ;;  %v1635_v45 = vcombine.high %v12278_v14, %v12278_v14  ;;  %v10754_v25 = vld [vmem:[%s11596_s8 + $0x9e0] ss:$8 sps:$4 sm:$0xff]   ;;  %v10763_v14 = vld [vmem:[%s11596_s8 + $0x19f0] ss:$8 sps:$4 sm:$0xff]  }
 0x28f   : > { %7944 = vmatprep.subr.bf16.mxu0 %v10681_v46  ;;  %7318 = vmatprep.mubr.bf16.mxu1 %v1486_v42  ;;  %v10757_v46 = vld [vmem:[%s11596_s8 + $0x19e0] ss:$8 sps:$4 sm:$0xff]   ;;  %v10762_v42 = vld [vmem:[%s11596_s8 + $0x9f4] ss:$8 sps:$4 sm:$0xff]  }
 0x290   : > { %7974 = vmatprep.mubr.bf16.mxu0 %v1682_v26  ;;  %v10765_v26 = vld [vmem:[%s11596_s8 + $0x19f4] ss:$8 sps:$4 sm:$0xff]  }
 0x291   : > { %7289 = vmatpush1.bf16.msra.mxu1 %v10676_v23  ;;  %v12455_v23 = vrot.slane %v1439_v43, %v11676_v50  ;;  %v10832_v43 = vld [vmem:[%s11596_s8 + $0xab0] ss:$8 sps:$4 sm:$0xff]  }
 0x292   : > { %7945 = vmatpush1.bf16.msra.mxu0 %v10679_v47  ;;  %7290 = vmatprep.subr.bf16.mxu1 %v10684_v33  ;;  %v12458_v47 = vrot.slane %v1635_v45, %v11676_v50  ;;  %v10768_v33 = vld [vmem:[%s11596_s8 + $0xa04] ss:$8 sps:$4 sm:$0xff]   ;;  %v10835_v45 = vld [vmem:[%s11596_s8 + $0x1ab0] ss:$8 sps:$4 sm:$0xff]  }
 0x293   : > { %7946 = vmatprep.subr.bf16.mxu0 %v10687_v37  ;;  %v10771_v37 = vld [vmem:[%s11596_s8 + $0x1a04] ss:$8 sps:$4 sm:$0xff]  }
 0x295   : > { %7291 = vmatpush1.bf16.msra.mxu1 %v10682_v15  ;;  %v1455_v15 = vcombine.high %v12455_v23, %v12455_v23 }
 0x296   : > { %7947 = vmatpush1.bf16.msra.mxu0 %v10685_v48  ;;  %7292 = vmatprep.subr.bf16.mxu1 %v10690_v17  ;;  %v1651_v48 = vcombine.high %v12458_v47, %v12458_v47  ;;  %v1484_v17 = vcombine.high %v12378_v18, %v12378_v18 }
 0x297   : > { %7948 = vmatprep.subr.bf16.mxu0 %v10693_v49  ;;  %v1680_v49 = vcombine.high %v12382_v38, %v12382_v38  ;;  %v10772_v38 = vld [vmem:[%s11596_s8 + $0xa10] ss:$8 sps:$4 sm:$0xff]  }
 0x298   : > { %v12480_v18 = vrot.slane %v1651_v48, %v11676_v50  ;;  %v10855_v48 = vld [vmem:[%s11596_s8 + $0x1ae4] ss:$8 sps:$4 sm:$0xff]  }
 0x299   : > { %7293 = vmatpush1.bf16.msra.mxu1 %v10688_v51  ;;  %v10766_v51 = vld [vmem:[%s11596_s8 + $0xa00] ss:$8 sps:$4 sm:$0xff]  }
 0x29a   : > { %7949 = vmatpush1.bf16.msra.mxu0 %v10691_v52  ;;  %7294 = vmatprep.subr.bf16.mxu1 %v10696_v54  ;;  %v10769_v52 = vld [vmem:[%s11596_s8 + $0x1a00] ss:$8 sps:$4 sm:$0xff]   ;;  %v10774_v54 = vld [vmem:[%s11596_s8 + $0xa14] ss:$8 sps:$4 sm:$0xff]  }
 0x29b   : > { %7950 = vmatprep.subr.bf16.mxu0 %v10699_v55  ;;  %v10777_v55 = vld [vmem:[%s11596_s8 + $0x1a14] ss:$8 sps:$4 sm:$0xff]  }
 0x29d   : > { %7295 = vmatpush1.bf16.msra.mxu1 %v10694_v39  ;;  %v12477_v39 = vrot.slane %v1455_v15, %v11676_v50  ;;  %v10852_v15 = vld [vmem:[%s11596_s8 + $0xae4] ss:$8 sps:$4 sm:$0xff]  }
 0x29e   : > { %7951 = vmatpush1.bf16.msra.mxu0 %v10697_v40  ;;  %7296 = vmatprep.subr.bf16.mxu1 %v10702_v61  ;;  %v10775_v40 = vld [vmem:[%s11596_s8 + $0x1a10] ss:$8 sps:$4 sm:$0xff]   ;;  %v10780_v61 = vld [vmem:[%s11596_s8 + $0xa24] ss:$8 sps:$4 sm:$0xff]  }
 0x29f   : > { %7952 = vmatprep.subr.bf16.mxu0 %v10705_v62  ;;  %v10783_v62 = vld [vmem:[%s11596_s8 + $0x1a24] ss:$8 sps:$4 sm:$0xff]  }
 0x2a1   : > { %7297 = vmatpush1.bf16.msra.mxu1 %v10700_v63  ;;  %v10778_v63 = vld [vmem:[%s11596_s8 + $0xa20] ss:$8 sps:$4 sm:$0xff]  }
 0x2a2   : > { %7953 = vmatpush1.bf16.msra.mxu0 %v10703_v0  ;;  %7298 = vmatprep.subr.bf16.mxu1 %v10708_v41  ;;  %v10781_v0 = vld [vmem:[%s11596_s8 + $0x1a20] ss:$8 sps:$4 sm:$0xff]   ;;  %v10786_v41 = vld [vmem:[%s11596_s8 + $0xa34] ss:$8 sps:$4 sm:$0xff]  }
 0x2a3   : > { %7954 = vmatprep.subr.bf16.mxu0 %v10711_v1  ;;  %v10789_v1 = vld [vmem:[%s11596_s8 + $0x1a34] ss:$8 sps:$4 sm:$0xff]  }
 0x2a5   : > { %7299 = vmatpush1.bf16.msra.mxu1 %v10706_v56  ;;  %v10784_v56 = vld [vmem:[%s11596_s8 + $0xa30] ss:$8 sps:$4 sm:$0xff]  }
 0x2a6   : > { %7955 = vmatpush1.bf16.msra.mxu0 %v10709_v3  ;;  %7300 = vmatprep.subr.bf16.mxu1 %v10714_v58  ;;  %v10787_v3 = vld [vmem:[%s11596_s8 + $0x1a30] ss:$8 sps:$4 sm:$0xff]   ;;  %v10792_v58 = vld [vmem:[%s11596_s8 + $0xa44] ss:$8 sps:$4 sm:$0xff]  }
 0x2a7   : > { %7956 = vmatprep.subr.bf16.mxu0 %v10717_v4  ;;  %v10795_v4 = vld [vmem:[%s11596_s8 + $0x1a44] ss:$8 sps:$4 sm:$0xff]  }
 0x2a9   : > { %7301 = vmatpush1.bf16.msra.mxu1 %v10712_v5  ;;  %v10790_v5 = vld [vmem:[%s11596_s8 + $0xa40] ss:$8 sps:$4 sm:$0xff]  }
 0x2aa   : > { %7957 = vmatpush1.bf16.msra.mxu0 %v10715_v6  ;;  %7302 = vmatprep.subr.bf16.mxu1 %v10720_v7  ;;  %v10793_v6 = vld [vmem:[%s11596_s8 + $0x1a40] ss:$8 sps:$4 sm:$0xff]   ;;  %v10798_v7 = vld [vmem:[%s11596_s8 + $0xa54] ss:$8 sps:$4 sm:$0xff]  }
 0x2ab   : > { %7958 = vmatprep.subr.bf16.mxu0 %v10723_v8  ;;  %v10801_v8 = vld [vmem:[%s11596_s8 + $0x1a54] ss:$8 sps:$4 sm:$0xff]  }
 0x2ad   : > { %7303 = vmatpush1.bf16.msra.mxu1 %v10718_v9  ;;  %v10796_v9 = vld [vmem:[%s11596_s8 + $0xa50] ss:$8 sps:$4 sm:$0xff]  }
 0x2ae   : > { %7959 = vmatpush1.bf16.msra.mxu0 %v10721_v10  ;;  %7304 = vmatprep.subr.bf16.mxu1 %v10726_v11  ;;  %v10799_v10 = vld [vmem:[%s11596_s8 + $0x1a50] ss:$8 sps:$4 sm:$0xff]   ;;  %v10804_v11 = vld [vmem:[%s11596_s8 + $0xa64] ss:$8 sps:$4 sm:$0xff]  }
 0x2af   : > { %7960 = vmatprep.subr.bf16.mxu0 %v10729_v12  ;;  %v10807_v12 = vld [vmem:[%s11596_s8 + $0x1a64] ss:$8 sps:$4 sm:$0xff]  }
 0x2b1   : > { %7305 = vmatpush1.bf16.msra.mxu1 %v10724_v19  ;;  %v10802_v19 = vld [vmem:[%s11596_s8 + $0xa60] ss:$8 sps:$4 sm:$0xff]  }
 0x2b2   : > { %7961 = vmatpush1.bf16.msra.mxu0 %v10727_v20  ;;  %7306 = vmatprep.subr.bf16.mxu1 %v10732_v21  ;;  %v10805_v20 = vld [vmem:[%s11596_s8 + $0x1a60] ss:$8 sps:$4 sm:$0xff]   ;;  %v10810_v21 = vld [vmem:[%s11596_s8 + $0xa74] ss:$8 sps:$4 sm:$0xff]  }
 0x2b3   : > { %7962 = vmatprep.subr.bf16.mxu0 %v10735_v22  ;;  %v10813_v22 = vld [vmem:[%s11596_s8 + $0x1a74] ss:$8 sps:$4 sm:$0xff]  }
 0x2b5   : > { %7307 = vmatpush1.bf16.msra.mxu1 %v10730_v2  ;;  %v10808_v2 = vld [vmem:[%s11596_s8 + $0xa70] ss:$8 sps:$4 sm:$0xff]  }
 0x2b6   : > { %7963 = vmatpush1.bf16.msra.mxu0 %v10733_v24  ;;  %7308 = vmatprep.subr.bf16.mxu1 %v10738_v13  ;;  %v10811_v24 = vld [vmem:[%s11596_s8 + $0x1a70] ss:$8 sps:$4 sm:$0xff]   ;;  %v10816_v13 = vld [vmem:[%s11596_s8 + $0xa84] ss:$8 sps:$4 sm:$0xff]  }
 0x2b7   : > { %7964 = vmatprep.subr.bf16.mxu0 %v10741_v53  ;;  %v10819_v53 = vld [vmem:[%s11596_s8 + $0x1a84] ss:$8 sps:$4 sm:$0xff]  }
 0x2b9   : > { %7309 = vmatpush1.bf16.msra.mxu1 %v10736_v59  ;;  %v10814_v59 = vld [vmem:[%s11596_s8 + $0xa80] ss:$8 sps:$4 sm:$0xff]  }
 0x2ba   : > { %7965 = vmatpush1.bf16.msra.mxu0 %v10739_v57  ;;  %7310 = vmatprep.subr.bf16.mxu1 %v10744_v27  ;;  %v10817_v57 = vld [vmem:[%s11596_s8 + $0x1a80] ss:$8 sps:$4 sm:$0xff]   ;;  %v10822_v27 = vld [vmem:[%s11596_s8 + $0xa94] ss:$8 sps:$4 sm:$0xff]  }
 0x2bb   : > { %7966 = vmatprep.subr.bf16.mxu0 %v10747_v28  ;;  %v10825_v28 = vld [vmem:[%s11596_s8 + $0x1a94] ss:$8 sps:$4 sm:$0xff]  }
 0x2bd   : > { %7311 = vmatpush1.bf16.msra.mxu1 %v10742_v29  ;;  %v10820_v29 = vld [vmem:[%s11596_s8 + $0xa90] ss:$8 sps:$4 sm:$0xff]  }
 0x2be   : > { %7967 = vmatpush1.bf16.msra.mxu0 %v10745_v30  ;;  %7312 = vmatprep.subr.bf16.mxu1 %v10750_v31  ;;  %v10823_v30 = vld [vmem:[%s11596_s8 + $0x1a90] ss:$8 sps:$4 sm:$0xff]   ;;  %v10828_v31 = vld [vmem:[%s11596_s8 + $0xaa4] ss:$8 sps:$4 sm:$0xff]  }
 0x2bf   : > { %7968 = vmatprep.subr.bf16.mxu0 %v10753_v32  ;;  %v10831_v32 = vld [vmem:[%s11596_s8 + $0x1aa4] ss:$8 sps:$4 sm:$0xff]  }
 0x2c1   : > { %7313 = vmatpush1.bf16.msra.mxu1 %v10748_v16  ;;  %v10826_v16 = vld [vmem:[%s11596_s8 + $0xaa0] ss:$8 sps:$4 sm:$0xff]  }
 0x2c2   : > { %7969 = vmatpush1.bf16.msra.mxu0 %v10751_v34  ;;  %7314 = vmatprep.subr.bf16.mxu1 %v10756_v35  ;;  %v10829_v34 = vld [vmem:[%s11596_s8 + $0x1aa0] ss:$8 sps:$4 sm:$0xff]   ;;  %v10834_v35 = vld [vmem:[%s11596_s8 + $0xab4] ss:$8 sps:$4 sm:$0xff]  }
 0x2c3   : > { %7970 = vmatprep.subr.bf16.mxu0 %v10759_v36  ;;  %v10837_v36 = vld [vmem:[%s11596_s8 + $0x1ab4] ss:$8 sps:$4 sm:$0xff]  }
 0x2c5   : > { %7315 = vmatpush1.bf16.msra.mxu1 %v10754_v25  ;;  %v10840_v25 = vld [vmem:[%s11596_s8 + $0xac4] ss:$8 sps:$4 sm:$0xff]  }
 0x2c6   : > { %7971 = vmatpush1.bf16.msra.mxu0 %v10757_v46  ;;  %7316 = vmatprep.subr.bf16.mxu1 %v10762_v42  ;;  %v10843_v46 = vld [vmem:[%s11596_s8 + $0x1ac4] ss:$8 sps:$4 sm:$0xff]   ;;  %v10838_v42 = vld [vmem:[%s11596_s8 + $0xac0] ss:$8 sps:$4 sm:$0xff]  }
 0x2c7   : > { %7972 = vmatprep.subr.bf16.mxu0 %v10765_v26  ;;  %v10841_v26 = vld [vmem:[%s11596_s8 + $0x1ac0] ss:$8 sps:$4 sm:$0xff]  }
 0x2c9   : > { %7317 = vmatpush1.bf16.msra.mxu1 %v10760_v60  ;;  %v10846_v60 = vld [vmem:[%s11596_s8 + $0xad4] ss:$8 sps:$4 sm:$0xff]  }
 0x2ca   : > { %7973 = vmatpush1.bf16.msra.mxu0 %v10763_v14  ;;  %7327 = vmatprep.subr.bf16.mxu1 %v10768_v33  ;;  %v10849_v14 = vld [vmem:[%s11596_s8 + $0x1ad4] ss:$8 sps:$4 sm:$0xff]   ;;  %v10844_v33 = vld [vmem:[%s11596_s8 + $0xad0] ss:$8 sps:$4 sm:$0xff]  }
 0x2cb   : > { %7983 = vmatprep.subr.bf16.mxu0 %v10771_v37  ;;  %v10847_v37 = vld [vmem:[%s11596_s8 + $0x1ad0] ss:$8 sps:$4 sm:$0xff]  }
 0x2cc   : > { %7319 = vmatmul.mubr.bf16.vlgmr.msra.gmra.mrb[0].mxu1 %v1484_v17  ;;  %v10850_v17 = vld [vmem:[%s11596_s8 + $0xae0] ss:$8 sps:$4 sm:$0xff]  }
 0x2cd   : > { %7975 = vmatmul.mubr.bf16.vlgmr.msra.gmra.mrb[0].mxu0 %v1680_v49  ;;  %7328 = vmatpush1.bf16.msra.mxu1 %v10766_v51  ;;  %v10853_v49 = vld [vmem:[%s11596_s8 + $0x1ae0] ss:$8 sps:$4 sm:$0xff]   ;;  %v10858_v51 = vld [vmem:[%s11596_s8 + $0xaf4] ss:$8 sps:$4 sm:$0xff]  }
 0x2ce   : > { %7984 = vmatpush1.bf16.msra.mxu0 %v10769_v52  ;;  %7329 = vmatprep.subr.bf16.mxu1 %v10774_v54  ;;  %v10861_v52 = vld [vmem:[%s11596_s8 + $0x1af4] ss:$8 sps:$4 sm:$0xff]   ;;  %v10856_v54 = vld [vmem:[%s11596_s8 + $0xaf0] ss:$8 sps:$4 sm:$0xff]  }
 0x2cf   : > { %7985 = vmatprep.subr.bf16.mxu0 %v10777_v55  ;;  %7359 = vmatprep.mubr.bf16.mxu1 %v12477_v39  ;;  %v10859_v55 = vld [vmem:[%s11596_s8 + $0x1af0] ss:$8 sps:$4 sm:$0xff]  }
 0x2d0   : > { %8015 = vmatprep.mubr.bf16.mxu0 %v12480_v18 }
 0x2d1   : > { %7330 = vmatpush1.bf16.msra.mxu1 %v10772_v38  ;;  %v10865_v38 = vld [vmem:[%s11596_s8 + $0xb04] ss:$8 sps:$4 sm:$0xff]  }
 0x2d2   : > { %7986 = vmatpush1.bf16.msra.mxu0 %v10775_v40  ;;  %7331 = vmatprep.subr.bf16.mxu1 %v10780_v61  ;;  %v10869_v40 = vld [vmem:[%s11596_s8 + $0x1b04] ss:$8 sps:$4 sm:$0xff]   ;;  %v12546_v61 = vrot.slane %v12455_v23, %v11676_v50  ;;  %v1487_v23 = vcombine.high %v12477_v39, %v12477_v39 }
 0x2d3   : > { %7987 = vmatprep.subr.bf16.mxu0 %v10783_v62  ;;  %v12550_v62 = vrot.slane %v12458_v47, %v11676_v50  ;;  %v10870_v47 = vld [vmem:[%s11596_s8 + $0xb10] ss:$8 sps:$4 sm:$0xff]   ;;  %v10878_v39 = vld [vmem:[%s11596_s8 + $0xb24] ss:$8 sps:$4 sm:$0xff]  }
 0x2d5   : > { %7332 = vmatpush1.bf16.msra.mxu1 %v10778_v63  ;;  %v10863_v63 = vld [vmem:[%s11596_s8 + $0xb00] ss:$8 sps:$4 sm:$0xff]  }
 0x2d6   : > { %7988 = vmatpush1.bf16.msra.mxu0 %v10781_v0  ;;  %7333 = vmatprep.subr.bf16.mxu1 %v10786_v41  ;;  %v10867_v0 = vld [vmem:[%s11596_s8 + $0x1b00] ss:$8 sps:$4 sm:$0xff]   ;;  %v10872_v41 = vld [vmem:[%s11596_s8 + $0xb14] ss:$8 sps:$4 sm:$0xff]  }
 0x2d7   : > { %7989 = vmatprep.subr.bf16.mxu0 %v10789_v1  ;;  %v10875_v1 = vld [vmem:[%s11596_s8 + $0x1b14] ss:$8 sps:$4 sm:$0xff]  }
 0x2d9   : > { %7334 = vmatpush1.bf16.msra.mxu1 %v10784_v56  ;;  %v1683_v56 = vcombine.high %v12480_v18, %v12480_v18  ;;  %v10876_v18 = vld [vmem:[%s11596_s8 + $0xb20] ss:$8 sps:$4 sm:$0xff]  }
 0x2da   : > { %7990 = vmatpush1.bf16.msra.mxu0 %v10787_v3  ;;  %7335 = vmatprep.subr.bf16.mxu1 %v10792_v58  ;;  %v10873_v3 = vld [vmem:[%s11596_s8 + $0x1b10] ss:$8 sps:$4 sm:$0xff]   ;;  %v10881_v58 = vld [vmem:[%s11596_s8 + $0x1b24] ss:$8 sps:$4 sm:$0xff]  }
 0x2db   : > { %7991 = vmatprep.subr.bf16.mxu0 %v10795_v4  ;;  %v10879_v4 = vld [vmem:[%s11596_s8 + $0x1b20] ss:$8 sps:$4 sm:$0xff]  }
 0x2dd   : > { %7336 = vmatpush1.bf16.msra.mxu1 %v10790_v5  ;;  %v10884_v5 = vld [vmem:[%s11596_s8 + $0xb34] ss:$8 sps:$4 sm:$0xff]  }
 0x2de   : > { %7992 = vmatpush1.bf16.msra.mxu0 %v10793_v6  ;;  %7337 = vmatprep.subr.bf16.mxu1 %v10798_v7  ;;  %v10887_v6 = vld [vmem:[%s11596_s8 + $0x1b34] ss:$8 sps:$4 sm:$0xff]   ;;  %v10882_v7 = vld [vmem:[%s11596_s8 + $0xb30] ss:$8 sps:$4 sm:$0xff]  }
 0x2df   : > { %7993 = vmatprep.subr.bf16.mxu0 %v10801_v8  ;;  %v10885_v8 = vld [vmem:[%s11596_s8 + $0x1b30] ss:$8 sps:$4 sm:$0xff]  }
 0x2e1   : > { %7338 = vmatpush1.bf16.msra.mxu1 %v10796_v9  ;;  %v10890_v9 = vld [vmem:[%s11596_s8 + $0xb44] ss:$8 sps:$4 sm:$0xff]  }
 0x2e2   : > { %7994 = vmatpush1.bf16.msra.mxu0 %v10799_v10  ;;  %7339 = vmatprep.subr.bf16.mxu1 %v10804_v11  ;;  %v10893_v10 = vld [vmem:[%s11596_s8 + $0x1b44] ss:$8 sps:$4 sm:$0xff]   ;;  %v10888_v11 = vld [vmem:[%s11596_s8 + $0xb40] ss:$8 sps:$4 sm:$0xff]  }
 0x2e3   : > { %7995 = vmatprep.subr.bf16.mxu0 %v10807_v12  ;;  %v10891_v12 = vld [vmem:[%s11596_s8 + $0x1b40] ss:$8 sps:$4 sm:$0xff]  }
 0x2e5   : > { %7340 = vmatpush1.bf16.msra.mxu1 %v10802_v19  ;;  %v10896_v19 = vld [vmem:[%s11596_s8 + $0xb54] ss:$8 sps:$4 sm:$0xff]  }
 0x2e6   : > { %7996 = vmatpush1.bf16.msra.mxu0 %v10805_v20  ;;  %7341 = vmatprep.subr.bf16.mxu1 %v10810_v21  ;;  %v10899_v20 = vld [vmem:[%s11596_s8 + $0x1b54] ss:$8 sps:$4 sm:$0xff]   ;;  %v10894_v21 = vld [vmem:[%s11596_s8 + $0xb50] ss:$8 sps:$4 sm:$0xff]  }
 0x2e7   : > { %7997 = vmatprep.subr.bf16.mxu0 %v10813_v22  ;;  %v10897_v22 = vld [vmem:[%s11596_s8 + $0x1b50] ss:$8 sps:$4 sm:$0xff]  }
 0x2e9   : > { %7342 = vmatpush1.bf16.msra.mxu1 %v10808_v2  ;;  %v10902_v2 = vld [vmem:[%s11596_s8 + $0xb64] ss:$8 sps:$4 sm:$0xff]  }
 0x2ea   : > { %7998 = vmatpush1.bf16.msra.mxu0 %v10811_v24  ;;  %7343 = vmatprep.subr.bf16.mxu1 %v10816_v13  ;;  %v10905_v24 = vld [vmem:[%s11596_s8 + $0x1b64] ss:$8 sps:$4 sm:$0xff]   ;;  %v10900_v13 = vld [vmem:[%s11596_s8 + $0xb60] ss:$8 sps:$4 sm:$0xff]  }
 0x2eb   : > { %7999 = vmatprep.subr.bf16.mxu0 %v10819_v53  ;;  %v10903_v53 = vld [vmem:[%s11596_s8 + $0x1b60] ss:$8 sps:$4 sm:$0xff]  }
 0x2ed   : > { %7344 = vmatpush1.bf16.msra.mxu1 %v10814_v59  ;;  %v10908_v59 = vld [vmem:[%s11596_s8 + $0xb74] ss:$8 sps:$4 sm:$0xff]  }
 0x2ee   : > { %8000 = vmatpush1.bf16.msra.mxu0 %v10817_v57  ;;  %7345 = vmatprep.subr.bf16.mxu1 %v10822_v27  ;;  %v10911_v57 = vld [vmem:[%s11596_s8 + $0x1b74] ss:$8 sps:$4 sm:$0xff]   ;;  %v10906_v27 = vld [vmem:[%s11596_s8 + $0xb70] ss:$8 sps:$4 sm:$0xff]  }
 0x2ef   : > { %8001 = vmatprep.subr.bf16.mxu0 %v10825_v28  ;;  %v10909_v28 = vld [vmem:[%s11596_s8 + $0x1b70] ss:$8 sps:$4 sm:$0xff]  }
 0x2f1   : > { %7346 = vmatpush1.bf16.msra.mxu1 %v10820_v29  ;;  %v10914_v29 = vld [vmem:[%s11596_s8 + $0xb84] ss:$8 sps:$4 sm:$0xff]  }
 0x2f2   : > { %8002 = vmatpush1.bf16.msra.mxu0 %v10823_v30  ;;  %7347 = vmatprep.subr.bf16.mxu1 %v10828_v31  ;;  %v10917_v30 = vld [vmem:[%s11596_s8 + $0x1b84] ss:$8 sps:$4 sm:$0xff]   ;;  %v10912_v31 = vld [vmem:[%s11596_s8 + $0xb80] ss:$8 sps:$4 sm:$0xff]  }
 0x2f3   : > { %8003 = vmatprep.subr.bf16.mxu0 %v10831_v32  ;;  %v10915_v32 = vld [vmem:[%s11596_s8 + $0x1b80] ss:$8 sps:$4 sm:$0xff]  }
 0x2f5   : > { %7348 = vmatpush1.bf16.msra.mxu1 %v10826_v16  ;;  %v10920_v16 = vld [vmem:[%s11596_s8 + $0xb94] ss:$8 sps:$4 sm:$0xff]  }
 0x2f6   : > { %8004 = vmatpush1.bf16.msra.mxu0 %v10829_v34  ;;  %7349 = vmatprep.subr.bf16.mxu1 %v10834_v35  ;;  %v10923_v34 = vld [vmem:[%s11596_s8 + $0x1b94] ss:$8 sps:$4 sm:$0xff]   ;;  %v10918_v35 = vld [vmem:[%s11596_s8 + $0xb90] ss:$8 sps:$4 sm:$0xff]  }
 0x2f7   : > { %8005 = vmatprep.subr.bf16.mxu0 %v10837_v36  ;;  %v10921_v36 = vld [vmem:[%s11596_s8 + $0x1b90] ss:$8 sps:$4 sm:$0xff]  }
 0x2f9   : > { %7350 = vmatpush1.bf16.msra.mxu1 %v10832_v43  ;;  %v10926_v43 = vld [vmem:[%s11596_s8 + $0xba4] ss:$8 sps:$4 sm:$0xff]  }
 0x2fa   : > { %8006 = vmatpush1.bf16.msra.mxu0 %v10835_v45  ;;  %7351 = vmatprep.subr.bf16.mxu1 %v10840_v25  ;;  %v10929_v45 = vld [vmem:[%s11596_s8 + $0x1ba4] ss:$8 sps:$4 sm:$0xff]   ;;  %v10924_v25 = vld [vmem:[%s11596_s8 + $0xba0] ss:$8 sps:$4 sm:$0xff]  }
 0x2fb   : > { %8007 = vmatprep.subr.bf16.mxu0 %v10843_v46  ;;  %v10927_v46 = vld [vmem:[%s11596_s8 + $0x1ba0] ss:$8 sps:$4 sm:$0xff]  }
 0x2fd   : > { %7352 = vmatpush1.bf16.msra.mxu1 %v10838_v42  ;;  %v10932_v42 = vld [vmem:[%s11596_s8 + $0xbb4] ss:$8 sps:$4 sm:$0xff]  }
 0x2fe   : > { %8008 = vmatpush1.bf16.msra.mxu0 %v10841_v26  ;;  %7353 = vmatprep.subr.bf16.mxu1 %v10846_v60  ;;  %v10935_v26 = vld [vmem:[%s11596_s8 + $0x1bb4] ss:$8 sps:$4 sm:$0xff]   ;;  %v10930_v60 = vld [vmem:[%s11596_s8 + $0xbb0] ss:$8 sps:$4 sm:$0xff]  }
 0x2ff   : > { %8009 = vmatprep.subr.bf16.mxu0 %v10849_v14  ;;  %v10933_v14 = vld [vmem:[%s11596_s8 + $0x1bb0] ss:$8 sps:$4 sm:$0xff]  }
 0x301   : > { %7354 = vmatpush1.bf16.msra.mxu1 %v10844_v33  ;;  %v10938_v33 = vld [vmem:[%s11596_s8 + $0xbc4] ss:$8 sps:$4 sm:$0xff]  }
 0x302   : > { %8010 = vmatpush1.bf16.msra.mxu0 %v10847_v37  ;;  %7355 = vmatprep.subr.bf16.mxu1 %v10852_v15  ;;  %v10941_v37 = vld [vmem:[%s11596_s8 + $0x1bc4] ss:$8 sps:$4 sm:$0xff]   ;;  %v10936_v15 = vld [vmem:[%s11596_s8 + $0xbc0] ss:$8 sps:$4 sm:$0xff]  }
 0x303   : > { %8011 = vmatprep.subr.bf16.mxu0 %v10855_v48  ;;  %v10939_v48 = vld [vmem:[%s11596_s8 + $0x1bc0] ss:$8 sps:$4 sm:$0xff]  }
 0x305   : > { %7356 = vmatpush1.bf16.msra.mxu1 %v10850_v17  ;;  %v10944_v17 = vld [vmem:[%s11596_s8 + $0xbd4] ss:$8 sps:$4 sm:$0xff]  }
 0x306   : > { %8012 = vmatpush1.bf16.msra.mxu0 %v10853_v49  ;;  %7357 = vmatprep.subr.bf16.mxu1 %v10858_v51  ;;  %v10947_v49 = vld [vmem:[%s11596_s8 + $0x1bd4] ss:$8 sps:$4 sm:$0xff]   ;;  %v10942_v51 = vld [vmem:[%s11596_s8 + $0xbd0] ss:$8 sps:$4 sm:$0xff]  }
 0x307   : > { %8013 = vmatprep.subr.bf16.mxu0 %v10861_v52  ;;  %v10945_v52 = vld [vmem:[%s11596_s8 + $0x1bd0] ss:$8 sps:$4 sm:$0xff]  }
 0x309   : > { %7358 = vmatpush1.bf16.msra.mxu1 %v10856_v54  ;;  %v10950_v54 = vld [vmem:[%s11596_s8 + $0xbe4] ss:$8 sps:$4 sm:$0xff]  }
 0x30a   : > { %8014 = vmatpush1.bf16.msra.mxu0 %v10859_v55  ;;  %7368 = vmatprep.subr.bf16.mxu1 %v10865_v38  ;;  %v10953_v55 = vld [vmem:[%s11596_s8 + $0x1be4] ss:$8 sps:$4 sm:$0xff]   ;;  %v12615_v38 = vld [vmem:[%s11611_s29 + $0x18] sm:$0xff] }
 0x30b   : > { %8024 = vmatprep.subr.bf16.mxu0 %v10869_v40  ;;  %v12618_v40 = vld [vmem:[%s11611_s29 + $0x38] sm:$0xff] }
 0x30c   : > { %7360 = vmatmul.mubr.bf16.vlgmr.msra.gmra.mrb[0].mxu1 %v12546_v61 }
 0x30d   : > { %8016 = vmatmul.mubr.bf16.vlgmr.msra.gmra.mrb[0].mxu0 %v12550_v62  ;;  %7369 = vmatpush1.bf16.msra.mxu1 %v10863_v63  ;;  %v10948_v63 = vld [vmem:[%s11596_s8 + $0xbe0] ss:$8 sps:$4 sm:$0xff]  }
 0x30e   : > { %8025 = vmatpush1.bf16.msra.mxu0 %v10867_v0  ;;  %7370 = vmatprep.subr.bf16.mxu1 %v10872_v41  ;;  %v10951_v0 = vld [vmem:[%s11596_s8 + $0x1be0] ss:$8 sps:$4 sm:$0xff]   ;;  %v10956_v41 = vld [vmem:[%s11596_s8 + $0xbf4] ss:$8 sps:$4 sm:$0xff]  }
 0x30f   : > { %8026 = vmatprep.subr.bf16.mxu0 %v10875_v1  ;;  %7400 = vmatprep.mubr.bf16.mxu1 %v1487_v23  ;;  %v10959_v1 = vld [vmem:[%s11596_s8 + $0x1bf4] ss:$8 sps:$4 sm:$0xff]   ;;  %v12626_v23 = vrot.slane %v12615_v38, %v11676_v50 }
 0x310   : > { %8056 = vmatprep.mubr.bf16.mxu0 %v1683_v56  ;;  %v12630_v56 = vrot.slane %v12618_v40, %v11676_v50 }
 0x311   : > { %7371 = vmatpush1.bf16.msra.mxu1 %v10870_v47  ;;  %v10954_v47 = vld [vmem:[%s11596_s8 + $0xbf0] ss:$8 sps:$4 sm:$0xff]  }
 0x312   : > { %8027 = vmatpush1.bf16.msra.mxu0 %v10873_v3  ;;  %7372 = vmatprep.subr.bf16.mxu1 %v10878_v39  ;;  %v10957_v3 = vld [vmem:[%s11596_s8 + $0x1bf0] ss:$8 sps:$4 sm:$0xff]   ;;  %v10962_v39 = vld [vmem:[%s11596_s8 + $0xc04] ss:$8 sps:$4 sm:$0xff]  }
 0x313   : > { %8028 = vmatprep.subr.bf16.mxu0 %v10881_v58  ;;  %v10965_v58 = vld [vmem:[%s11596_s8 + $0x1c04] ss:$8 sps:$4 sm:$0xff]  }
 0x315   : > { %7373 = vmatpush1.bf16.msra.mxu1 %v10876_v18  ;;  %v1503_v18 = vcombine.high %v12626_v23, %v12626_v23 }
 0x316   : > { %8029 = vmatpush1.bf16.msra.mxu0 %v10879_v4  ;;  %7374 = vmatprep.subr.bf16.mxu1 %v10884_v5  ;;  %v1699_v4 = vcombine.high %v12630_v56, %v12630_v56  ;;  %v1485_v5 = vcombine.high %v12546_v61, %v12546_v61 }
 0x317   : > { %8030 = vmatprep.subr.bf16.mxu0 %v10887_v6  ;;  %v1681_v6 = vcombine.high %v12550_v62, %v12550_v62  ;;  %v10966_v62 = vld [vmem:[%s11596_s8 + $0xc10] ss:$8 sps:$4 sm:$0xff]  }
 0x318   : > { %v12652_v61 = vrot.slane %v1699_v4, %v11676_v50  ;;  %v11041_v4 = vld [vmem:[%s11596_s8 + $0x1cd0] ss:$8 sps:$4 sm:$0xff]  }
 0x319   : > { %7375 = vmatpush1.bf16.msra.mxu1 %v10882_v7  ;;  %v10960_v7 = vld [vmem:[%s11596_s8 + $0xc00] ss:$8 sps:$4 sm:$0xff]  }
 0x31a   : > { %8031 = vmatpush1.bf16.msra.mxu0 %v10885_v8  ;;  %7376 = vmatprep.subr.bf16.mxu1 %v10890_v9  ;;  %v10963_v8 = vld [vmem:[%s11596_s8 + $0x1c00] ss:$8 sps:$4 sm:$0xff]   ;;  %v10968_v9 = vld [vmem:[%s11596_s8 + $0xc14] ss:$8 sps:$4 sm:$0xff]  }
 0x31b   : > { %8032 = vmatprep.subr.bf16.mxu0 %v10893_v10  ;;  %v10971_v10 = vld [vmem:[%s11596_s8 + $0x1c14] ss:$8 sps:$4 sm:$0xff]  }
 0x31d   : > { %7377 = vmatpush1.bf16.msra.mxu1 %v10888_v11  ;;  %v12649_v11 = vrot.slane %v1503_v18, %v11676_v50  ;;  %v11038_v18 = vld [vmem:[%s11596_s8 + $0xcd0] ss:$8 sps:$4 sm:$0xff]  }
 0x31e   : > { %8033 = vmatpush1.bf16.msra.mxu0 %v10891_v12  ;;  %7378 = vmatprep.subr.bf16.mxu1 %v10896_v19  ;;  %v10969_v12 = vld [vmem:[%s11596_s8 + $0x1c10] ss:$8 sps:$4 sm:$0xff]   ;;  %v10974_v19 = vld [vmem:[%s11596_s8 + $0xc24] ss:$8 sps:$4 sm:$0xff]  }
 0x31f   : > { %8034 = vmatprep.subr.bf16.mxu0 %v10899_v20  ;;  %v10977_v20 = vld [vmem:[%s11596_s8 + $0x1c24] ss:$8 sps:$4 sm:$0xff]  }
 0x321   : > { %7379 = vmatpush1.bf16.msra.mxu1 %v10894_v21  ;;  %v10972_v21 = vld [vmem:[%s11596_s8 + $0xc20] ss:$8 sps:$4 sm:$0xff]  }
 0x322   : > { %8035 = vmatpush1.bf16.msra.mxu0 %v10897_v22  ;;  %7380 = vmatprep.subr.bf16.mxu1 %v10902_v2  ;;  %v10975_v22 = vld [vmem:[%s11596_s8 + $0x1c20] ss:$8 sps:$4 sm:$0xff]   ;;  %v10980_v2 = vld [vmem:[%s11596_s8 + $0xc34] ss:$8 sps:$4 sm:$0xff]  }
 0x323   : > { %8036 = vmatprep.subr.bf16.mxu0 %v10905_v24  ;;  %v10983_v24 = vld [vmem:[%s11596_s8 + $0x1c34] ss:$8 sps:$4 sm:$0xff]  }
 0x325   : > { %7381 = vmatpush1.bf16.msra.mxu1 %v10900_v13  ;;  %v10978_v13 = vld [vmem:[%s11596_s8 + $0xc30] ss:$8 sps:$4 sm:$0xff]  }
 0x326   : > { %8037 = vmatpush1.bf16.msra.mxu0 %v10903_v53  ;;  %7382 = vmatprep.subr.bf16.mxu1 %v10908_v59  ;;  %v10981_v53 = vld [vmem:[%s11596_s8 + $0x1c30] ss:$8 sps:$4 sm:$0xff]   ;;  %v10986_v59 = vld [vmem:[%s11596_s8 + $0xc44] ss:$8 sps:$4 sm:$0xff]  }
 0x327   : > { %8038 = vmatprep.subr.bf16.mxu0 %v10911_v57  ;;  %v10989_v57 = vld [vmem:[%s11596_s8 + $0x1c44] ss:$8 sps:$4 sm:$0xff]  }
 0x329   : > { %7383 = vmatpush1.bf16.msra.mxu1 %v10906_v27  ;;  %v10984_v27 = vld [vmem:[%s11596_s8 + $0xc40] ss:$8 sps:$4 sm:$0xff]  }
 0x32a   : > { %8039 = vmatpush1.bf16.msra.mxu0 %v10909_v28  ;;  %7384 = vmatprep.subr.bf16.mxu1 %v10914_v29  ;;  %v10987_v28 = vld [vmem:[%s11596_s8 + $0x1c40] ss:$8 sps:$4 sm:$0xff]   ;;  %v10992_v29 = vld [vmem:[%s11596_s8 + $0xc54] ss:$8 sps:$4 sm:$0xff]  }
 0x32b   : > { %8040 = vmatprep.subr.bf16.mxu0 %v10917_v30  ;;  %v10995_v30 = vld [vmem:[%s11596_s8 + $0x1c54] ss:$8 sps:$4 sm:$0xff]  }
 0x32d   : > { %7385 = vmatpush1.bf16.msra.mxu1 %v10912_v31  ;;  %v10990_v31 = vld [vmem:[%s11596_s8 + $0xc50] ss:$8 sps:$4 sm:$0xff]  }
 0x32e   : > { %8041 = vmatpush1.bf16.msra.mxu0 %v10915_v32  ;;  %7386 = vmatprep.subr.bf16.mxu1 %v10920_v16  ;;  %v10993_v32 = vld [vmem:[%s11596_s8 + $0x1c50] ss:$8 sps:$4 sm:$0xff]   ;;  %v10998_v16 = vld [vmem:[%s11596_s8 + $0xc64] ss:$8 sps:$4 sm:$0xff]  }
 0x32f   : > { %8042 = vmatprep.subr.bf16.mxu0 %v10923_v34  ;;  %v11001_v34 = vld [vmem:[%s11596_s8 + $0x1c64] ss:$8 sps:$4 sm:$0xff]  }
 0x331   : > { %7387 = vmatpush1.bf16.msra.mxu1 %v10918_v35  ;;  %v10996_v35 = vld [vmem:[%s11596_s8 + $0xc60] ss:$8 sps:$4 sm:$0xff]  }
 0x332   : > { %8043 = vmatpush1.bf16.msra.mxu0 %v10921_v36  ;;  %7388 = vmatprep.subr.bf16.mxu1 %v10926_v43  ;;  %v10999_v36 = vld [vmem:[%s11596_s8 + $0x1c60] ss:$8 sps:$4 sm:$0xff]   ;;  %v11004_v43 = vld [vmem:[%s11596_s8 + $0xc74] ss:$8 sps:$4 sm:$0xff]  }
 0x333   : > { %8044 = vmatprep.subr.bf16.mxu0 %v10929_v45  ;;  %v11007_v45 = vld [vmem:[%s11596_s8 + $0x1c74] ss:$8 sps:$4 sm:$0xff]  }
 0x335   : > { %7389 = vmatpush1.bf16.msra.mxu1 %v10924_v25  ;;  %v11002_v25 = vld [vmem:[%s11596_s8 + $0xc70] ss:$8 sps:$4 sm:$0xff]  }
 0x336   : > { %8045 = vmatpush1.bf16.msra.mxu0 %v10927_v46  ;;  %7390 = vmatprep.subr.bf16.mxu1 %v10932_v42  ;;  %v11005_v46 = vld [vmem:[%s11596_s8 + $0x1c70] ss:$8 sps:$4 sm:$0xff]   ;;  %v11010_v42 = vld [vmem:[%s11596_s8 + $0xc84] ss:$8 sps:$4 sm:$0xff]  }
 0x337   : > { %8046 = vmatprep.subr.bf16.mxu0 %v10935_v26  ;;  %v11013_v26 = vld [vmem:[%s11596_s8 + $0x1c84] ss:$8 sps:$4 sm:$0xff]  }
 0x339   : > { %7391 = vmatpush1.bf16.msra.mxu1 %v10930_v60  ;;  %v11008_v60 = vld [vmem:[%s11596_s8 + $0xc80] ss:$8 sps:$4 sm:$0xff]  }
 0x33a   : > { %8047 = vmatpush1.bf16.msra.mxu0 %v10933_v14  ;;  %7392 = vmatprep.subr.bf16.mxu1 %v10938_v33  ;;  %v11011_v14 = vld [vmem:[%s11596_s8 + $0x1c80] ss:$8 sps:$4 sm:$0xff]   ;;  %v11016_v33 = vld [vmem:[%s11596_s8 + $0xc94] ss:$8 sps:$4 sm:$0xff]  }
 0x33b   : > { %8048 = vmatprep.subr.bf16.mxu0 %v10941_v37  ;;  %v11019_v37 = vld [vmem:[%s11596_s8 + $0x1c94] ss:$8 sps:$4 sm:$0xff]  }
 0x33d   : > { %7393 = vmatpush1.bf16.msra.mxu1 %v10936_v15  ;;  %v11014_v15 = vld [vmem:[%s11596_s8 + $0xc90] ss:$8 sps:$4 sm:$0xff]  }
 0x33e   : > { %8049 = vmatpush1.bf16.msra.mxu0 %v10939_v48  ;;  %7394 = vmatprep.subr.bf16.mxu1 %v10944_v17  ;;  %v11017_v48 = vld [vmem:[%s11596_s8 + $0x1c90] ss:$8 sps:$4 sm:$0xff]   ;;  %v11022_v17 = vld [vmem:[%s11596_s8 + $0xca4] ss:$8 sps:$4 sm:$0xff]  }
 0x33f   : > { %8050 = vmatprep.subr.bf16.mxu0 %v10947_v49  ;;  %v11025_v49 = vld [vmem:[%s11596_s8 + $0x1ca4] ss:$8 sps:$4 sm:$0xff]  }
 0x341   : > { %7395 = vmatpush1.bf16.msra.mxu1 %v10942_v51  ;;  %v11020_v51 = vld [vmem:[%s11596_s8 + $0xca0] ss:$8 sps:$4 sm:$0xff]  }
 0x342   : > { %8051 = vmatpush1.bf16.msra.mxu0 %v10945_v52  ;;  %7396 = vmatprep.subr.bf16.mxu1 %v10950_v54  ;;  %v11023_v52 = vld [vmem:[%s11596_s8 + $0x1ca0] ss:$8 sps:$4 sm:$0xff]   ;;  %v11028_v54 = vld [vmem:[%s11596_s8 + $0xcb4] ss:$8 sps:$4 sm:$0xff]  }
 0x343   : > { %8052 = vmatprep.subr.bf16.mxu0 %v10953_v55  ;;  %v11031_v55 = vld [vmem:[%s11596_s8 + $0x1cb4] ss:$8 sps:$4 sm:$0xff]  }
 0x345   : > { %7397 = vmatpush1.bf16.msra.mxu1 %v10948_v63  ;;  %v11026_v63 = vld [vmem:[%s11596_s8 + $0xcb0] ss:$8 sps:$4 sm:$0xff]  }
 0x346   : > { %8053 = vmatpush1.bf16.msra.mxu0 %v10951_v0  ;;  %7398 = vmatprep.subr.bf16.mxu1 %v10956_v41  ;;  %v11029_v0 = vld [vmem:[%s11596_s8 + $0x1cb0] ss:$8 sps:$4 sm:$0xff]   ;;  %v11034_v41 = vld [vmem:[%s11596_s8 + $0xcc4] ss:$8 sps:$4 sm:$0xff]  }
 0x347   : > { %8054 = vmatprep.subr.bf16.mxu0 %v10959_v1  ;;  %v11037_v1 = vld [vmem:[%s11596_s8 + $0x1cc4] ss:$8 sps:$4 sm:$0xff]  }
 0x349   : > { %7399 = vmatpush1.bf16.msra.mxu1 %v10954_v47  ;;  %v11032_v47 = vld [vmem:[%s11596_s8 + $0xcc0] ss:$8 sps:$4 sm:$0xff]  }
 0x34a   : > { %8055 = vmatpush1.bf16.msra.mxu0 %v10957_v3  ;;  %7409 = vmatprep.subr.bf16.mxu1 %v10962_v39  ;;  %v11035_v3 = vld [vmem:[%s11596_s8 + $0x1cc0] ss:$8 sps:$4 sm:$0xff]   ;;  %v11040_v39 = vld [vmem:[%s11596_s8 + $0xcd4] ss:$8 sps:$4 sm:$0xff]  }
 0x34b   : > { %8065 = vmatprep.subr.bf16.mxu0 %v10965_v58  ;;  %v11043_v58 = vld [vmem:[%s11596_s8 + $0x1cd4] ss:$8 sps:$4 sm:$0xff]  }
 0x34c   : > { %7401 = vmatmul.mubr.bf16.vlgmr.msra.gmra.mrb[0].mxu1 %v1485_v5  ;;  %v11046_v5 = vld [vmem:[%s11596_s8 + $0xce4] ss:$8 sps:$4 sm:$0xff]  }
 0x34d   : > { %8057 = vmatmul.mubr.bf16.vlgmr.msra.gmra.mrb[0].mxu0 %v1681_v6  ;;  %7410 = vmatpush1.bf16.msra.mxu1 %v10960_v7  ;;  %v11049_v6 = vld [vmem:[%s11596_s8 + $0x1ce4] ss:$8 sps:$4 sm:$0xff]   ;;  %v11044_v7 = vld [vmem:[%s11596_s8 + $0xce0] ss:$8 sps:$4 sm:$0xff]  }
 0x34e   : > { %8066 = vmatpush1.bf16.msra.mxu0 %v10963_v8  ;;  %7411 = vmatprep.subr.bf16.mxu1 %v10968_v9  ;;  %v11047_v8 = vld [vmem:[%s11596_s8 + $0x1ce0] ss:$8 sps:$4 sm:$0xff]   ;;  %v11052_v9 = vld [vmem:[%s11596_s8 + $0xcf4] ss:$8 sps:$4 sm:$0xff]  }
 0x34f   : > { %8067 = vmatprep.subr.bf16.mxu0 %v10971_v10  ;;  %7441 = vmatprep.mubr.bf16.mxu1 %v12649_v11  ;;  %v11055_v10 = vld [vmem:[%s11596_s8 + $0x1cf4] ss:$8 sps:$4 sm:$0xff]  }
 0x350   : > { %8097 = vmatprep.mubr.bf16.mxu0 %v12652_v61 }
 0x351   : > { %7412 = vmatpush1.bf16.msra.mxu1 %v10966_v62  ;;  %v11050_v62 = vld [vmem:[%s11596_s8 + $0xcf0] ss:$8 sps:$4 sm:$0xff]  }
 0x352   : > { %8068 = vmatpush1.bf16.msra.mxu0 %v10969_v12  ;;  %7413 = vmatprep.subr.bf16.mxu1 %v10974_v19  ;;  %v11053_v12 = vld [vmem:[%s11596_s8 + $0x1cf0] ss:$8 sps:$4 sm:$0xff]   ;;  %v11058_v19 = vld [vmem:[%s11596_s8 + $0xd04] ss:$8 sps:$4 sm:$0xff]  }
 0x353   : > { %8069 = vmatprep.subr.bf16.mxu0 %v10977_v20  ;;  %v11061_v20 = vld [vmem:[%s11596_s8 + $0x1d04] ss:$8 sps:$4 sm:$0xff]  }
 0x355   : > { %7414 = vmatpush1.bf16.msra.mxu1 %v10972_v21  ;;  %v12718_v21 = vrot.slane %v12626_v23, %v11676_v50  ;;  %v1535_v23 = vcombine.high %v12649_v11, %v12649_v11  ;;  %v11070_v11 = vld [vmem:[%s11596_s8 + $0xd24] ss:$8 sps:$4 sm:$0xff]  }
 0x356   : > { %8070 = vmatpush1.bf16.msra.mxu0 %v10975_v22  ;;  %7415 = vmatprep.subr.bf16.mxu1 %v10980_v2  ;;  %v12722_v22 = vrot.slane %v12630_v56, %v11676_v50  ;;  %v11056_v2 = vld [vmem:[%s11596_s8 + $0xd00] ss:$8 sps:$4 sm:$0xff]   ;;  %v11062_v56 = vld [vmem:[%s11596_s8 + $0xd10] ss:$8 sps:$4 sm:$0xff]  }
 0x357   : > { %8071 = vmatprep.subr.bf16.mxu0 %v10983_v24  ;;  %v11059_v24 = vld [vmem:[%s11596_s8 + $0x1d00] ss:$8 sps:$4 sm:$0xff]  }
 0x359   : > { %7416 = vmatpush1.bf16.msra.mxu1 %v10978_v13  ;;  %v11064_v13 = vld [vmem:[%s11596_s8 + $0xd14] ss:$8 sps:$4 sm:$0xff]  }
 0x35a   : > { %8072 = vmatpush1.bf16.msra.mxu0 %v10981_v53  ;;  %7417 = vmatprep.subr.bf16.mxu1 %v10986_v59  ;;  %v11067_v53 = vld [vmem:[%s11596_s8 + $0x1d14] ss:$8 sps:$4 sm:$0xff]   ;;  %v1731_v59 = vcombine.high %v12652_v61, %v12652_v61  ;;  %v11068_v61 = vld [vmem:[%s11596_s8 + $0xd20] ss:$8 sps:$4 sm:$0xff]  }
 0x35b   : > { %8073 = vmatprep.subr.bf16.mxu0 %v10989_v57  ;;  %v11065_v57 = vld [vmem:[%s11596_s8 + $0x1d10] ss:$8 sps:$4 sm:$0xff]  }
 0x35d   : > { %7418 = vmatpush1.bf16.msra.mxu1 %v10984_v27  ;;  %v11073_v27 = vld [vmem:[%s11596_s8 + $0x1d24] ss:$8 sps:$4 sm:$0xff]  }
 0x35e   : > { %8074 = vmatpush1.bf16.msra.mxu0 %v10987_v28  ;;  %7419 = vmatprep.subr.bf16.mxu1 %v10992_v29  ;;  %v11071_v28 = vld [vmem:[%s11596_s8 + $0x1d20] ss:$8 sps:$4 sm:$0xff]   ;;  %v11076_v29 = vld [vmem:[%s11596_s8 + $0xd34] ss:$8 sps:$4 sm:$0xff]  }
 0x35f   : > { %8075 = vmatprep.subr.bf16.mxu0 %v10995_v30  ;;  %v11079_v30 = vld [vmem:[%s11596_s8 + $0x1d34] ss:$8 sps:$4 sm:$0xff]  }
 0x361   : > { %7420 = vmatpush1.bf16.msra.mxu1 %v10990_v31  ;;  %v11074_v31 = vld [vmem:[%s11596_s8 + $0xd30] ss:$8 sps:$4 sm:$0xff]  }
 0x362   : > { %8076 = vmatpush1.bf16.msra.mxu0 %v10993_v32  ;;  %7421 = vmatprep.subr.bf16.mxu1 %v10998_v16  ;;  %v11077_v32 = vld [vmem:[%s11596_s8 + $0x1d30] ss:$8 sps:$4 sm:$0xff]   ;;  %v11082_v16 = vld [vmem:[%s11596_s8 + $0xd44] ss:$8 sps:$4 sm:$0xff]  }
 0x363   : > { %8077 = vmatprep.subr.bf16.mxu0 %v11001_v34  ;;  %v11085_v34 = vld [vmem:[%s11596_s8 + $0x1d44] ss:$8 sps:$4 sm:$0xff]  }
 0x365   : > { %7422 = vmatpush1.bf16.msra.mxu1 %v10996_v35  ;;  %v11080_v35 = vld [vmem:[%s11596_s8 + $0xd40] ss:$8 sps:$4 sm:$0xff]  }
 0x366   : > { %8078 = vmatpush1.bf16.msra.mxu0 %v10999_v36  ;;  %7423 = vmatprep.subr.bf16.mxu1 %v11004_v43  ;;  %v11083_v36 = vld [vmem:[%s11596_s8 + $0x1d40] ss:$8 sps:$4 sm:$0xff]   ;;  %v11088_v43 = vld [vmem:[%s11596_s8 + $0xd54] ss:$8 sps:$4 sm:$0xff]  }
 0x367   : > { %8079 = vmatprep.subr.bf16.mxu0 %v11007_v45  ;;  %v11091_v45 = vld [vmem:[%s11596_s8 + $0x1d54] ss:$8 sps:$4 sm:$0xff]  }
 0x369   : > { %7424 = vmatpush1.bf16.msra.mxu1 %v11002_v25  ;;  %v11086_v25 = vld [vmem:[%s11596_s8 + $0xd50] ss:$8 sps:$4 sm:$0xff]  }
 0x36a   : > { %8080 = vmatpush1.bf16.msra.mxu0 %v11005_v46  ;;  %7425 = vmatprep.subr.bf16.mxu1 %v11010_v42  ;;  %v11089_v46 = vld [vmem:[%s11596_s8 + $0x1d50] ss:$8 sps:$4 sm:$0xff]   ;;  %v11094_v42 = vld [vmem:[%s11596_s8 + $0xd64] ss:$8 sps:$4 sm:$0xff]  }
 0x36b   : > { %8081 = vmatprep.subr.bf16.mxu0 %v11013_v26  ;;  %v11097_v26 = vld [vmem:[%s11596_s8 + $0x1d64] ss:$8 sps:$4 sm:$0xff]  }
 0x36d   : > { %7426 = vmatpush1.bf16.msra.mxu1 %v11008_v60  ;;  %v11092_v60 = vld [vmem:[%s11596_s8 + $0xd60] ss:$8 sps:$4 sm:$0xff]  }
 0x36e   : > { %8082 = vmatpush1.bf16.msra.mxu0 %v11011_v14  ;;  %7427 = vmatprep.subr.bf16.mxu1 %v11016_v33  ;;  %v11095_v14 = vld [vmem:[%s11596_s8 + $0x1d60] ss:$8 sps:$4 sm:$0xff]   ;;  %v11100_v33 = vld [vmem:[%s11596_s8 + $0xd74] ss:$8 sps:$4 sm:$0xff]  }
 0x36f   : > { %8083 = vmatprep.subr.bf16.mxu0 %v11019_v37  ;;  %v11103_v37 = vld [vmem:[%s11596_s8 + $0x1d74] ss:$8 sps:$4 sm:$0xff]  }
 0x371   : > { %7428 = vmatpush1.bf16.msra.mxu1 %v11014_v15  ;;  %v11098_v15 = vld [vmem:[%s11596_s8 + $0xd70] ss:$8 sps:$4 sm:$0xff]  }
 0x372   : > { %8084 = vmatpush1.bf16.msra.mxu0 %v11017_v48  ;;  %7429 = vmatprep.subr.bf16.mxu1 %v11022_v17  ;;  %v11101_v48 = vld [vmem:[%s11596_s8 + $0x1d70] ss:$8 sps:$4 sm:$0xff]   ;;  %v11106_v17 = vld [vmem:[%s11596_s8 + $0xd84] ss:$8 sps:$4 sm:$0xff]  }
 0x373   : > { %8085 = vmatprep.subr.bf16.mxu0 %v11025_v49  ;;  %v11109_v49 = vld [vmem:[%s11596_s8 + $0x1d84] ss:$8 sps:$4 sm:$0xff]  }
 0x375   : > { %7430 = vmatpush1.bf16.msra.mxu1 %v11020_v51  ;;  %v11104_v51 = vld [vmem:[%s11596_s8 + $0xd80] ss:$8 sps:$4 sm:$0xff]  }
 0x376   : > { %8086 = vmatpush1.bf16.msra.mxu0 %v11023_v52  ;;  %7431 = vmatprep.subr.bf16.mxu1 %v11028_v54  ;;  %v11107_v52 = vld [vmem:[%s11596_s8 + $0x1d80] ss:$8 sps:$4 sm:$0xff]   ;;  %v11112_v54 = vld [vmem:[%s11596_s8 + $0xd94] ss:$8 sps:$4 sm:$0xff]  }
 0x377   : > { %8087 = vmatprep.subr.bf16.mxu0 %v11031_v55  ;;  %v11115_v55 = vld [vmem:[%s11596_s8 + $0x1d94] ss:$8 sps:$4 sm:$0xff]  }
 0x379   : > { %7432 = vmatpush1.bf16.msra.mxu1 %v11026_v63  ;;  %v11110_v63 = vld [vmem:[%s11596_s8 + $0xd90] ss:$8 sps:$4 sm:$0xff]  }
 0x37a   : > { %8088 = vmatpush1.bf16.msra.mxu0 %v11029_v0  ;;  %7433 = vmatprep.subr.bf16.mxu1 %v11034_v41  ;;  %v11113_v0 = vld [vmem:[%s11596_s8 + $0x1d90] ss:$8 sps:$4 sm:$0xff]   ;;  %v11118_v41 = vld [vmem:[%s11596_s8 + $0xda4] ss:$8 sps:$4 sm:$0xff]  }
 0x37b   : > { %8089 = vmatprep.subr.bf16.mxu0 %v11037_v1  ;;  %v11121_v1 = vld [vmem:[%s11596_s8 + $0x1da4] ss:$8 sps:$4 sm:$0xff]  }
 0x37d   : > { %7434 = vmatpush1.bf16.msra.mxu1 %v11032_v47  ;;  %v11116_v47 = vld [vmem:[%s11596_s8 + $0xda0] ss:$8 sps:$4 sm:$0xff]  }
 0x37e   : > { %8090 = vmatpush1.bf16.msra.mxu0 %v11035_v3  ;;  %7435 = vmatprep.subr.bf16.mxu1 %v11040_v39  ;;  %v11119_v3 = vld [vmem:[%s11596_s8 + $0x1da0] ss:$8 sps:$4 sm:$0xff]   ;;  %v11124_v39 = vld [vmem:[%s11596_s8 + $0xdb4] ss:$8 sps:$4 sm:$0xff]  }
 0x37f   : > { %8091 = vmatprep.subr.bf16.mxu0 %v11043_v58  ;;  %v11127_v58 = vld [vmem:[%s11596_s8 + $0x1db4] ss:$8 sps:$4 sm:$0xff]  }
 0x381   : > { %7436 = vmatpush1.bf16.msra.mxu1 %v11038_v18  ;;  %v11122_v18 = vld [vmem:[%s11596_s8 + $0xdb0] ss:$8 sps:$4 sm:$0xff]  }
 0x382   : > { %8092 = vmatpush1.bf16.msra.mxu0 %v11041_v4  ;;  %7437 = vmatprep.subr.bf16.mxu1 %v11046_v5  ;;  %v11125_v4 = vld [vmem:[%s11596_s8 + $0x1db0] ss:$8 sps:$4 sm:$0xff]   ;;  %v11130_v5 = vld [vmem:[%s11596_s8 + $0xdc4] ss:$8 sps:$4 sm:$0xff]  }
 0x383   : > { %8093 = vmatprep.subr.bf16.mxu0 %v11049_v6  ;;  %v11133_v6 = vld [vmem:[%s11596_s8 + $0x1dc4] ss:$8 sps:$4 sm:$0xff]  }
 0x385   : > { %7438 = vmatpush1.bf16.msra.mxu1 %v11044_v7  ;;  %v11128_v7 = vld [vmem:[%s11596_s8 + $0xdc0] ss:$8 sps:$4 sm:$0xff]  }
 0x386   : > { %8094 = vmatpush1.bf16.msra.mxu0 %v11047_v8  ;;  %7439 = vmatprep.subr.bf16.mxu1 %v11052_v9  ;;  %v11131_v8 = vld [vmem:[%s11596_s8 + $0x1dc0] ss:$8 sps:$4 sm:$0xff]   ;;  %v11136_v9 = vld [vmem:[%s11596_s8 + $0xdd4] ss:$8 sps:$4 sm:$0xff]  }
 0x387   : > { %8095 = vmatprep.subr.bf16.mxu0 %v11055_v10  ;;  %v11139_v10 = vld [vmem:[%s11596_s8 + $0x1dd4] ss:$8 sps:$4 sm:$0xff]  }
 0x389   : > { %7440 = vmatpush1.bf16.msra.mxu1 %v11050_v62  ;;  %v11134_v62 = vld [vmem:[%s11596_s8 + $0xdd0] ss:$8 sps:$4 sm:$0xff]  }
 0x38a   : > { %8096 = vmatpush1.bf16.msra.mxu0 %v11053_v12  ;;  %7450 = vmatprep.subr.bf16.mxu1 %v11058_v19  ;;  %v11137_v12 = vld [vmem:[%s11596_s8 + $0x1dd0] ss:$8 sps:$4 sm:$0xff]   ;;  %v11142_v19 = vld [vmem:[%s11596_s8 + $0xde4] ss:$8 sps:$4 sm:$0xff]  }
 0x38b   : > { %8106 = vmatprep.subr.bf16.mxu0 %v11061_v20  ;;  %v11145_v20 = vld [vmem:[%s11596_s8 + $0x1de4] ss:$8 sps:$4 sm:$0xff]  }
 0x38c   : > { %7442 = vmatmul.mubr.bf16.vlgmr.msra.gmra.mrb[0].mxu1 %v12718_v21 }
 0x38d   : > { %8098 = vmatmul.mubr.bf16.vlgmr.msra.gmra.mrb[0].mxu0 %v12722_v22  ;;  %7451 = vmatpush1.bf16.msra.mxu1 %v11056_v2  ;;  %v1488_v2 = vcombine.high %v12615_v38, %v12615_v38  ;;  %v11146_v38 = vld [vmem:[%s11596_s8 + $0xdf0] ss:$8 sps:$4 sm:$0xff]  }
 0x38e   : > { %8107 = vmatpush1.bf16.msra.mxu0 %v11059_v24  ;;  %7452 = vmatprep.subr.bf16.mxu1 %v11064_v13  ;;  %v1684_v24 = vcombine.high %v12618_v40, %v12618_v40  ;;  %v11140_v13 = vld [vmem:[%s11596_s8 + $0xde0] ss:$8 sps:$4 sm:$0xff]   ;;  %v11149_v40 = vld [vmem:[%s11596_s8 + $0x1df0] ss:$8 sps:$4 sm:$0xff]  }
 0x38f   : > { %8108 = vmatprep.subr.bf16.mxu0 %v11067_v53  ;;  %7482 = vmatprep.mubr.bf16.mxu1 %v1535_v23  ;;  %v11143_v53 = vld [vmem:[%s11596_s8 + $0x1de0] ss:$8 sps:$4 sm:$0xff]   ;;  %v11148_v23 = vld [vmem:[%s11596_s8 + $0xdf4] ss:$8 sps:$4 sm:$0xff]  }
 0x390   : > { %8138 = vmatprep.mubr.bf16.mxu0 %v1731_v59  ;;  %v11151_v59 = vld [vmem:[%s11596_s8 + $0x1df4] ss:$8 sps:$4 sm:$0xff]  }
 0x391   : > { %7453 = vmatpush1.bf16.msra.mxu1 %v11062_v56  ;;  %v12795_v56 = vrot.slane %v1488_v2, %v11676_v50  ;;  %v11218_v2 = vld [vmem:[%s11596_s8 + $0xeb0] ss:$8 sps:$4 sm:$0xff]  }
 0x392   : > { %8109 = vmatpush1.bf16.msra.mxu0 %v11065_v57  ;;  %7454 = vmatprep.subr.bf16.mxu1 %v11070_v11  ;;  %v12798_v57 = vrot.slane %v1684_v24, %v11676_v50  ;;  %v11154_v11 = vld [vmem:[%s11596_s8 + $0xe04] ss:$8 sps:$4 sm:$0xff]   ;;  %v11221_v24 = vld [vmem:[%s11596_s8 + $0x1eb0] ss:$8 sps:$4 sm:$0xff]  }
 0x393   : > { %8110 = vmatprep.subr.bf16.mxu0 %v11073_v27  ;;  %v11157_v27 = vld [vmem:[%s11596_s8 + $0x1e04] ss:$8 sps:$4 sm:$0xff]  }
 0x395   : > { %7455 = vmatpush1.bf16.msra.mxu1 %v11068_v61  ;;  %v1504_v61 = vcombine.high %v12795_v56, %v12795_v56 }
 0x396   : > { %8111 = vmatpush1.bf16.msra.mxu0 %v11071_v28  ;;  %7456 = vmatprep.subr.bf16.mxu1 %v11076_v29  ;;  %v1700_v28 = vcombine.high %v12798_v57, %v12798_v57  ;;  %v1533_v29 = vcombine.high %v12718_v21, %v12718_v21 }
 0x397   : > { %8112 = vmatprep.subr.bf16.mxu0 %v11079_v30  ;;  %v1729_v30 = vcombine.high %v12722_v22, %v12722_v22  ;;  %v11158_v22 = vld [vmem:[%s11596_s8 + $0xe10] ss:$8 sps:$4 sm:$0xff]  }
 0x398   : > { %v12820_v21 = vrot.slane %v1700_v28, %v11676_v50  ;;  %v11241_v28 = vld [vmem:[%s11596_s8 + $0x1ee4] ss:$8 sps:$4 sm:$0xff]  }
 0x399   : > { %7457 = vmatpush1.bf16.msra.mxu1 %v11074_v31  ;;  %v11152_v31 = vld [vmem:[%s11596_s8 + $0xe00] ss:$8 sps:$4 sm:$0xff]  }
 0x39a   : > { %8113 = vmatpush1.bf16.msra.mxu0 %v11077_v32  ;;  %7458 = vmatprep.subr.bf16.mxu1 %v11082_v16  ;;  %v11155_v32 = vld [vmem:[%s11596_s8 + $0x1e00] ss:$8 sps:$4 sm:$0xff]   ;;  %v11160_v16 = vld [vmem:[%s11596_s8 + $0xe14] ss:$8 sps:$4 sm:$0xff]  }
 0x39b   : > { %8114 = vmatprep.subr.bf16.mxu0 %v11085_v34  ;;  %v11163_v34 = vld [vmem:[%s11596_s8 + $0x1e14] ss:$8 sps:$4 sm:$0xff]  }
 0x39d   : > { %7459 = vmatpush1.bf16.msra.mxu1 %v11080_v35  ;;  %v12817_v35 = vrot.slane %v1504_v61, %v11676_v50  ;;  %v11238_v61 = vld [vmem:[%s11596_s8 + $0xee4] ss:$8 sps:$4 sm:$0xff]  }
 0x39e   : > { %8115 = vmatpush1.bf16.msra.mxu0 %v11083_v36  ;;  %7460 = vmatprep.subr.bf16.mxu1 %v11088_v43  ;;  %v11161_v36 = vld [vmem:[%s11596_s8 + $0x1e10] ss:$8 sps:$4 sm:$0xff]   ;;  %v11166_v43 = vld [vmem:[%s11596_s8 + $0xe24] ss:$8 sps:$4 sm:$0xff]  }
 0x39f   : > { %8116 = vmatprep.subr.bf16.mxu0 %v11091_v45  ;;  %v11169_v45 = vld [vmem:[%s11596_s8 + $0x1e24] ss:$8 sps:$4 sm:$0xff]  }
 0x3a1   : > { %7461 = vmatpush1.bf16.msra.mxu1 %v11086_v25  ;;  %v11164_v25 = vld [vmem:[%s11596_s8 + $0xe20] ss:$8 sps:$4 sm:$0xff]  }
 0x3a2   : > { %8117 = vmatpush1.bf16.msra.mxu0 %v11089_v46  ;;  %7462 = vmatprep.subr.bf16.mxu1 %v11094_v42  ;;  %v11167_v46 = vld [vmem:[%s11596_s8 + $0x1e20] ss:$8 sps:$4 sm:$0xff]   ;;  %v11172_v42 = vld [vmem:[%s11596_s8 + $0xe34] ss:$8 sps:$4 sm:$0xff]  }
 0x3a3   : > { %8118 = vmatprep.subr.bf16.mxu0 %v11097_v26  ;;  %v11175_v26 = vld [vmem:[%s11596_s8 + $0x1e34] ss:$8 sps:$4 sm:$0xff]  }
 0x3a5   : > { %7463 = vmatpush1.bf16.msra.mxu1 %v11092_v60  ;;  %v11170_v60 = vld [vmem:[%s11596_s8 + $0xe30] ss:$8 sps:$4 sm:$0xff]  }
 0x3a6   : > { %8119 = vmatpush1.bf16.msra.mxu0 %v11095_v14  ;;  %7464 = vmatprep.subr.bf16.mxu1 %v11100_v33  ;;  %v11173_v14 = vld [vmem:[%s11596_s8 + $0x1e30] ss:$8 sps:$4 sm:$0xff]   ;;  %v11178_v33 = vld [vmem:[%s11596_s8 + $0xe44] ss:$8 sps:$4 sm:$0xff]  }
 0x3a7   : > { %8120 = vmatprep.subr.bf16.mxu0 %v11103_v37  ;;  %v11181_v37 = vld [vmem:[%s11596_s8 + $0x1e44] ss:$8 sps:$4 sm:$0xff]  }
 0x3a9   : > { %7465 = vmatpush1.bf16.msra.mxu1 %v11098_v15  ;;  %v11176_v15 = vld [vmem:[%s11596_s8 + $0xe40] ss:$8 sps:$4 sm:$0xff]  }
 0x3aa   : > { %8121 = vmatpush1.bf16.msra.mxu0 %v11101_v48  ;;  %7466 = vmatprep.subr.bf16.mxu1 %v11106_v17  ;;  %v11179_v48 = vld [vmem:[%s11596_s8 + $0x1e40] ss:$8 sps:$4 sm:$0xff]   ;;  %v11184_v17 = vld [vmem:[%s11596_s8 + $0xe54] ss:$8 sps:$4 sm:$0xff]  }
 0x3ab   : > { %8122 = vmatprep.subr.bf16.mxu0 %v11109_v49  ;;  %v11187_v49 = vld [vmem:[%s11596_s8 + $0x1e54] ss:$8 sps:$4 sm:$0xff]  }
 0x3ad   : > { %7467 = vmatpush1.bf16.msra.mxu1 %v11104_v51  ;;  %v11182_v51 = vld [vmem:[%s11596_s8 + $0xe50] ss:$8 sps:$4 sm:$0xff]  }
 0x3ae   : > { %8123 = vmatpush1.bf16.msra.mxu0 %v11107_v52  ;;  %7468 = vmatprep.subr.bf16.mxu1 %v11112_v54  ;;  %v11185_v52 = vld [vmem:[%s11596_s8 + $0x1e50] ss:$8 sps:$4 sm:$0xff]   ;;  %v11190_v54 = vld [vmem:[%s11596_s8 + $0xe64] ss:$8 sps:$4 sm:$0xff]  }
 0x3af   : > { %8124 = vmatprep.subr.bf16.mxu0 %v11115_v55  ;;  %v11193_v55 = vld [vmem:[%s11596_s8 + $0x1e64] ss:$8 sps:$4 sm:$0xff]  }
 0x3b1   : > { %7469 = vmatpush1.bf16.msra.mxu1 %v11110_v63  ;;  %v11188_v63 = vld [vmem:[%s11596_s8 + $0xe60] ss:$8 sps:$4 sm:$0xff]  }
 0x3b2   : > { %8125 = vmatpush1.bf16.msra.mxu0 %v11113_v0  ;;  %7470 = vmatprep.subr.bf16.mxu1 %v11118_v41  ;;  %v11191_v0 = vld [vmem:[%s11596_s8 + $0x1e60] ss:$8 sps:$4 sm:$0xff]   ;;  %v11196_v41 = vld [vmem:[%s11596_s8 + $0xe74] ss:$8 sps:$4 sm:$0xff]  }
 0x3b3   : > { %8126 = vmatprep.subr.bf16.mxu0 %v11121_v1  ;;  %v11199_v1 = vld [vmem:[%s11596_s8 + $0x1e74] ss:$8 sps:$4 sm:$0xff]  }
 0x3b5   : > { %7471 = vmatpush1.bf16.msra.mxu1 %v11116_v47  ;;  %v11194_v47 = vld [vmem:[%s11596_s8 + $0xe70] ss:$8 sps:$4 sm:$0xff]  }
 0x3b6   : > { %8127 = vmatpush1.bf16.msra.mxu0 %v11119_v3  ;;  %7472 = vmatprep.subr.bf16.mxu1 %v11124_v39  ;;  %v11197_v3 = vld [vmem:[%s11596_s8 + $0x1e70] ss:$8 sps:$4 sm:$0xff]   ;;  %v11202_v39 = vld [vmem:[%s11596_s8 + $0xe84] ss:$8 sps:$4 sm:$0xff]  }
 0x3b7   : > { %8128 = vmatprep.subr.bf16.mxu0 %v11127_v58  ;;  %v11205_v58 = vld [vmem:[%s11596_s8 + $0x1e84] ss:$8 sps:$4 sm:$0xff]  }
 0x3b9   : > { %7473 = vmatpush1.bf16.msra.mxu1 %v11122_v18  ;;  %v11200_v18 = vld [vmem:[%s11596_s8 + $0xe80] ss:$8 sps:$4 sm:$0xff]  }
 0x3ba   : > { %8129 = vmatpush1.bf16.msra.mxu0 %v11125_v4  ;;  %7474 = vmatprep.subr.bf16.mxu1 %v11130_v5  ;;  %v11203_v4 = vld [vmem:[%s11596_s8 + $0x1e80] ss:$8 sps:$4 sm:$0xff]   ;;  %v11208_v5 = vld [vmem:[%s11596_s8 + $0xe94] ss:$8 sps:$4 sm:$0xff]  }
 0x3bb   : > { %8130 = vmatprep.subr.bf16.mxu0 %v11133_v6  ;;  %v11211_v6 = vld [vmem:[%s11596_s8 + $0x1e94] ss:$8 sps:$4 sm:$0xff]  }
 0x3bd   : > { %7475 = vmatpush1.bf16.msra.mxu1 %v11128_v7  ;;  %v11206_v7 = vld [vmem:[%s11596_s8 + $0xe90] ss:$8 sps:$4 sm:$0xff]  }
 0x3be   : > { %8131 = vmatpush1.bf16.msra.mxu0 %v11131_v8  ;;  %7476 = vmatprep.subr.bf16.mxu1 %v11136_v9  ;;  %v11209_v8 = vld [vmem:[%s11596_s8 + $0x1e90] ss:$8 sps:$4 sm:$0xff]   ;;  %v11214_v9 = vld [vmem:[%s11596_s8 + $0xea4] ss:$8 sps:$4 sm:$0xff]  }
 0x3bf   : > { %8132 = vmatprep.subr.bf16.mxu0 %v11139_v10  ;;  %v11217_v10 = vld [vmem:[%s11596_s8 + $0x1ea4] ss:$8 sps:$4 sm:$0xff]  }
 0x3c1   : > { %7477 = vmatpush1.bf16.msra.mxu1 %v11134_v62  ;;  %v11212_v62 = vld [vmem:[%s11596_s8 + $0xea0] ss:$8 sps:$4 sm:$0xff]  }
 0x3c2   : > { %8133 = vmatpush1.bf16.msra.mxu0 %v11137_v12  ;;  %7478 = vmatprep.subr.bf16.mxu1 %v11142_v19  ;;  %v11215_v12 = vld [vmem:[%s11596_s8 + $0x1ea0] ss:$8 sps:$4 sm:$0xff]   ;;  %v11220_v19 = vld [vmem:[%s11596_s8 + $0xeb4] ss:$8 sps:$4 sm:$0xff]  }
 0x3c3   : > { %8134 = vmatprep.subr.bf16.mxu0 %v11145_v20  ;;  %v11223_v20 = vld [vmem:[%s11596_s8 + $0x1eb4] ss:$8 sps:$4 sm:$0xff]  }
 0x3c5   : > { %7479 = vmatpush1.bf16.msra.mxu1 %v11140_v13  ;;  %v11226_v13 = vld [vmem:[%s11596_s8 + $0xec4] ss:$8 sps:$4 sm:$0xff]  }
 0x3c6   : > { %8135 = vmatpush1.bf16.msra.mxu0 %v11143_v53  ;;  %7480 = vmatprep.subr.bf16.mxu1 %v11148_v23  ;;  %v11229_v53 = vld [vmem:[%s11596_s8 + $0x1ec4] ss:$8 sps:$4 sm:$0xff]   ;;  %v11224_v23 = vld [vmem:[%s11596_s8 + $0xec0] ss:$8 sps:$4 sm:$0xff]  }
 0x3c7   : > { %8136 = vmatprep.subr.bf16.mxu0 %v11151_v59  ;;  %v11227_v59 = vld [vmem:[%s11596_s8 + $0x1ec0] ss:$8 sps:$4 sm:$0xff]  }
 0x3c9   : > { %7481 = vmatpush1.bf16.msra.mxu1 %v11146_v38  ;;  %v11232_v38 = vld [vmem:[%s11596_s8 + $0xed4] ss:$8 sps:$4 sm:$0xff]  }
 0x3ca   : > { %8137 = vmatpush1.bf16.msra.mxu0 %v11149_v40  ;;  %7491 = vmatprep.subr.bf16.mxu1 %v11154_v11  ;;  %v11235_v40 = vld [vmem:[%s11596_s8 + $0x1ed4] ss:$8 sps:$4 sm:$0xff]   ;;  %v11230_v11 = vld [vmem:[%s11596_s8 + $0xed0] ss:$8 sps:$4 sm:$0xff]  }
 0x3cb   : > { %8147 = vmatprep.subr.bf16.mxu0 %v11157_v27  ;;  %v11233_v27 = vld [vmem:[%s11596_s8 + $0x1ed0] ss:$8 sps:$4 sm:$0xff]  }
 0x3cc   : > { %7483 = vmatmul.mubr.bf16.vlgmr.msra.gmra.mrb[0].mxu1 %v1533_v29  ;;  %v11236_v29 = vld [vmem:[%s11596_s8 + $0xee0] ss:$8 sps:$4 sm:$0xff]  }
 0x3cd   : > { %8139 = vmatmul.mubr.bf16.vlgmr.msra.gmra.mrb[0].mxu0 %v1729_v30  ;;  %7492 = vmatpush1.bf16.msra.mxu1 %v11152_v31  ;;  %v11239_v30 = vld [vmem:[%s11596_s8 + $0x1ee0] ss:$8 sps:$4 sm:$0xff]   ;;  %v11244_v31 = vld [vmem:[%s11596_s8 + $0xef4] ss:$8 sps:$4 sm:$0xff]  }
 0x3ce   : > { %8148 = vmatpush1.bf16.msra.mxu0 %v11155_v32  ;;  %7493 = vmatprep.subr.bf16.mxu1 %v11160_v16  ;;  %v11247_v32 = vld [vmem:[%s11596_s8 + $0x1ef4] ss:$8 sps:$4 sm:$0xff]   ;;  %v11242_v16 = vld [vmem:[%s11596_s8 + $0xef0] ss:$8 sps:$4 sm:$0xff]  }
 0x3cf   : > { %8149 = vmatprep.subr.bf16.mxu0 %v11163_v34  ;;  %7523 = vmatprep.mubr.bf16.mxu1 %v12817_v35  ;;  %v11245_v34 = vld [vmem:[%s11596_s8 + $0x1ef0] ss:$8 sps:$4 sm:$0xff]  }
 0x3d0   : > { %8179 = vmatprep.mubr.bf16.mxu0 %v12820_v21 }
 0x3d1   : > { %7494 = vmatpush1.bf16.msra.mxu1 %v11158_v22  ;;  %v11251_v22 = vld [vmem:[%s11596_s8 + $0xf04] ss:$8 sps:$4 sm:$0xff]  }
 0x3d2   : > { %8150 = vmatpush1.bf16.msra.mxu0 %v11161_v36  ;;  %7495 = vmatprep.subr.bf16.mxu1 %v11166_v43  ;;  %v11255_v36 = vld [vmem:[%s11596_s8 + $0x1f04] ss:$8 sps:$4 sm:$0xff]   ;;  %v12886_v43 = vrot.slane %v12795_v56, %v11676_v50  ;;  %v1536_v56 = vcombine.high %v12817_v35, %v12817_v35 }
 0x3d3   : > { %8151 = vmatprep.subr.bf16.mxu0 %v11169_v45  ;;  %v12890_v45 = vrot.slane %v12798_v57, %v11676_v50  ;;  %v11256_v50 = vld [vmem:[%s11596_s8 + $0xf10] ss:$8 sps:$4 sm:$0xff]   ;;  %v11264_v35 = vld [vmem:[%s11596_s8 + $0xf24] ss:$8 sps:$4 sm:$0xff]  }
 0x3d4   : > { %v11259_v57 = vld [vmem:[%s11596_s8 + $0x1f10] ss:$8 sps:$4 sm:$0xff]  }
 0x3d5   : > { %7496 = vmatpush1.bf16.msra.mxu1 %v11164_v25  ;;  %v11249_v25 = vld [vmem:[%s11596_s8 + $0xf00] ss:$8 sps:$4 sm:$0xff]  }
 0x3d6   : > { %8152 = vmatpush1.bf16.msra.mxu0 %v11167_v46  ;;  %7497 = vmatprep.subr.bf16.mxu1 %v11172_v42  ;;  %v11253_v46 = vld [vmem:[%s11596_s8 + $0x1f00] ss:$8 sps:$4 sm:$0xff]   ;;  %v11258_v42 = vld [vmem:[%s11596_s8 + $0xf14] ss:$8 sps:$4 sm:$0xff]  }
 0x3d7   : > { %8153 = vmatprep.subr.bf16.mxu0 %v11175_v26  ;;  %v11261_v26 = vld [vmem:[%s11596_s8 + $0x1f14] ss:$8 sps:$4 sm:$0xff]  }
 0x3d9   : > { %7498 = vmatpush1.bf16.msra.mxu1 %v11170_v60  ;;  %v1732_v60 = vcombine.high %v12820_v21, %v12820_v21  ;;  %v11262_v21 = vld [vmem:[%s11596_s8 + $0xf20] ss:$8 sps:$4 sm:$0xff]  }
 0x3da   : > { %8154 = vmatpush1.bf16.msra.mxu0 %v11173_v14  ;;  %7499 = vmatprep.subr.bf16.mxu1 %v11178_v33  ;;  %v11267_v14 = vld [vmem:[%s11596_s8 + $0x1f24] ss:$8 sps:$4 sm:$0xff]   ;;  %v11265_v33 = vld [vmem:[%s11596_s8 + $0x1f20] ss:$8 sps:$4 sm:$0xff]  }
 0x3db   : > { %8155 = vmatprep.subr.bf16.mxu0 %v11181_v37  ;;  %v11270_v37 = vld [vmem:[%s11596_s8 + $0xf34] ss:$8 sps:$4 sm:$0xff]  }
 0x3dd   : > { %7500 = vmatpush1.bf16.msra.mxu1 %v11176_v15  ;;  %v11273_v15 = vld [vmem:[%s11596_s8 + $0x1f34] ss:$8 sps:$4 sm:$0xff]  }
 0x3de   : > { %8156 = vmatpush1.bf16.msra.mxu0 %v11179_v48  ;;  %7501 = vmatprep.subr.bf16.mxu1 %v11184_v17  ;;  %v11268_v48 = vld [vmem:[%s11596_s8 + $0xf30] ss:$8 sps:$4 sm:$0xff]  }
 0x3df   : > { %8157 = vmatprep.subr.bf16.mxu0 %v11187_v49  ;;  %v11271_v17 = vld [vmem:[%s11596_s8 + $0x1f30] ss:$8 sps:$4 sm:$0xff]   ;;  %v11276_v49 = vld [vmem:[%s11596_s8 + $0xf44] ss:$8 sps:$4 sm:$0xff]  }
 0x3e1   : > { %7502 = vmatpush1.bf16.msra.mxu1 %v11182_v51  ;;  %v11279_v51 = vld [vmem:[%s11596_s8 + $0x1f44] ss:$8 sps:$4 sm:$0xff]  }
 0x3e2   : > { %8158 = vmatpush1.bf16.msra.mxu0 %v11185_v52  ;;  %7503 = vmatprep.subr.bf16.mxu1 %v11190_v54  ;;  %v11274_v52 = vld [vmem:[%s11596_s8 + $0xf40] ss:$8 sps:$4 sm:$0xff]  }
 0x3e3   : > { %8159 = vmatprep.subr.bf16.mxu0 %v11193_v55  ;;  %v11277_v54 = vld [vmem:[%s11596_s8 + $0x1f40] ss:$8 sps:$4 sm:$0xff]   ;;  %v11282_v55 = vld [vmem:[%s11596_s8 + $0xf54] ss:$8 sps:$4 sm:$0xff]  }
 0x3e5   : > { %7504 = vmatpush1.bf16.msra.mxu1 %v11188_v63  ;;  %v11285_v63 = vld [vmem:[%s11596_s8 + $0x1f54] ss:$8 sps:$4 sm:$0xff]  }
 0x3e6   : > { %8160 = vmatpush1.bf16.msra.mxu0 %v11191_v0  ;;  %7505 = vmatprep.subr.bf16.mxu1 %v11196_v41  ;;  %v11280_v0 = vld [vmem:[%s11596_s8 + $0xf50] ss:$8 sps:$4 sm:$0xff]  }
 0x3e7   : > { %8161 = vmatprep.subr.bf16.mxu0 %v11199_v1  ;;  %v11283_v41 = vld [vmem:[%s11596_s8 + $0x1f50] ss:$8 sps:$4 sm:$0xff]   ;;  %v11288_v1 = vld [vmem:[%s11596_s8 + $0xf64] ss:$8 sps:$4 sm:$0xff]  }
 0x3e9   : > { %7506 = vmatpush1.bf16.msra.mxu1 %v11194_v47  ;;  %v11291_v47 = vld [vmem:[%s11596_s8 + $0x1f64] ss:$8 sps:$4 sm:$0xff]  }
 0x3ea   : > { %8162 = vmatpush1.bf16.msra.mxu0 %v11197_v3  ;;  %7507 = vmatprep.subr.bf16.mxu1 %v11202_v39  ;;  %v11286_v3 = vld [vmem:[%s11596_s8 + $0xf60] ss:$8 sps:$4 sm:$0xff]  }
 0x3eb   : > { %8163 = vmatprep.subr.bf16.mxu0 %v11205_v58  ;;  %v11289_v39 = vld [vmem:[%s11596_s8 + $0x1f60] ss:$8 sps:$4 sm:$0xff]   ;;  %v11294_v58 = vld [vmem:[%s11596_s8 + $0xf74] ss:$8 sps:$4 sm:$0xff]  }
 0x3ed   : > { %7508 = vmatpush1.bf16.msra.mxu1 %v11200_v18  ;;  %v11297_v18 = vld [vmem:[%s11596_s8 + $0x1f74] ss:$8 sps:$4 sm:$0xff]  }
 0x3ee   : > { %8164 = vmatpush1.bf16.msra.mxu0 %v11203_v4  ;;  %7509 = vmatprep.subr.bf16.mxu1 %v11208_v5  ;;  %v11292_v4 = vld [vmem:[%s11596_s8 + $0xf70] ss:$8 sps:$4 sm:$0xff]  }
 0x3ef   : > { %8165 = vmatprep.subr.bf16.mxu0 %v11211_v6  ;;  %v11295_v5 = vld [vmem:[%s11596_s8 + $0x1f70] ss:$8 sps:$4 sm:$0xff]   ;;  %v11300_v6 = vld [vmem:[%s11596_s8 + $0xf84] ss:$8 sps:$4 sm:$0xff]  }
 0x3f1   : > { %7510 = vmatpush1.bf16.msra.mxu1 %v11206_v7  ;;  %v11303_v7 = vld [vmem:[%s11596_s8 + $0x1f84] ss:$8 sps:$4 sm:$0xff]  }
 0x3f2   : > { %8166 = vmatpush1.bf16.msra.mxu0 %v11209_v8  ;;  %7511 = vmatprep.subr.bf16.mxu1 %v11214_v9  ;;  %v11298_v8 = vld [vmem:[%s11596_s8 + $0xf80] ss:$8 sps:$4 sm:$0xff]  }
 0x3f3   : > { %8167 = vmatprep.subr.bf16.mxu0 %v11217_v10  ;;  %v11301_v9 = vld [vmem:[%s11596_s8 + $0x1f80] ss:$8 sps:$4 sm:$0xff]   ;;  %v11306_v10 = vld [vmem:[%s11596_s8 + $0xf94] ss:$8 sps:$4 sm:$0xff]  }
 0x3f5   : > { %7512 = vmatpush1.bf16.msra.mxu1 %v11212_v62  ;;  %v11309_v62 = vld [vmem:[%s11596_s8 + $0x1f94] ss:$8 sps:$4 sm:$0xff]  }
 0x3f6   : > { %8168 = vmatpush1.bf16.msra.mxu0 %v11215_v12  ;;  %7513 = vmatprep.subr.bf16.mxu1 %v11220_v19  ;;  %v11304_v12 = vld [vmem:[%s11596_s8 + $0xf90] ss:$8 sps:$4 sm:$0xff]  }
 0x3f7   : > { %8169 = vmatprep.subr.bf16.mxu0 %v11223_v20  ;;  %v11307_v19 = vld [vmem:[%s11596_s8 + $0x1f90] ss:$8 sps:$4 sm:$0xff]   ;;  %v11312_v20 = vld [vmem:[%s11596_s8 + $0xfa4] ss:$8 sps:$4 sm:$0xff]  }
 0x3f9   : > { %7514 = vmatpush1.bf16.msra.mxu1 %v11218_v2  ;;  %v11315_v2 = vld [vmem:[%s11596_s8 + $0x1fa4] ss:$8 sps:$4 sm:$0xff]  }
 0x3fa   : > { %8170 = vmatpush1.bf16.msra.mxu0 %v11221_v24  ;;  %7515 = vmatprep.subr.bf16.mxu1 %v11226_v13  ;;  %v11310_v24 = vld [vmem:[%s11596_s8 + $0xfa0] ss:$8 sps:$4 sm:$0xff]  }
 0x3fb   : > { %8171 = vmatprep.subr.bf16.mxu0 %v11229_v53  ;;  %v11313_v13 = vld [vmem:[%s11596_s8 + $0x1fa0] ss:$8 sps:$4 sm:$0xff]   ;;  %v11318_v53 = vld [vmem:[%s11596_s8 + $0xfb4] ss:$8 sps:$4 sm:$0xff]  }
 0x3fd   : > { %7516 = vmatpush1.bf16.msra.mxu1 %v11224_v23  ;;  %v11321_v23 = vld [vmem:[%s11596_s8 + $0x1fb4] ss:$8 sps:$4 sm:$0xff]  }
 0x3fe   : > { %8172 = vmatpush1.bf16.msra.mxu0 %v11227_v59  ;;  %7517 = vmatprep.subr.bf16.mxu1 %v11232_v38  ;;  %v11316_v59 = vld [vmem:[%s11596_s8 + $0xfb0] ss:$8 sps:$4 sm:$0xff]  }
 0x3ff   : > { %8173 = vmatprep.subr.bf16.mxu0 %v11235_v40  ;;  %v11319_v38 = vld [vmem:[%s11596_s8 + $0x1fb0] ss:$8 sps:$4 sm:$0xff]   ;;  %v11324_v40 = vld [vmem:[%s11596_s8 + $0xfc4] ss:$8 sps:$4 sm:$0xff]  }
 0x401   : > { %7518 = vmatpush1.bf16.msra.mxu1 %v11230_v11  ;;  %v11327_v11 = vld [vmem:[%s11596_s8 + $0x1fc4] ss:$8 sps:$4 sm:$0xff]  }
 0x402   : > { %8174 = vmatpush1.bf16.msra.mxu0 %v11233_v27  ;;  %7519 = vmatprep.subr.bf16.mxu1 %v11238_v61  ;;  %v11322_v27 = vld [vmem:[%s11596_s8 + $0xfc0] ss:$8 sps:$4 sm:$0xff]  }
 0x403   : > { %8175 = vmatprep.subr.bf16.mxu0 %v11241_v28  ;;  %v11325_v61 = vld [vmem:[%s11596_s8 + $0x1fc0] ss:$8 sps:$4 sm:$0xff]   ;;  %v11330_v28 = vld [vmem:[%s11596_s8 + $0xfd4] ss:$8 sps:$4 sm:$0xff]  }
 0x405   : > { %7520 = vmatpush1.bf16.msra.mxu1 %v11236_v29  ;;  %v11333_v29 = vld [vmem:[%s11596_s8 + $0x1fd4] ss:$8 sps:$4 sm:$0xff]  }
 0x406   : > { %8176 = vmatpush1.bf16.msra.mxu0 %v11239_v30  ;;  %7521 = vmatprep.subr.bf16.mxu1 %v11244_v31  ;;  %v11328_v30 = vld [vmem:[%s11596_s8 + $0xfd0] ss:$8 sps:$4 sm:$0xff]  }
 0x407   : > { %8177 = vmatprep.subr.bf16.mxu0 %v11247_v32  ;;  %v11331_v31 = vld [vmem:[%s11596_s8 + $0x1fd0] ss:$8 sps:$4 sm:$0xff]   ;;  %v11336_v32 = vld [vmem:[%s11596_s8 + $0xfe4] ss:$8 sps:$4 sm:$0xff]  }
 0x409   : > { %7522 = vmatpush1.bf16.msra.mxu1 %v11242_v16  ;;  %v11339_v16 = vld [vmem:[%s11596_s8 + $0x1fe4] ss:$8 sps:$4 sm:$0xff]  }
 0x40a   : > { %8178 = vmatpush1.bf16.msra.mxu0 %v11245_v34  ;;  %7532 = vmatprep.subr.bf16.mxu1 %v11251_v22  ;;  %v11334_v34 = vld [vmem:[%s11596_s8 + $0xfe0] ss:$8 sps:$4 sm:$0xff]  }
 0x40b   : > { %8188 = vmatprep.subr.bf16.mxu0 %v11255_v36  ;;  %v11337_v22 = vld [vmem:[%s11596_s8 + $0x1fe0] ss:$8 sps:$4 sm:$0xff]   ;;  %v11342_v36 = vld [vmem:[%s11596_s8 + $0xff4] ss:$8 sps:$4 sm:$0xff]  }
 0x40c   : > { %7524 = vmatmul.mubr.bf16.vlgmr.msra.gmra.mrb[0].mxu1 %v12886_v43 }
 0x40d   : > { %8180 = vmatmul.mubr.bf16.vlgmr.msra.gmra.mrb[0].mxu0 %v12890_v45  ;;  %7533 = vmatpush1.bf16.msra.mxu1 %v11249_v25  ;;  %v11345_v25 = vld [vmem:[%s11596_s8 + $0x1ff4] ss:$8 sps:$4 sm:$0xff]  }
 0x40e   : > { %8189 = vmatpush1.bf16.msra.mxu0 %v11253_v46  ;;  %7534 = vmatprep.subr.bf16.mxu1 %v11258_v42  ;;  %v11340_v46 = vld [vmem:[%s11596_s8 + $0xff0] ss:$8 sps:$4 sm:$0xff]  }
 0x40f   : > { %8190 = vmatprep.subr.bf16.mxu0 %v11261_v26  ;;  %7564 = vmatprep.mubr.bf16.mxu1 %v1536_v56  ;;  %v11343_v42 = vld [vmem:[%s11596_s8 + $0x1ff0] ss:$8 sps:$4 sm:$0xff]   ;;  %v1534_v26 = vcombine.high %v12886_v43, %v12886_v43  ;;  %v1730_v56 = vcombine.high %v12890_v45, %v12890_v45 }
 0x410   : > { %8220 = vmatprep.mubr.bf16.mxu0 %v1732_v60  ;;  %v11454_v60 = vmov 1983009808  }
 0x411   : > { %7535 = vmatpush1.bf16.msra.mxu1 %v11256_v50  ;;  %v8233_v50 = vunpack.c.l.s4 %v11454_v60 }
 0x412   : > { %8191 = vmatpush1.bf16.msra.mxu0 %v11259_v57  ;;  %7536 = vmatprep.subr.bf16.mxu1 %v11264_v35 }
 0x413   : > { %8192 = vmatprep.subr.bf16.mxu0 %v11267_v14  ;;  %v8234_v57 = vunpack.c.0.s8 %v8233_v50 }
 0x415   : > { %7537 = vmatpush1.bf16.msra.mxu1 %v11262_v21 }
 0x416   : > { %8193 = vmatpush1.bf16.msra.mxu0 %v11265_v33  ;;  %7538 = vmatprep.subr.bf16.mxu1 %v11270_v37 }
 0x417   : > { %8194 = vmatprep.subr.bf16.mxu0 %v11273_v15 }
 0x419   : > { %7539 = vmatpush1.bf16.msra.mxu1 %v11268_v48  ;;  %v12965_v48 = vsub.s32 %v8234_v57, %v11668_v44 }
 0x41a   : > { %8195 = vmatpush1.bf16.msra.mxu0 %v11271_v17  ;;  %7540 = vmatprep.subr.bf16.mxu1 %v11276_v49 }
 0x41b   : > { %8196 = vmatprep.subr.bf16.mxu0 %v11279_v51 }
 0x41d   : > { %7541 = vmatpush1.bf16.msra.mxu1 %v11274_v52  ;;  %v300_v52 = vld [vmem:[#allocation2] sm:$0xf] }
 0x41e   : > { %8197 = vmatpush1.bf16.msra.mxu0 %v11277_v54  ;;  %7542 = vmatprep.subr.bf16.mxu1 %v11282_v55 }
 0x41f   : > { %8198 = vmatprep.subr.bf16.mxu0 %v11285_v63  ;;  %v8284_v63 = vld [vmem:[%s11621_s30 + $0x80] sm:$0xff] (!%p9532_p9) }
 0x421   : > { %7543 = vmatpush1.bf16.msra.mxu1 %v11280_v0  ;;  %v8285_v0 = vld [vmem:[%s11621_s30 + $0x88] sm:$0xff] (!%p9532_p9) }
 0x422   : > { %8199 = vmatpush1.bf16.msra.mxu0 %v11283_v41  ;;  %7544 = vmatprep.subr.bf16.mxu1 %v11288_v1  ;;  %v8268_v41 = vld [vmem:[%s11621_s30] sm:$0xff] (!%p9532_p9)  ;;  %v9571_v1 = vpack.c.bf16 (!%p9532_p9), %v8285_v0, %v8284_v63 }
 0x423   : > { %8200 = vmatprep.subr.bf16.mxu0 %v11291_v47  ;;  %v8269_v47 = vld [vmem:[%s11621_s30 + $0x8] sm:$0xff] (!%p9532_p9) }
 0x425   : > { %7545 = vmatpush1.bf16.msra.mxu1 %v11286_v3  ;;  %v8286_v3 = vld [vmem:[%s11621_s30 + $0x90] sm:$0xff] (!%p9532_p9) }
 0x426   : > { %8201 = vmatpush1.bf16.msra.mxu0 %v11289_v39  ;;  %7546 = vmatprep.subr.bf16.mxu1 %v11294_v58  ;;  %v8287_v39 = vld [vmem:[%s11621_s30 + $0x98] sm:$0xff] (!%p9532_p9)  ;;  %v9573_v58 = vpack.c.bf16 (!%p9532_p9), %v8269_v47, %v8268_v41 }
 0x427   : > { %8202 = vmatprep.subr.bf16.mxu0 %v11297_v18  ;;  %v9575_v18 = vpack.c.bf16 (!%p9532_p9), %v8287_v39, %v8286_v3 }
 0x429   : > { %7547 = vmatpush1.bf16.msra.mxu1 %v11292_v4  ;;  %v8270_v4 = vld [vmem:[%s11621_s30 + $0x10] sm:$0xff] (!%p9532_p9) }
 0x42a   : > { %8203 = vmatpush1.bf16.msra.mxu0 %v11295_v5  ;;  %7548 = vmatprep.subr.bf16.mxu1 %v11300_v6  ;;  %v8271_v5 = vld [vmem:[%s11621_s30 + $0x18] sm:$0xff] (!%p9532_p9)  ;;  %v8288_v6 = vld [vmem:[%s11621_s30 + $0xa0] sm:$0xff] (!%p9532_p9) }
 0x42b   : > { %8204 = vmatprep.subr.bf16.mxu0 %v11303_v7  ;;  %v8289_v7 = vld [vmem:[%s11621_s30 + $0xa8] sm:$0xff] (!%p9532_p9) }
 0x42d   : > { %7549 = vmatpush1.bf16.msra.mxu1 %v11298_v8  ;;  %v9577_v8 = vpack.c.bf16 (!%p9532_p9), %v8271_v5, %v8270_v4 }
 0x42e   : > { %8205 = vmatpush1.bf16.msra.mxu0 %v11301_v9  ;;  %7550 = vmatprep.subr.bf16.mxu1 %v11306_v10  ;;  %v9579_v9 = vpack.c.bf16 (!%p9532_p9), %v8289_v7, %v8288_v6  ;;  %v8272_v10 = vld [vmem:[%s11621_s30 + $0x20] sm:$0xff] (!%p9532_p9) }
 0x42f   : > { %8206 = vmatprep.subr.bf16.mxu0 %v11309_v62  ;;  %v8273_v62 = vld [vmem:[%s11621_s30 + $0x28] sm:$0xff] (!%p9532_p9) }
 0x431   : > { %7551 = vmatpush1.bf16.msra.mxu1 %v11304_v12  ;;  %v8290_v12 = vld [vmem:[%s11621_s30 + $0xb0] sm:$0xff] (!%p9532_p9) }
 0x432   : > { %8207 = vmatpush1.bf16.msra.mxu0 %v11307_v19  ;;  %7552 = vmatprep.subr.bf16.mxu1 %v11312_v20  ;;  %v8291_v19 = vld [vmem:[%s11621_s30 + $0xb8] sm:$0xff] (!%p9532_p9)  ;;  %v9581_v20 = vpack.c.bf16 (!%p9532_p9), %v8273_v62, %v8272_v10 }
 0x433   : > { %8208 = vmatprep.subr.bf16.mxu0 %v11315_v2  ;;  %v8251_v2 = vsub.s32 (!%p9532_p9), 0, %v11668_v44 }
 0x435   : > { %7553 = vmatpush1.bf16.msra.mxu1 %v11310_v24  ;;  %v8255_v24 = vsub.s32 (!%p9532_p9), 1, %v11668_v44 }
 0x436   : > { %8209 = vmatpush1.bf16.msra.mxu0 %v11313_v13  ;;  %7554 = vmatprep.subr.bf16.mxu1 %v11318_v53  ;;  %v9583_v13 = vpack.c.bf16 (!%p9532_p9), %v8291_v19, %v8290_v12  ;;  %v8274_v53 = vld [vmem:[%s11621_s30 + $0x30] sm:$0xff] (!%p9532_p9) }
 0x437   : > { %8210 = vmatprep.subr.bf16.mxu0 %v11321_v23  ;;  %v8275_v23 = vld [vmem:[%s11621_s30 + $0x38] sm:$0xff] (!%p9532_p9) }
 0x439   : > { %7555 = vmatpush1.bf16.msra.mxu1 %v11316_v59  ;;  %v8292_v59 = vld [vmem:[%s11621_s30 + $0xc0] sm:$0xff] (!%p9532_p9) }
 0x43a   : > { %8211 = vmatpush1.bf16.msra.mxu0 %v11319_v38  ;;  %7556 = vmatprep.subr.bf16.mxu1 %v11324_v40  ;;  %v8293_v38 = vld [vmem:[%s11621_s30 + $0xc8] sm:$0xff] (!%p9532_p9)  ;;  %v8247_v40 = vld [vmem:[%s283_s12] sm:$0x3] (!%p9532_p9) }
 0x43b   : > { %8212 = vmatprep.subr.bf16.mxu0 %v11327_v11  ;;  %v9585_v11 = vpack.c.bf16 (!%p9532_p9), %v8275_v23, %v8274_v53  ;;  %v9587_v44 = vpack.c.bf16 (!%p9532_p9), %v8293_v38, %v8292_v59 }
 0x43d   : > { %7557 = vmatpush1.bf16.msra.mxu1 %v11322_v27  ;;  %v8252_v27 = vrot.slane (!%p9532_p9), %v8247_v40, %v8251_v2 }
 0x43e   : > { %8213 = vmatpush1.bf16.msra.mxu0 %v11325_v61  ;;  %7558 = vmatprep.subr.bf16.mxu1 %v11330_v28  ;;  %v8256_v61 = vrot.slane (!%p9532_p9), %v8247_v40, %v8255_v24  ;;  %v8276_v28 = vld [vmem:[%s11621_s30 + $0x40] sm:$0xff] (!%p9532_p9) }
 0x43f   : > { %8214 = vmatprep.subr.bf16.mxu0 %v11333_v29  ;;  %v8277_v29 = vld [vmem:[%s11621_s30 + $0x48] sm:$0xff] (!%p9532_p9) }
 0x441   : > { %7559 = vmatpush1.bf16.msra.mxu1 %v11328_v30  ;;  %v8294_v30 = vld [vmem:[%s11621_s30 + $0xd0] sm:$0xff] (!%p9532_p9) }
 0x442   : > { %8215 = vmatpush1.bf16.msra.mxu0 %v11331_v31  ;;  %7560 = vmatprep.subr.bf16.mxu1 %v11336_v32  ;;  %v8295_v31 = vld [vmem:[%s11621_s30 + $0xd8] sm:$0xff] (!%p9532_p9)  ;;  %v8257_v32 = vcombine.low (!%p9532_p9), %v8252_v27, %v8256_v61 }
 0x443   : > { %8216 = vmatprep.subr.bf16.mxu0 %v11339_v16 }
 0x445   : > { %7561 = vmatpush1.bf16.msra.mxu1 %v11334_v34  ;;  %v9589_v34 = vpack.c.bf16 (!%p9532_p9), %v8277_v29, %v8276_v28 }
 0x446   : > { %8217 = vmatpush1.bf16.msra.mxu0 %v11337_v22  ;;  %7562 = vmatprep.subr.bf16.mxu1 %v11342_v36  ;;  %v8264_v22 = vrot.slane (!%p9532_p9), %v8257_v32, %v12965_v48  ;;  %v9591_v36 = vpack.c.bf16 (!%p9532_p9), %v8295_v31, %v8294_v30 }
 0x447   : > { %8218 = vmatprep.subr.bf16.mxu0 %v11345_v25  ;;  %v8278_v25 = vld [vmem:[%s11621_s30 + $0x50] sm:$0xff] (!%p9532_p9) }
 0x449   : > { %7563 = vmatpush1.bf16.msra.mxu1 %v11340_v46  ;;  %v8279_v46 = vld [vmem:[%s11621_s30 + $0x58] sm:$0xff] (!%p9532_p9) }
 0x44a   : > { %8219 = vmatpush1.bf16.msra.mxu0 %v11343_v42  ;;  %v8296_v42 = vld [vmem:[%s11621_s30 + $0xe0] sm:$0xff] (!%p9532_p9)  ;;  %v9593_v60 = vpack.c.bf16 (!%p9532_p9), %v8279_v46, %v8278_v25 }
 0x44b   : > { %9572 = vmatprep.subr.bf16.mxu0 (!%p9532_p9), %v9571_v1 }
 0x44c   : > { %7565 = vmatmul.mubr.bf16.vlgmr.msra.gmra.mrb[0].mxu1 %v1534_v26  ;;  %v8297_v26 = vld [vmem:[%s11621_s30 + $0xe8] sm:$0xff] (!%p9532_p9) }
 0x44d   : > { %8221 = vmatmul.mubr.bf16.vlgmr.msra.gmra.mrb[0].mxu0 %v1730_v56  ;;  %v9595_v57 = vpack.c.bf16 (!%p9532_p9), %v8297_v26, %v8296_v42 }
 0x44e   : > { %9574 = vmatpush3.bf16.msra.mxu0 (!%p9532_p9), %v9573_v58 }
 0x44f   : > { %9576 = vmatprep.subr.bf16.mxu0 (!%p9532_p9), %v9575_v18 }
 0x452   : > { %9578 = vmatpush3.bf16.msra.mxu0 (!%p9532_p9), %v9577_v8 }
 0x453   : > { %9580 = vmatprep.subr.bf16.mxu0 (!%p9532_p9), %v9579_v9 }
 0x456   : > { %9582 = vmatpush3.bf16.msra.mxu0 (!%p9532_p9), %v9581_v20 }
 0x457   : > { %9584 = vmatprep.subr.bf16.mxu0 (!%p9532_p9), %v9583_v13 }
 0x45a   : > { %9586 = vmatpush3.bf16.msra.mxu0 (!%p9532_p9), %v9585_v11 }
 0x45b   : > { %9588 = vmatprep.subr.bf16.mxu0 (!%p9532_p9), %v9587_v44 }
 0x45e   : > { %9590 = vmatpush3.bf16.msra.mxu0 (!%p9532_p9), %v9589_v34 }
 0x45f   : > { %9592 = vmatprep.subr.bf16.mxu0 (!%p9532_p9), %v9591_v36 }
 0x462   : > { %9594 = vmatpush3.bf16.msra.mxu0 (!%p9532_p9), %v9593_v60 }
 0x463   : > { %9596 = vmatprep.subr.bf16.mxu0 (!%p9532_p9), %v9595_v57 }
 0x51f   : > { %v7566_v35 = vpop.f32.mrb[0].mxu1 }
 0x520   : > { %v8222_v14 = vpop.f32.mrb[0].mxu0  ;;  %v7568_v33 = vpop.f32.mrb[1].mxu1 }
 0x521   : > { %v9603_v21 = vadd.f32 %v8222_v14, %v7566_v35  ;;  %v8224_v37 = vpop.f32.mrb[1].mxu0  ;;  %v7570_v43 = vpop.f32.mrb[2].mxu1  ;;  %v8280_v35 = vld [vmem:[%s11621_s30 + $0x60] sm:$0xff] (!%p9532_p9)  ;;  %v8281_v14 = vld [vmem:[%s11621_s30 + $0x68] sm:$0xff] (!%p9532_p9) }
 0x522   : > { %v9604_v15 = vadd.f32 %v8224_v37, %v7568_v33  ;;  %v8226_v17 = vpop.f32.mrb[2].mxu0  ;;  %v7571_v49 = vpop.f32.mrb[3].mxu1  ;;  %v8299_v33 = vld [vmem:[%s11621_s30 + $0xf8] sm:$0xff] (!%p9532_p9) }
 0x523   : > { %v8227_v45 = vpop.f32.mrb[3].mxu0  ;;  %v8282_v49 = vld [vmem:[%s11621_s30 + $0x70] sm:$0xff] (!%p9532_p9) }
 0x524   : > { %v8231_v51 = vcombine.low %v9603_v21, %v9604_v15  ;;  %8245 = sbr.rel (%p9532_p9) target bundleno = 1555 (0x613), region = 48  ;;  %v8298_v21 = vld [vmem:[%s11621_s30 + $0xf0] sm:$0xff] (!%p9532_p9)  ;;  %v9597_v15 = vpack.c.bf16 (!%p9532_p9), %v8281_v14, %v8280_v35  ;;  %v8283_v45 = vld [vmem:[%s11621_s30 + $0x78] sm:$0xff] (!%p9532_p9) }
 0x525   : > { %v9599_v17 = vpack.c.bf16 (!%p9532_p9), %v8299_v33, %v8298_v21 }
 0x526   : > { %v8238_v54 = vrot.slane %v8231_v51, %v12965_v48  ;;  %9598 = vmatpush3.bf16.msra.mxu0 (!%p9532_p9), %v9597_v15  ;;  %v9601_v51 = vpack.c.bf16 (!%p9532_p9), %v8283_v45, %v8282_v49 }
 0x527   : > { %9600 = vmatprep.subr.bf16.mxu0 (!%p9532_p9), %v9599_v17 }
 0x528   : > { %v8240_v55 = vadd.f32 %v8238_v54, %v300_v52 }
 0x52a   : > { %8241 = vst [vmem:[#allocation2] sm:$0xf] %v8240_v55  ;;  %9602 = vmatpush3.bf16.msra.mxu0 (!%p9532_p9), %v9601_v51 }
 0x531   : > { %v8246_v16 = vld [vmem:[#allocation2] sm:$0xf] }
 0x532   : > { %v8266_v56 = vadd.f32 %v8264_v22, %v8246_v16 }
 0x534   : > { %v8267_v50 = vmax.f32 %v8266_v56, 0.0 }
 0x536   : > { %v8307_v37 = vrot.slane %v8267_v50, %v12965_v48 }
 0x538   : > { %v8308_v43 = vcombine.high %v8307_v37, %v8307_v37 }
 0x53a   : > { %8375 = vmatprep.mubr.f32.mxu0 %v8308_v43 }
 0x53b   : > { %8376 = vmatmul.mubr.f32.vlgmr.msra.gmra.mrb[0].mxu0 %v8307_v37 }
 0x60e   : > { %v9568_v52 = vpop.f32.mrb[0].mxu0 }
 0x60f   : > { %v9569_v54 = vpop.f32.mrb[1].mxu0 }
 0x610   : > { %v9570_v55 = vadd.f32 %v9569_v54, %v9568_v52 }
 0x612   : > { %8381 = vst [vmem:[%s11626_s27] sm:$0x3] %v9570_v55 }
 0x613 PF: > { %s17_s22 = sadd.s32 1, %s11446_s22   ;;  %s13045_s8 = sld [smem:[#allocation6_spill]] }
 0x614   : > { %p14_p11 = scmp.ge.s32.totalorder %s17_s22, 10   ;;  %s13046_s15 = smov %s11422_s16 }
 0x615   : > { %s13047_s16 = smov %s11426_s17  ;;  %s13048_s17 = smov %s11547_s9 }
 0x616   : > { %s13049_s18 = smov %s11438_s20  ;;  %s13050_s19 = smov %s11442_s21 }
 0x617   : > { %s13052_s21 = smov %s13058_s25  ;;  %16 = sbr.rel (!%p14_p11) target bundleno = 5 (0x5), region = 93 }
 0x619   : > { %s13051_s20 = smov %s13045_s8 }
 0x61e   :  { %8401 = vsyncpa [#allocation4], 1 }
 0x61f   :  { %8403 = vsyncpa [#allocation4 + $0x1], 1 }

</bundles_post_ra>
